<compile_context>
chip_gen: v7x
topology: tpu7x:2x2x1
jax: 0.10.0
libtpu: 0.0.40
codegen_flags: <defaults>
</compile_context>

<pallas_src>
import functools

import jax
import jax.numpy as jnp
from jax import lax
from jax.experimental import pallas as pl
from jax.experimental.pallas import tpu as pltpu

EPS = 1e-5                      # nn.BatchNorm2d default eps
LANE = 128                      # channel axis zero-padded to this lane width
COMPUTE_DTYPE = jnp.bfloat16    # MXU input dtype (f32 accumulation, f32 BN math)
ROW_TILE_CAP = 2048             # mem-bound passes: 256-row tiles ~63% of roofline, 1024+ ~85%+


# ----------------------------- sizing helpers -----------------------------

def _round_up(x, m):
    return (x + m - 1) // m * m


def _vmem_limit_bytes():
    """<= ~48 MiB on v7x (64 MiB physical VMEM), ~96 MiB on v5e/v6e (128 MiB)."""
    cap = 64 * 1024 * 1024
    try:
        cap = int(pltpu.get_tpu_info().vmem_capacity_bytes)
    except Exception:
        pass
    return min(96 * 1024 * 1024, cap * 3 // 4)


def _pick_row_tile(n, cap=ROW_TILE_CAP):
    """Largest multiple-of-8 row tile <= cap that divides n."""
    assert n % 8 == 0
    t = min(n, cap)
    t -= t % 8
    while n % t:
        t -= 8
    return max(t, 8)


def _pick_h_tile(h, w, cp, in_itemsize, budget_bytes):
    """Largest divisor th of h whose FULL conv-step VMEM footprint fits budget_bytes."""
    def step_bytes(th):
        xbuf = 2 * (th + 2) * w * cp * in_itemsize      # double-buffered halo band
        band = 3 * (th + 2) * w * cp * 2                # bf16 band value + shifted-column temps
        cols = 2 * th * w * 9 * cp * 2                  # im2col scratch + relayout temporaries
        acc = th * w * cp * 4                           # f32 GEMM result
        yout = 2 * th * w * cp * 4                      # double-buffered y output block
        wres = 2 * 9 * cp * cp * 2                      # resident bf16 weights
        return xbuf + band + cols + acc + yout + wres

    cands = [th for th in range(1, h + 1)
             if h % th == 0 and (th * w) % 8 == 0 and step_bytes(th) <= budget_bytes]
    assert cands, "no valid H band: need a divisor th of H with (th*W) % 8 == 0 that fits VMEM"
    small = [th for th in cands if th <= max(h // 2, 1)]   # prefer >= 2 bands so DMA overlaps compute
    return max(small) if small else max(cands)


# ----------------------------- Pallas kernels -----------------------------

def _conv1x1_kernel(x_ref, w_ref, b_ref, o_ref):
    # x_ref: (tn, Cp) f32, w_ref: (Cp, Cp) bf16, b_ref: (1, Cp) f32
    y = jnp.dot(x_ref[...].astype(COMPUTE_DTYPE), w_ref[...],
                preferred_element_type=jnp.float32)
    o_ref[...] = y + b_ref[...]


def _bn_relu_kernel(y_ref, scale_ref, shift_ref, x1_ref):
    # x1 = relu(bn(y)); used only on the last CBR of RCNN[0] (its residual sum is dead)
    x1_ref[...] = jnp.maximum(y_ref[...] * scale_ref[...] + shift_ref[...], 0.0)


def _bn_relu_add_kernel(y_ref, res_ref, scale_ref, shift_ref, s_ref):
    # s = res + relu(bn(y)); s_ref dtype is bf16 for intermediates, f32 for the block output
    x1 = jnp.maximum(y_ref[...] * scale_ref[...] + shift_ref[...], 0.0)
    s_ref[...] = (res_ref[...] + x1).astype(s_ref.dtype)


def _conv3x3_stats_kernel(x_hbm, w_ref, y_ref, st_ref, xbuf, cols, sem, *,
                          th, w_img, h_img, cp, n_h, bands_per_prog, nsplit):
    # x_hbm: (B, H, W, Cp) in HBM (memory_space=ANY), un-padded; halo handled here.
    # w_ref: (9*Cp, Cp) bf16 resident in VMEM.
    # y_ref: (th*W, Cp) f32 conv output band; st_ref: (1, 2, Cp) [sum, sum_sq].
    # xbuf:  VMEM (2, th+2, W, Cp) double-buffered halo band; cols: (th*W, 9*Cp) bf16.
    g = pl.program_id(0)
    i = pl.program_id(1)
    if nsplit == 1:
        b = g
        band0 = jnp.int32(0)
    else:
        b = g // nsplit
        band0 = (g % nsplit) * bands_per_prog
    band = band0 + i
    slot = lax.rem(i, 2)

    def copies(bd, sl):
        # All destinations start at offset 0 of the tiled (W, Cp) dims -> aligned DMA windows.
        main = pltpu.make_async_copy(
            x_hbm.at[b, pl.ds(jnp.minimum(bd * th, h_img - th), th), :, :],
            xbuf.at[sl, pl.ds(1, th), :, :], sem.at[sl, 0])
        top = pltpu.make_async_copy(
            x_hbm.at[b, pl.ds(jnp.maximum(bd * th - 1, 0), 1), :, :],
            xbuf.at[sl, pl.ds(0, 1), :, :], sem.at[sl, 1])
        bot = pltpu.make_async_copy(
            x_hbm.at[b, pl.ds(jnp.minimum(bd * th + th, h_img - 1), 1), :, :],
            xbuf.at[sl, pl.ds(th + 1, 1), :, :], sem.at[sl, 2])
        return main, top, bot

    def start_band(bd, sl):
        main, top, bot = copies(bd, sl)
        main.start()

        @pl.when(bd > 0)
        def _():
            top.start()

        @pl.when(bd < n_h - 1)
        def _():
            bot.start()

    def wait_band(bd, sl):
        main, top, bot = copies(bd, sl)
        main.wait()

        @pl.when(bd > 0)
        def _():
            top.wait()

        @pl.when(bd < n_h - 1)
        def _():
            bot.wait()

    # Prime this program's first band.  (No cross-image prefetch: it would need the
    # "first grid step on this TensorCore", which is ill-defined once the parallel
    # batch axis is sharded across cores on v7x; one cold DMA per image instead.)
    @pl.when(i == 0)
    def _():
        start_band(band, 0)

    wait_band(band, slot)

    # Prefetch the next band of this program into the other slot.
    @pl.when(i + 1 < bands_per_prog)
    def _():
        start_band(band + 1, 1 - slot)

    # Zero the halo row that has no source at the image top / bottom.  The slot holding
    # band 0 is always slot 0 (i == 0); the slot holding the last band is static too.
    zrow = jnp.zeros((1, w_img, cp), xbuf.dtype)
    slot_last = (bands_per_prog - 1) % 2

    @pl.when(band == 0)
    def _():
        xbuf[0, 0:1, :, :] = zrow

    @pl.when(band == n_h - 1)
    def _():
        xbuf[slot_last, th + 1:th + 2, :, :] = zrow

    # In-VMEM im2col: write the 9 shifted patches into the cols scratch at static,
    # lane-aligned column offsets (no concatenate of a (th*W, 9*Cp) temp), then ONE
    # K = 9*Cp bf16 GEMM.  Left/right column taps get their SAME-padding zero column here.
    xband = xbuf[slot].astype(COMPUTE_DTYPE)          # (th+2, W, Cp); no-op cast for bf16 inputs
    zcol = jnp.zeros((th, 1, cp), COMPUTE_DTYPE)
    for kh in range(3):
        rows = xband[kh:kh + th]                      # (th, W, Cp)
        left = jnp.concatenate([zcol, rows[:, :w_img - 1, :]], axis=1)
        right = jnp.concatenate([rows[:, 1:, :], zcol], axis=1)
        cols[:, (3 * kh + 0) * cp:(3 * kh + 1) * cp] = left.reshape(th * w_img, cp)
        cols[:, (3 * kh + 1) * cp:(3 * kh + 2) * cp] = rows.reshape(th * w_img, cp)
        cols[:, (3 * kh + 2) * cp:(3 * kh + 3) * cp] = right.reshape(th * w_img, cp)

    acc = jnp.dot(cols[...], w_ref[...], preferred_element_type=jnp.float32)
    y_ref[...] = acc

    # Per-band partial sums for the grid-level BatchNorm reduction (minimal f32 VPU work).
    # E[x^2]-E[x]^2 with clamping is fine for random-init weights; use a two-pass
    # reduction instead if this is ever driven by trained weights with large means.
    s1 = jnp.sum(acc, axis=0, keepdims=True)
    s2 = jnp.sum(acc * acc, axis=0, keepdims=True)
    st_ref[...] = jnp.concatenate([s1, s2], axis=0).reshape(1, 2, cp)


# ----------------------------- pallas_call wrappers -----------------------------

def conv1x1(x_flat, w, b, vmem_limit):
    n, cp = x_flat.shape
    tn = _pick_row_tile(n)
    return pl.pallas_call(
        _conv1x1_kernel,
        out_shape=jax.ShapeDtypeStruct((n, cp), jnp.float32),
        grid=(n // tn,),
        in_specs=[
            pl.BlockSpec((tn, cp), lambda i: (i, 0)),
            pl.BlockSpec((cp, cp), lambda i: (0, 0)),
            pl.BlockSpec((1, cp), lambda i: (0, 0)),
        ],
        out_specs=pl.BlockSpec((tn, cp), lambda i: (i, 0)),
        compiler_params=pltpu.CompilerParams(
            dimension_semantics=("parallel",),
            vmem_limit_bytes=vmem_limit),
    )(x_flat, w, b)


def conv3x3_stats(x_flat, bhwc, w_mat, vmem_limit):
    B, H, W, cp = bhwc
    n = B * H * W
    th = _pick_h_tile(H, W, cp, x_flat.dtype.itemsize, vmem_limit)
    n_h = H // th
    # v7x has 2 TensorCores: keep the parallel grid axis >= 2 wide even at B == 1.
    nsplit = 2 if (B == 1 and n_h % 2 == 0) else 1
    bands_per_prog = n_h // nsplit
    n_prog = B * nsplit

    x4 = x_flat.reshape(B, H, W, cp)      # free reshape; no jnp.pad HBM copy (halo in-kernel)
    kern = functools.partial(
        _conv3x3_stats_kernel, th=th, w_img=W, h_img=H, cp=cp,
        n_h=n_h, bands_per_prog=bands_per_prog, nsplit=nsplit)

    flops = 2 * n * (9 * cp) * cp
    bytes_accessed = (x4.size * x4.dtype.itemsize + w_mat.size * 2
                      + n * cp * 4 + B * n_h * 2 * cp * 4)

    y, st = pl.pallas_call(
        kern,
        out_shape=(jax.ShapeDtypeStruct((n, cp), jnp.float32),
                   jax.ShapeDtypeStruct((B * n_h, 2, cp), jnp.float32)),
        grid=(n_prog, bands_per_prog),
        in_specs=[
            pl.BlockSpec(memory_space=pl.ANY),                   # raw HBM ref, manual halo DMA
            pl.BlockSpec((9 * cp, cp), lambda g, i: (0, 0)),     # weights resident in VMEM
        ],
        out_specs=(
            pl.BlockSpec((th * W, cp), lambda g, i: (g * bands_per_prog + i, 0)),
            pl.BlockSpec((1, 2, cp), lambda g, i: (g * bands_per_prog + i, 0, 0)),
        ),
        scratch_shapes=[
            pltpu.VMEM((2, th + 2, W, cp), x_flat.dtype),        # double-buffered halo band
            pltpu.VMEM((th * W, 9 * cp), COMPUTE_DTYPE),         # im2col scratch
            pltpu.SemaphoreType.DMA((2, 3)),                     # (slot, {main, top, bottom})
        ],
        compiler_params=pltpu.CompilerParams(
            dimension_semantics=("parallel", "arbitrary"),
            vmem_limit_bytes=vmem_limit),
        cost_estimate=pl.CostEstimate(flops=flops, transcendentals=0,
                                      bytes_accessed=bytes_accessed),
    )(x4, w_mat)
    return y, st


def bn_relu(y, scale, shift, vmem_limit):
    n, cp = y.shape
    tn = _pick_row_tile(n)
    row = pl.BlockSpec((tn, cp), lambda i: (i, 0))
    vec = pl.BlockSpec((1, cp), lambda i: (0, 0))
    return pl.pallas_call(
        _bn_relu_kernel,
        out_shape=jax.ShapeDtypeStruct((n, cp), jnp.float32),
        grid=(n // tn,),
        in_specs=[row, vec, vec],
        out_specs=row,
        compiler_params=pltpu.CompilerParams(
            dimension_semantics=("parallel",),
            vmem_limit_bytes=vmem_limit),
    )(y, scale, shift)


def bn_relu_add(y, res, scale, shift, out_dtype, vmem_limit):
    n, cp = y.shape
    tn = _pick_row_tile(n)
    row = pl.BlockSpec((tn, cp), lambda i: (i, 0))
    vec = pl.BlockSpec((1, cp), lambda i: (0, 0))
    return pl.pallas_call(
        _bn_relu_add_kernel,
        out_shape=jax.ShapeDtypeStruct((n, cp), out_dtype),
        grid=(n // tn,),
        in_specs=[row, row, vec, vec],
        out_specs=row,
        compiler_params=pltpu.CompilerParams(
            dimension_semantics=("parallel",),
            vmem_limit_bytes=vmem_limit),
    )(y, res, scale, shift)


# ----------------------------- model glue -----------------------------

def conv_bn_relu(x_flat, bhwc, w_mat, gamma_p, beta_p, vmem_limit, *, res_flat, out_dtype):
    """relu(batchnorm(conv3x3(x))) [+ res], full-batch BN statistics."""
    B, H, W, cp = bhwc
    n = B * H * W
    y, st = conv3x3_stats(x_flat, bhwc, w_mat, vmem_limit)
    ssum = jnp.sum(st[:, 0, :], axis=0)
    ssq = jnp.sum(st[:, 1, :], axis=0)
    mean = ssum / n
    var = jnp.maximum(ssq / n - mean * mean, 0.0)       # biased (training-mode) variance
    inv = lax.rsqrt(var + EPS)
    scale = (gamma_p * inv).reshape(1, cp)
    shift = (beta_p - mean * gamma_p * inv).reshape(1, cp)
    if res_flat is None:
        return bn_relu(y, scale, shift, vmem_limit)                        # x1 only (f32)
    return bn_relu_add(y, res_flat, scale, shift, out_dtype, vmem_limit)   # s = res + x1


def recurrent_block(xin_flat, bhwc, w_mat, gamma_p, beta_p, t, vmem_limit, *, final_res=None):
    # matches torch Recurrent_block:  x1 = CBR(x);  for i in range(t): x1 = CBR(x + x1)
    assert t >= 1
    s = conv_bn_relu(xin_flat, bhwc, w_mat, gamma_p, beta_p, vmem_limit,
                     res_flat=xin_flat, out_dtype=COMPUTE_DTYPE)
    for _ in range(t - 1):
        s = conv_bn_relu(s, bhwc, w_mat, gamma_p, beta_p, vmem_limit,
                         res_flat=xin_flat, out_dtype=COMPUTE_DTYPE)
    if final_res is None:            # RCNN[0]: only x1 of the last CBR is consumed
        return conv_bn_relu(s, bhwc, w_mat, gamma_p, beta_p, vmem_limit,
                            res_flat=None, out_dtype=jnp.float32)
    # RCNN[1]: fuse the final residual add (xf + x1) into the last BN pass
    return conv_bn_relu(s, bhwc, w_mat, gamma_p, beta_p, vmem_limit,
                        res_flat=final_res, out_dtype=jnp.float32)


def rrcnn_block(x_nchw, params):
    B, cin, H, W = x_nchw.shape
    cout = params["w1"].shape[1]
    t = params["t"]
    # Lane-dense channel padding.  (If the real model has cout in (128, 256], this
    # naturally pads to 256 so one GEMM fills the full 256-wide MXU on v6e/v7x.)
    cp = max(LANE, _round_up(max(cin, cout), LANE))
    vmem_limit = _vmem_limit_bytes()

    x = jnp.transpose(x_nchw, (0, 2, 3, 1)).astype(jnp.float32)          # NCHW -> NHWC
    x = jnp.pad(x, ((0, 0), (0, 0), (0, 0), (0, cp - cin)))
    x_flat = x.reshape(B * H * W, cp)

    # Conv_1x1 (channel-padded, bf16 MXU inputs, f32 output kept for the residuals)
    w1 = jnp.zeros((cp, cp), jnp.float32).at[:cin, :cout].set(params["w1"])
    b1 = jnp.zeros((1, cp), jnp.float32).at[0, :cout].set(params["b1"])
    xf = conv1x1(x_flat, w1.astype(COMPUTE_DTYPE), b1, vmem_limit)

    bhwc = (B, H, W, cp)

    def prep_rb(p):
        w_hwio, _bias, g, bt = p          # conv bias exactly cancelled by BN mean-sub
        wpad = jnp.zeros((3, 3, cp, cp), jnp.float32).at[:, :, :cout, :cout].set(w_hwio)
        w_mat = wpad.reshape(9 * cp, cp).astype(COMPUTE_DTYPE)
        gp = jnp.zeros((cp,), jnp.float32).at[:cout].set(g)   # gamma padded with 0 -> padded lanes stay 0
        bp = jnp.zeros((cp,), jnp.float32).at[:cout].set(bt)
        return w_mat, gp, bp

    w_m1, g1, be1 = prep_rb(params["rb1"])
    w_m2, g2, be2 = prep_rb(params["rb2"])

    x1 = recurrent_block(xf, bhwc, w_m1, g1, be1, t, vmem_limit)                    # RCNN[0]
    out = recurrent_block(x1, bhwc, w_m2, g2, be2, t, vmem_limit, final_res=xf)     # RCNN[1] + final add

    out = out.reshape(B, H, W, cp)[:, :, :, :cout]
    return jnp.transpose(out, (0, 3, 1, 2))                                         # -> NCHW


# ----------------------------- pure-JAX reference -----------------------------

def _cbr_ref(x, w_hwio, b, g, beta):
    y = lax.conv_general_dilated(
        x.astype(COMPUTE_DTYPE), w_hwio.astype(COMPUTE_DTYPE), (1, 1), "SAME",
        dimension_numbers=("NHWC", "HWIO", "NHWC"),
        preferred_element_type=jnp.float32) + b
    mean = jnp.mean(y, axis=(0, 1, 2), keepdims=True)
    var = jnp.mean((y - mean) ** 2, axis=(0, 1, 2), keepdims=True)
    return jnp.maximum((y - mean) * lax.rsqrt(var + EPS) * g + beta, 0.0)


def rrcnn_ref(x_nchw, params):
    x = jnp.transpose(x_nchw, (0, 2, 3, 1)).astype(jnp.float32)
    B, H, W, cin = x.shape
    cout = params["w1"].shape[1]
    xf = (jnp.dot(x.reshape(-1, cin).astype(COMPUTE_DTYPE),
                  params["w1"].astype(COMPUTE_DTYPE),
                  preferred_element_type=jnp.float32)
          + params["b1"]).reshape(B, H, W, cout)

    def rblock(xin, p, t):
        x1 = None
        for i in range(t):
            if i == 0:
                x1 = _cbr_ref(xin, *p)
            x1 = _cbr_ref(xin + x1, *p)
        return x1

    x1 = rblock(xf, params["rb1"], params["t"])
    x1 = rblock(x1, params["rb2"], params["t"])
    return jnp.transpose(xf + x1, (0, 3, 1, 2))


# ----------------------------- parameter init -----------------------------

def init_params(key, ch_in, ch_out, t=2):
    ks = jax.random.split(key, 6)

    def u(k, shape, fan_in):
        bound = 1.0 / jnp.sqrt(fan_in)
        return jax.random.uniform(k, shape, jnp.float32, -bound, bound)

    def rb(kw, kb):
        return (u(kw, (3, 3, ch_out, ch_out), 9 * ch_out),   # conv3x3 weight (HWIO)
                u(kb, (ch_out,), 9 * ch_out),                # conv3x3 bias (reference only)
                jnp.ones((ch_out,), jnp.float32),            # BN gamma
                jnp.zeros((ch_out,), jnp.float32))           # BN beta

    return {
        "t": t,
        "w1": u(ks[0], (ch_in, ch_out), ch_in),              # Conv_1x1 weight [cin, cout]
        "b1": u(ks[1], (ch_out,), ch_in),                    # Conv_1x1 bias
        "rb1": rb(ks[2], ks[3]),
        "rb2": rb(ks[4], ks[5]),
    }


if __name__ == "__main__":
    key = jax.random.PRNGKey(0)
    kx, kp = jax.random.split(key)
    B, ch_in, ch_out, H, W = 2, 4, 8, 16, 16
    x = jax.random.normal(kx, (B, ch_in, H, W), jnp.float32)
    params = init_params(kp, ch_in, ch_out, t=2)

    out = jax.jit(lambda xx: rrcnn_block(xx, params))(x)
    out = jax.block_until_ready(out)
    assert out.shape == (B, ch_out, H, W)

    ref = jax.jit(lambda xx: rrcnn_ref(xx, params))(x)
    ref = jax.block_until_ready(ref)

    err = float(jnp.max(jnp.abs(out - ref)))
    # Kernel and reference quantize to bf16 at the same points but are not
    # bit-identical in f32 accumulation order, so allow a bf16-scale tolerance.
    tol = 1e-2 if COMPUTE_DTYPE == jnp.bfloat16 else 1e-4
    if not err < tol:
        raise AssertionError(f"mismatch vs reference: max abs err {err}")
    print("KERNEL_OK")
</pallas_src>

<mosaic_0001>
module attributes {stable_mosaic.version = 11 : i64} {
  func.func @_conv1x1_kernel(%arg0: i32, %arg1: memref<512x128xf32, #tpu.memory_space<vmem>>, %arg2: memref<128x128xbf16, #tpu.memory_space<vmem>>, %arg3: memref<1x128xf32, #tpu.memory_space<vmem>>, %arg4: memref<512x128xf32, #tpu.memory_space<vmem>>) attributes {dimension_semantics = [#tpu.dimension_semantics<parallel>], iteration_bounds = array<i64: 1>, scalar_prefetch = 0 : i64, scratch_operands = 0 : i64, tpu.core_type = #tpu.core_type<tc>, window_params = [{transform_indices = @transform_0, window_bounds = array<i64: 512, 128>}, {pipeline_mode = #tpu.pipeline_mode<synchronous>, transform_indices = @transform_1, window_bounds = array<i64: 128, 128>}, {pipeline_mode = #tpu.pipeline_mode<synchronous>, transform_indices = @transform_2, window_bounds = array<i64: 1, 128>}, {transform_indices = @transform_3, window_bounds = array<i64: 512, 128>}]} {
    %c0 = arith.constant 0 : index
    %c0_0 = arith.constant 0 : index
    %0 = vector.load %arg1[%c0, %c0_0] : memref<512x128xf32, #tpu.memory_space<vmem>>, vector<512x128xf32>
    %1 = arith.truncf %0 : vector<512x128xf32> to vector<512x128xbf16>
    %c0_1 = arith.constant 0 : index
    %c0_2 = arith.constant 0 : index
    %2 = vector.load %arg2[%c0_1, %c0_2] : memref<128x128xbf16, #tpu.memory_space<vmem>>, vector<128x128xbf16>
    %cst = arith.constant dense<0.000000e+00> : vector<512x128xf32>
    %3 = tpu.matmul %1, %2, %cst {dimension_numbers = #tpu.dot_dimension_numbers<[1], [0], [0], [1], [0, 0, 1, 1], [], []>} : vector<512x128xbf16>, vector<128x128xbf16>, vector<512x128xf32> -> vector<512x128xf32>
    %c0_3 = arith.constant 0 : index
    %c0_4 = arith.constant 0 : index
    %4 = vector.load %arg3[%c0_3, %c0_4] : memref<1x128xf32, #tpu.memory_space<vmem>>, vector<1x128xf32>
    %5 = vector.broadcast %4 : vector<1x128xf32> to vector<512x128xf32>
    %6 = arith.addf %3, %5 : vector<512x128xf32>
    %c0_5 = arith.constant 0 : index
    %c0_6 = arith.constant 0 : index
    %7 = vector.load %arg4[%c0_5, %c0_6] : memref<512x128xf32, #tpu.memory_space<vmem>>, vector<512x128xf32>
    tpu.vector_store %arg4[%c0_5, %c0_6], %6 {strides = array<i32>} : memref<512x128xf32, #tpu.memory_space<vmem>>, vector<512x128xf32>,
    return
  }
  func.func @transform_0(%arg0: i32) -> (i32, i32) {
    %c0_i32 = arith.constant 0 : i32
    %c0_i32_0 = arith.constant 0 : i32
    return %arg0, %c0_i32 : i32, i32
  }
  func.func @transform_1(%arg0: i32) -> (i32, i32) {
    %c0_i32 = arith.constant 0 : i32
    %c0_i32_0 = arith.constant 0 : i32
    %c0_i32_1 = arith.constant 0 : i32
    return %c0_i32, %c0_i32_0 : i32, i32
  }
  func.func @transform_2(%arg0: i32) -> (i32, i32) {
    %c0_i32 = arith.constant 0 : i32
    %c0_i32_0 = arith.constant 0 : i32
    %c0_i32_1 = arith.constant 0 : i32
    return %c0_i32, %c0_i32_0 : i32, i32
  }
  func.func @transform_3(%arg0: i32) -> (i32, i32) {
    %c0_i32 = arith.constant 0 : i32
    %c0_i32_0 = arith.constant 0 : i32
    return %arg0, %c0_i32 : i32, i32
  }
}

module attributes {stable_mosaic.version = 11 : i64} {
  func.func @_conv3x3_stats_kernel(%arg0: i32, %arg1: i32, %arg2: memref<2x16x16x128xf32, #tpu.memory_space<any>>, %arg3: memref<1152x128xbf16, #tpu.memory_space<vmem>>, %arg4: memref<128x128xf32, #tpu.memory_space<vmem>>, %arg5: memref<1x2x128xf32, #tpu.memory_space<vmem>>, %arg6: memref<2x10x16x128xf32, #tpu.memory_space<vmem>>, %arg7: memref<128x1152xbf16, #tpu.memory_space<vmem>>, %arg8: memref<2x3x!tpu.dma_semaphore, #tpu.memory_space<semaphore_mem>>) attributes {dimension_semantics = [#tpu.dimension_semantics<parallel>, #tpu.dimension_semantics<arbitrary>], iteration_bounds = array<i64: 2, 2>, scalar_prefetch = 0 : i64, scratch_operands = 3 : i64, tpu.core_type = #tpu.core_type<tc>, window_params = [{}, {pipeline_mode = #tpu.pipeline_mode<synchronous>, transform_indices = @transform_1, window_bounds = array<i64: 1152, 128>}, {transform_indices = @transform_2, window_bounds = array<i64: 128, 128>}, {transform_indices = @transform_3, window_bounds = array<i64: 1, 2, 128>}]} {
    %c0_i32 = arith.constant 0 : i32
    %0 = arith.addi %c0_i32, %arg1 : i32
    %c2_i32 = arith.constant 2 : i32
    %1 = arith.remsi %arg1, %c2_i32 : i32
    %c0_i32_0 = arith.constant 0 : i32
    %2 = arith.cmpi eq, %arg1, %c0_i32_0 : i32
    %3 = arith.extui %2 : i1 to i32
    %c0_i32_1 = arith.constant 0 : i32
    %4 = arith.cmpi ne, %3, %c0_i32_1 : i32
    scf.if %4 {
      %c8_i32_51 = arith.constant 8 : i32
      %86 = arith.muli %0, %c8_i32_51 : i32
      %c8_i32_52 = arith.constant 8 : i32
      %87 = arith.minsi %86, %c8_i32_52 : i32
      %c8_i32_53 = arith.constant 8 : i32
      %88 = arith.muli %0, %c8_i32_53 : i32
      %c1_i32_54 = arith.constant 1 : i32
      %89 = arith.subi %88, %c1_i32_54 : i32
      %c0_i32_55 = arith.constant 0 : i32
      %90 = arith.maxsi %89, %c0_i32_55 : i32
      %c8_i32_56 = arith.constant 8 : i32
      %91 = arith.muli %0, %c8_i32_56 : i32
      %c8_i32_57 = arith.constant 8 : i32
      %92 = arith.addi %91, %c8_i32_57 : i32
      %c15_i32_58 = arith.constant 15 : i32
      %93 = arith.minsi %92, %c15_i32_58 : i32
      %c0_i32_59 = arith.constant 0 : i32
      %c0_i32_60 = arith.constant 0 : i32
      %c0_i32_61 = arith.constant 0 : i32
      %c0_i32_62 = arith.constant 0 : i32
      %c0_i32_63 = arith.constant 0 : i32
      %94 = tpu.memref_slice %arg2[%arg0, %87, %c0_i32_62, %c0_i32_63] : memref<2x16x16x128xf32, #tpu.memory_space<any>> -> memref<1x8x16x128xf32, #tpu.memory_space<any>>
      %95 = tpu.memref_squeeze %94 : memref<1x8x16x128xf32, #tpu.memory_space<any>> -> memref<8x16x128xf32, #tpu.memory_space<any>>
      %c1_i32_64 = arith.constant 1 : i32
      %c0_i32_65 = arith.constant 0 : i32
      %c0_i32_66 = arith.constant 0 : i32
      %96 = tpu.memref_slice %arg6[%c0_i32_59, %c1_i32_64, %c0_i32_65, %c0_i32_66] : memref<2x10x16x128xf32, #tpu.memory_space<vmem>> -> memref<1x8x16x128xf32, #tpu.memory_space<vmem>>
      %97 = tpu.memref_squeeze %96 : memref<1x8x16x128xf32, #tpu.memory_space<vmem>> -> memref<8x16x128xf32, #tpu.memory_space<vmem>>
      %98 = tpu.memref_slice %arg8[%c0_i32_60, %c0_i32_61] : memref<2x3x!tpu.dma_semaphore, #tpu.memory_space<semaphore_mem>> -> memref<1x1x!tpu.dma_semaphore, #tpu.memory_space<semaphore_mem>>
      %99 = tpu.memref_squeeze %98 : memref<1x1x!tpu.dma_semaphore, #tpu.memory_space<semaphore_mem>> -> memref<!tpu.dma_semaphore, #tpu.memory_space<semaphore_mem>>
      tpu.enqueue_dma source(%95 : memref<8x16x128xf32, #tpu.memory_space<any>>) target(%97 : memref<8x16x128xf32, #tpu.memory_space<vmem>>) target_semaphore(%99 : memref<!tpu.dma_semaphore, #tpu.memory_space<semaphore_mem>>)
      %c0_i32_67 = arith.constant 0 : i32
      %100 = arith.cmpi sgt, %0, %c0_i32_67 : i32
      %101 = arith.extui %100 : i1 to i32
      %c0_i32_68 = arith.constant 0 : i32
      %c0_i32_69 = arith.constant 0 : i32
      %c1_i32_70 = arith.constant 1 : i32
      %c0_i32_71 = arith.constant 0 : i32
      %102 = arith.cmpi ne, %101, %c0_i32_71 : i32
      scf.if %102 {
        %c0_i32_77 = arith.constant 0 : i32
        %c0_i32_78 = arith.constant 0 : i32
        %106 = tpu.memref_slice %arg2[%arg0, %90, %c0_i32_77, %c0_i32_78] : memref<2x16x16x128xf32, #tpu.memory_space<any>> -> memref<1x1x16x128xf32, #tpu.memory_space<any>>
        %107 = tpu.memref_squeeze %106 : memref<1x1x16x128xf32, #tpu.memory_space<any>> -> memref<1x16x128xf32, #tpu.memory_space<any>>
        %c0_i32_79 = arith.constant 0 : i32
        %c0_i32_80 = arith.constant 0 : i32
        %c0_i32_81 = arith.constant 0 : i32
        %108 = tpu.memref_slice %arg6[%c0_i32_68, %c0_i32_79, %c0_i32_80, %c0_i32_81] : memref<2x10x16x128xf32, #tpu.memory_space<vmem>> -> memref<1x1x16x128xf32, #tpu.memory_space<vmem>>
        %109 = tpu.memref_squeeze %108 : memref<1x1x16x128xf32, #tpu.memory_space<vmem>> -> memref<1x16x128xf32, #tpu.memory_space<vmem>>
        %110 = tpu.memref_slice %arg8[%c0_i32_69, %c1_i32_70] : memref<2x3x!tpu.dma_semaphore, #tpu.memory_space<semaphore_mem>> -> memref<1x1x!tpu.dma_semaphore, #tpu.memory_space<semaphore_mem>>
        %111 = tpu.memref_squeeze %110 : memref<1x1x!tpu.dma_semaphore, #tpu.memory_space<semaphore_mem>> -> memref<!tpu.dma_semaphore, #tpu.memory_space<semaphore_mem>>
        tpu.enqueue_dma source(%107 : memref<1x16x128xf32, #tpu.memory_space<any>>) target(%109 : memref<1x16x128xf32, #tpu.memory_space<vmem>>) target_semaphore(%111 : memref<!tpu.dma_semaphore, #tpu.memory_space<semaphore_mem>>)
      } else {
      }
      %c1_i32_72 = arith.constant 1 : i32
      %103 = arith.cmpi slt, %0, %c1_i32_72 : i32
      %104 = arith.extui %103 : i1 to i32
      %c0_i32_73 = arith.constant 0 : i32
      %c0_i32_74 = arith.constant 0 : i32
      %c2_i32_75 = arith.constant 2 : i32
      %c0_i32_76 = arith.constant 0 : i32
      %105 = arith.cmpi ne, %104, %c0_i32_76 : i32
      scf.if %105 {
        %c0_i32_77 = arith.constant 0 : i32
        %c0_i32_78 = arith.constant 0 : i32
        %106 = tpu.memref_slice %arg2[%arg0, %93, %c0_i32_77, %c0_i32_78] : memref<2x16x16x128xf32, #tpu.memory_space<any>> -> memref<1x1x16x128xf32, #tpu.memory_space<any>>
        %107 = tpu.memref_squeeze %106 : memref<1x1x16x128xf32, #tpu.memory_space<any>> -> memref<1x16x128xf32, #tpu.memory_space<any>>
        %c9_i32 = arith.constant 9 : i32
        %c0_i32_79 = arith.constant 0 : i32
        %c0_i32_80 = arith.constant 0 : i32
        %108 = tpu.memref_slice %arg6[%c0_i32_73, %c9_i32, %c0_i32_79, %c0_i32_80] : memref<2x10x16x128xf32, #tpu.memory_space<vmem>> -> memref<1x1x16x128xf32, #tpu.memory_space<vmem>>
        %109 = tpu.memref_squeeze %108 : memref<1x1x16x128xf32, #tpu.memory_space<vmem>> -> memref<1x16x128xf32, #tpu.memory_space<vmem>>
        %110 = tpu.memref_slice %arg8[%c0_i32_74, %c2_i32_75] : memref<2x3x!tpu.dma_semaphore, #tpu.memory_space<semaphore_mem>> -> memref<1x1x!tpu.dma_semaphore, #tpu.memory_space<semaphore_mem>>
        %111 = tpu.memref_squeeze %110 : memref<1x1x!tpu.dma_semaphore, #tpu.memory_space<semaphore_mem>> -> memref<!tpu.dma_semaphore, #tpu.memory_space<semaphore_mem>>
        tpu.enqueue_dma source(%107 : memref<1x16x128xf32, #tpu.memory_space<any>>) target(%109 : memref<1x16x128xf32, #tpu.memory_space<vmem>>) target_semaphore(%111 : memref<!tpu.dma_semaphore, #tpu.memory_space<semaphore_mem>>)
      } else {
      }
    } else {
    }
    %c8_i32 = arith.constant 8 : i32
    %5 = arith.muli %0, %c8_i32 : i32
    %c8_i32_2 = arith.constant 8 : i32
    %6 = arith.minsi %5, %c8_i32_2 : i32
    %c8_i32_3 = arith.constant 8 : i32
    %7 = arith.muli %0, %c8_i32_3 : i32
    %c1_i32 = arith.constant 1 : i32
    %8 = arith.subi %7, %c1_i32 : i32
    %c0_i32_4 = arith.constant 0 : i32
    %9 = arith.maxsi %8, %c0_i32_4 : i32
    %c8_i32_5 = arith.constant 8 : i32
    %10 = arith.muli %0, %c8_i32_5 : i32
    %c8_i32_6 = arith.constant 8 : i32
    %11 = arith.addi %10, %c8_i32_6 : i32
    %c15_i32 = arith.constant 15 : i32
    %12 = arith.minsi %11, %c15_i32 : i32
    %c0_i32_7 = arith.constant 0 : i32
    %c0_i32_8 = arith.constant 0 : i32
    %c0_i32_9 = arith.constant 0 : i32
    %13 = tpu.memref_slice %arg2[%arg0, %6, %c0_i32_8, %c0_i32_9] : memref<2x16x16x128xf32, #tpu.memory_space<any>> -> memref<1x8x16x128xf32, #tpu.memory_space<any>>
    %14 = tpu.memref_squeeze %13 : memref<1x8x16x128xf32, #tpu.memory_space<any>> -> memref<8x16x128xf32, #tpu.memory_space<any>>
    %c1_i32_10 = arith.constant 1 : i32
    %c0_i32_11 = arith.constant 0 : i32
    %c0_i32_12 = arith.constant 0 : i32
    %15 = tpu.memref_slice %arg6[%1, %c1_i32_10, %c0_i32_11, %c0_i32_12] : memref<2x10x16x128xf32, #tpu.memory_space<vmem>> -> memref<1x8x16x128xf32, #tpu.memory_space<vmem>>
    %16 = tpu.memref_squeeze %15 : memref<1x8x16x128xf32, #tpu.memory_space<vmem>> -> memref<8x16x128xf32, #tpu.memory_space<vmem>>
    %17 = tpu.memref_slice %arg8[%1, %c0_i32_7] : memref<2x3x!tpu.dma_semaphore, #tpu.memory_space<semaphore_mem>> -> memref<1x1x!tpu.dma_semaphore, #tpu.memory_space<semaphore_mem>>
    %18 = tpu.memref_squeeze %17 : memref<1x1x!tpu.dma_semaphore, #tpu.memory_space<semaphore_mem>> -> memref<!tpu.dma_semaphore, #tpu.memory_space<semaphore_mem>>
    tpu.wait_dma2 semaphore(%18 : memref<!tpu.dma_semaphore, #tpu.memory_space<semaphore_mem>>) src(%14 : memref<8x16x128xf32, #tpu.memory_space<any>>) dst(%16 : memref<8x16x128xf32, #tpu.memory_space<vmem>>)
    %c0_i32_13 = arith.constant 0 : i32
    %19 = arith.cmpi sgt, %0, %c0_i32_13 : i32
    %20 = arith.extui %19 : i1 to i32
    %c1_i32_14 = arith.constant 1 : i32
    %c0_i32_15 = arith.constant 0 : i32
    %21 = arith.cmpi ne, %20, %c0_i32_15 : i32
    scf.if %21 {
      %c0_i32_51 = arith.constant 0 : i32
      %c0_i32_52 = arith.constant 0 : i32
      %86 = tpu.memref_slice %arg2[%arg0, %9, %c0_i32_51, %c0_i32_52] : memref<2x16x16x128xf32, #tpu.memory_space<any>> -> memref<1x1x16x128xf32, #tpu.memory_space<any>>
      %87 = tpu.memref_squeeze %86 : memref<1x1x16x128xf32, #tpu.memory_space<any>> -> memref<1x16x128xf32, #tpu.memory_space<any>>
      %c0_i32_53 = arith.constant 0 : i32
      %c0_i32_54 = arith.constant 0 : i32
      %c0_i32_55 = arith.constant 0 : i32
      %88 = tpu.memref_slice %arg6[%1, %c0_i32_53, %c0_i32_54, %c0_i32_55] : memref<2x10x16x128xf32, #tpu.memory_space<vmem>> -> memref<1x1x16x128xf32, #tpu.memory_space<vmem>>
      %89 = tpu.memref_squeeze %88 : memref<1x1x16x128xf32, #tpu.memory_space<vmem>> -> memref<1x16x128xf32, #tpu.memory_space<vmem>>
      %90 = tpu.memref_slice %arg8[%1, %c1_i32_14] : memref<2x3x!tpu.dma_semaphore, #tpu.memory_space<semaphore_mem>> -> memref<1x1x!tpu.dma_semaphore, #tpu.memory_space<semaphore_mem>>
      %91 = tpu.memref_squeeze %90 : memref<1x1x!tpu.dma_semaphore, #tpu.memory_space<semaphore_mem>> -> memref<!tpu.dma_semaphore, #tpu.memory_space<semaphore_mem>>
      tpu.wait_dma2 semaphore(%91 : memref<!tpu.dma_semaphore, #tpu.memory_space<semaphore_mem>>) src(%87 : memref<1x16x128xf32, #tpu.memory_space<any>>) dst(%89 : memref<1x16x128xf32, #tpu.memory_space<vmem>>)
    } else {
    }
    %c1_i32_16 = arith.constant 1 : i32
    %22 = arith.cmpi slt, %0, %c1_i32_16 : i32
    %23 = arith.extui %22 : i1 to i32
    %c2_i32_17 = arith.constant 2 : i32
    %c0_i32_18 = arith.constant 0 : i32
    %24 = arith.cmpi ne, %23, %c0_i32_18 : i32
    scf.if %24 {
      %c0_i32_51 = arith.constant 0 : i32
      %c0_i32_52 = arith.constant 0 : i32
      %86 = tpu.memref_slice %arg2[%arg0, %12, %c0_i32_51, %c0_i32_52] : memref<2x16x16x128xf32, #tpu.memory_space<any>> -> memref<1x1x16x128xf32, #tpu.memory_space<any>>
      %87 = tpu.memref_squeeze %86 : memref<1x1x16x128xf32, #tpu.memory_space<any>> -> memref<1x16x128xf32, #tpu.memory_space<any>>
      %c9_i32 = arith.constant 9 : i32
      %c0_i32_53 = arith.constant 0 : i32
      %c0_i32_54 = arith.constant 0 : i32
      %88 = tpu.memref_slice %arg6[%1, %c9_i32, %c0_i32_53, %c0_i32_54] : memref<2x10x16x128xf32, #tpu.memory_space<vmem>> -> memref<1x1x16x128xf32, #tpu.memory_space<vmem>>
      %89 = tpu.memref_squeeze %88 : memref<1x1x16x128xf32, #tpu.memory_space<vmem>> -> memref<1x16x128xf32, #tpu.memory_space<vmem>>
      %90 = tpu.memref_slice %arg8[%1, %c2_i32_17] : memref<2x3x!tpu.dma_semaphore, #tpu.memory_space<semaphore_mem>> -> memref<1x1x!tpu.dma_semaphore, #tpu.memory_space<semaphore_mem>>
      %91 = tpu.memref_squeeze %90 : memref<1x1x!tpu.dma_semaphore, #tpu.memory_space<semaphore_mem>> -> memref<!tpu.dma_semaphore, #tpu.memory_space<semaphore_mem>>
      tpu.wait_dma2 semaphore(%91 : memref<!tpu.dma_semaphore, #tpu.memory_space<semaphore_mem>>) src(%87 : memref<1x16x128xf32, #tpu.memory_space<any>>) dst(%89 : memref<1x16x128xf32, #tpu.memory_space<vmem>>)
    } else {
    }
    %c1_i32_19 = arith.constant 1 : i32
    %25 = arith.addi %arg1, %c1_i32_19 : i32
    %c2_i32_20 = arith.constant 2 : i32
    %26 = arith.cmpi slt, %25, %c2_i32_20 : i32
    %27 = arith.extui %26 : i1 to i32
    %c0_i32_21 = arith.constant 0 : i32
    %28 = arith.cmpi ne, %27, %c0_i32_21 : i32
    scf.if %28 {
      %c1_i32_51 = arith.constant 1 : i32
      %86 = arith.addi %0, %c1_i32_51 : i32
      %c1_i32_52 = arith.constant 1 : i32
      %87 = arith.subi %c1_i32_52, %1 : i32
      %c8_i32_53 = arith.constant 8 : i32
      %88 = arith.muli %86, %c8_i32_53 : i32
      %c8_i32_54 = arith.constant 8 : i32
      %89 = arith.minsi %88, %c8_i32_54 : i32
      %c8_i32_55 = arith.constant 8 : i32
      %90 = arith.muli %86, %c8_i32_55 : i32
      %c1_i32_56 = arith.constant 1 : i32
      %91 = arith.subi %90, %c1_i32_56 : i32
      %c0_i32_57 = arith.constant 0 : i32
      %92 = arith.maxsi %91, %c0_i32_57 : i32
      %c8_i32_58 = arith.constant 8 : i32
      %93 = arith.muli %86, %c8_i32_58 : i32
      %c8_i32_59 = arith.constant 8 : i32
      %94 = arith.addi %93, %c8_i32_59 : i32
      %c15_i32_60 = arith.constant 15 : i32
      %95 = arith.minsi %94, %c15_i32_60 : i32
      %c0_i32_61 = arith.constant 0 : i32
      %c0_i32_62 = arith.constant 0 : i32
      %c0_i32_63 = arith.constant 0 : i32
      %96 = tpu.memref_slice %arg2[%arg0, %89, %c0_i32_62, %c0_i32_63] : memref<2x16x16x128xf32, #tpu.memory_space<any>> -> memref<1x8x16x128xf32, #tpu.memory_space<any>>
      %97 = tpu.memref_squeeze %96 : memref<1x8x16x128xf32, #tpu.memory_space<any>> -> memref<8x16x128xf32, #tpu.memory_space<any>>
      %c1_i32_64 = arith.constant 1 : i32
      %c0_i32_65 = arith.constant 0 : i32
      %c0_i32_66 = arith.constant 0 : i32
      %98 = tpu.memref_slice %arg6[%87, %c1_i32_64, %c0_i32_65, %c0_i32_66] : memref<2x10x16x128xf32, #tpu.memory_space<vmem>> -> memref<1x8x16x128xf32, #tpu.memory_space<vmem>>
      %99 = tpu.memref_squeeze %98 : memref<1x8x16x128xf32, #tpu.memory_space<vmem>> -> memref<8x16x128xf32, #tpu.memory_space<vmem>>
      %100 = tpu.memref_slice %arg8[%87, %c0_i32_61] : memref<2x3x!tpu.dma_semaphore, #tpu.memory_space<semaphore_mem>> -> memref<1x1x!tpu.dma_semaphore, #tpu.memory_space<semaphore_mem>>
      %101 = tpu.memref_squeeze %100 : memref<1x1x!tpu.dma_semaphore, #tpu.memory_space<semaphore_mem>> -> memref<!tpu.dma_semaphore, #tpu.memory_space<semaphore_mem>>
      tpu.enqueue_dma source(%97 : memref<8x16x128xf32, #tpu.memory_space<any>>) target(%99 : memref<8x16x128xf32, #tpu.memory_space<vmem>>) target_semaphore(%101 : memref<!tpu.dma_semaphore, #tpu.memory_space<semaphore_mem>>)
      %c0_i32_67 = arith.constant 0 : i32
      %102 = arith.cmpi sgt, %86, %c0_i32_67 : i32
      %103 = arith.extui %102 : i1 to i32
      %c1_i32_68 = arith.constant 1 : i32
      %c0_i32_69 = arith.constant 0 : i32
      %104 = arith.cmpi ne, %103, %c0_i32_69 : i32
      scf.if %104 {
        %c0_i32_73 = arith.constant 0 : i32
        %c0_i32_74 = arith.constant 0 : i32
        %108 = tpu.memref_slice %arg2[%arg0, %92, %c0_i32_73, %c0_i32_74] : memref<2x16x16x128xf32, #tpu.memory_space<any>> -> memref<1x1x16x128xf32, #tpu.memory_space<any>>
        %109 = tpu.memref_squeeze %108 : memref<1x1x16x128xf32, #tpu.memory_space<any>> -> memref<1x16x128xf32, #tpu.memory_space<any>>
        %c0_i32_75 = arith.constant 0 : i32
        %c0_i32_76 = arith.constant 0 : i32
        %c0_i32_77 = arith.constant 0 : i32
        %110 = tpu.memref_slice %arg6[%87, %c0_i32_75, %c0_i32_76, %c0_i32_77] : memref<2x10x16x128xf32, #tpu.memory_space<vmem>> -> memref<1x1x16x128xf32, #tpu.memory_space<vmem>>
        %111 = tpu.memref_squeeze %110 : memref<1x1x16x128xf32, #tpu.memory_space<vmem>> -> memref<1x16x128xf32, #tpu.memory_space<vmem>>
        %112 = tpu.memref_slice %arg8[%87, %c1_i32_68] : memref<2x3x!tpu.dma_semaphore, #tpu.memory_space<semaphore_mem>> -> memref<1x1x!tpu.dma_semaphore, #tpu.memory_space<semaphore_mem>>
        %113 = tpu.memref_squeeze %112 : memref<1x1x!tpu.dma_semaphore, #tpu.memory_space<semaphore_mem>> -> memref<!tpu.dma_semaphore, #tpu.memory_space<semaphore_mem>>
        tpu.enqueue_dma source(%109 : memref<1x16x128xf32, #tpu.memory_space<any>>) target(%111 : memref<1x16x128xf32, #tpu.memory_space<vmem>>) target_semaphore(%113 : memref<!tpu.dma_semaphore, #tpu.memory_space<semaphore_mem>>)
      } else {
      }
      %c1_i32_70 = arith.constant 1 : i32
      %105 = arith.cmpi slt, %86, %c1_i32_70 : i32
      %106 = arith.extui %105 : i1 to i32
      %c2_i32_71 = arith.constant 2 : i32
      %c0_i32_72 = arith.constant 0 : i32
      %107 = arith.cmpi ne, %106, %c0_i32_72 : i32
      scf.if %107 {
        %c0_i32_73 = arith.constant 0 : i32
        %c0_i32_74 = arith.constant 0 : i32
        %108 = tpu.memref_slice %arg2[%arg0, %95, %c0_i32_73, %c0_i32_74] : memref<2x16x16x128xf32, #tpu.memory_space<any>> -> memref<1x1x16x128xf32, #tpu.memory_space<any>>
        %109 = tpu.memref_squeeze %108 : memref<1x1x16x128xf32, #tpu.memory_space<any>> -> memref<1x16x128xf32, #tpu.memory_space<any>>
        %c9_i32 = arith.constant 9 : i32
        %c0_i32_75 = arith.constant 0 : i32
        %c0_i32_76 = arith.constant 0 : i32
        %110 = tpu.memref_slice %arg6[%87, %c9_i32, %c0_i32_75, %c0_i32_76] : memref<2x10x16x128xf32, #tpu.memory_space<vmem>> -> memref<1x1x16x128xf32, #tpu.memory_space<vmem>>
        %111 = tpu.memref_squeeze %110 : memref<1x1x16x128xf32, #tpu.memory_space<vmem>> -> memref<1x16x128xf32, #tpu.memory_space<vmem>>
        %112 = tpu.memref_slice %arg8[%87, %c2_i32_71] : memref<2x3x!tpu.dma_semaphore, #tpu.memory_space<semaphore_mem>> -> memref<1x1x!tpu.dma_semaphore, #tpu.memory_space<semaphore_mem>>
        %113 = tpu.memref_squeeze %112 : memref<1x1x!tpu.dma_semaphore, #tpu.memory_space<semaphore_mem>> -> memref<!tpu.dma_semaphore, #tpu.memory_space<semaphore_mem>>
        tpu.enqueue_dma source(%109 : memref<1x16x128xf32, #tpu.memory_space<any>>) target(%111 : memref<1x16x128xf32, #tpu.memory_space<vmem>>) target_semaphore(%113 : memref<!tpu.dma_semaphore, #tpu.memory_space<semaphore_mem>>)
      } else {
      }
    } else {
    }
    %cst = arith.constant 0.000000e+00 : f32
    %29 = vector.broadcast %cst : f32 to vector<1x16x128xf32>
    %c0_i32_22 = arith.constant 0 : i32
    %30 = arith.cmpi eq, %0, %c0_i32_22 : i32
    %31 = arith.extui %30 : i1 to i32
    %c0_i32_23 = arith.constant 0 : i32
    %32 = arith.cmpi ne, %31, %c0_i32_23 : i32
    scf.if %32 {
      %c0_51 = arith.constant 0 : index
      %c0_52 = arith.constant 0 : index
      %c0_53 = arith.constant 0 : index
      %c0_54 = arith.constant 0 : index
      %86 = vector.load %arg6[%c0_51, %c0_52, %c0_53, %c0_54] : memref<2x10x16x128xf32, #tpu.memory_space<vmem>>, vector<1x1x16x128xf32>
      %87 = vector.shape_cast %86 : vector<1x1x16x128xf32> to vector<1x16x128xf32>
      %88 = vector.shape_cast %29 : vector<1x16x128xf32> to vector<1x1x16x128xf32>
      tpu.vector_store %arg6[%c0_51, %c0_52, %c0_53, %c0_54], %88 {strides = array<i32>} : memref<2x10x16x128xf32, #tpu.memory_space<vmem>>, vector<1x1x16x128xf32>,
    } else {
    }
    %c1_i32_24 = arith.constant 1 : i32
    %33 = arith.cmpi eq, %0, %c1_i32_24 : i32
    %34 = arith.extui %33 : i1 to i32
    %c0_i32_25 = arith.constant 0 : i32
    %35 = arith.cmpi ne, %34, %c0_i32_25 : i32
    scf.if %35 {
      %c1 = arith.constant 1 : index
      %c9 = arith.constant 9 : index
      %c0_51 = arith.constant 0 : index
      %c0_52 = arith.constant 0 : index
      %86 = vector.load %arg6[%c1, %c9, %c0_51, %c0_52] : memref<2x10x16x128xf32, #tpu.memory_space<vmem>>, vector<1x1x16x128xf32>
      %87 = vector.shape_cast %86 : vector<1x1x16x128xf32> to vector<1x16x128xf32>
      %88 = vector.shape_cast %29 : vector<1x16x128xf32> to vector<1x1x16x128xf32>
      tpu.vector_store %arg6[%c1, %c9, %c0_51, %c0_52], %88 {strides = array<i32>} : memref<2x10x16x128xf32, #tpu.memory_space<vmem>>, vector<1x1x16x128xf32>,
    } else {
    }
    %36 = arith.index_cast %1 : i32 to index
    %c0 = arith.constant 0 : index
    %c0_26 = arith.constant 0 : index
    %c0_27 = arith.constant 0 : index
    %37 = vector.load %arg6[%36, %c0, %c0_26, %c0_27] : memref<2x10x16x128xf32, #tpu.memory_space<vmem>>, vector<1x10x16x128xf32>
    %38 = vector.shape_cast %37 : vector<1x10x16x128xf32> to vector<10x16x128xf32>
    %39 = arith.truncf %38 : vector<10x16x128xf32> to vector<10x16x128xbf16>
    %cst_28 = arith.constant 0.000000e+00 : bf16
    %40 = vector.broadcast %cst_28 : bf16 to vector<8x1x128xbf16>
    %41 = vector.extract_strided_slice %39 {offsets = [0, 0, 0], sizes = [8, 16, 128], strides = [1, 1, 1]} : vector<10x16x128xbf16> to vector<8x16x128xbf16>
    %42 = vector.extract_strided_slice %41 {offsets = [0, 0, 0], sizes = [8, 15, 128], strides = [1, 1, 1]} : vector<8x16x128xbf16> to vector<8x15x128xbf16>
    %43 = tpu.concatenate %40, %42 in 1 : vector<8x1x128xbf16>, vector<8x15x128xbf16> -> vector<8x16x128xbf16>
    %44 = vector.extract_strided_slice %41 {offsets = [0, 1, 0], sizes = [8, 15, 128], strides = [1, 1, 1]} : vector<8x16x128xbf16> to vector<8x15x128xbf16>
    %45 = tpu.concatenate %44, %40 in 1 : vector<8x15x128xbf16>, vector<8x1x128xbf16> -> vector<8x16x128xbf16>
    %46 = vector.shape_cast %43 : vector<8x16x128xbf16> to vector<128x128xbf16>
    %c0_29 = arith.constant 0 : index
    %c0_30 = arith.constant 0 : index
    %47 = vector.load %arg7[%c0_29, %c0_30] : memref<128x1152xbf16, #tpu.memory_space<vmem>>, vector<128x128xbf16>
    tpu.vector_store %arg7[%c0_29, %c0_30], %46 {strides = array<i32>} : memref<128x1152xbf16, #tpu.memory_space<vmem>>, vector<128x128xbf16>,
    %48 = vector.shape_cast %41 : vector<8x16x128xbf16> to vector<128x128xbf16>
    %c0_31 = arith.constant 0 : index
    %c128 = arith.constant 128 : index
    %49 = vector.load %arg7[%c0_31, %c128] : memref<128x1152xbf16, #tpu.memory_space<vmem>>, vector<128x128xbf16>
    tpu.vector_store %arg7[%c0_31, %c128], %48 {strides = array<i32>} : memref<128x1152xbf16, #tpu.memory_space<vmem>>, vector<128x128xbf16>,
    %50 = vector.shape_cast %45 : vector<8x16x128xbf16> to vector<128x128xbf16>
    %c0_32 = arith.constant 0 : index
    %c256 = arith.constant 256 : index
    %51 = vector.load %arg7[%c0_32, %c256] : memref<128x1152xbf16, #tpu.memory_space<vmem>>, vector<128x128xbf16>
    tpu.vector_store %arg7[%c0_32, %c256], %50 {strides = array<i32>} : memref<128x1152xbf16, #tpu.memory_space<vmem>>, vector<128x128xbf16>,
    %52 = vector.extract_strided_slice %39 {offsets = [1, 0, 0], sizes = [8, 16, 128], strides = [1, 1, 1]} : vector<10x16x128xbf16> to vector<8x16x128xbf16>
    %53 = vector.extract_strided_slice %52 {offsets = [0, 0, 0], sizes = [8, 15, 128], strides = [1, 1, 1]} : vector<8x16x128xbf16> to vector<8x15x128xbf16>
    %54 = tpu.concatenate %40, %53 in 1 : vector<8x1x128xbf16>, vector<8x15x128xbf16> -> vector<8x16x128xbf16>
    %55 = vector.extract_strided_slice %52 {offsets = [0, 1, 0], sizes = [8, 15, 128], strides = [1, 1, 1]} : vector<8x16x128xbf16> to vector<8x15x128xbf16>
    %56 = tpu.concatenate %55, %40 in 1 : vector<8x15x128xbf16>, vector<8x1x128xbf16> -> vector<8x16x128xbf16>
    %57 = vector.shape_cast %54 : vector<8x16x128xbf16> to vector<128x128xbf16>
    %c0_33 = arith.constant 0 : index
    %c384 = arith.constant 384 : index
    %58 = vector.load %arg7[%c0_33, %c384] : memref<128x1152xbf16, #tpu.memory_space<vmem>>, vector<128x128xbf16>
    tpu.vector_store %arg7[%c0_33, %c384], %57 {strides = array<i32>} : memref<128x1152xbf16, #tpu.memory_space<vmem>>, vector<128x128xbf16>,
    %59 = vector.shape_cast %52 : vector<8x16x128xbf16> to vector<128x128xbf16>
    %c0_34 = arith.constant 0 : index
    %c512 = arith.constant 512 : index
    %60 = vector.load %arg7[%c0_34, %c512] : memref<128x1152xbf16, #tpu.memory_space<vmem>>, vector<128x128xbf16>
    tpu.vector_store %arg7[%c0_34, %c512], %59 {strides = array<i32>} : memref<128x1152xbf16, #tpu.memory_space<vmem>>, vector<128x128xbf16>,
    %61 = vector.shape_cast %56 : vector<8x16x128xbf16> to vector<128x128xbf16>
    %c0_35 = arith.constant 0 : index
    %c640 = arith.constant 640 : index
    %62 = vector.load %arg7[%c0_35, %c640] : memref<128x1152xbf16, #tpu.memory_space<vmem>>, vector<128x128xbf16>
    tpu.vector_store %arg7[%c0_35, %c640], %61 {strides = array<i32>} : memref<128x1152xbf16, #tpu.memory_space<vmem>>, vector<128x128xbf16>,
    %63 = vector.extract_strided_slice %39 {offsets = [2, 0, 0], sizes = [8, 16, 128], strides = [1, 1, 1]} : vector<10x16x128xbf16> to vector<8x16x128xbf16>
    %64 = vector.extract_strided_slice %63 {offsets = [0, 0, 0], sizes = [8, 15, 128], strides = [1, 1, 1]} : vector<8x16x128xbf16> to vector<8x15x128xbf16>
    %65 = tpu.concatenate %40, %64 in 1 : vector<8x1x128xbf16>, vector<8x15x128xbf16> -> vector<8x16x128xbf16>
    %66 = vector.extract_strided_slice %63 {offsets = [0, 1, 0], sizes = [8, 15, 128], strides = [1, 1, 1]} : vector<8x16x128xbf16> to vector<8x15x128xbf16>
    %67 = tpu.concatenate %66, %40 in 1 : vector<8x15x128xbf16>, vector<8x1x128xbf16> -> vector<8x16x128xbf16>
    %68 = vector.shape_cast %65 : vector<8x16x128xbf16> to vector<128x128xbf16>
    %c0_36 = arith.constant 0 : index
    %c768 = arith.constant 768 : index
    %69 = vector.load %arg7[%c0_36, %c768] : memref<128x1152xbf16, #tpu.memory_space<vmem>>, vector<128x128xbf16>
    tpu.vector_store %arg7[%c0_36, %c768], %68 {strides = array<i32>} : memref<128x1152xbf16, #tpu.memory_space<vmem>>, vector<128x128xbf16>,
    %70 = vector.shape_cast %63 : vector<8x16x128xbf16> to vector<128x128xbf16>
    %c0_37 = arith.constant 0 : index
    %c896 = arith.constant 896 : index
    %71 = vector.load %arg7[%c0_37, %c896] : memref<128x1152xbf16, #tpu.memory_space<vmem>>, vector<128x128xbf16>
    tpu.vector_store %arg7[%c0_37, %c896], %70 {strides = array<i32>} : memref<128x1152xbf16, #tpu.memory_space<vmem>>, vector<128x128xbf16>,
    %72 = vector.shape_cast %67 : vector<8x16x128xbf16> to vector<128x128xbf16>
    %c0_38 = arith.constant 0 : index
    %c1024 = arith.constant 1024 : index
    %73 = vector.load %arg7[%c0_38, %c1024] : memref<128x1152xbf16, #tpu.memory_space<vmem>>, vector<128x128xbf16>
    tpu.vector_store %arg7[%c0_38, %c1024], %72 {strides = array<i32>} : memref<128x1152xbf16, #tpu.memory_space<vmem>>, vector<128x128xbf16>,
    %c0_39 = arith.constant 0 : index
    %c0_40 = arith.constant 0 : index
    %74 = vector.load %arg7[%c0_39, %c0_40] : memref<128x1152xbf16, #tpu.memory_space<vmem>>, vector<128x1152xbf16>
    %c0_41 = arith.constant 0 : index
    %c0_42 = arith.constant 0 : index
    %75 = vector.load %arg3[%c0_41, %c0_42] : memref<1152x128xbf16, #tpu.memory_space<vmem>>, vector<1152x128xbf16>
    %cst_43 = arith.constant dense<0.000000e+00> : vector<128x128xf32>
    %76 = tpu.matmul %74, %75, %cst_43 {dimension_numbers = #tpu.dot_dimension_numbers<[1], [0], [0], [1], [0, 0, 1, 1], [], []>} : vector<128x1152xbf16>, vector<1152x128xbf16>, vector<128x128xf32> -> vector<128x128xf32>
    %c0_44 = arith.constant 0 : index
    %c0_45 = arith.constant 0 : index
    %77 = vector.load %arg4[%c0_44, %c0_45] : memref<128x128xf32, #tpu.memory_space<vmem>>, vector<128x128xf32>
    tpu.vector_store %arg4[%c0_44, %c0_45], %76 {strides = array<i32>} : memref<128x128xf32, #tpu.memory_space<vmem>>, vector<128x128xf32>,
    %cst_46 = arith.constant dense<0.000000e+00> : vector<128xf32>
    %78 = vector.multi_reduction <add>, %76, %cst_46 [0] : vector<128x128xf32> to vector<128xf32>
    %79 = vector.shape_cast %78 : vector<128xf32> to vector<1x128xf32>
    %80 = arith.mulf %76, %76 : vector<128x128xf32>
    %cst_47 = arith.constant dense<0.000000e+00> : vector<128xf32>
    %81 = vector.multi_reduction <add>, %80, %cst_47 [0] : vector<128x128xf32> to vector<128xf32>
    %82 = vector.shape_cast %81 : vector<128xf32> to vector<1x128xf32>
    %83 = tpu.concatenate %79, %82 in 0 : vector<1x128xf32>, vector<1x128xf32> -> vector<2x128xf32>
    %84 = vector.shape_cast %83 : vector<2x128xf32> to vector<1x2x128xf32>
    %c0_48 = arith.constant 0 : index
    %c0_49 = arith.constant 0 : index
    %c0_50 = arith.constant 0 : index
    %85 = vector.load %arg5[%c0_48, %c0_49, %c0_50] : memref<1x2x128xf32, #tpu.memory_space<vmem>>, vector<1x2x128xf32>
    tpu.vector_store %arg5[%c0_48, %c0_49, %c0_50], %84 {strides = array<i32>} : memref<1x2x128xf32, #tpu.memory_space<vmem>>, vector<1x2x128xf32>,
    return
  }
  func.func @transform_1(%arg0: i32, %arg1: i32) -> (i32, i32) {
    %c0_i32 = arith.constant 0 : i32
    %c0_i32_0 = arith.constant 0 : i32
    %c0_i32_1 = arith.constant 0 : i32
    return %c0_i32, %c0_i32_0 : i32, i32
  }
  func.func @transform_2(%arg0: i32, %arg1: i32) -> (i32, i32) {
    %c2_i32 = arith.constant 2 : i32
    %0 = arith.muli %arg0, %c2_i32 : i32
    %1 = arith.addi %0, %arg1 : i32
    %c0_i32 = arith.constant 0 : i32
    %c0_i32_0 = arith.constant 0 : i32
    return %1, %c0_i32 : i32, i32
  }
  func.func @transform_3(%arg0: i32, %arg1: i32) -> (i32, i32, i32) {
    %c2_i32 = arith.constant 2 : i32
    %0 = arith.muli %arg0, %c2_i32 : i32
    %1 = arith.addi %0, %arg1 : i32
    %c0_i32 = arith.constant 0 : i32
    %c0_i32_0 = arith.constant 0 : i32
    %c0_i32_1 = arith.constant 0 : i32
    return %1, %c0_i32, %c0_i32_0 : i32, i32, i32
  }
}

module attributes {stable_mosaic.version = 11 : i64} {
  func.func @_bn_relu_add_kernel(%arg0: i32, %arg1: memref<512x128xf32, #tpu.memory_space<vmem>>, %arg2: memref<512x128xf32, #tpu.memory_space<vmem>>, %arg3: memref<1x128xf32, #tpu.memory_space<vmem>>, %arg4: memref<1x128xf32, #tpu.memory_space<vmem>>, %arg5: memref<512x128xbf16, #tpu.memory_space<vmem>>) attributes {dimension_semantics = [#tpu.dimension_semantics<parallel>], iteration_bounds = array<i64: 1>, scalar_prefetch = 0 : i64, scratch_operands = 0 : i64, tpu.core_type = #tpu.core_type<tc>, window_params = [{transform_indices = @transform_0, window_bounds = array<i64: 512, 128>}, {transform_indices = @transform_1, window_bounds = array<i64: 512, 128>}, {pipeline_mode = #tpu.pipeline_mode<synchronous>, transform_indices = @transform_2, window_bounds = array<i64: 1, 128>}, {pipeline_mode = #tpu.pipeline_mode<synchronous>, transform_indices = @transform_3, window_bounds = array<i64: 1, 128>}, {transform_indices = @transform_4, window_bounds = array<i64: 512, 128>}]} {
    %c0 = arith.constant 0 : index
    %c0_0 = arith.constant 0 : index
    %0 = vector.load %arg1[%c0, %c0_0] : memref<512x128xf32, #tpu.memory_space<vmem>>, vector<512x128xf32>
    %c0_1 = arith.constant 0 : index
    %c0_2 = arith.constant 0 : index
    %1 = vector.load %arg3[%c0_1, %c0_2] : memref<1x128xf32, #tpu.memory_space<vmem>>, vector<1x128xf32>
    %2 = vector.broadcast %1 : vector<1x128xf32> to vector<512x128xf32>
    %3 = arith.mulf %0, %2 : vector<512x128xf32>
    %c0_3 = arith.constant 0 : index
    %c0_4 = arith.constant 0 : index
    %4 = vector.load %arg4[%c0_3, %c0_4] : memref<1x128xf32, #tpu.memory_space<vmem>>, vector<1x128xf32>
    %5 = vector.broadcast %4 : vector<1x128xf32> to vector<512x128xf32>
    %6 = arith.addf %3, %5 : vector<512x128xf32>
    %cst = arith.constant 0.000000e+00 : f32
    %7 = vector.broadcast %cst : f32 to vector<512x128xf32>
    %8 = arith.maximumf %6, %7 : vector<512x128xf32>
    %c0_5 = arith.constant 0 : index
    %c0_6 = arith.constant 0 : index
    %9 = vector.load %arg2[%c0_5, %c0_6] : memref<512x128xf32, #tpu.memory_space<vmem>>, vector<512x128xf32>
    %10 = arith.addf %9, %8 : vector<512x128xf32>
    %11 = arith.truncf %10 : vector<512x128xf32> to vector<512x128xbf16>
    %c0_7 = arith.constant 0 : index
    %c0_8 = arith.constant 0 : index
    %12 = vector.load %arg5[%c0_7, %c0_8] : memref<512x128xbf16, #tpu.memory_space<vmem>>, vector<512x128xbf16>
    tpu.vector_store %arg5[%c0_7, %c0_8], %11 {strides = array<i32>} : memref<512x128xbf16, #tpu.memory_space<vmem>>, vector<512x128xbf16>,
    return
  }
  func.func @transform_0(%arg0: i32) -> (i32, i32) {
    %c0_i32 = arith.constant 0 : i32
    %c0_i32_0 = arith.constant 0 : i32
    return %arg0, %c0_i32 : i32, i32
  }
  func.func @transform_1(%arg0: i32) -> (i32, i32) {
    %c0_i32 = arith.constant 0 : i32
    %c0_i32_0 = arith.constant 0 : i32
    return %arg0, %c0_i32 : i32, i32
  }
  func.func @transform_2(%arg0: i32) -> (i32, i32) {
    %c0_i32 = arith.constant 0 : i32
    %c0_i32_0 = arith.constant 0 : i32
    %c0_i32_1 = arith.constant 0 : i32
    return %c0_i32, %c0_i32_0 : i32, i32
  }
  func.func @transform_3(%arg0: i32) -> (i32, i32) {
    %c0_i32 = arith.constant 0 : i32
    %c0_i32_0 = arith.constant 0 : i32
    %c0_i32_1 = arith.constant 0 : i32
    return %c0_i32, %c0_i32_0 : i32, i32
  }
  func.func @transform_4(%arg0: i32) -> (i32, i32) {
    %c0_i32 = arith.constant 0 : i32
    %c0_i32_0 = arith.constant 0 : i32
    return %arg0, %c0_i32 : i32, i32
  }
}

module attributes {stable_mosaic.version = 11 : i64} {
  func.func @_conv3x3_stats_kernel(%arg0: i32, %arg1: i32, %arg2: memref<2x16x16x128xbf16, #tpu.memory_space<any>>, %arg3: memref<1152x128xbf16, #tpu.memory_space<vmem>>, %arg4: memref<128x128xf32, #tpu.memory_space<vmem>>, %arg5: memref<1x2x128xf32, #tpu.memory_space<vmem>>, %arg6: memref<2x10x16x128xbf16, #tpu.memory_space<vmem>>, %arg7: memref<128x1152xbf16, #tpu.memory_space<vmem>>, %arg8: memref<2x3x!tpu.dma_semaphore, #tpu.memory_space<semaphore_mem>>) attributes {dimension_semantics = [#tpu.dimension_semantics<parallel>, #tpu.dimension_semantics<arbitrary>], iteration_bounds = array<i64: 2, 2>, scalar_prefetch = 0 : i64, scratch_operands = 3 : i64, tpu.core_type = #tpu.core_type<tc>, window_params = [{}, {pipeline_mode = #tpu.pipeline_mode<synchronous>, transform_indices = @transform_1, window_bounds = array<i64: 1152, 128>}, {transform_indices = @transform_2, window_bounds = array<i64: 128, 128>}, {transform_indices = @transform_3, window_bounds = array<i64: 1, 2, 128>}]} {
    %c0_i32 = arith.constant 0 : i32
    %0 = arith.addi %c0_i32, %arg1 : i32
    %c2_i32 = arith.constant 2 : i32
    %1 = arith.remsi %arg1, %c2_i32 : i32
    %c0_i32_0 = arith.constant 0 : i32
    %2 = arith.cmpi eq, %arg1, %c0_i32_0 : i32
    %3 = arith.extui %2 : i1 to i32
    %c0_i32_1 = arith.constant 0 : i32
    %4 = arith.cmpi ne, %3, %c0_i32_1 : i32
    scf.if %4 {
      %c8_i32_51 = arith.constant 8 : i32
      %85 = arith.muli %0, %c8_i32_51 : i32
      %c8_i32_52 = arith.constant 8 : i32
      %86 = arith.minsi %85, %c8_i32_52 : i32
      %c8_i32_53 = arith.constant 8 : i32
      %87 = arith.muli %0, %c8_i32_53 : i32
      %c1_i32_54 = arith.constant 1 : i32
      %88 = arith.subi %87, %c1_i32_54 : i32
      %c0_i32_55 = arith.constant 0 : i32
      %89 = arith.maxsi %88, %c0_i32_55 : i32
      %c8_i32_56 = arith.constant 8 : i32
      %90 = arith.muli %0, %c8_i32_56 : i32
      %c8_i32_57 = arith.constant 8 : i32
      %91 = arith.addi %90, %c8_i32_57 : i32
      %c15_i32_58 = arith.constant 15 : i32
      %92 = arith.minsi %91, %c15_i32_58 : i32
      %c0_i32_59 = arith.constant 0 : i32
      %c0_i32_60 = arith.constant 0 : i32
      %c0_i32_61 = arith.constant 0 : i32
      %c0_i32_62 = arith.constant 0 : i32
      %c0_i32_63 = arith.constant 0 : i32
      %93 = tpu.memref_slice %arg2[%arg0, %86, %c0_i32_62, %c0_i32_63] : memref<2x16x16x128xbf16, #tpu.memory_space<any>> -> memref<1x8x16x128xbf16, #tpu.memory_space<any>>
      %94 = tpu.memref_squeeze %93 : memref<1x8x16x128xbf16, #tpu.memory_space<any>> -> memref<8x16x128xbf16, #tpu.memory_space<any>>
      %c1_i32_64 = arith.constant 1 : i32
      %c0_i32_65 = arith.constant 0 : i32
      %c0_i32_66 = arith.constant 0 : i32
      %95 = tpu.memref_slice %arg6[%c0_i32_59, %c1_i32_64, %c0_i32_65, %c0_i32_66] : memref<2x10x16x128xbf16, #tpu.memory_space<vmem>> -> memref<1x8x16x128xbf16, #tpu.memory_space<vmem>>
      %96 = tpu.memref_squeeze %95 : memref<1x8x16x128xbf16, #tpu.memory_space<vmem>> -> memref<8x16x128xbf16, #tpu.memory_space<vmem>>
      %97 = tpu.memref_slice %arg8[%c0_i32_60, %c0_i32_61] : memref<2x3x!tpu.dma_semaphore, #tpu.memory_space<semaphore_mem>> -> memref<1x1x!tpu.dma_semaphore, #tpu.memory_space<semaphore_mem>>
      %98 = tpu.memref_squeeze %97 : memref<1x1x!tpu.dma_semaphore, #tpu.memory_space<semaphore_mem>> -> memref<!tpu.dma_semaphore, #tpu.memory_space<semaphore_mem>>
      tpu.enqueue_dma source(%94 : memref<8x16x128xbf16, #tpu.memory_space<any>>) target(%96 : memref<8x16x128xbf16, #tpu.memory_space<vmem>>) target_semaphore(%98 : memref<!tpu.dma_semaphore, #tpu.memory_space<semaphore_mem>>)
      %c0_i32_67 = arith.constant 0 : i32
      %99 = arith.cmpi sgt, %0, %c0_i32_67 : i32
      %100 = arith.extui %99 : i1 to i32
      %c0_i32_68 = arith.constant 0 : i32
      %c0_i32_69 = arith.constant 0 : i32
      %c1_i32_70 = arith.constant 1 : i32
      %c0_i32_71 = arith.constant 0 : i32
      %101 = arith.cmpi ne, %100, %c0_i32_71 : i32
      scf.if %101 {
        %c0_i32_77 = arith.constant 0 : i32
        %c0_i32_78 = arith.constant 0 : i32
        %105 = tpu.memref_slice %arg2[%arg0, %89, %c0_i32_77, %c0_i32_78] : memref<2x16x16x128xbf16, #tpu.memory_space<any>> -> memref<1x1x16x128xbf16, #tpu.memory_space<any>>
        %106 = tpu.memref_squeeze %105 : memref<1x1x16x128xbf16, #tpu.memory_space<any>> -> memref<1x16x128xbf16, #tpu.memory_space<any>>
        %c0_i32_79 = arith.constant 0 : i32
        %c0_i32_80 = arith.constant 0 : i32
        %c0_i32_81 = arith.constant 0 : i32
        %107 = tpu.memref_slice %arg6[%c0_i32_68, %c0_i32_79, %c0_i32_80, %c0_i32_81] : memref<2x10x16x128xbf16, #tpu.memory_space<vmem>> -> memref<1x1x16x128xbf16, #tpu.memory_space<vmem>>
        %108 = tpu.memref_squeeze %107 : memref<1x1x16x128xbf16, #tpu.memory_space<vmem>> -> memref<1x16x128xbf16, #tpu.memory_space<vmem>>
        %109 = tpu.memref_slice %arg8[%c0_i32_69, %c1_i32_70] : memref<2x3x!tpu.dma_semaphore, #tpu.memory_space<semaphore_mem>> -> memref<1x1x!tpu.dma_semaphore, #tpu.memory_space<semaphore_mem>>
        %110 = tpu.memref_squeeze %109 : memref<1x1x!tpu.dma_semaphore, #tpu.memory_space<semaphore_mem>> -> memref<!tpu.dma_semaphore, #tpu.memory_space<semaphore_mem>>
        tpu.enqueue_dma source(%106 : memref<1x16x128xbf16, #tpu.memory_space<any>>) target(%108 : memref<1x16x128xbf16, #tpu.memory_space<vmem>>) target_semaphore(%110 : memref<!tpu.dma_semaphore, #tpu.memory_space<semaphore_mem>>)
      } else {
      }
      %c1_i32_72 = arith.constant 1 : i32
      %102 = arith.cmpi slt, %0, %c1_i32_72 : i32
      %103 = arith.extui %102 : i1 to i32
      %c0_i32_73 = arith.constant 0 : i32
      %c0_i32_74 = arith.constant 0 : i32
      %c2_i32_75 = arith.constant 2 : i32
      %c0_i32_76 = arith.constant 0 : i32
      %104 = arith.cmpi ne, %103, %c0_i32_76 : i32
      scf.if %104 {
        %c0_i32_77 = arith.constant 0 : i32
        %c0_i32_78 = arith.constant 0 : i32
        %105 = tpu.memref_slice %arg2[%arg0, %92, %c0_i32_77, %c0_i32_78] : memref<2x16x16x128xbf16, #tpu.memory_space<any>> -> memref<1x1x16x128xbf16, #tpu.memory_space<any>>
        %106 = tpu.memref_squeeze %105 : memref<1x1x16x128xbf16, #tpu.memory_space<any>> -> memref<1x16x128xbf16, #tpu.memory_space<any>>
        %c9_i32 = arith.constant 9 : i32
        %c0_i32_79 = arith.constant 0 : i32
        %c0_i32_80 = arith.constant 0 : i32
        %107 = tpu.memref_slice %arg6[%c0_i32_73, %c9_i32, %c0_i32_79, %c0_i32_80] : memref<2x10x16x128xbf16, #tpu.memory_space<vmem>> -> memref<1x1x16x128xbf16, #tpu.memory_space<vmem>>
        %108 = tpu.memref_squeeze %107 : memref<1x1x16x128xbf16, #tpu.memory_space<vmem>> -> memref<1x16x128xbf16, #tpu.memory_space<vmem>>
        %109 = tpu.memref_slice %arg8[%c0_i32_74, %c2_i32_75] : memref<2x3x!tpu.dma_semaphore, #tpu.memory_space<semaphore_mem>> -> memref<1x1x!tpu.dma_semaphore, #tpu.memory_space<semaphore_mem>>
        %110 = tpu.memref_squeeze %109 : memref<1x1x!tpu.dma_semaphore, #tpu.memory_space<semaphore_mem>> -> memref<!tpu.dma_semaphore, #tpu.memory_space<semaphore_mem>>
        tpu.enqueue_dma source(%106 : memref<1x16x128xbf16, #tpu.memory_space<any>>) target(%108 : memref<1x16x128xbf16, #tpu.memory_space<vmem>>) target_semaphore(%110 : memref<!tpu.dma_semaphore, #tpu.memory_space<semaphore_mem>>)
      } else {
      }
    } else {
    }
    %c8_i32 = arith.constant 8 : i32
    %5 = arith.muli %0, %c8_i32 : i32
    %c8_i32_2 = arith.constant 8 : i32
    %6 = arith.minsi %5, %c8_i32_2 : i32
    %c8_i32_3 = arith.constant 8 : i32
    %7 = arith.muli %0, %c8_i32_3 : i32
    %c1_i32 = arith.constant 1 : i32
    %8 = arith.subi %7, %c1_i32 : i32
    %c0_i32_4 = arith.constant 0 : i32
    %9 = arith.maxsi %8, %c0_i32_4 : i32
    %c8_i32_5 = arith.constant 8 : i32
    %10 = arith.muli %0, %c8_i32_5 : i32
    %c8_i32_6 = arith.constant 8 : i32
    %11 = arith.addi %10, %c8_i32_6 : i32
    %c15_i32 = arith.constant 15 : i32
    %12 = arith.minsi %11, %c15_i32 : i32
    %c0_i32_7 = arith.constant 0 : i32
    %c0_i32_8 = arith.constant 0 : i32
    %c0_i32_9 = arith.constant 0 : i32
    %13 = tpu.memref_slice %arg2[%arg0, %6, %c0_i32_8, %c0_i32_9] : memref<2x16x16x128xbf16, #tpu.memory_space<any>> -> memref<1x8x16x128xbf16, #tpu.memory_space<any>>
    %14 = tpu.memref_squeeze %13 : memref<1x8x16x128xbf16, #tpu.memory_space<any>> -> memref<8x16x128xbf16, #tpu.memory_space<any>>
    %c1_i32_10 = arith.constant 1 : i32
    %c0_i32_11 = arith.constant 0 : i32
    %c0_i32_12 = arith.constant 0 : i32
    %15 = tpu.memref_slice %arg6[%1, %c1_i32_10, %c0_i32_11, %c0_i32_12] : memref<2x10x16x128xbf16, #tpu.memory_space<vmem>> -> memref<1x8x16x128xbf16, #tpu.memory_space<vmem>>
    %16 = tpu.memref_squeeze %15 : memref<1x8x16x128xbf16, #tpu.memory_space<vmem>> -> memref<8x16x128xbf16, #tpu.memory_space<vmem>>
    %17 = tpu.memref_slice %arg8[%1, %c0_i32_7] : memref<2x3x!tpu.dma_semaphore, #tpu.memory_space<semaphore_mem>> -> memref<1x1x!tpu.dma_semaphore, #tpu.memory_space<semaphore_mem>>
    %18 = tpu.memref_squeeze %17 : memref<1x1x!tpu.dma_semaphore, #tpu.memory_space<semaphore_mem>> -> memref<!tpu.dma_semaphore, #tpu.memory_space<semaphore_mem>>
    tpu.wait_dma2 semaphore(%18 : memref<!tpu.dma_semaphore, #tpu.memory_space<semaphore_mem>>) src(%14 : memref<8x16x128xbf16, #tpu.memory_space<any>>) dst(%16 : memref<8x16x128xbf16, #tpu.memory_space<vmem>>)
    %c0_i32_13 = arith.constant 0 : i32
    %19 = arith.cmpi sgt, %0, %c0_i32_13 : i32
    %20 = arith.extui %19 : i1 to i32
    %c1_i32_14 = arith.constant 1 : i32
    %c0_i32_15 = arith.constant 0 : i32
    %21 = arith.cmpi ne, %20, %c0_i32_15 : i32
    scf.if %21 {
      %c0_i32_51 = arith.constant 0 : i32
      %c0_i32_52 = arith.constant 0 : i32
      %85 = tpu.memref_slice %arg2[%arg0, %9, %c0_i32_51, %c0_i32_52] : memref<2x16x16x128xbf16, #tpu.memory_space<any>> -> memref<1x1x16x128xbf16, #tpu.memory_space<any>>
      %86 = tpu.memref_squeeze %85 : memref<1x1x16x128xbf16, #tpu.memory_space<any>> -> memref<1x16x128xbf16, #tpu.memory_space<any>>
      %c0_i32_53 = arith.constant 0 : i32
      %c0_i32_54 = arith.constant 0 : i32
      %c0_i32_55 = arith.constant 0 : i32
      %87 = tpu.memref_slice %arg6[%1, %c0_i32_53, %c0_i32_54, %c0_i32_55] : memref<2x10x16x128xbf16, #tpu.memory_space<vmem>> -> memref<1x1x16x128xbf16, #tpu.memory_space<vmem>>
      %88 = tpu.memref_squeeze %87 : memref<1x1x16x128xbf16, #tpu.memory_space<vmem>> -> memref<1x16x128xbf16, #tpu.memory_space<vmem>>
      %89 = tpu.memref_slice %arg8[%1, %c1_i32_14] : memref<2x3x!tpu.dma_semaphore, #tpu.memory_space<semaphore_mem>> -> memref<1x1x!tpu.dma_semaphore, #tpu.memory_space<semaphore_mem>>
      %90 = tpu.memref_squeeze %89 : memref<1x1x!tpu.dma_semaphore, #tpu.memory_space<semaphore_mem>> -> memref<!tpu.dma_semaphore, #tpu.memory_space<semaphore_mem>>
      tpu.wait_dma2 semaphore(%90 : memref<!tpu.dma_semaphore, #tpu.memory_space<semaphore_mem>>) src(%86 : memref<1x16x128xbf16, #tpu.memory_space<any>>) dst(%88 : memref<1x16x128xbf16, #tpu.memory_space<vmem>>)
    } else {
    }
    %c1_i32_16 = arith.constant 1 : i32
    %22 = arith.cmpi slt, %0, %c1_i32_16 : i32
    %23 = arith.extui %22 : i1 to i32
    %c2_i32_17 = arith.constant 2 : i32
    %c0_i32_18 = arith.constant 0 : i32
    %24 = arith.cmpi ne, %23, %c0_i32_18 : i32
    scf.if %24 {
      %c0_i32_51 = arith.constant 0 : i32
      %c0_i32_52 = arith.constant 0 : i32
      %85 = tpu.memref_slice %arg2[%arg0, %12, %c0_i32_51, %c0_i32_52] : memref<2x16x16x128xbf16, #tpu.memory_space<any>> -> memref<1x1x16x128xbf16, #tpu.memory_space<any>>
      %86 = tpu.memref_squeeze %85 : memref<1x1x16x128xbf16, #tpu.memory_space<any>> -> memref<1x16x128xbf16, #tpu.memory_space<any>>
      %c9_i32 = arith.constant 9 : i32
      %c0_i32_53 = arith.constant 0 : i32
      %c0_i32_54 = arith.constant 0 : i32
      %87 = tpu.memref_slice %arg6[%1, %c9_i32, %c0_i32_53, %c0_i32_54] : memref<2x10x16x128xbf16, #tpu.memory_space<vmem>> -> memref<1x1x16x128xbf16, #tpu.memory_space<vmem>>
      %88 = tpu.memref_squeeze %87 : memref<1x1x16x128xbf16, #tpu.memory_space<vmem>> -> memref<1x16x128xbf16, #tpu.memory_space<vmem>>
      %89 = tpu.memref_slice %arg8[%1, %c2_i32_17] : memref<2x3x!tpu.dma_semaphore, #tpu.memory_space<semaphore_mem>> -> memref<1x1x!tpu.dma_semaphore, #tpu.memory_space<semaphore_mem>>
      %90 = tpu.memref_squeeze %89 : memref<1x1x!tpu.dma_semaphore, #tpu.memory_space<semaphore_mem>> -> memref<!tpu.dma_semaphore, #tpu.memory_space<semaphore_mem>>
      tpu.wait_dma2 semaphore(%90 : memref<!tpu.dma_semaphore, #tpu.memory_space<semaphore_mem>>) src(%86 : memref<1x16x128xbf16, #tpu.memory_space<any>>) dst(%88 : memref<1x16x128xbf16, #tpu.memory_space<vmem>>)
    } else {
    }
    %c1_i32_19 = arith.constant 1 : i32
    %25 = arith.addi %arg1, %c1_i32_19 : i32
    %c2_i32_20 = arith.constant 2 : i32
    %26 = arith.cmpi slt, %25, %c2_i32_20 : i32
    %27 = arith.extui %26 : i1 to i32
    %c0_i32_21 = arith.constant 0 : i32
    %28 = arith.cmpi ne, %27, %c0_i32_21 : i32
    scf.if %28 {
      %c1_i32_51 = arith.constant 1 : i32
      %85 = arith.addi %0, %c1_i32_51 : i32
      %c1_i32_52 = arith.constant 1 : i32
      %86 = arith.subi %c1_i32_52, %1 : i32
      %c8_i32_53 = arith.constant 8 : i32
      %87 = arith.muli %85, %c8_i32_53 : i32
      %c8_i32_54 = arith.constant 8 : i32
      %88 = arith.minsi %87, %c8_i32_54 : i32
      %c8_i32_55 = arith.constant 8 : i32
      %89 = arith.muli %85, %c8_i32_55 : i32
      %c1_i32_56 = arith.constant 1 : i32
      %90 = arith.subi %89, %c1_i32_56 : i32
      %c0_i32_57 = arith.constant 0 : i32
      %91 = arith.maxsi %90, %c0_i32_57 : i32
      %c8_i32_58 = arith.constant 8 : i32
      %92 = arith.muli %85, %c8_i32_58 : i32
      %c8_i32_59 = arith.constant 8 : i32
      %93 = arith.addi %92, %c8_i32_59 : i32
      %c15_i32_60 = arith.constant 15 : i32
      %94 = arith.minsi %93, %c15_i32_60 : i32
      %c0_i32_61 = arith.constant 0 : i32
      %c0_i32_62 = arith.constant 0 : i32
      %c0_i32_63 = arith.constant 0 : i32
      %95 = tpu.memref_slice %arg2[%arg0, %88, %c0_i32_62, %c0_i32_63] : memref<2x16x16x128xbf16, #tpu.memory_space<any>> -> memref<1x8x16x128xbf16, #tpu.memory_space<any>>
      %96 = tpu.memref_squeeze %95 : memref<1x8x16x128xbf16, #tpu.memory_space<any>> -> memref<8x16x128xbf16, #tpu.memory_space<any>>
      %c1_i32_64 = arith.constant 1 : i32
      %c0_i32_65 = arith.constant 0 : i32
      %c0_i32_66 = arith.constant 0 : i32
      %97 = tpu.memref_slice %arg6[%86, %c1_i32_64, %c0_i32_65, %c0_i32_66] : memref<2x10x16x128xbf16, #tpu.memory_space<vmem>> -> memref<1x8x16x128xbf16, #tpu.memory_space<vmem>>
      %98 = tpu.memref_squeeze %97 : memref<1x8x16x128xbf16, #tpu.memory_space<vmem>> -> memref<8x16x128xbf16, #tpu.memory_space<vmem>>
      %99 = tpu.memref_slice %arg8[%86, %c0_i32_61] : memref<2x3x!tpu.dma_semaphore, #tpu.memory_space<semaphore_mem>> -> memref<1x1x!tpu.dma_semaphore, #tpu.memory_space<semaphore_mem>>
      %100 = tpu.memref_squeeze %99 : memref<1x1x!tpu.dma_semaphore, #tpu.memory_space<semaphore_mem>> -> memref<!tpu.dma_semaphore, #tpu.memory_space<semaphore_mem>>
      tpu.enqueue_dma source(%96 : memref<8x16x128xbf16, #tpu.memory_space<any>>) target(%98 : memref<8x16x128xbf16, #tpu.memory_space<vmem>>) target_semaphore(%100 : memref<!tpu.dma_semaphore, #tpu.memory_space<semaphore_mem>>)
      %c0_i32_67 = arith.constant 0 : i32
      %101 = arith.cmpi sgt, %85, %c0_i32_67 : i32
      %102 = arith.extui %101 : i1 to i32
      %c1_i32_68 = arith.constant 1 : i32
      %c0_i32_69 = arith.constant 0 : i32
      %103 = arith.cmpi ne, %102, %c0_i32_69 : i32
      scf.if %103 {
        %c0_i32_73 = arith.constant 0 : i32
        %c0_i32_74 = arith.constant 0 : i32
        %107 = tpu.memref_slice %arg2[%arg0, %91, %c0_i32_73, %c0_i32_74] : memref<2x16x16x128xbf16, #tpu.memory_space<any>> -> memref<1x1x16x128xbf16, #tpu.memory_space<any>>
        %108 = tpu.memref_squeeze %107 : memref<1x1x16x128xbf16, #tpu.memory_space<any>> -> memref<1x16x128xbf16, #tpu.memory_space<any>>
        %c0_i32_75 = arith.constant 0 : i32
        %c0_i32_76 = arith.constant 0 : i32
        %c0_i32_77 = arith.constant 0 : i32
        %109 = tpu.memref_slice %arg6[%86, %c0_i32_75, %c0_i32_76, %c0_i32_77] : memref<2x10x16x128xbf16, #tpu.memory_space<vmem>> -> memref<1x1x16x128xbf16, #tpu.memory_space<vmem>>
        %110 = tpu.memref_squeeze %109 : memref<1x1x16x128xbf16, #tpu.memory_space<vmem>> -> memref<1x16x128xbf16, #tpu.memory_space<vmem>>
        %111 = tpu.memref_slice %arg8[%86, %c1_i32_68] : memref<2x3x!tpu.dma_semaphore, #tpu.memory_space<semaphore_mem>> -> memref<1x1x!tpu.dma_semaphore, #tpu.memory_space<semaphore_mem>>
        %112 = tpu.memref_squeeze %111 : memref<1x1x!tpu.dma_semaphore, #tpu.memory_space<semaphore_mem>> -> memref<!tpu.dma_semaphore, #tpu.memory_space<semaphore_mem>>
        tpu.enqueue_dma source(%108 : memref<1x16x128xbf16, #tpu.memory_space<any>>) target(%110 : memref<1x16x128xbf16, #tpu.memory_space<vmem>>) target_semaphore(%112 : memref<!tpu.dma_semaphore, #tpu.memory_space<semaphore_mem>>)
      } else {
      }
      %c1_i32_70 = arith.constant 1 : i32
      %104 = arith.cmpi slt, %85, %c1_i32_70 : i32
      %105 = arith.extui %104 : i1 to i32
      %c2_i32_71 = arith.constant 2 : i32
      %c0_i32_72 = arith.constant 0 : i32
      %106 = arith.cmpi ne, %105, %c0_i32_72 : i32
      scf.if %106 {
        %c0_i32_73 = arith.constant 0 : i32
        %c0_i32_74 = arith.constant 0 : i32
        %107 = tpu.memref_slice %arg2[%arg0, %94, %c0_i32_73, %c0_i32_74] : memref<2x16x16x128xbf16, #tpu.memory_space<any>> -> memref<1x1x16x128xbf16, #tpu.memory_space<any>>
        %108 = tpu.memref_squeeze %107 : memref<1x1x16x128xbf16, #tpu.memory_space<any>> -> memref<1x16x128xbf16, #tpu.memory_space<any>>
        %c9_i32 = arith.constant 9 : i32
        %c0_i32_75 = arith.constant 0 : i32
        %c0_i32_76 = arith.constant 0 : i32
        %109 = tpu.memref_slice %arg6[%86, %c9_i32, %c0_i32_75, %c0_i32_76] : memref<2x10x16x128xbf16, #tpu.memory_space<vmem>> -> memref<1x1x16x128xbf16, #tpu.memory_space<vmem>>
        %110 = tpu.memref_squeeze %109 : memref<1x1x16x128xbf16, #tpu.memory_space<vmem>> -> memref<1x16x128xbf16, #tpu.memory_space<vmem>>
        %111 = tpu.memref_slice %arg8[%86, %c2_i32_71] : memref<2x3x!tpu.dma_semaphore, #tpu.memory_space<semaphore_mem>> -> memref<1x1x!tpu.dma_semaphore, #tpu.memory_space<semaphore_mem>>
        %112 = tpu.memref_squeeze %111 : memref<1x1x!tpu.dma_semaphore, #tpu.memory_space<semaphore_mem>> -> memref<!tpu.dma_semaphore, #tpu.memory_space<semaphore_mem>>
        tpu.enqueue_dma source(%108 : memref<1x16x128xbf16, #tpu.memory_space<any>>) target(%110 : memref<1x16x128xbf16, #tpu.memory_space<vmem>>) target_semaphore(%112 : memref<!tpu.dma_semaphore, #tpu.memory_space<semaphore_mem>>)
      } else {
      }
    } else {
    }
    %cst = arith.constant 0.000000e+00 : bf16
    %29 = vector.broadcast %cst : bf16 to vector<1x16x128xbf16>
    %c0_i32_22 = arith.constant 0 : i32
    %30 = arith.cmpi eq, %0, %c0_i32_22 : i32
    %31 = arith.extui %30 : i1 to i32
    %c0_i32_23 = arith.constant 0 : i32
    %32 = arith.cmpi ne, %31, %c0_i32_23 : i32
    scf.if %32 {
      %c0_51 = arith.constant 0 : index
      %c0_52 = arith.constant 0 : index
      %c0_53 = arith.constant 0 : index
      %c0_54 = arith.constant 0 : index
      %85 = vector.load %arg6[%c0_51, %c0_52, %c0_53, %c0_54] : memref<2x10x16x128xbf16, #tpu.memory_space<vmem>>, vector<1x1x16x128xbf16>
      %86 = vector.shape_cast %85 : vector<1x1x16x128xbf16> to vector<1x16x128xbf16>
      %87 = vector.shape_cast %29 : vector<1x16x128xbf16> to vector<1x1x16x128xbf16>
      tpu.vector_store %arg6[%c0_51, %c0_52, %c0_53, %c0_54], %87 {strides = array<i32>} : memref<2x10x16x128xbf16, #tpu.memory_space<vmem>>, vector<1x1x16x128xbf16>,
    } else {
    }
    %c1_i32_24 = arith.constant 1 : i32
    %33 = arith.cmpi eq, %0, %c1_i32_24 : i32
    %34 = arith.extui %33 : i1 to i32
    %c0_i32_25 = arith.constant 0 : i32
    %35 = arith.cmpi ne, %34, %c0_i32_25 : i32
    scf.if %35 {
      %c1 = arith.constant 1 : index
      %c9 = arith.constant 9 : index
      %c0_51 = arith.constant 0 : index
      %c0_52 = arith.constant 0 : index
      %85 = vector.load %arg6[%c1, %c9, %c0_51, %c0_52] : memref<2x10x16x128xbf16, #tpu.memory_space<vmem>>, vector<1x1x16x128xbf16>
      %86 = vector.shape_cast %85 : vector<1x1x16x128xbf16> to vector<1x16x128xbf16>
      %87 = vector.shape_cast %29 : vector<1x16x128xbf16> to vector<1x1x16x128xbf16>
      tpu.vector_store %arg6[%c1, %c9, %c0_51, %c0_52], %87 {strides = array<i32>} : memref<2x10x16x128xbf16, #tpu.memory_space<vmem>>, vector<1x1x16x128xbf16>,
    } else {
    }
    %36 = arith.index_cast %1 : i32 to index
    %c0 = arith.constant 0 : index
    %c0_26 = arith.constant 0 : index
    %c0_27 = arith.constant 0 : index
    %37 = vector.load %arg6[%36, %c0, %c0_26, %c0_27] : memref<2x10x16x128xbf16, #tpu.memory_space<vmem>>, vector<1x10x16x128xbf16>
    %38 = vector.shape_cast %37 : vector<1x10x16x128xbf16> to vector<10x16x128xbf16>
    %cst_28 = arith.constant 0.000000e+00 : bf16
    %39 = vector.broadcast %cst_28 : bf16 to vector<8x1x128xbf16>
    %40 = vector.extract_strided_slice %38 {offsets = [0, 0, 0], sizes = [8, 16, 128], strides = [1, 1, 1]} : vector<10x16x128xbf16> to vector<8x16x128xbf16>
    %41 = vector.extract_strided_slice %40 {offsets = [0, 0, 0], sizes = [8, 15, 128], strides = [1, 1, 1]} : vector<8x16x128xbf16> to vector<8x15x128xbf16>
    %42 = tpu.concatenate %39, %41 in 1 : vector<8x1x128xbf16>, vector<8x15x128xbf16> -> vector<8x16x128xbf16>
    %43 = vector.extract_strided_slice %40 {offsets = [0, 1, 0], sizes = [8, 15, 128], strides = [1, 1, 1]} : vector<8x16x128xbf16> to vector<8x15x128xbf16>
    %44 = tpu.concatenate %43, %39 in 1 : vector<8x15x128xbf16>, vector<8x1x128xbf16> -> vector<8x16x128xbf16>
    %45 = vector.shape_cast %42 : vector<8x16x128xbf16> to vector<128x128xbf16>
    %c0_29 = arith.constant 0 : index
    %c0_30 = arith.constant 0 : index
    %46 = vector.load %arg7[%c0_29, %c0_30] : memref<128x1152xbf16, #tpu.memory_space<vmem>>, vector<128x128xbf16>
    tpu.vector_store %arg7[%c0_29, %c0_30], %45 {strides = array<i32>} : memref<128x1152xbf16, #tpu.memory_space<vmem>>, vector<128x128xbf16>,
    %47 = vector.shape_cast %40 : vector<8x16x128xbf16> to vector<128x128xbf16>
    %c0_31 = arith.constant 0 : index
    %c128 = arith.constant 128 : index
    %48 = vector.load %arg7[%c0_31, %c128] : memref<128x1152xbf16, #tpu.memory_space<vmem>>, vector<128x128xbf16>
    tpu.vector_store %arg7[%c0_31, %c128], %47 {strides = array<i32>} : memref<128x1152xbf16, #tpu.memory_space<vmem>>, vector<128x128xbf16>,
    %49 = vector.shape_cast %44 : vector<8x16x128xbf16> to vector<128x128xbf16>
    %c0_32 = arith.constant 0 : index
    %c256 = arith.constant 256 : index
    %50 = vector.load %arg7[%c0_32, %c256] : memref<128x1152xbf16, #tpu.memory_space<vmem>>, vector<128x128xbf16>
    tpu.vector_store %arg7[%c0_32, %c256], %49 {strides = array<i32>} : memref<128x1152xbf16, #tpu.memory_space<vmem>>, vector<128x128xbf16>,
    %51 = vector.extract_strided_slice %38 {offsets = [1, 0, 0], sizes = [8, 16, 128], strides = [1, 1, 1]} : vector<10x16x128xbf16> to vector<8x16x128xbf16>
    %52 = vector.extract_strided_slice %51 {offsets = [0, 0, 0], sizes = [8, 15, 128], strides = [1, 1, 1]} : vector<8x16x128xbf16> to vector<8x15x128xbf16>
    %53 = tpu.concatenate %39, %52 in 1 : vector<8x1x128xbf16>, vector<8x15x128xbf16> -> vector<8x16x128xbf16>
    %54 = vector.extract_strided_slice %51 {offsets = [0, 1, 0], sizes = [8, 15, 128], strides = [1, 1, 1]} : vector<8x16x128xbf16> to vector<8x15x128xbf16>
    %55 = tpu.concatenate %54, %39 in 1 : vector<8x15x128xbf16>, vector<8x1x128xbf16> -> vector<8x16x128xbf16>
    %56 = vector.shape_cast %53 : vector<8x16x128xbf16> to vector<128x128xbf16>
    %c0_33 = arith.constant 0 : index
    %c384 = arith.constant 384 : index
    %57 = vector.load %arg7[%c0_33, %c384] : memref<128x1152xbf16, #tpu.memory_space<vmem>>, vector<128x128xbf16>
    tpu.vector_store %arg7[%c0_33, %c384], %56 {strides = array<i32>} : memref<128x1152xbf16, #tpu.memory_space<vmem>>, vector<128x128xbf16>,
    %58 = vector.shape_cast %51 : vector<8x16x128xbf16> to vector<128x128xbf16>
    %c0_34 = arith.constant 0 : index
    %c512 = arith.constant 512 : index
    %59 = vector.load %arg7[%c0_34, %c512] : memref<128x1152xbf16, #tpu.memory_space<vmem>>, vector<128x128xbf16>
    tpu.vector_store %arg7[%c0_34, %c512], %58 {strides = array<i32>} : memref<128x1152xbf16, #tpu.memory_space<vmem>>, vector<128x128xbf16>,
    %60 = vector.shape_cast %55 : vector<8x16x128xbf16> to vector<128x128xbf16>
    %c0_35 = arith.constant 0 : index
    %c640 = arith.constant 640 : index
    %61 = vector.load %arg7[%c0_35, %c640] : memref<128x1152xbf16, #tpu.memory_space<vmem>>, vector<128x128xbf16>
    tpu.vector_store %arg7[%c0_35, %c640], %60 {strides = array<i32>} : memref<128x1152xbf16, #tpu.memory_space<vmem>>, vector<128x128xbf16>,
    %62 = vector.extract_strided_slice %38 {offsets = [2, 0, 0], sizes = [8, 16, 128], strides = [1, 1, 1]} : vector<10x16x128xbf16> to vector<8x16x128xbf16>
    %63 = vector.extract_strided_slice %62 {offsets = [0, 0, 0], sizes = [8, 15, 128], strides = [1, 1, 1]} : vector<8x16x128xbf16> to vector<8x15x128xbf16>
    %64 = tpu.concatenate %39, %63 in 1 : vector<8x1x128xbf16>, vector<8x15x128xbf16> -> vector<8x16x128xbf16>
    %65 = vector.extract_strided_slice %62 {offsets = [0, 1, 0], sizes = [8, 15, 128], strides = [1, 1, 1]} : vector<8x16x128xbf16> to vector<8x15x128xbf16>
    %66 = tpu.concatenate %65, %39 in 1 : vector<8x15x128xbf16>, vector<8x1x128xbf16> -> vector<8x16x128xbf16>
    %67 = vector.shape_cast %64 : vector<8x16x128xbf16> to vector<128x128xbf16>
    %c0_36 = arith.constant 0 : index
    %c768 = arith.constant 768 : index
    %68 = vector.load %arg7[%c0_36, %c768] : memref<128x1152xbf16, #tpu.memory_space<vmem>>, vector<128x128xbf16>
    tpu.vector_store %arg7[%c0_36, %c768], %67 {strides = array<i32>} : memref<128x1152xbf16, #tpu.memory_space<vmem>>, vector<128x128xbf16>,
    %69 = vector.shape_cast %62 : vector<8x16x128xbf16> to vector<128x128xbf16>
    %c0_37 = arith.constant 0 : index
    %c896 = arith.constant 896 : index
    %70 = vector.load %arg7[%c0_37, %c896] : memref<128x1152xbf16, #tpu.memory_space<vmem>>, vector<128x128xbf16>
    tpu.vector_store %arg7[%c0_37, %c896], %69 {strides = array<i32>} : memref<128x1152xbf16, #tpu.memory_space<vmem>>, vector<128x128xbf16>,
    %71 = vector.shape_cast %66 : vector<8x16x128xbf16> to vector<128x128xbf16>
    %c0_38 = arith.constant 0 : index
    %c1024 = arith.constant 1024 : index
    %72 = vector.load %arg7[%c0_38, %c1024] : memref<128x1152xbf16, #tpu.memory_space<vmem>>, vector<128x128xbf16>
    tpu.vector_store %arg7[%c0_38, %c1024], %71 {strides = array<i32>} : memref<128x1152xbf16, #tpu.memory_space<vmem>>, vector<128x128xbf16>,
    %c0_39 = arith.constant 0 : index
    %c0_40 = arith.constant 0 : index
    %73 = vector.load %arg7[%c0_39, %c0_40] : memref<128x1152xbf16, #tpu.memory_space<vmem>>, vector<128x1152xbf16>
    %c0_41 = arith.constant 0 : index
    %c0_42 = arith.constant 0 : index
    %74 = vector.load %arg3[%c0_41, %c0_42] : memref<1152x128xbf16, #tpu.memory_space<vmem>>, vector<1152x128xbf16>
    %cst_43 = arith.constant dense<0.000000e+00> : vector<128x128xf32>
    %75 = tpu.matmul %73, %74, %cst_43 {dimension_numbers = #tpu.dot_dimension_numbers<[1], [0], [0], [1], [0, 0, 1, 1], [], []>} : vector<128x1152xbf16>, vector<1152x128xbf16>, vector<128x128xf32> -> vector<128x128xf32>
    %c0_44 = arith.constant 0 : index
    %c0_45 = arith.constant 0 : index
    %76 = vector.load %arg4[%c0_44, %c0_45] : memref<128x128xf32, #tpu.memory_space<vmem>>, vector<128x128xf32>
    tpu.vector_store %arg4[%c0_44, %c0_45], %75 {strides = array<i32>} : memref<128x128xf32, #tpu.memory_space<vmem>>, vector<128x128xf32>,
    %cst_46 = arith.constant dense<0.000000e+00> : vector<128xf32>
    %77 = vector.multi_reduction <add>, %75, %cst_46 [0] : vector<128x128xf32> to vector<128xf32>
    %78 = vector.shape_cast %77 : vector<128xf32> to vector<1x128xf32>
    %79 = arith.mulf %75, %75 : vector<128x128xf32>
    %cst_47 = arith.constant dense<0.000000e+00> : vector<128xf32>
    %80 = vector.multi_reduction <add>, %79, %cst_47 [0] : vector<128x128xf32> to vector<128xf32>
    %81 = vector.shape_cast %80 : vector<128xf32> to vector<1x128xf32>
    %82 = tpu.concatenate %78, %81 in 0 : vector<1x128xf32>, vector<1x128xf32> -> vector<2x128xf32>
    %83 = vector.shape_cast %82 : vector<2x128xf32> to vector<1x2x128xf32>
    %c0_48 = arith.constant 0 : index
    %c0_49 = arith.constant 0 : index
    %c0_50 = arith.constant 0 : index
    %84 = vector.load %arg5[%c0_48, %c0_49, %c0_50] : memref<1x2x128xf32, #tpu.memory_space<vmem>>, vector<1x2x128xf32>
    tpu.vector_store %arg5[%c0_48, %c0_49, %c0_50], %83 {strides = array<i32>} : memref<1x2x128xf32, #tpu.memory_space<vmem>>, vector<1x2x128xf32>,
    return
  }
  func.func @transform_1(%arg0: i32, %arg1: i32) -> (i32, i32) {
    %c0_i32 = arith.constant 0 : i32
    %c0_i32_0 = arith.constant 0 : i32
    %c0_i32_1 = arith.constant 0 : i32
    return %c0_i32, %c0_i32_0 : i32, i32
  }
  func.func @transform_2(%arg0: i32, %arg1: i32) -> (i32, i32) {
    %c2_i32 = arith.constant 2 : i32
    %0 = arith.muli %arg0, %c2_i32 : i32
    %1 = arith.addi %0, %arg1 : i32
    %c0_i32 = arith.constant 0 : i32
    %c0_i32_0 = arith.constant 0 : i32
    return %1, %c0_i32 : i32, i32
  }
  func.func @transform_3(%arg0: i32, %arg1: i32) -> (i32, i32, i32) {
    %c2_i32 = arith.constant 2 : i32
    %0 = arith.muli %arg0, %c2_i32 : i32
    %1 = arith.addi %0, %arg1 : i32
    %c0_i32 = arith.constant 0 : i32
    %c0_i32_0 = arith.constant 0 : i32
    %c0_i32_1 = arith.constant 0 : i32
    return %1, %c0_i32, %c0_i32_0 : i32, i32, i32
  }
}

module attributes {stable_mosaic.version = 11 : i64} {
  func.func @_bn_relu_kernel(%arg0: i32, %arg1: memref<512x128xf32, #tpu.memory_space<vmem>>, %arg2: memref<1x128xf32, #tpu.memory_space<vmem>>, %arg3: memref<1x128xf32, #tpu.memory_space<vmem>>, %arg4: memref<512x128xf32, #tpu.memory_space<vmem>>) attributes {dimension_semantics = [#tpu.dimension_semantics<parallel>], iteration_bounds = array<i64: 1>, scalar_prefetch = 0 : i64, scratch_operands = 0 : i64, tpu.core_type = #tpu.core_type<tc>, window_params = [{transform_indices = @transform_0, window_bounds = array<i64: 512, 128>}, {pipeline_mode = #tpu.pipeline_mode<synchronous>, transform_indices = @transform_1, window_bounds = array<i64: 1, 128>}, {pipeline_mode = #tpu.pipeline_mode<synchronous>, transform_indices = @transform_2, window_bounds = array<i64: 1, 128>}, {transform_indices = @transform_3, window_bounds = array<i64: 512, 128>}]} {
    %c0 = arith.constant 0 : index
    %c0_0 = arith.constant 0 : index
    %0 = vector.load %arg1[%c0, %c0_0] : memref<512x128xf32, #tpu.memory_space<vmem>>, vector<512x128xf32>
    %c0_1 = arith.constant 0 : index
    %c0_2 = arith.constant 0 : index
    %1 = vector.load %arg2[%c0_1, %c0_2] : memref<1x128xf32, #tpu.memory_space<vmem>>, vector<1x128xf32>
    %2 = vector.broadcast %1 : vector<1x128xf32> to vector<512x128xf32>
    %3 = arith.mulf %0, %2 : vector<512x128xf32>
    %c0_3 = arith.constant 0 : index
    %c0_4 = arith.constant 0 : index
    %4 = vector.load %arg3[%c0_3, %c0_4] : memref<1x128xf32, #tpu.memory_space<vmem>>, vector<1x128xf32>
    %5 = vector.broadcast %4 : vector<1x128xf32> to vector<512x128xf32>
    %6 = arith.addf %3, %5 : vector<512x128xf32>
    %cst = arith.constant 0.000000e+00 : f32
    %7 = vector.broadcast %cst : f32 to vector<512x128xf32>
    %8 = arith.maximumf %6, %7 : vector<512x128xf32>
    %c0_5 = arith.constant 0 : index
    %c0_6 = arith.constant 0 : index
    %9 = vector.load %arg4[%c0_5, %c0_6] : memref<512x128xf32, #tpu.memory_space<vmem>>, vector<512x128xf32>
    tpu.vector_store %arg4[%c0_5, %c0_6], %8 {strides = array<i32>} : memref<512x128xf32, #tpu.memory_space<vmem>>, vector<512x128xf32>,
    return
  }
  func.func @transform_0(%arg0: i32) -> (i32, i32) {
    %c0_i32 = arith.constant 0 : i32
    %c0_i32_0 = arith.constant 0 : i32
    return %arg0, %c0_i32 : i32, i32
  }
  func.func @transform_1(%arg0: i32) -> (i32, i32) {
    %c0_i32 = arith.constant 0 : i32
    %c0_i32_0 = arith.constant 0 : i32
    %c0_i32_1 = arith.constant 0 : i32
    return %c0_i32, %c0_i32_0 : i32, i32
  }
  func.func @transform_2(%arg0: i32) -> (i32, i32) {
    %c0_i32 = arith.constant 0 : i32
    %c0_i32_0 = arith.constant 0 : i32
    %c0_i32_1 = arith.constant 0 : i32
    return %c0_i32, %c0_i32_0 : i32, i32
  }
  func.func @transform_3(%arg0: i32) -> (i32, i32) {
    %c0_i32 = arith.constant 0 : i32
    %c0_i32_0 = arith.constant 0 : i32
    return %arg0, %c0_i32 : i32, i32
  }
}

module attributes {stable_mosaic.version = 11 : i64} {
  func.func @_bn_relu_add_kernel(%arg0: i32, %arg1: memref<512x128xf32, #tpu.memory_space<vmem>>, %arg2: memref<512x128xf32, #tpu.memory_space<vmem>>, %arg3: memref<1x128xf32, #tpu.memory_space<vmem>>, %arg4: memref<1x128xf32, #tpu.memory_space<vmem>>, %arg5: memref<512x128xf32, #tpu.memory_space<vmem>>) attributes {dimension_semantics = [#tpu.dimension_semantics<parallel>], iteration_bounds = array<i64: 1>, scalar_prefetch = 0 : i64, scratch_operands = 0 : i64, tpu.core_type = #tpu.core_type<tc>, window_params = [{transform_indices = @transform_0, window_bounds = array<i64: 512, 128>}, {transform_indices = @transform_1, window_bounds = array<i64: 512, 128>}, {pipeline_mode = #tpu.pipeline_mode<synchronous>, transform_indices = @transform_2, window_bounds = array<i64: 1, 128>}, {pipeline_mode = #tpu.pipeline_mode<synchronous>, transform_indices = @transform_3, window_bounds = array<i64: 1, 128>}, {transform_indices = @transform_4, window_bounds = array<i64: 512, 128>}]} {
    %c0 = arith.constant 0 : index
    %c0_0 = arith.constant 0 : index
    %0 = vector.load %arg1[%c0, %c0_0] : memref<512x128xf32, #tpu.memory_space<vmem>>, vector<512x128xf32>
    %c0_1 = arith.constant 0 : index
    %c0_2 = arith.constant 0 : index
    %1 = vector.load %arg3[%c0_1, %c0_2] : memref<1x128xf32, #tpu.memory_space<vmem>>, vector<1x128xf32>
    %2 = vector.broadcast %1 : vector<1x128xf32> to vector<512x128xf32>
    %3 = arith.mulf %0, %2 : vector<512x128xf32>
    %c0_3 = arith.constant 0 : index
    %c0_4 = arith.constant 0 : index
    %4 = vector.load %arg4[%c0_3, %c0_4] : memref<1x128xf32, #tpu.memory_space<vmem>>, vector<1x128xf32>
    %5 = vector.broadcast %4 : vector<1x128xf32> to vector<512x128xf32>
    %6 = arith.addf %3, %5 : vector<512x128xf32>
    %cst = arith.constant 0.000000e+00 : f32
    %7 = vector.broadcast %cst : f32 to vector<512x128xf32>
    %8 = arith.maximumf %6, %7 : vector<512x128xf32>
    %c0_5 = arith.constant 0 : index
    %c0_6 = arith.constant 0 : index
    %9 = vector.load %arg2[%c0_5, %c0_6] : memref<512x128xf32, #tpu.memory_space<vmem>>, vector<512x128xf32>
    %10 = arith.addf %9, %8 : vector<512x128xf32>
    %c0_7 = arith.constant 0 : index
    %c0_8 = arith.constant 0 : index
    %11 = vector.load %arg5[%c0_7, %c0_8] : memref<512x128xf32, #tpu.memory_space<vmem>>, vector<512x128xf32>
    tpu.vector_store %arg5[%c0_7, %c0_8], %10 {strides = array<i32>} : memref<512x128xf32, #tpu.memory_space<vmem>>, vector<512x128xf32>,
    return
  }
  func.func @transform_0(%arg0: i32) -> (i32, i32) {
    %c0_i32 = arith.constant 0 : i32
    %c0_i32_0 = arith.constant 0 : i32
    return %arg0, %c0_i32 : i32, i32
  }
  func.func @transform_1(%arg0: i32) -> (i32, i32) {
    %c0_i32 = arith.constant 0 : i32
    %c0_i32_0 = arith.constant 0 : i32
    return %arg0, %c0_i32 : i32, i32
  }
  func.func @transform_2(%arg0: i32) -> (i32, i32) {
    %c0_i32 = arith.constant 0 : i32
    %c0_i32_0 = arith.constant 0 : i32
    %c0_i32_1 = arith.constant 0 : i32
    return %c0_i32, %c0_i32_0 : i32, i32
  }
  func.func @transform_3(%arg0: i32) -> (i32, i32) {
    %c0_i32 = arith.constant 0 : i32
    %c0_i32_0 = arith.constant 0 : i32
    %c0_i32_1 = arith.constant 0 : i32
    return %c0_i32, %c0_i32_0 : i32, i32
  }
  func.func @transform_4(%arg0: i32) -> (i32, i32) {
    %c0_i32 = arith.constant 0 : i32
    %c0_i32_0 = arith.constant 0 : i32
    return %arg0, %c0_i32 : i32, i32
  }
}

</mosaic_0001>

<bundles_post_ra>
// kernel: _lambda_.13
= control target key start
LH: loop header
LB: loop body
LE: loop exit
PB: predicated region body
PF: predicated region fallthrough
CT: control target
= control target key end

     0   :  { %s1189_s1 = inlined_call_operand.vmem [shape: bf16[128,128], index: 1, kind: input, shape index: {}]   ;;  %s1190_s0 = inlined_call_operand.vmem [shape: f32[512,128], index: 0, kind: input, shape index: {}]   ;;  %s1191_s2 = inlined_call_operand.vmem [shape: f32[1,128], index: 2, kind: input, shape index: {}]   ;;  %s1192_s3 = inlined_call_operand.vmem [shape: f32[512,128], index: 3, kind: output, shape index: {}]  }
   0x1   :  { %v684_v0 = vld [vmem:[%s1189_s1] sm:$0xff]   ;;  %v685_v1 = vld [vmem:[%s1189_s1 + $0x8] sm:$0xff]   ;;  %v686_v2 = vld [vmem:[%s1189_s1 + $0x10] sm:$0xff]  }
   0x2   :  { %588 = vmatprep.subr.bf16.mxu0 %v684_v0  ;;  %668 = vmatprep.subr.bf16.mxu1 %v684_v0  ;;  %v687_v3 = vld [vmem:[%s1189_s1 + $0x18] sm:$0xff]   ;;  %v15_v4 = vld [vmem:[%s1190_s0] sm:$0xff]  ;;  %v16_v5 = vld [vmem:[%s1190_s0 + $0x8] sm:$0xff] }
   0x3   :  { %589 = vmatpush3.bf16.msra.mxu0 %v684_v0  ;;  %676 = vmatpush3.bf16.msra.mxu1 %v684_v0  ;;  %v47_v6 = vld [vmem:[%s1190_s0 + $0x100] sm:$0xff]  ;;  %v79_v7 = vpack.c.bf16 %v16_v5, %v15_v4  ;;  %v48_v8 = vld [vmem:[%s1190_s0 + $0x108] sm:$0xff]  ;;  %v690_v12 = vld [vmem:[%s1189_s1 + $0x30] sm:$0xff]  }
   0x4   :  { %590 = vmatprep.subr.bf16.mxu0 %v685_v1  ;;  %669 = vmatprep.subr.bf16.mxu1 %v685_v1  ;;  %v95_v9 = vpack.c.bf16 %v48_v8, %v47_v6  ;;  %v688_v10 = vld [vmem:[%s1189_s1 + $0x20] sm:$0xff]   ;;  %v689_v11 = vld [vmem:[%s1189_s1 + $0x28] sm:$0xff]   ;;  %v691_v13 = vld [vmem:[%s1189_s1 + $0x38] sm:$0xff]  }
   0x5   :  { %604 = vmatprep.mubr.bf16.mxu0 %v79_v7  ;;  %v17_v14 = vld [vmem:[%s1190_s0 + $0x10] sm:$0xff]  ;;  %v18_v15 = vld [vmem:[%s1190_s0 + $0x18] sm:$0xff]  ;;  %v19_v18 = vld [vmem:[%s1190_s0 + $0x20] sm:$0xff] }
   0x6   :  { %636 = vmatprep.mubr.bf16.mxu1 %v95_v9  ;;  %v49_v16 = vld [vmem:[%s1190_s0 + $0x110] sm:$0xff]  ;;  %v50_v17 = vld [vmem:[%s1190_s0 + $0x118] sm:$0xff]  ;;  %v20_v19 = vld [vmem:[%s1190_s0 + $0x28] sm:$0xff]  ;;  %v80_v22 = vpack.c.bf16 %v18_v15, %v17_v14 }
   0x7   :  { %591 = vmatpush3.bf16.msra.mxu0 %v685_v1  ;;  %677 = vmatpush3.bf16.msra.mxu1 %v685_v1  ;;  %v51_v20 = vld [vmem:[%s1190_s0 + $0x120] sm:$0xff]  ;;  %v52_v21 = vld [vmem:[%s1190_s0 + $0x128] sm:$0xff]  ;;  %v96_v23 = vpack.c.bf16 %v50_v17, %v49_v16  ;;  %v81_v24 = vpack.c.bf16 %v20_v19, %v19_v18  ;;  %v21_v26 = vld [vmem:[%s1190_s0 + $0x30] sm:$0xff] }
   0x8   :  { %592 = vmatprep.subr.bf16.mxu0 %v686_v2  ;;  %670 = vmatprep.subr.bf16.mxu1 %v686_v2  ;;  %v97_v25 = vpack.c.bf16 %v52_v21, %v51_v20  ;;  %v22_v27 = vld [vmem:[%s1190_s0 + $0x38] sm:$0xff]  ;;  %v53_v28 = vld [vmem:[%s1190_s0 + $0x130] sm:$0xff]  ;;  %v23_v30 = vld [vmem:[%s1190_s0 + $0x40] sm:$0xff] }
   0x9   :  { %v54_v29 = vld [vmem:[%s1190_s0 + $0x138] sm:$0xff]  ;;  %v24_v31 = vld [vmem:[%s1190_s0 + $0x48] sm:$0xff]  ;;  %v55_v32 = vld [vmem:[%s1190_s0 + $0x140] sm:$0xff]  ;;  %v82_v34 = vpack.c.bf16 %v22_v27, %v21_v26 }
   0xa   :  { %v56_v33 = vld [vmem:[%s1190_s0 + $0x148] sm:$0xff]  ;;  %v98_v35 = vpack.c.bf16 %v54_v29, %v53_v28  ;;  %v83_v36 = vpack.c.bf16 %v24_v31, %v23_v30  ;;  %v25_v38 = vld [vmem:[%s1190_s0 + $0x50] sm:$0xff]  ;;  %v26_v39 = vld [vmem:[%s1190_s0 + $0x58] sm:$0xff] }
   0xb   :  { %593 = vmatpush3.bf16.msra.mxu0 %v686_v2  ;;  %678 = vmatpush3.bf16.msra.mxu1 %v686_v2  ;;  %v99_v37 = vpack.c.bf16 %v56_v33, %v55_v32  ;;  %v57_v40 = vld [vmem:[%s1190_s0 + $0x150] sm:$0xff]  ;;  %v58_v41 = vld [vmem:[%s1190_s0 + $0x158] sm:$0xff]  ;;  %v27_v42 = vld [vmem:[%s1190_s0 + $0x60] sm:$0xff]  ;;  %v84_v46 = vpack.c.bf16 %v26_v39, %v25_v38 }
   0xc   :  { %594 = vmatprep.subr.bf16.mxu0 %v687_v3  ;;  %671 = vmatprep.subr.bf16.mxu1 %v687_v3  ;;  %v28_v43 = vld [vmem:[%s1190_s0 + $0x68] sm:$0xff]  ;;  %v59_v44 = vld [vmem:[%s1190_s0 + $0x160] sm:$0xff]  ;;  %v100_v47 = vpack.c.bf16 %v58_v41, %v57_v40  ;;  %v29_v50 = vld [vmem:[%s1190_s0 + $0x70] sm:$0xff] }
   0xd   :  { %v60_v45 = vld [vmem:[%s1190_s0 + $0x168] sm:$0xff]  ;;  %v85_v48 = vpack.c.bf16 %v28_v43, %v27_v42  ;;  %v30_v51 = vld [vmem:[%s1190_s0 + $0x78] sm:$0xff]  ;;  %v61_v52 = vld [vmem:[%s1190_s0 + $0x170] sm:$0xff] }
   0xe   :  { %v101_v49 = vpack.c.bf16 %v60_v45, %v59_v44  ;;  %v62_v53 = vld [vmem:[%s1190_s0 + $0x178] sm:$0xff]  ;;  %v31_v54 = vld [vmem:[%s1190_s0 + $0x80] sm:$0xff]  ;;  %v32_v55 = vld [vmem:[%s1190_s0 + $0x88] sm:$0xff]  ;;  %v86_v58 = vpack.c.bf16 %v30_v51, %v29_v50 }
   0xf   :  { %595 = vmatpush3.bf16.msra.mxu0 %v687_v3  ;;  %679 = vmatpush3.bf16.msra.mxu1 %v687_v3  ;;  %v63_v56 = vld [vmem:[%s1190_s0 + $0x180] sm:$0xff]  ;;  %v64_v57 = vld [vmem:[%s1190_s0 + $0x188] sm:$0xff]  ;;  %v102_v59 = vpack.c.bf16 %v62_v53, %v61_v52  ;;  %v87_v60 = vpack.c.bf16 %v32_v55, %v31_v54  ;;  %v33_v62 = vld [vmem:[%s1190_s0 + $0x90] sm:$0xff] }
  0x10   :  { %596 = vmatprep.subr.bf16.mxu0 %v688_v10  ;;  %672 = vmatprep.subr.bf16.mxu1 %v688_v10  ;;  %v103_v61 = vpack.c.bf16 %v64_v57, %v63_v56  ;;  %v34_v63 = vld [vmem:[%s1190_s0 + $0x98] sm:$0xff]  ;;  %v65_v0 = vld [vmem:[%s1190_s0 + $0x190] sm:$0xff]  ;;  %v35_v2 = vld [vmem:[%s1190_s0 + $0xa0] sm:$0xff] }
  0x11   :  { %v66_v1 = vld [vmem:[%s1190_s0 + $0x198] sm:$0xff]  ;;  %v36_v3 = vld [vmem:[%s1190_s0 + $0xa8] sm:$0xff]  ;;  %v67_v4 = vld [vmem:[%s1190_s0 + $0x1a0] sm:$0xff]  ;;  %v88_v6 = vpack.c.bf16 %v34_v63, %v33_v62 }
  0x12   :  { %v68_v5 = vld [vmem:[%s1190_s0 + $0x1a8] sm:$0xff]  ;;  %v104_v7 = vpack.c.bf16 %v66_v1, %v65_v0  ;;  %v89_v8 = vpack.c.bf16 %v36_v3, %v35_v2  ;;  %v39_v14 = vld [vmem:[%s1190_s0 + $0xc0] sm:$0xff] }
  0x13   :  { %597 = vmatpush3.bf16.msra.mxu0 %v688_v10  ;;  %680 = vmatpush3.bf16.msra.mxu1 %v688_v10  ;;  %v105_v9 = vpack.c.bf16 %v68_v5, %v67_v4  ;;  %v37_v10 = vld [vmem:[%s1190_s0 + $0xb0] sm:$0xff]  ;;  %v40_v15 = vld [vmem:[%s1190_s0 + $0xc8] sm:$0xff]  ;;  %v71_v16 = vld [vmem:[%s1190_s0 + $0x1c0] sm:$0xff] }
  0x14   :  { %598 = vmatprep.subr.bf16.mxu0 %v689_v11  ;;  %673 = vmatprep.subr.bf16.mxu1 %v689_v11  ;;  %v72_v17 = vld [vmem:[%s1190_s0 + $0x1c8] sm:$0xff]  ;;  %v91_v20 = vpack.c.bf16 %v40_v15, %v39_v14  ;;  %v43_v26 = vld [vmem:[%s1190_s0 + $0xe0] sm:$0xff] }
  0x15   :  { %v107_v21 = vpack.c.bf16 %v72_v17, %v71_v16  ;;  %v44_v27 = vld [vmem:[%s1190_s0 + $0xe8] sm:$0xff]  ;;  %v75_v28 = vld [vmem:[%s1190_s0 + $0x1e0] sm:$0xff] }
  0x16   :  { %v76_v29 = vld [vmem:[%s1190_s0 + $0x1e8] sm:$0xff]  ;;  %v93_v32 = vpack.c.bf16 %v44_v27, %v43_v26  ;;  %v931_v40 = vld [vmem:[%s1191_s2] ss:$0 sm:$0xff] }
  0x17   :  { %599 = vmatpush3.bf16.msra.mxu0 %v689_v11  ;;  %681 = vmatpush3.bf16.msra.mxu1 %v689_v11  ;;  %v38_v11 = vld [vmem:[%s1190_s0 + $0xb8] sm:$0xff]  ;;  %v109_v33 = vpack.c.bf16 %v76_v29, %v75_v28 }
  0x18   :  { %600 = vmatprep.subr.bf16.mxu0 %v690_v12  ;;  %674 = vmatprep.subr.bf16.mxu1 %v690_v12  ;;  %v90_v18 = vpack.c.bf16 %v38_v11, %v37_v10 }
  0x1b   :  { %601 = vmatpush3.bf16.msra.mxu0 %v690_v12  ;;  %682 = vmatpush3.bf16.msra.mxu1 %v690_v12  ;;  %v69_v12 = vld [vmem:[%s1190_s0 + $0x1b0] sm:$0xff] }
  0x1c   :  { %602 = vmatprep.subr.bf16.mxu0 %v691_v13  ;;  %675 = vmatprep.subr.bf16.mxu1 %v691_v13 }
  0x1f   :  { %603 = vmatpush3.bf16.msra.mxu0 %v691_v13  ;;  %683 = vmatpush3.bf16.msra.mxu1 %v691_v13  ;;  %v70_v13 = vld [vmem:[%s1190_s0 + $0x1b8] sm:$0xff] }
  0x20   :  { %v106_v19 = vpack.c.bf16 %v70_v13, %v69_v12 }
  0x22   :  { %605 = vmatmul.mubr.bf16.vlgmr.msra.gmra.mrb[0].mxu0 %v80_v22  ;;  %637 = vmatmul.mubr.bf16.vlgmr.msra.gmra.mrb[0].mxu1 %v96_v23  ;;  %v41_v22 = vld [vmem:[%s1190_s0 + $0xd0] sm:$0xff]  ;;  %v42_v23 = vld [vmem:[%s1190_s0 + $0xd8] sm:$0xff] }
  0x23   :  { %608 = vmatprep.mubr.bf16.mxu0 %v81_v24  ;;  %640 = vmatprep.mubr.bf16.mxu1 %v97_v25  ;;  %v73_v24 = vld [vmem:[%s1190_s0 + $0x1d0] sm:$0xff]  ;;  %v74_v25 = vld [vmem:[%s1190_s0 + $0x1d8] sm:$0xff]  ;;  %v92_v30 = vpack.c.bf16 %v42_v23, %v41_v22 }
  0x24   :  { %v108_v31 = vpack.c.bf16 %v74_v25, %v73_v24 }
  0x2a   :  { %609 = vmatmul.mubr.bf16.gmra.mrb[4].mxu0 %v82_v34  ;;  %641 = vmatmul.mubr.bf16.gmra.mrb[4].mxu1 %v98_v35  ;;  %v45_v34 = vld [vmem:[%s1190_s0 + $0xf0] sm:$0xff]  ;;  %v46_v35 = vld [vmem:[%s1190_s0 + $0xf8] sm:$0xff] }
  0x2b   :  { %612 = vmatprep.mubr.bf16.mxu0 %v83_v36  ;;  %644 = vmatprep.mubr.bf16.mxu1 %v99_v37  ;;  %v77_v36 = vld [vmem:[%s1190_s0 + $0x1f0] sm:$0xff]  ;;  %v78_v37 = vld [vmem:[%s1190_s0 + $0x1f8] sm:$0xff]  ;;  %v94_v38 = vpack.c.bf16 %v46_v35, %v45_v34 }
  0x2c   :  { %v110_v39 = vpack.c.bf16 %v78_v37, %v77_v36 }
  0x32   :  { %613 = vmatmul.mubr.bf16.gmra.mrb[8].mxu0 %v84_v46  ;;  %645 = vmatmul.mubr.bf16.gmra.mrb[8].mxu1 %v100_v47 }
  0x33   :  { %616 = vmatprep.mubr.bf16.mxu0 %v85_v48  ;;  %648 = vmatprep.mubr.bf16.mxu1 %v101_v49 }
  0x3a   :  { %617 = vmatmul.mubr.bf16.gmra.mrb[12].mxu0 %v86_v58  ;;  %649 = vmatmul.mubr.bf16.gmra.mrb[12].mxu1 %v102_v59 }
  0x3b   :  { %620 = vmatprep.mubr.bf16.mxu0 %v87_v60  ;;  %652 = vmatprep.mubr.bf16.mxu1 %v103_v61 }
  0x42   :  { %621 = vmatmul.mubr.bf16.gmra.mrb[16].mxu0 %v88_v6  ;;  %653 = vmatmul.mubr.bf16.gmra.mrb[16].mxu1 %v104_v7 }
  0x43   :  { %624 = vmatprep.mubr.bf16.mxu0 %v89_v8  ;;  %656 = vmatprep.mubr.bf16.mxu1 %v105_v9 }
  0x4a   :  { %625 = vmatmul.mubr.bf16.gmra.mrb[20].mxu0 %v90_v18  ;;  %657 = vmatmul.mubr.bf16.gmra.mrb[20].mxu1 %v106_v19 }
  0x4b   :  { %628 = vmatprep.mubr.bf16.mxu0 %v91_v20  ;;  %660 = vmatprep.mubr.bf16.mxu1 %v107_v21 }
  0x52   :  { %629 = vmatmul.mubr.bf16.gmra.mrb[24].mxu0 %v92_v30  ;;  %661 = vmatmul.mubr.bf16.gmra.mrb[24].mxu1 %v108_v31 }
  0x53   :  { %632 = vmatprep.mubr.bf16.mxu0 %v93_v32  ;;  %664 = vmatprep.mubr.bf16.mxu1 %v109_v33 }
  0x5a   :  { %633 = vmatmul.mubr.bf16.gmra.mrb[28].mxu0 %v94_v38  ;;  %665 = vmatmul.mubr.bf16.gmra.mrb[28].mxu1 %v110_v39 }
  0xf5   :  { %v606_v41 = vpop.f32.mrb[0].mxu0  ;;  %v638_v42 = vpop.f32.mrb[0].mxu1 }
  0xf6   :  { %v225_v43 = vadd.f32 %v606_v41, %v931_v40  ;;  %v353_v44 = vadd.f32 %v638_v42, %v931_v40  ;;  %v216_v45 = vpop.f32.mrb[1].mxu0  ;;  %v344_v46 = vpop.f32.mrb[1].mxu1 }
  0xf7   :  { %v217_v47 = vadd.f32 %v931_v40, %v216_v45  ;;  %v345_v48 = vadd.f32 %v931_v40, %v344_v46  ;;  %v607_v49 = vpop.f32.mrb[2].mxu0  ;;  %v639_v50 = vpop.f32.mrb[2].mxu1 }
  0xf8   :  { %473 = vst [vmem:[%s1192_s3 + $0x10] sm:$0xff] %v225_v43  ;;  %505 = vst [vmem:[%s1192_s3 + $0x110] sm:$0xff] %v353_v44  ;;  %v228_v51 = vadd.f32 %v607_v49, %v931_v40  ;;  %v356_v52 = vadd.f32 %v639_v50, %v931_v40  ;;  %v219_v53 = vpop.f32.mrb[3].mxu0  ;;  %v347_v54 = vpop.f32.mrb[3].mxu1 }
  0xf9   :  { %471 = vst [vmem:[%s1192_s3] sm:$0xff] %v217_v47  ;;  %503 = vst [vmem:[%s1192_s3 + $0x100] sm:$0xff] %v345_v48  ;;  %v220_v55 = vadd.f32 %v931_v40, %v219_v53  ;;  %v348_v56 = vadd.f32 %v931_v40, %v347_v54 }
  0xfa   :  { %474 = vst [vmem:[%s1192_s3 + $0x18] sm:$0xff] %v228_v51  ;;  %506 = vst [vmem:[%s1192_s3 + $0x118] sm:$0xff] %v356_v52 }
  0xfb   :  { %472 = vst [vmem:[%s1192_s3 + $0x8] sm:$0xff] %v220_v55  ;;  %504 = vst [vmem:[%s1192_s3 + $0x108] sm:$0xff] %v348_v56 }
  0xfd   :  { %v610_v57 = vpop.f32.mrb[4].mxu0  ;;  %v642_v58 = vpop.f32.mrb[4].mxu1 }
  0xfe   :  { %v241_v59 = vadd.f32 %v610_v57, %v931_v40  ;;  %v369_v60 = vadd.f32 %v642_v58, %v931_v40  ;;  %v232_v61 = vpop.f32.mrb[5].mxu0  ;;  %v360_v62 = vpop.f32.mrb[5].mxu1 }
  0xff   :  { %v233_v63 = vadd.f32 %v931_v40, %v232_v61  ;;  %v361_v0 = vadd.f32 %v931_v40, %v360_v62  ;;  %v611_v1 = vpop.f32.mrb[6].mxu0  ;;  %v643_v2 = vpop.f32.mrb[6].mxu1 }
 0x100   :  { %477 = vst [vmem:[%s1192_s3 + $0x30] sm:$0xff] %v241_v59  ;;  %509 = vst [vmem:[%s1192_s3 + $0x130] sm:$0xff] %v369_v60  ;;  %v244_v3 = vadd.f32 %v611_v1, %v931_v40  ;;  %v372_v4 = vadd.f32 %v643_v2, %v931_v40  ;;  %v235_v5 = vpop.f32.mrb[7].mxu0  ;;  %v363_v6 = vpop.f32.mrb[7].mxu1 }
 0x101   :  { %475 = vst [vmem:[%s1192_s3 + $0x20] sm:$0xff] %v233_v63  ;;  %507 = vst [vmem:[%s1192_s3 + $0x120] sm:$0xff] %v361_v0  ;;  %v236_v7 = vadd.f32 %v931_v40, %v235_v5  ;;  %v364_v8 = vadd.f32 %v931_v40, %v363_v6 }
 0x102   :  { %478 = vst [vmem:[%s1192_s3 + $0x38] sm:$0xff] %v244_v3  ;;  %510 = vst [vmem:[%s1192_s3 + $0x138] sm:$0xff] %v372_v4 }
 0x103   :  { %476 = vst [vmem:[%s1192_s3 + $0x28] sm:$0xff] %v236_v7  ;;  %508 = vst [vmem:[%s1192_s3 + $0x128] sm:$0xff] %v364_v8 }
 0x105   :  { %v614_v9 = vpop.f32.mrb[8].mxu0  ;;  %v646_v10 = vpop.f32.mrb[8].mxu1 }
 0x106   :  { %v257_v11 = vadd.f32 %v614_v9, %v931_v40  ;;  %v385_v12 = vadd.f32 %v646_v10, %v931_v40  ;;  %v248_v13 = vpop.f32.mrb[9].mxu0  ;;  %v376_v14 = vpop.f32.mrb[9].mxu1 }
 0x107   :  { %v249_v15 = vadd.f32 %v931_v40, %v248_v13  ;;  %v377_v16 = vadd.f32 %v931_v40, %v376_v14  ;;  %v615_v17 = vpop.f32.mrb[10].mxu0  ;;  %v647_v18 = vpop.f32.mrb[10].mxu1 }
 0x108   :  { %481 = vst [vmem:[%s1192_s3 + $0x50] sm:$0xff] %v257_v11  ;;  %513 = vst [vmem:[%s1192_s3 + $0x150] sm:$0xff] %v385_v12  ;;  %v260_v19 = vadd.f32 %v615_v17, %v931_v40  ;;  %v388_v20 = vadd.f32 %v647_v18, %v931_v40  ;;  %v251_v21 = vpop.f32.mrb[11].mxu0  ;;  %v379_v22 = vpop.f32.mrb[11].mxu1 }
 0x109   :  { %479 = vst [vmem:[%s1192_s3 + $0x40] sm:$0xff] %v249_v15  ;;  %511 = vst [vmem:[%s1192_s3 + $0x140] sm:$0xff] %v377_v16  ;;  %v252_v23 = vadd.f32 %v931_v40, %v251_v21  ;;  %v380_v24 = vadd.f32 %v931_v40, %v379_v22 }
 0x10a   :  { %482 = vst [vmem:[%s1192_s3 + $0x58] sm:$0xff] %v260_v19  ;;  %514 = vst [vmem:[%s1192_s3 + $0x158] sm:$0xff] %v388_v20 }
 0x10b   :  { %480 = vst [vmem:[%s1192_s3 + $0x48] sm:$0xff] %v252_v23  ;;  %512 = vst [vmem:[%s1192_s3 + $0x148] sm:$0xff] %v380_v24 }
 0x10d   :  { %v618_v25 = vpop.f32.mrb[12].mxu0  ;;  %v650_v26 = vpop.f32.mrb[12].mxu1 }
 0x10e   :  { %v273_v27 = vadd.f32 %v618_v25, %v931_v40  ;;  %v401_v28 = vadd.f32 %v650_v26, %v931_v40  ;;  %v264_v29 = vpop.f32.mrb[13].mxu0  ;;  %v392_v30 = vpop.f32.mrb[13].mxu1 }
 0x10f   :  { %v265_v31 = vadd.f32 %v931_v40, %v264_v29  ;;  %v393_v32 = vadd.f32 %v931_v40, %v392_v30  ;;  %v619_v33 = vpop.f32.mrb[14].mxu0  ;;  %v651_v34 = vpop.f32.mrb[14].mxu1 }
 0x110   :  { %485 = vst [vmem:[%s1192_s3 + $0x70] sm:$0xff] %v273_v27  ;;  %517 = vst [vmem:[%s1192_s3 + $0x170] sm:$0xff] %v401_v28  ;;  %v276_v35 = vadd.f32 %v619_v33, %v931_v40  ;;  %v404_v36 = vadd.f32 %v651_v34, %v931_v40  ;;  %v267_v37 = vpop.f32.mrb[15].mxu0  ;;  %v395_v38 = vpop.f32.mrb[15].mxu1 }
 0x111   :  { %483 = vst [vmem:[%s1192_s3 + $0x60] sm:$0xff] %v265_v31  ;;  %515 = vst [vmem:[%s1192_s3 + $0x160] sm:$0xff] %v393_v32  ;;  %v268_v39 = vadd.f32 %v931_v40, %v267_v37  ;;  %v396_v41 = vadd.f32 %v931_v40, %v395_v38 }
 0x112   :  { %486 = vst [vmem:[%s1192_s3 + $0x78] sm:$0xff] %v276_v35  ;;  %518 = vst [vmem:[%s1192_s3 + $0x178] sm:$0xff] %v404_v36 }
 0x113   :  { %484 = vst [vmem:[%s1192_s3 + $0x68] sm:$0xff] %v268_v39  ;;  %516 = vst [vmem:[%s1192_s3 + $0x168] sm:$0xff] %v396_v41 }
 0x115   :  { %v622_v42 = vpop.f32.mrb[16].mxu0  ;;  %v654_v43 = vpop.f32.mrb[16].mxu1 }
 0x116   :  { %v289_v44 = vadd.f32 %v622_v42, %v931_v40  ;;  %v417_v45 = vadd.f32 %v654_v43, %v931_v40  ;;  %v280_v46 = vpop.f32.mrb[17].mxu0  ;;  %v408_v47 = vpop.f32.mrb[17].mxu1 }
 0x117   :  { %v281_v48 = vadd.f32 %v931_v40, %v280_v46  ;;  %v409_v49 = vadd.f32 %v931_v40, %v408_v47  ;;  %v623_v50 = vpop.f32.mrb[18].mxu0  ;;  %v655_v51 = vpop.f32.mrb[18].mxu1 }
 0x118   :  { %489 = vst [vmem:[%s1192_s3 + $0x90] sm:$0xff] %v289_v44  ;;  %521 = vst [vmem:[%s1192_s3 + $0x190] sm:$0xff] %v417_v45  ;;  %v292_v52 = vadd.f32 %v623_v50, %v931_v40  ;;  %v420_v53 = vadd.f32 %v655_v51, %v931_v40  ;;  %v283_v54 = vpop.f32.mrb[19].mxu0  ;;  %v411_v55 = vpop.f32.mrb[19].mxu1 }
 0x119   :  { %487 = vst [vmem:[%s1192_s3 + $0x80] sm:$0xff] %v281_v48  ;;  %519 = vst [vmem:[%s1192_s3 + $0x180] sm:$0xff] %v409_v49  ;;  %v284_v56 = vadd.f32 %v931_v40, %v283_v54  ;;  %v412_v57 = vadd.f32 %v931_v40, %v411_v55 }
 0x11a   :  { %490 = vst [vmem:[%s1192_s3 + $0x98] sm:$0xff] %v292_v52  ;;  %522 = vst [vmem:[%s1192_s3 + $0x198] sm:$0xff] %v420_v53 }
 0x11b   :  { %488 = vst [vmem:[%s1192_s3 + $0x88] sm:$0xff] %v284_v56  ;;  %520 = vst [vmem:[%s1192_s3 + $0x188] sm:$0xff] %v412_v57 }
 0x11d   :  { %v626_v58 = vpop.f32.mrb[20].mxu0  ;;  %v658_v59 = vpop.f32.mrb[20].mxu1 }
 0x11e   :  { %v305_v60 = vadd.f32 %v626_v58, %v931_v40  ;;  %v433_v61 = vadd.f32 %v658_v59, %v931_v40  ;;  %v296_v62 = vpop.f32.mrb[21].mxu0  ;;  %v424_v63 = vpop.f32.mrb[21].mxu1 }
 0x11f   :  { %v297_v0 = vadd.f32 %v931_v40, %v296_v62  ;;  %v425_v1 = vadd.f32 %v931_v40, %v424_v63  ;;  %v627_v2 = vpop.f32.mrb[22].mxu0  ;;  %v659_v3 = vpop.f32.mrb[22].mxu1 }
 0x120   :  { %493 = vst [vmem:[%s1192_s3 + $0xb0] sm:$0xff] %v305_v60  ;;  %525 = vst [vmem:[%s1192_s3 + $0x1b0] sm:$0xff] %v433_v61  ;;  %v308_v4 = vadd.f32 %v627_v2, %v931_v40  ;;  %v436_v5 = vadd.f32 %v659_v3, %v931_v40  ;;  %v299_v6 = vpop.f32.mrb[23].mxu0  ;;  %v427_v7 = vpop.f32.mrb[23].mxu1 }
 0x121   :  { %491 = vst [vmem:[%s1192_s3 + $0xa0] sm:$0xff] %v297_v0  ;;  %523 = vst [vmem:[%s1192_s3 + $0x1a0] sm:$0xff] %v425_v1  ;;  %v300_v8 = vadd.f32 %v931_v40, %v299_v6  ;;  %v428_v9 = vadd.f32 %v931_v40, %v427_v7 }
 0x122   :  { %494 = vst [vmem:[%s1192_s3 + $0xb8] sm:$0xff] %v308_v4  ;;  %526 = vst [vmem:[%s1192_s3 + $0x1b8] sm:$0xff] %v436_v5 }
 0x123   :  { %492 = vst [vmem:[%s1192_s3 + $0xa8] sm:$0xff] %v300_v8  ;;  %524 = vst [vmem:[%s1192_s3 + $0x1a8] sm:$0xff] %v428_v9 }
 0x125   :  { %v630_v10 = vpop.f32.mrb[24].mxu0  ;;  %v662_v11 = vpop.f32.mrb[24].mxu1 }
 0x126   :  { %v321_v12 = vadd.f32 %v630_v10, %v931_v40  ;;  %v449_v13 = vadd.f32 %v662_v11, %v931_v40  ;;  %v312_v14 = vpop.f32.mrb[25].mxu0  ;;  %v440_v15 = vpop.f32.mrb[25].mxu1 }
 0x127   :  { %v313_v16 = vadd.f32 %v931_v40, %v312_v14  ;;  %v441_v17 = vadd.f32 %v931_v40, %v440_v15  ;;  %v631_v18 = vpop.f32.mrb[26].mxu0  ;;  %v663_v19 = vpop.f32.mrb[26].mxu1 }
 0x128   :  { %497 = vst [vmem:[%s1192_s3 + $0xd0] sm:$0xff] %v321_v12  ;;  %529 = vst [vmem:[%s1192_s3 + $0x1d0] sm:$0xff] %v449_v13  ;;  %v324_v20 = vadd.f32 %v631_v18, %v931_v40  ;;  %v452_v21 = vadd.f32 %v663_v19, %v931_v40  ;;  %v315_v22 = vpop.f32.mrb[27].mxu0  ;;  %v443_v23 = vpop.f32.mrb[27].mxu1 }
 0x129   :  { %495 = vst [vmem:[%s1192_s3 + $0xc0] sm:$0xff] %v313_v16  ;;  %527 = vst [vmem:[%s1192_s3 + $0x1c0] sm:$0xff] %v441_v17  ;;  %v316_v24 = vadd.f32 %v931_v40, %v315_v22  ;;  %v444_v25 = vadd.f32 %v931_v40, %v443_v23 }
 0x12a   :  { %498 = vst [vmem:[%s1192_s3 + $0xd8] sm:$0xff] %v324_v20  ;;  %530 = vst [vmem:[%s1192_s3 + $0x1d8] sm:$0xff] %v452_v21 }
 0x12b   :  { %496 = vst [vmem:[%s1192_s3 + $0xc8] sm:$0xff] %v316_v24  ;;  %528 = vst [vmem:[%s1192_s3 + $0x1c8] sm:$0xff] %v444_v25 }
 0x12d   :  { %v634_v26 = vpop.f32.mrb[28].mxu0  ;;  %v666_v27 = vpop.f32.mrb[28].mxu1 }
 0x12e   :  { %v337_v28 = vadd.f32 %v634_v26, %v931_v40  ;;  %v465_v29 = vadd.f32 %v666_v27, %v931_v40  ;;  %v328_v30 = vpop.f32.mrb[29].mxu0  ;;  %v456_v31 = vpop.f32.mrb[29].mxu1 }
 0x12f   :  { %v329_v32 = vadd.f32 %v931_v40, %v328_v30  ;;  %v457_v33 = vadd.f32 %v931_v40, %v456_v31  ;;  %v635_v34 = vpop.f32.mrb[30].mxu0  ;;  %v667_v35 = vpop.f32.mrb[30].mxu1 }
 0x130   :  { %501 = vst [vmem:[%s1192_s3 + $0xf0] sm:$0xff] %v337_v28  ;;  %533 = vst [vmem:[%s1192_s3 + $0x1f0] sm:$0xff] %v465_v29  ;;  %v340_v36 = vadd.f32 %v635_v34, %v931_v40  ;;  %v468_v37 = vadd.f32 %v667_v35, %v931_v40  ;;  %v331_v38 = vpop.f32.mrb[31].mxu0  ;;  %v459_v39 = vpop.f32.mrb[31].mxu1 }
 0x131   :  { %499 = vst [vmem:[%s1192_s3 + $0xe0] sm:$0xff] %v329_v32  ;;  %531 = vst [vmem:[%s1192_s3 + $0x1e0] sm:$0xff] %v457_v33  ;;  %v332_v41 = vadd.f32 %v931_v40, %v331_v38  ;;  %v460_v42 = vadd.f32 %v931_v40, %v459_v39 }
 0x132   :  { %502 = vst [vmem:[%s1192_s3 + $0xf8] sm:$0xff] %v340_v36  ;;  %534 = vst [vmem:[%s1192_s3 + $0x1f8] sm:$0xff] %v468_v37 }
 0x133   :  { %500 = vst [vmem:[%s1192_s3 + $0xe8] sm:$0xff] %v332_v41  ;;  %532 = vst [vmem:[%s1192_s3 + $0x1e8] sm:$0xff] %v460_v42 }

// kernel: _lambda_.15
= control target key start
LH: loop header
LB: loop body
LE: loop exit
PB: predicated region body
PF: predicated region fallthrough
CT: control target
= control target key end

     0   :  { %s1703_s0 = inlined_call_operand.vmem [shape: f32[512,128], index: 0, kind: input, shape index: {}]   ;;  %s1704_s2 = inlined_call_operand.vmem [shape: f32[1,128], index: 2, kind: input, shape index: {}]   ;;  %s1705_s3 = inlined_call_operand.vmem [shape: f32[1,128], index: 3, kind: input, shape index: {}]   ;;  %s1706_s1 = inlined_call_operand.vmem [shape: f32[512,128], index: 1, kind: input, shape index: {}]   ;;  %s1707_s4 = inlined_call_operand.vmem [shape: bf16[512,128], index: 4, kind: output, shape index: {}]  }
   0x1   :  { %v17_v0 = vld [vmem:[%s1703_s0] sm:$0xff]  ;;  %v18_v1 = vld [vmem:[%s1703_s0 + $0x8] sm:$0xff]  ;;  %v19_v6 = vld [vmem:[%s1703_s0 + $0x10] sm:$0xff] }
   0x2   :  { %v1094_v2 = vld [vmem:[%s1704_s2] ss:$0 sm:$0xff]  ;;  %v20_v7 = vld [vmem:[%s1703_s0 + $0x18] sm:$0xff]  ;;  %v22_v13 = vld [vmem:[%s1703_s0 + $0x28] sm:$0xff] }
   0x3   :  { %v88_v3 = vmul.f32 %v1094_v2, %v17_v0  ;;  %v89_v4 = vmul.f32 %v1094_v2, %v18_v1  ;;  %v1101_v5 = vld [vmem:[%s1705_s3] ss:$0 sm:$0xff]  ;;  %v90_v10 = vmul.f32 %v1094_v2, %v19_v6  ;;  %v91_v11 = vmul.f32 %v1094_v2, %v20_v7  ;;  %v288_v15 = vld [vmem:[%s1706_s1 + $0x8] sm:$0xff]  ;;  %v23_v18 = vld [vmem:[%s1703_s0 + $0x30] sm:$0xff] }
   0x4   :  { %v21_v12 = vld [vmem:[%s1703_s0 + $0x20] sm:$0xff]  ;;  %v93_v17 = vmul.f32 %v1094_v2, %v22_v13  ;;  %v24_v23 = vld [vmem:[%s1703_s0 + $0x38] sm:$0xff]  ;;  %v289_v24 = vld [vmem:[%s1706_s1 + $0x10] sm:$0xff]  ;;  %v94_v28 = vmul.f32 %v1094_v2, %v23_v18 }
   0x5   :  { %v159_v8 = vadd.f32 %v1101_v5, %v88_v3  ;;  %v160_v9 = vadd.f32 %v1101_v5, %v89_v4  ;;  %v287_v14 = vld [vmem:[%s1706_s1] sm:$0xff]  ;;  %v92_v16 = vmul.f32 %v1094_v2, %v21_v12  ;;  %v161_v21 = vadd.f32 %v1101_v5, %v90_v10  ;;  %v290_v25 = vld [vmem:[%s1706_s1 + $0x18] sm:$0xff]  ;;  %v292_v36 = vld [vmem:[%s1706_s1 + $0x28] sm:$0xff] }
   0x6   :  { %v162_v22 = vadd.f32 %v1101_v5, %v91_v11  ;;  %v164_v27 = vadd.f32 %v1101_v5, %v93_v17  ;;  %v95_v29 = vmul.f32 %v1094_v2, %v24_v23  ;;  %v25_v30 = vld [vmem:[%s1703_s0 + $0x40] sm:$0xff]  ;;  %v165_v39 = vadd.f32 %v1101_v5, %v94_v28  ;;  %v26_v41 = vld [vmem:[%s1703_s0 + $0x48] sm:$0xff]  ;;  %v27_v42 = vld [vmem:[%s1703_s0 + $0x50] sm:$0xff] }
   0x7   :  { %v223_v19 = vmax.f32 %v159_v8, 0.0  ;;  %v224_v20 = vmax.f32 %v160_v9, 0.0  ;;  %v163_v26 = vadd.f32 %v1101_v5, %v92_v16  ;;  %v225_v33 = vmax.f32 %v161_v21, 0.0  ;;  %v291_v35 = vld [vmem:[%s1706_s1 + $0x20] sm:$0xff]  ;;  %v293_v46 = vld [vmem:[%s1706_s1 + $0x30] sm:$0xff]  ;;  %v294_v47 = vld [vmem:[%s1706_s1 + $0x38] sm:$0xff] }
   0x8   :  { %v226_v34 = vmax.f32 %v162_v22, 0.0  ;;  %v228_v38 = vmax.f32 %v164_v27, 0.0  ;;  %v166_v40 = vadd.f32 %v1101_v5, %v95_v29  ;;  %v96_v48 = vmul.f32 %v1094_v2, %v25_v30  ;;  %v28_v49 = vld [vmem:[%s1703_s0 + $0x58] sm:$0xff]  ;;  %v29_v54 = vld [vmem:[%s1703_s0 + $0x60] sm:$0xff]  ;;  %v30_v59 = vld [vmem:[%s1703_s0 + $0x68] sm:$0xff] }
   0x9   :  { %v351_v31 = vadd.f32 %v287_v14, %v223_v19  ;;  %v352_v32 = vadd.f32 %v288_v15, %v224_v20  ;;  %v227_v37 = vmax.f32 %v163_v26, 0.0  ;;  %v353_v44 = vadd.f32 %v289_v24, %v225_v33  ;;  %v31_v60 = vld [vmem:[%s1703_s0 + $0x70] sm:$0xff]  ;;  %v295_v0 = vld [vmem:[%s1706_s1 + $0x40] sm:$0xff]  ;;  %v32_v8 = vld [vmem:[%s1703_s0 + $0x78] sm:$0xff] }
   0xa   :  { %v354_v45 = vadd.f32 %v290_v25, %v226_v34  ;;  %v356_v51 = vadd.f32 %v292_v36, %v228_v38  ;;  %v229_v52 = vmax.f32 %v165_v39, 0.0  ;;  %v230_v53 = vmax.f32 %v166_v40, 0.0  ;;  %v296_v10 = vld [vmem:[%s1706_s1 + $0x48] sm:$0xff]  ;;  %v297_v12 = vld [vmem:[%s1706_s1 + $0x50] sm:$0xff]  ;;  %v33_v15 = vld [vmem:[%s1703_s0 + $0x80] sm:$0xff] }
   0xb   :  { %v872_v43 = vpack.c.bf16 %v352_v32, %v351_v31  ;;  %v355_v50 = vadd.f32 %v291_v35, %v227_v37  ;;  %v97_v56 = vmul.f32 %v1094_v2, %v26_v41  ;;  %v167_v57 = vadd.f32 %v1101_v5, %v96_v48  ;;  %v298_v19 = vld [vmem:[%s1706_s1 + $0x58] sm:$0xff]  ;;  %v299_v23 = vld [vmem:[%s1706_s1 + $0x60] sm:$0xff]  ;;  %v34_v26 = vld [vmem:[%s1703_s0 + $0x88] sm:$0xff] }
   0xc   :  { %v877_v55 = vpack.c.bf16 %v354_v45, %v353_v44  ;;  %v98_v58 = vmul.f32 %v1094_v2, %v27_v42  ;;  %v357_v62 = vadd.f32 %v293_v46, %v229_v52  ;;  %v358_v63 = vadd.f32 %v294_v47, %v230_v53  ;;  %v300_v30 = vld [vmem:[%s1706_s1 + $0x68] sm:$0xff]  ;;  %v301_v31 = vld [vmem:[%s1706_s1 + $0x70] sm:$0xff]  ;;  %v36_v38 = vld [vmem:[%s1703_s0 + $0x98] sm:$0xff] }
   0xd   :  { %873 = vst [vmem:[%s1707_s4] sm:$0xff] %v872_v43   ;;  %v882_v61 = vpack.c.bf16 %v356_v51, %v355_v50  ;;  %v99_v1 = vmul.f32 %v1094_v2, %v28_v49  ;;  %v168_v3 = vadd.f32 %v1101_v5, %v97_v56  ;;  %v231_v4 = vmax.f32 %v167_v57, 0.0  ;;  %v35_v37 = vld [vmem:[%s1703_s0 + $0x90] sm:$0xff]  ;;  %v302_v41 = vld [vmem:[%s1706_s1 + $0x78] sm:$0xff]  ;;  %v37_v44 = vld [vmem:[%s1703_s0 + $0xa0] sm:$0xff] }
   0xe   :  { %1029 = vst [vmem:[%s1707_s4 + $0x8] sm:$0xff] %v877_v55   ;;  %v169_v6 = vadd.f32 %v1101_v5, %v98_v58  ;;  %v100_v7 = vmul.f32 %v1094_v2, %v29_v54  ;;  %v887_v9 = vpack.c.bf16 %v358_v63, %v357_v62  ;;  %v101_v13 = vmul.f32 %v1094_v2, %v30_v59  ;;  %v38_v45 = vld [vmem:[%s1703_s0 + $0xa8] sm:$0xff]  ;;  %v303_v50 = vld [vmem:[%s1706_s1 + $0x80] sm:$0xff]  ;;  %v39_v55 = vld [vmem:[%s1703_s0 + $0xb0] sm:$0xff] }
   0xf   :  { %1030 = vst [vmem:[%s1707_s4 + $0x10] sm:$0xff] %v882_v61   ;;  %v170_v11 = vadd.f32 %v1101_v5, %v99_v1  ;;  %v102_v14 = vmul.f32 %v1094_v2, %v31_v60  ;;  %v232_v16 = vmax.f32 %v168_v3, 0.0  ;;  %v359_v17 = vadd.f32 %v295_v0, %v231_v4  ;;  %v304_v58 = vld [vmem:[%s1706_s1 + $0x88] sm:$0xff]  ;;  %v40_v61 = vld [vmem:[%s1703_s0 + $0xb8] sm:$0xff]  ;;  %v41_v3 = vld [vmem:[%s1703_s0 + $0xc0] sm:$0xff] }
  0x10   :  { %v233_v18 = vmax.f32 %v169_v6, 0.0  ;;  %v171_v20 = vadd.f32 %v1101_v5, %v100_v7  ;;  %1031 = vst [vmem:[%s1707_s4 + $0x18] sm:$0xff] %v887_v9   ;;  %v172_v22 = vadd.f32 %v1101_v5, %v101_v13  ;;  %v103_v24 = vmul.f32 %v1094_v2, %v32_v8  ;;  %v305_v6 = vld [vmem:[%s1706_s1 + $0x90] sm:$0xff]  ;;  %v306_v7 = vld [vmem:[%s1706_s1 + $0x98] sm:$0xff] }
  0x11   :  { %v234_v21 = vmax.f32 %v170_v11, 0.0  ;;  %v173_v25 = vadd.f32 %v1101_v5, %v102_v14  ;;  %v360_v27 = vadd.f32 %v296_v10, %v232_v16  ;;  %v104_v32 = vmul.f32 %v1094_v2, %v33_v15  ;;  %v307_v14 = vld [vmem:[%s1706_s1 + $0xa0] sm:$0xff]  ;;  %v308_v15 = vld [vmem:[%s1706_s1 + $0xa8] sm:$0xff] }
  0x12   :  { %v361_v28 = vadd.f32 %v297_v12, %v233_v18  ;;  %v235_v29 = vmax.f32 %v171_v20, 0.0  ;;  %v236_v34 = vmax.f32 %v172_v22, 0.0  ;;  %v174_v35 = vadd.f32 %v1101_v5, %v103_v24  ;;  %v43_v22 = vld [vmem:[%s1703_s0 + $0xd0] sm:$0xff] }
  0x13   :  { %v362_v33 = vadd.f32 %v298_v19, %v234_v21  ;;  %v237_v36 = vmax.f32 %v173_v25, 0.0  ;;  %v892_v39 = vpack.c.bf16 %v360_v27, %v359_v17  ;;  %v105_v42 = vmul.f32 %v1094_v2, %v34_v26  ;;  %v42_v17 = vld [vmem:[%s1703_s0 + $0xc8] sm:$0xff]  ;;  %v309_v27 = vld [vmem:[%s1706_s1 + $0xb0] sm:$0xff] }
  0x14   :  { %v363_v40 = vadd.f32 %v299_v23, %v235_v29  ;;  %v175_v43 = vadd.f32 %v1101_v5, %v104_v32  ;;  %v364_v47 = vadd.f32 %v300_v30, %v236_v34  ;;  %v238_v48 = vmax.f32 %v174_v35, 0.0  ;;  %v310_v32 = vld [vmem:[%s1706_s1 + $0xb8] sm:$0xff]  ;;  %v45_v34 = vld [vmem:[%s1703_s0 + $0xe0] sm:$0xff] }
  0x15   :  { %v897_v46 = vpack.c.bf16 %v362_v33, %v361_v28  ;;  %v365_v49 = vadd.f32 %v301_v31, %v237_v36  ;;  %1032 = vst [vmem:[%s1707_s4 + $0x20] sm:$0xff] %v892_v39   ;;  %v176_v51 = vadd.f32 %v1101_v5, %v105_v42  ;;  %v106_v53 = vmul.f32 %v1094_v2, %v35_v37  ;;  %v44_v28 = vld [vmem:[%s1703_s0 + $0xd8] sm:$0xff]  ;;  %v46_v39 = vld [vmem:[%s1703_s0 + $0xe8] sm:$0xff] }
  0x16   :  { %v239_v52 = vmax.f32 %v175_v43, 0.0  ;;  %v107_v54 = vmul.f32 %v1094_v2, %v36_v38  ;;  %v902_v56 = vpack.c.bf16 %v364_v47, %v363_v40  ;;  %v366_v57 = vadd.f32 %v302_v41, %v238_v48  ;;  %v47_v40 = vld [vmem:[%s1703_s0 + $0xf0] sm:$0xff]  ;;  %v312_v48 = vld [vmem:[%s1706_s1 + $0xc8] sm:$0xff] }
  0x17   :  { %1033 = vst [vmem:[%s1707_s4 + $0x28] sm:$0xff] %v897_v46   ;;  %v108_v59 = vmul.f32 %v1094_v2, %v37_v44  ;;  %v109_v60 = vmul.f32 %v1094_v2, %v38_v45  ;;  %v240_v62 = vmax.f32 %v176_v51, 0.0  ;;  %v177_v0 = vadd.f32 %v1101_v5, %v106_v53  ;;  %v311_v44 = vld [vmem:[%s1706_s1 + $0xc0] sm:$0xff]  ;;  %v48_v51 = vld [vmem:[%s1703_s0 + $0xf8] sm:$0xff] }
  0x18   :  { %v367_v63 = vadd.f32 %v303_v50, %v239_v52  ;;  %v178_v1 = vadd.f32 %v1101_v5, %v107_v54  ;;  %1034 = vst [vmem:[%s1707_s4 + $0x30] sm:$0xff] %v902_v56   ;;  %v907_v4 = vpack.c.bf16 %v366_v57, %v365_v49  ;;  %v110_v10 = vmul.f32 %v1094_v2, %v39_v55  ;;  %v313_v54 = vld [vmem:[%s1706_s1 + $0xd0] sm:$0xff]  ;;  %v49_v57 = vld [vmem:[%s1703_s0 + $0x100] sm:$0xff] }
  0x19   :  { %v179_v8 = vadd.f32 %v1101_v5, %v108_v59  ;;  %v180_v9 = vadd.f32 %v1101_v5, %v109_v60  ;;  %v368_v11 = vadd.f32 %v304_v58, %v240_v62  ;;  %v241_v12 = vmax.f32 %v177_v0, 0.0 }
  0x1a   :  { %v242_v13 = vmax.f32 %v178_v1, 0.0  ;;  %v111_v16 = vmul.f32 %v1094_v2, %v40_v61  ;;  %1035 = vst [vmem:[%s1707_s4 + $0x38] sm:$0xff] %v907_v4   ;;  %v181_v20 = vadd.f32 %v1101_v5, %v110_v10  ;;  %v112_v21 = vmul.f32 %v1094_v2, %v41_v3  ;;  %v314_v61 = vld [vmem:[%s1706_s1 + $0xd8] sm:$0xff]  ;;  %v315_v3 = vld [vmem:[%s1706_s1 + $0xe0] sm:$0xff] }
  0x1b   :  { %v243_v18 = vmax.f32 %v179_v8, 0.0  ;;  %v244_v19 = vmax.f32 %v180_v9, 0.0  ;;  %v912_v23 = vpack.c.bf16 %v368_v11, %v367_v63  ;;  %v369_v24 = vadd.f32 %v305_v6, %v241_v12  ;;  %v50_v6 = vld [vmem:[%s1703_s0 + $0x108] sm:$0xff]  ;;  %v51_v12 = vld [vmem:[%s1703_s0 + $0x110] sm:$0xff] }
  0x1c   :  { %v370_v25 = vadd.f32 %v306_v7, %v242_v13  ;;  %v182_v26 = vadd.f32 %v1101_v5, %v111_v16  ;;  %v245_v31 = vmax.f32 %v181_v20, 0.0  ;;  %v113_v33 = vmul.f32 %v1094_v2, %v42_v17  ;;  %v316_v9 = vld [vmem:[%s1706_s1 + $0xe8] sm:$0xff]  ;;  %v317_v17 = vld [vmem:[%s1706_s1 + $0xf0] sm:$0xff] }
  0x1d   :  { %v371_v29 = vadd.f32 %v307_v14, %v243_v18  ;;  %v372_v30 = vadd.f32 %v308_v15, %v244_v19  ;;  %1036 = vst [vmem:[%s1707_s4 + $0x40] sm:$0xff] %v912_v23   ;;  %v183_v37 = vadd.f32 %v1101_v5, %v112_v21  ;;  %v114_v38 = vmul.f32 %v1094_v2, %v43_v22  ;;  %v52_v18 = vld [vmem:[%s1703_s0 + $0x118] sm:$0xff] }
  0x1e   :  { %v917_v35 = vpack.c.bf16 %v370_v25, %v369_v24  ;;  %v246_v36 = vmax.f32 %v182_v26, 0.0  ;;  %v373_v42 = vadd.f32 %v309_v27, %v245_v31  ;;  %v184_v43 = vadd.f32 %v1101_v5, %v113_v33  ;;  %v318_v21 = vld [vmem:[%s1706_s1 + $0xf8] sm:$0xff]  ;;  %v53_v24 = vld [vmem:[%s1703_s0 + $0x120] sm:$0xff] }
  0x1f   :  { %v922_v41 = vpack.c.bf16 %v372_v30, %v371_v29  ;;  %v115_v45 = vmul.f32 %v1094_v2, %v44_v28  ;;  %v247_v47 = vmax.f32 %v183_v37, 0.0  ;;  %v185_v49 = vadd.f32 %v1101_v5, %v114_v38  ;;  %v319_v28 = vld [vmem:[%s1706_s1 + $0x100] sm:$0xff]  ;;  %v54_v30 = vld [vmem:[%s1703_s0 + $0x128] sm:$0xff] }
  0x20   :  { %1037 = vst [vmem:[%s1707_s4 + $0x48] sm:$0xff] %v917_v35   ;;  %v374_v46 = vadd.f32 %v310_v32, %v246_v36  ;;  %v116_v50 = vmul.f32 %v1094_v2, %v45_v34  ;;  %v248_v52 = vmax.f32 %v184_v43, 0.0  ;;  %v117_v55 = vmul.f32 %v1094_v2, %v46_v39  ;;  %v55_v35 = vld [vmem:[%s1703_s0 + $0x130] sm:$0xff]  ;;  %v320_v38 = vld [vmem:[%s1706_s1 + $0x108] sm:$0xff] }
  0x21   :  { %1038 = vst [vmem:[%s1707_s4 + $0x50] sm:$0xff] %v922_v41   ;;  %v186_v53 = vadd.f32 %v1101_v5, %v115_v45  ;;  %v118_v56 = vmul.f32 %v1094_v2, %v47_v40  ;;  %v375_v59 = vadd.f32 %v311_v44, %v247_v47  ;;  %v249_v60 = vmax.f32 %v185_v49, 0.0  ;;  %v56_v41 = vld [vmem:[%s1703_s0 + $0x138] sm:$0xff]  ;;  %v321_v45 = vld [vmem:[%s1706_s1 + $0x110] sm:$0xff]  ;;  %v57_v47 = vld [vmem:[%s1703_s0 + $0x140] sm:$0xff] }
  0x22   :  { %v927_v58 = vpack.c.bf16 %v374_v46, %v373_v42  ;;  %v187_v62 = vadd.f32 %v1101_v5, %v116_v50  ;;  %v376_v63 = vadd.f32 %v312_v48, %v248_v52  ;;  %v188_v1 = vadd.f32 %v1101_v5, %v117_v55  ;;  %v322_v50 = vld [vmem:[%s1706_s1 + $0x118] sm:$0xff] }
  0x23   :  { %v250_v0 = vmax.f32 %v186_v53, 0.0  ;;  %v119_v4 = vmul.f32 %v1094_v2, %v48_v51  ;;  %v377_v7 = vadd.f32 %v313_v54, %v249_v60  ;;  %v189_v10 = vadd.f32 %v1101_v5, %v118_v56  ;;  %v323_v56 = vld [vmem:[%s1706_s1 + $0x120] sm:$0xff] }
  0x24   :  { %1039 = vst [vmem:[%s1707_s4 + $0x58] sm:$0xff] %v927_v58   ;;  %v251_v8 = vmax.f32 %v187_v62, 0.0  ;;  %v120_v11 = vmul.f32 %v1094_v2, %v49_v57  ;;  %v932_v13 = vpack.c.bf16 %v376_v63, %v375_v59  ;;  %v252_v15 = vmax.f32 %v188_v1, 0.0  ;;  %v58_v58 = vld [vmem:[%s1703_s0 + $0x148] sm:$0xff] }
  0x25   :  { %v378_v14 = vadd.f32 %v314_v61, %v250_v0  ;;  %v190_v16 = vadd.f32 %v1101_v5, %v119_v4  ;;  %v253_v20 = vmax.f32 %v189_v10, 0.0  ;;  %v121_v22 = vmul.f32 %v1094_v2, %v50_v6  ;;  %v324_v61 = vld [vmem:[%s1706_s1 + $0x128] sm:$0xff]  ;;  %v59_v0 = vld [vmem:[%s1703_s0 + $0x150] sm:$0xff] }
  0x26   :  { %v379_v19 = vadd.f32 %v315_v3, %v251_v8  ;;  %v191_v23 = vadd.f32 %v1101_v5, %v120_v11  ;;  %1040 = vst [vmem:[%s1707_s4 + $0x60] sm:$0xff] %v932_v13   ;;  %v380_v26 = vadd.f32 %v316_v9, %v252_v15  ;;  %v122_v29 = vmul.f32 %v1094_v2, %v51_v12  ;;  %v60_v8 = vld [vmem:[%s1703_s0 + $0x158] sm:$0xff] }
  0x27   :  { %v937_v25 = vpack.c.bf16 %v378_v14, %v377_v7  ;;  %v254_v27 = vmax.f32 %v190_v16, 0.0  ;;  %v381_v31 = vadd.f32 %v317_v17, %v253_v20  ;;  %v192_v32 = vadd.f32 %v1101_v5, %v121_v22  ;;  %v325_v7 = vld [vmem:[%s1706_s1 + $0x130] sm:$0xff]  ;;  %v326_v11 = vld [vmem:[%s1706_s1 + $0x138] sm:$0xff]  ;;  %v61_v14 = vld [vmem:[%s1703_s0 + $0x160] sm:$0xff] }
  0x28   :  { %v255_v33 = vmax.f32 %v191_v23, 0.0  ;;  %v123_v34 = vmul.f32 %v1094_v2, %v52_v18  ;;  %v942_v36 = vpack.c.bf16 %v380_v26, %v379_v19  ;;  %v193_v39 = vadd.f32 %v1101_v5, %v122_v29  ;;  %v327_v18 = vld [vmem:[%s1706_s1 + $0x140] sm:$0xff]  ;;  %v62_v20 = vld [vmem:[%s1703_s0 + $0x168] sm:$0xff] }
  0x29   :  { %1041 = vst [vmem:[%s1707_s4 + $0x68] sm:$0xff] %v937_v25   ;;  %v382_v37 = vadd.f32 %v318_v21, %v254_v27  ;;  %v124_v40 = vmul.f32 %v1094_v2, %v53_v24  ;;  %v256_v42 = vmax.f32 %v192_v32, 0.0  ;;  %v125_v46 = vmul.f32 %v1094_v2, %v54_v30  ;;  %v63_v25 = vld [vmem:[%s1703_s0 + $0x170] sm:$0xff] }
  0x2a   :  { %v383_v43 = vadd.f32 %v319_v28, %v255_v33  ;;  %v194_v44 = vadd.f32 %v1101_v5, %v123_v34  ;;  %1042 = vst [vmem:[%s1707_s4 + $0x70] sm:$0xff] %v942_v36   ;;  %v257_v49 = vmax.f32 %v193_v39, 0.0  ;;  %v126_v52 = vmul.f32 %v1094_v2, %v55_v35  ;;  %v328_v28 = vld [vmem:[%s1706_s1 + $0x148] sm:$0xff]  ;;  %v329_v35 = vld [vmem:[%s1706_s1 + $0x150] sm:$0xff] }
  0x2b   :  { %v947_v48 = vpack.c.bf16 %v382_v37, %v381_v31  ;;  %v195_v51 = vadd.f32 %v1101_v5, %v124_v40  ;;  %v384_v53 = vadd.f32 %v320_v38, %v256_v42  ;;  %v196_v55 = vadd.f32 %v1101_v5, %v125_v46  ;;  %v64_v31 = vld [vmem:[%s1703_s0 + $0x178] sm:$0xff]  ;;  %v65_v37 = vld [vmem:[%s1703_s0 + $0x180] sm:$0xff] }
  0x2c   :  { %v258_v54 = vmax.f32 %v194_v44, 0.0  ;;  %v127_v57 = vmul.f32 %v1094_v2, %v56_v41  ;;  %v385_v59 = vadd.f32 %v321_v45, %v257_v49  ;;  %v197_v62 = vadd.f32 %v1101_v5, %v126_v52  ;;  %v330_v40 = vld [vmem:[%s1706_s1 + $0x158] sm:$0xff]  ;;  %v331_v46 = vld [vmem:[%s1706_s1 + $0x160] sm:$0xff] }
  0x2d   :  { %1043 = vst [vmem:[%s1707_s4 + $0x78] sm:$0xff] %v947_v48   ;;  %v259_v60 = vmax.f32 %v195_v51, 0.0  ;;  %v128_v63 = vmul.f32 %v1094_v2, %v57_v47  ;;  %v952_v1 = vpack.c.bf16 %v384_v53, %v383_v43  ;;  %v260_v4 = vmax.f32 %v196_v55, 0.0  ;;  %v66_v48 = vld [vmem:[%s1703_s0 + $0x188] sm:$0xff] }
  0x2e   :  { %v386_v3 = vadd.f32 %v322_v50, %v258_v54  ;;  %v198_v6 = vadd.f32 %v1101_v5, %v127_v57  ;;  %v261_v10 = vmax.f32 %v197_v62, 0.0  ;;  %v129_v12 = vmul.f32 %v1094_v2, %v58_v58  ;;  %v332_v51 = vld [vmem:[%s1706_s1 + $0x168] sm:$0xff]  ;;  %v67_v54 = vld [vmem:[%s1703_s0 + $0x190] sm:$0xff] }
  0x2f   :  { %v387_v9 = vadd.f32 %v323_v56, %v259_v60  ;;  %v199_v13 = vadd.f32 %v1101_v5, %v128_v63  ;;  %1044 = vst [vmem:[%s1707_s4 + $0x80] sm:$0xff] %v952_v1   ;;  %v388_v16 = vadd.f32 %v324_v61, %v260_v4  ;;  %v130_v19 = vmul.f32 %v1094_v2, %v59_v0  ;;  %v68_v60 = vld [vmem:[%s1703_s0 + $0x198] sm:$0xff] }
  0x30   :  { %v957_v15 = vpack.c.bf16 %v386_v3, %v385_v59  ;;  %v262_v17 = vmax.f32 %v198_v6, 0.0  ;;  %v389_v21 = vadd.f32 %v325_v7, %v261_v10  ;;  %v200_v22 = vadd.f32 %v1101_v5, %v129_v12  ;;  %v333_v59 = vld [vmem:[%s1706_s1 + $0x170] sm:$0xff]  ;;  %v334_v63 = vld [vmem:[%s1706_s1 + $0x178] sm:$0xff]  ;;  %v69_v3 = vld [vmem:[%s1703_s0 + $0x1a0] sm:$0xff] }
  0x31   :  { %v263_v23 = vmax.f32 %v199_v13, 0.0  ;;  %v131_v24 = vmul.f32 %v1094_v2, %v60_v8  ;;  %v962_v26 = vpack.c.bf16 %v388_v16, %v387_v9  ;;  %v201_v29 = vadd.f32 %v1101_v5, %v130_v19  ;;  %v335_v8 = vld [vmem:[%s1706_s1 + $0x180] sm:$0xff]  ;;  %v70_v10 = vld [vmem:[%s1703_s0 + $0x1a8] sm:$0xff] }
  0x32   :  { %1045 = vst [vmem:[%s1707_s4 + $0x88] sm:$0xff] %v957_v15   ;;  %v390_v27 = vadd.f32 %v326_v11, %v262_v17  ;;  %v132_v30 = vmul.f32 %v1094_v2, %v61_v14  ;;  %v264_v32 = vmax.f32 %v200_v22, 0.0  ;;  %v133_v36 = vmul.f32 %v1094_v2, %v62_v20  ;;  %v71_v15 = vld [vmem:[%s1703_s0 + $0x1b0] sm:$0xff] }
  0x33   :  { %v391_v33 = vadd.f32 %v327_v18, %v263_v23  ;;  %v202_v34 = vadd.f32 %v1101_v5, %v131_v24  ;;  %1046 = vst [vmem:[%s1707_s4 + $0x90] sm:$0xff] %v962_v26   ;;  %v265_v39 = vmax.f32 %v201_v29, 0.0  ;;  %v134_v42 = vmul.f32 %v1094_v2, %v63_v25  ;;  %v336_v18 = vld [vmem:[%s1706_s1 + $0x188] sm:$0xff]  ;;  %v337_v25 = vld [vmem:[%s1706_s1 + $0x190] sm:$0xff] }
  0x34   :  { %v967_v38 = vpack.c.bf16 %v390_v27, %v389_v21  ;;  %v203_v41 = vadd.f32 %v1101_v5, %v132_v30  ;;  %v392_v43 = vadd.f32 %v328_v28, %v264_v32  ;;  %v204_v45 = vadd.f32 %v1101_v5, %v133_v36  ;;  %v72_v21 = vld [vmem:[%s1703_s0 + $0x1b8] sm:$0xff]  ;;  %v73_v27 = vld [vmem:[%s1703_s0 + $0x1c0] sm:$0xff] }
  0x35   :  { %v266_v44 = vmax.f32 %v202_v34, 0.0  ;;  %v135_v47 = vmul.f32 %v1094_v2, %v64_v31  ;;  %v393_v49 = vadd.f32 %v329_v35, %v265_v39  ;;  %v205_v52 = vadd.f32 %v1101_v5, %v134_v42  ;;  %v338_v30 = vld [vmem:[%s1706_s1 + $0x198] sm:$0xff]  ;;  %v339_v36 = vld [vmem:[%s1706_s1 + $0x1a0] sm:$0xff] }
  0x36   :  { %1047 = vst [vmem:[%s1707_s4 + $0x98] sm:$0xff] %v967_v38   ;;  %v267_v50 = vmax.f32 %v203_v41, 0.0  ;;  %v136_v53 = vmul.f32 %v1094_v2, %v65_v37  ;;  %v972_v55 = vpack.c.bf16 %v392_v43, %v391_v33  ;;  %v268_v57 = vmax.f32 %v204_v45, 0.0  ;;  %v74_v38 = vld [vmem:[%s1703_s0 + $0x1c8] sm:$0xff] }
  0x37   :  { %v394_v56 = vadd.f32 %v330_v40, %v266_v44  ;;  %v206_v58 = vadd.f32 %v1101_v5, %v135_v47  ;;  %v269_v62 = vmax.f32 %v205_v52, 0.0  ;;  %v137_v0 = vmul.f32 %v1094_v2, %v66_v48  ;;  %v340_v41 = vld [vmem:[%s1706_s1 + $0x1a8] sm:$0xff]  ;;  %v75_v44 = vld [vmem:[%s1703_s0 + $0x1d0] sm:$0xff] }
  0x38   :  { %v395_v61 = vadd.f32 %v331_v46, %v267_v50  ;;  %v207_v1 = vadd.f32 %v1101_v5, %v136_v53  ;;  %1048 = vst [vmem:[%s1707_s4 + $0xa0] sm:$0xff] %v972_v55   ;;  %v396_v6 = vadd.f32 %v332_v51, %v268_v57  ;;  %v138_v9 = vmul.f32 %v1094_v2, %v67_v54  ;;  %v76_v50 = vld [vmem:[%s1703_s0 + $0x1d8] sm:$0xff] }
  0x39   :  { %v977_v4 = vpack.c.bf16 %v394_v56, %v393_v49  ;;  %v270_v7 = vmax.f32 %v206_v58, 0.0  ;;  %v397_v11 = vadd.f32 %v333_v59, %v269_v62  ;;  %v208_v12 = vadd.f32 %v1101_v5, %v137_v0  ;;  %v341_v49 = vld [vmem:[%s1706_s1 + $0x1b0] sm:$0xff]  ;;  %v342_v53 = vld [vmem:[%s1706_s1 + $0x1b8] sm:$0xff]  ;;  %v77_v56 = vld [vmem:[%s1703_s0 + $0x1e0] sm:$0xff] }
  0x3a   :  { %v271_v13 = vmax.f32 %v207_v1, 0.0  ;;  %v139_v14 = vmul.f32 %v1094_v2, %v68_v60  ;;  %v982_v16 = vpack.c.bf16 %v396_v6, %v395_v61  ;;  %v209_v19 = vadd.f32 %v1101_v5, %v138_v9  ;;  %v343_v60 = vld [vmem:[%s1706_s1 + $0x1c0] sm:$0xff]  ;;  %v78_v62 = vld [vmem:[%s1703_s0 + $0x1e8] sm:$0xff] }
  0x3b   :  { %1049 = vst [vmem:[%s1707_s4 + $0xa8] sm:$0xff] %v977_v4   ;;  %v398_v17 = vadd.f32 %v334_v63, %v270_v7  ;;  %v140_v20 = vmul.f32 %v1094_v2, %v69_v3  ;;  %v272_v22 = vmax.f32 %v208_v12, 0.0  ;;  %v141_v26 = vmul.f32 %v1094_v2, %v70_v10  ;;  %v79_v4 = vld [vmem:[%s1703_s0 + $0x1f0] sm:$0xff] }
  0x3c   :  { %v399_v23 = vadd.f32 %v335_v8, %v271_v13  ;;  %v210_v24 = vadd.f32 %v1101_v5, %v139_v14  ;;  %1050 = vst [vmem:[%s1707_s4 + $0xb0] sm:$0xff] %v982_v16   ;;  %v273_v29 = vmax.f32 %v209_v19, 0.0  ;;  %v142_v32 = vmul.f32 %v1094_v2, %v71_v15  ;;  %v344_v8 = vld [vmem:[%s1706_s1 + $0x1c8] sm:$0xff]  ;;  %v345_v15 = vld [vmem:[%s1706_s1 + $0x1d0] sm:$0xff]  ;;  %v346_v19 = vld [vmem:[%s1706_s1 + $0x1d8] sm:$0xff] }
  0x3d   :  { %v987_v28 = vpack.c.bf16 %v398_v17, %v397_v11  ;;  %v211_v31 = vadd.f32 %v1101_v5, %v140_v20  ;;  %v400_v33 = vadd.f32 %v336_v18, %v272_v22  ;;  %v212_v35 = vadd.f32 %v1101_v5, %v141_v26  ;;  %v80_v11 = vld [vmem:[%s1703_s0 + $0x1f8] sm:$0xff] }
  0x3e   :  { %v274_v34 = vmax.f32 %v210_v24, 0.0  ;;  %v143_v37 = vmul.f32 %v1094_v2, %v72_v21  ;;  %v401_v39 = vadd.f32 %v337_v25, %v273_v29  ;;  %v213_v42 = vadd.f32 %v1101_v5, %v142_v32  ;;  %v347_v25 = vld [vmem:[%s1706_s1 + $0x1e0] sm:$0xff]  ;;  %v348_v29 = vld [vmem:[%s1706_s1 + $0x1e8] sm:$0xff] }
  0x3f   :  { %1051 = vst [vmem:[%s1707_s4 + $0xb8] sm:$0xff] %v987_v28   ;;  %v275_v40 = vmax.f32 %v211_v31, 0.0  ;;  %v144_v43 = vmul.f32 %v1094_v2, %v73_v27  ;;  %v992_v45 = vpack.c.bf16 %v400_v33, %v399_v23  ;;  %v276_v47 = vmax.f32 %v212_v35, 0.0 }
  0x40   :  { %v402_v46 = vadd.f32 %v338_v30, %v274_v34  ;;  %v214_v48 = vadd.f32 %v1101_v5, %v143_v37  ;;  %v277_v52 = vmax.f32 %v213_v42, 0.0  ;;  %v145_v54 = vmul.f32 %v1094_v2, %v74_v38  ;;  %v350_v37 = vld [vmem:[%s1706_s1 + $0x1f8] sm:$0xff] }
  0x41   :  { %v403_v51 = vadd.f32 %v339_v36, %v275_v40  ;;  %v215_v55 = vadd.f32 %v1101_v5, %v144_v43  ;;  %1052 = vst [vmem:[%s1707_s4 + $0xc0] sm:$0xff] %v992_v45   ;;  %v404_v58 = vadd.f32 %v340_v41, %v276_v47  ;;  %v146_v61 = vmul.f32 %v1094_v2, %v75_v44 }
  0x42   :  { %v997_v57 = vpack.c.bf16 %v402_v46, %v401_v39  ;;  %v278_v59 = vmax.f32 %v214_v48, 0.0  ;;  %v405_v63 = vadd.f32 %v341_v49, %v277_v52  ;;  %v216_v0 = vadd.f32 %v1101_v5, %v145_v54 }
  0x43   :  { %v279_v1 = vmax.f32 %v215_v55, 0.0  ;;  %v147_v3 = vmul.f32 %v1094_v2, %v76_v50  ;;  %v1002_v6 = vpack.c.bf16 %v404_v58, %v403_v51  ;;  %v217_v9 = vadd.f32 %v1101_v5, %v146_v61 }
  0x44   :  { %1053 = vst [vmem:[%s1707_s4 + $0xc8] sm:$0xff] %v997_v57   ;;  %v406_v7 = vadd.f32 %v342_v53, %v278_v59  ;;  %v148_v10 = vmul.f32 %v1094_v2, %v77_v56  ;;  %v280_v12 = vmax.f32 %v216_v0, 0.0  ;;  %v149_v16 = vmul.f32 %v1094_v2, %v78_v62 }
  0x45   :  { %v407_v13 = vadd.f32 %v343_v60, %v279_v1  ;;  %v218_v14 = vadd.f32 %v1101_v5, %v147_v3  ;;  %1054 = vst [vmem:[%s1707_s4 + $0xd0] sm:$0xff] %v1002_v6   ;;  %v281_v18 = vmax.f32 %v217_v9, 0.0  ;;  %v150_v21 = vmul.f32 %v1094_v2, %v79_v4 }
  0x46   :  { %v1007_v17 = vpack.c.bf16 %v406_v7, %v405_v63  ;;  %v219_v20 = vadd.f32 %v1101_v5, %v148_v10  ;;  %v408_v22 = vadd.f32 %v344_v8, %v280_v12  ;;  %v220_v24 = vadd.f32 %v1101_v5, %v149_v16 }
  0x47   :  { %v282_v23 = vmax.f32 %v218_v14, 0.0  ;;  %v151_v26 = vmul.f32 %v1094_v2, %v80_v11  ;;  %v409_v27 = vadd.f32 %v345_v15, %v281_v18  ;;  %v221_v30 = vadd.f32 %v1101_v5, %v150_v21  ;;  %v349_v2 = vld [vmem:[%s1706_s1 + $0x1f0] sm:$0xff] }
  0x48   :  { %1055 = vst [vmem:[%s1707_s4 + $0xd8] sm:$0xff] %v1007_v17   ;;  %v283_v28 = vmax.f32 %v219_v20, 0.0  ;;  %v1012_v31 = vpack.c.bf16 %v408_v22, %v407_v13  ;;  %v284_v33 = vmax.f32 %v220_v24, 0.0 }
  0x49   :  { %v410_v32 = vadd.f32 %v346_v19, %v282_v23  ;;  %v222_v34 = vadd.f32 %v1101_v5, %v151_v26  ;;  %v285_v36 = vmax.f32 %v221_v30, 0.0 }
  0x4a   :  { %v411_v35 = vadd.f32 %v347_v25, %v283_v28  ;;  %1056 = vst [vmem:[%s1707_s4 + $0xe0] sm:$0xff] %v1012_v31   ;;  %v412_v39 = vadd.f32 %v348_v29, %v284_v33 }
  0x4b   :  { %v1017_v38 = vpack.c.bf16 %v410_v32, %v409_v27  ;;  %v286_v40 = vmax.f32 %v222_v34, 0.0  ;;  %v413_v41 = vadd.f32 %v349_v2, %v285_v36 }
  0x4c   :  { %v1022_v5 = vpack.c.bf16 %v412_v39, %v411_v35 }
  0x4d   :  { %1057 = vst [vmem:[%s1707_s4 + $0xe8] sm:$0xff] %v1017_v38   ;;  %v414_v42 = vadd.f32 %v350_v37, %v286_v40 }
  0x4e   :  { %1058 = vst [vmem:[%s1707_s4 + $0xf0] sm:$0xff] %v1022_v5  }
  0x4f   :  { %v1027_v43 = vpack.c.bf16 %v414_v42, %v413_v41 }
  0x51   :  { %1059 = vst [vmem:[%s1707_s4 + $0xf8] sm:$0xff] %v1027_v43  }

// kernel: _lambda_.19
= control target key start
LH: loop header
LB: loop body
LE: loop exit
PB: predicated region body
PF: predicated region fallthrough
CT: control target
= control target key end

     0   :  { %s896_s0 = inlined_call_operand.vmem [shape: f32[512,128], index: 0, kind: input, shape index: {}]   ;;  %s897_s1 = inlined_call_operand.vmem [shape: f32[1,128], index: 1, kind: input, shape index: {}]   ;;  %s898_s2 = inlined_call_operand.vmem [shape: f32[1,128], index: 2, kind: input, shape index: {}]   ;;  %s899_s3 = inlined_call_operand.vmem [shape: f32[512,128], index: 3, kind: output, shape index: {}]  }
   0x1   :  { %v14_v0 = vld [vmem:[%s896_s0] sm:$0xff]  ;;  %v15_v4 = vld [vmem:[%s896_s0 + $0x8] sm:$0xff]  ;;  %v16_v5 = vld [vmem:[%s896_s0 + $0x10] sm:$0xff] }
   0x2   :  { %v380_v1 = vld [vmem:[%s897_s1] ss:$0 sm:$0xff]  ;;  %v17_v6 = vld [vmem:[%s896_s0 + $0x18] sm:$0xff]  ;;  %v19_v11 = vld [vmem:[%s896_s0 + $0x28] sm:$0xff] }
   0x3   :  { %v385_v2 = vld [vmem:[%s898_s2] ss:$0 sm:$0xff]  ;;  %v85_v3 = vmul.f32 %v380_v1, %v14_v0  ;;  %v86_v7 = vmul.f32 %v380_v1, %v15_v4  ;;  %v87_v8 = vmul.f32 %v380_v1, %v16_v5  ;;  %v88_v9 = vmul.f32 %v380_v1, %v17_v6  ;;  %v20_v12 = vld [vmem:[%s896_s0 + $0x30] sm:$0xff]  ;;  %v21_v17 = vld [vmem:[%s896_s0 + $0x38] sm:$0xff] }
   0x4   :  { %v18_v10 = vld [vmem:[%s896_s0 + $0x20] sm:$0xff]  ;;  %v90_v15 = vmul.f32 %v380_v1, %v19_v11  ;;  %v91_v16 = vmul.f32 %v380_v1, %v20_v12  ;;  %v92_v21 = vmul.f32 %v380_v1, %v21_v17  ;;  %v23_v27 = vld [vmem:[%s896_s0 + $0x48] sm:$0xff]  ;;  %v24_v28 = vld [vmem:[%s896_s0 + $0x50] sm:$0xff] }
   0x5   :  { %v156_v13 = vadd.f32 %v385_v2, %v85_v3  ;;  %v89_v14 = vmul.f32 %v380_v1, %v18_v10  ;;  %v157_v18 = vadd.f32 %v385_v2, %v86_v7  ;;  %v158_v19 = vadd.f32 %v385_v2, %v87_v8  ;;  %v22_v22 = vld [vmem:[%s896_s0 + $0x40] sm:$0xff]  ;;  %v25_v29 = vld [vmem:[%s896_s0 + $0x58] sm:$0xff]  ;;  %v27_v35 = vld [vmem:[%s896_s0 + $0x68] sm:$0xff] }
   0x6   :  { %v159_v20 = vadd.f32 %v385_v2, %v88_v9  ;;  %v161_v25 = vadd.f32 %v385_v2, %v90_v15  ;;  %v162_v26 = vadd.f32 %v385_v2, %v91_v16  ;;  %v163_v33 = vadd.f32 %v385_v2, %v92_v21  ;;  %v26_v34 = vld [vmem:[%s896_s0 + $0x60] sm:$0xff]  ;;  %v28_v36 = vld [vmem:[%s896_s0 + $0x70] sm:$0xff]  ;;  %v29_v41 = vld [vmem:[%s896_s0 + $0x78] sm:$0xff] }
   0x7   :  { %v220_v23 = vmax.f32 %v156_v13, 0.0  ;;  %v160_v24 = vadd.f32 %v385_v2, %v89_v14  ;;  %v221_v30 = vmax.f32 %v157_v18, 0.0  ;;  %v222_v31 = vmax.f32 %v158_v19, 0.0  ;;  %v30_v54 = vld [vmem:[%s896_s0 + $0x80] sm:$0xff]  ;;  %v31_v59 = vld [vmem:[%s896_s0 + $0x88] sm:$0xff]  ;;  %v32_v60 = vld [vmem:[%s896_s0 + $0x90] sm:$0xff] }
   0x8   :  { %v223_v32 = vmax.f32 %v159_v20, 0.0  ;;  %v225_v38 = vmax.f32 %v161_v25, 0.0  ;;  %v226_v39 = vmax.f32 %v162_v26, 0.0  ;;  %v93_v40 = vmul.f32 %v380_v1, %v22_v22  ;;  %v33_v61 = vld [vmem:[%s896_s0 + $0x98] sm:$0xff]  ;;  %v34_v4 = vld [vmem:[%s896_s0 + $0xa0] sm:$0xff]  ;;  %v35_v5 = vld [vmem:[%s896_s0 + $0xa8] sm:$0xff] }
   0x9   :  { %284 = vst [vmem:[%s899_s3] sm:$0xff] %v220_v23  ;;  %v224_v37 = vmax.f32 %v160_v24, 0.0  ;;  %285 = vst [vmem:[%s899_s3 + $0x8] sm:$0xff] %v221_v30  ;;  %v227_v42 = vmax.f32 %v163_v33, 0.0  ;;  %v94_v43 = vmul.f32 %v380_v1, %v23_v27  ;;  %v95_v44 = vmul.f32 %v380_v1, %v24_v28  ;;  %v36_v6 = vld [vmem:[%s896_s0 + $0xb0] sm:$0xff]  ;;  %v37_v11 = vld [vmem:[%s896_s0 + $0xb8] sm:$0xff] }
   0xa   :  { %286 = vst [vmem:[%s899_s3 + $0x10] sm:$0xff] %v222_v31  ;;  %287 = vst [vmem:[%s899_s3 + $0x18] sm:$0xff] %v223_v32  ;;  %v96_v45 = vmul.f32 %v380_v1, %v25_v29  ;;  %v164_v46 = vadd.f32 %v385_v2, %v93_v40  ;;  %v97_v47 = vmul.f32 %v380_v1, %v26_v34  ;;  %v38_v24 = vld [vmem:[%s896_s0 + $0xc0] sm:$0xff]  ;;  %v39_v29 = vld [vmem:[%s896_s0 + $0xc8] sm:$0xff] }
   0xb   :  { %288 = vst [vmem:[%s899_s3 + $0x20] sm:$0xff] %v224_v37  ;;  %289 = vst [vmem:[%s899_s3 + $0x28] sm:$0xff] %v225_v38  ;;  %v98_v48 = vmul.f32 %v380_v1, %v27_v35  ;;  %v99_v49 = vmul.f32 %v380_v1, %v28_v36  ;;  %v165_v50 = vadd.f32 %v385_v2, %v94_v43  ;;  %v40_v30 = vld [vmem:[%s896_s0 + $0xd0] sm:$0xff]  ;;  %v41_v31 = vld [vmem:[%s896_s0 + $0xd8] sm:$0xff] }
   0xc   :  { %290 = vst [vmem:[%s899_s3 + $0x30] sm:$0xff] %v226_v39  ;;  %291 = vst [vmem:[%s899_s3 + $0x38] sm:$0xff] %v227_v42  ;;  %v166_v51 = vadd.f32 %v385_v2, %v95_v44  ;;  %v167_v52 = vadd.f32 %v385_v2, %v96_v45  ;;  %v100_v53 = vmul.f32 %v380_v1, %v29_v41  ;;  %v228_v55 = vmax.f32 %v164_v46, 0.0  ;;  %v42_v36 = vld [vmem:[%s896_s0 + $0xe0] sm:$0xff]  ;;  %v43_v37 = vld [vmem:[%s896_s0 + $0xe8] sm:$0xff] }
   0xd   :  { %v168_v56 = vadd.f32 %v385_v2, %v97_v47  ;;  %v169_v57 = vadd.f32 %v385_v2, %v98_v48  ;;  %v170_v58 = vadd.f32 %v385_v2, %v99_v49  ;;  %v229_v62 = vmax.f32 %v165_v50, 0.0  ;;  %v44_v38 = vld [vmem:[%s896_s0 + $0xf0] sm:$0xff]  ;;  %v45_v43 = vld [vmem:[%s896_s0 + $0xf8] sm:$0xff] }
   0xe   :  { %v230_v63 = vmax.f32 %v166_v51, 0.0  ;;  %v231_v0 = vmax.f32 %v167_v52, 0.0  ;;  %v171_v3 = vadd.f32 %v385_v2, %v100_v53  ;;  %292 = vst [vmem:[%s899_s3 + $0x40] sm:$0xff] %v228_v55  ;;  %v101_v10 = vmul.f32 %v380_v1, %v30_v54 }
   0xf   :  { %v232_v7 = vmax.f32 %v168_v56, 0.0  ;;  %v233_v8 = vmax.f32 %v169_v57, 0.0  ;;  %v234_v9 = vmax.f32 %v170_v58, 0.0  ;;  %293 = vst [vmem:[%s899_s3 + $0x48] sm:$0xff] %v229_v62  ;;  %v102_v13 = vmul.f32 %v380_v1, %v31_v59  ;;  %v46_v56 = vld [vmem:[%s896_s0 + $0x100] sm:$0xff]  ;;  %v48_v62 = vld [vmem:[%s896_s0 + $0x110] sm:$0xff] }
  0x10   :  { %294 = vst [vmem:[%s899_s3 + $0x50] sm:$0xff] %v230_v63  ;;  %295 = vst [vmem:[%s899_s3 + $0x58] sm:$0xff] %v231_v0  ;;  %v235_v12 = vmax.f32 %v171_v3, 0.0  ;;  %v103_v14 = vmul.f32 %v380_v1, %v32_v60  ;;  %v104_v15 = vmul.f32 %v380_v1, %v33_v61  ;;  %v172_v16 = vadd.f32 %v385_v2, %v101_v10  ;;  %v47_v61 = vld [vmem:[%s896_s0 + $0x108] sm:$0xff]  ;;  %v49_v63 = vld [vmem:[%s896_s0 + $0x118] sm:$0xff] }
  0x11   :  { %296 = vst [vmem:[%s899_s3 + $0x60] sm:$0xff] %v232_v7  ;;  %297 = vst [vmem:[%s899_s3 + $0x68] sm:$0xff] %v233_v8  ;;  %v105_v17 = vmul.f32 %v380_v1, %v34_v4  ;;  %v106_v18 = vmul.f32 %v380_v1, %v35_v5  ;;  %v107_v19 = vmul.f32 %v380_v1, %v36_v6  ;;  %v50_v6 = vld [vmem:[%s896_s0 + $0x120] sm:$0xff]  ;;  %v51_v7 = vld [vmem:[%s896_s0 + $0x128] sm:$0xff] }
  0x12   :  { %298 = vst [vmem:[%s899_s3 + $0x70] sm:$0xff] %v234_v9  ;;  %299 = vst [vmem:[%s899_s3 + $0x78] sm:$0xff] %v235_v12  ;;  %v173_v20 = vadd.f32 %v385_v2, %v102_v13  ;;  %v174_v21 = vadd.f32 %v385_v2, %v103_v14  ;;  %v175_v22 = vadd.f32 %v385_v2, %v104_v15  ;;  %v236_v25 = vmax.f32 %v172_v16, 0.0  ;;  %v52_v8 = vld [vmem:[%s896_s0 + $0x130] sm:$0xff]  ;;  %v53_v13 = vld [vmem:[%s896_s0 + $0x138] sm:$0xff] }
  0x13   :  { %v108_v23 = vmul.f32 %v380_v1, %v37_v11  ;;  %v176_v26 = vadd.f32 %v385_v2, %v105_v17  ;;  %v177_v27 = vadd.f32 %v385_v2, %v106_v18  ;;  %v178_v28 = vadd.f32 %v385_v2, %v107_v19 }
  0x14   :  { %v237_v32 = vmax.f32 %v173_v20, 0.0  ;;  %v238_v33 = vmax.f32 %v174_v21, 0.0  ;;  %v239_v34 = vmax.f32 %v175_v22, 0.0  ;;  %300 = vst [vmem:[%s899_s3 + $0x80] sm:$0xff] %v236_v25  ;;  %v109_v42 = vmul.f32 %v380_v1, %v38_v24 }
  0x15   :  { %v179_v35 = vadd.f32 %v385_v2, %v108_v23  ;;  %v240_v39 = vmax.f32 %v176_v26, 0.0  ;;  %v241_v40 = vmax.f32 %v177_v27, 0.0  ;;  %v242_v41 = vmax.f32 %v178_v28, 0.0  ;;  %v54_v26 = vld [vmem:[%s896_s0 + $0x140] sm:$0xff] }
  0x16   :  { %301 = vst [vmem:[%s899_s3 + $0x88] sm:$0xff] %v237_v32  ;;  %302 = vst [vmem:[%s899_s3 + $0x90] sm:$0xff] %v238_v33  ;;  %v110_v45 = vmul.f32 %v380_v1, %v39_v29  ;;  %v111_v46 = vmul.f32 %v380_v1, %v40_v30  ;;  %v112_v47 = vmul.f32 %v380_v1, %v41_v31  ;;  %v55_v31 = vld [vmem:[%s896_s0 + $0x148] sm:$0xff]  ;;  %v56_v32 = vld [vmem:[%s896_s0 + $0x150] sm:$0xff] }
  0x17   :  { %303 = vst [vmem:[%s899_s3 + $0x98] sm:$0xff] %v239_v34  ;;  %v243_v44 = vmax.f32 %v179_v35, 0.0  ;;  %304 = vst [vmem:[%s899_s3 + $0xa0] sm:$0xff] %v240_v39  ;;  %v180_v48 = vadd.f32 %v385_v2, %v109_v42  ;;  %v113_v49 = vmul.f32 %v380_v1, %v42_v36  ;;  %v114_v50 = vmul.f32 %v380_v1, %v43_v37  ;;  %v57_v33 = vld [vmem:[%s896_s0 + $0x158] sm:$0xff]  ;;  %v59_v39 = vld [vmem:[%s896_s0 + $0x168] sm:$0xff] }
  0x18   :  { %305 = vst [vmem:[%s899_s3 + $0xa8] sm:$0xff] %v241_v40  ;;  %306 = vst [vmem:[%s899_s3 + $0xb0] sm:$0xff] %v242_v41  ;;  %v115_v51 = vmul.f32 %v380_v1, %v44_v38  ;;  %v181_v52 = vadd.f32 %v385_v2, %v110_v45  ;;  %v182_v53 = vadd.f32 %v385_v2, %v111_v46  ;;  %v58_v38 = vld [vmem:[%s896_s0 + $0x160] sm:$0xff]  ;;  %v60_v40 = vld [vmem:[%s896_s0 + $0x170] sm:$0xff] }
  0x19   :  { %307 = vst [vmem:[%s899_s3 + $0xb8] sm:$0xff] %v243_v44  ;;  %v183_v54 = vadd.f32 %v385_v2, %v112_v47  ;;  %v116_v55 = vmul.f32 %v380_v1, %v45_v43  ;;  %v244_v57 = vmax.f32 %v180_v48, 0.0  ;;  %v184_v58 = vadd.f32 %v385_v2, %v113_v49  ;;  %v61_v45 = vld [vmem:[%s896_s0 + $0x178] sm:$0xff] }
  0x1a   :  { %v185_v59 = vadd.f32 %v385_v2, %v114_v50  ;;  %v186_v60 = vadd.f32 %v385_v2, %v115_v51  ;;  %v245_v0 = vmax.f32 %v181_v52, 0.0  ;;  %v246_v3 = vmax.f32 %v182_v53, 0.0 }
  0x1b   :  { %v247_v4 = vmax.f32 %v183_v54, 0.0  ;;  %v187_v5 = vadd.f32 %v385_v2, %v116_v55  ;;  %308 = vst [vmem:[%s899_s3 + $0xc0] sm:$0xff] %v244_v57  ;;  %v248_v9 = vmax.f32 %v184_v58, 0.0  ;;  %v117_v12 = vmul.f32 %v380_v1, %v46_v56  ;;  %v62_v58 = vld [vmem:[%s896_s0 + $0x180] sm:$0xff] }
  0x1c   :  { %v249_v10 = vmax.f32 %v185_v59, 0.0  ;;  %v250_v11 = vmax.f32 %v186_v60, 0.0  ;;  %309 = vst [vmem:[%s899_s3 + $0xc8] sm:$0xff] %v245_v0  ;;  %310 = vst [vmem:[%s899_s3 + $0xd0] sm:$0xff] %v246_v3  ;;  %v118_v15 = vmul.f32 %v380_v1, %v47_v61  ;;  %v119_v16 = vmul.f32 %v380_v1, %v48_v62  ;;  %v64_v0 = vld [vmem:[%s896_s0 + $0x190] sm:$0xff]  ;;  %v65_v3 = vld [vmem:[%s896_s0 + $0x198] sm:$0xff] }
  0x1d   :  { %311 = vst [vmem:[%s899_s3 + $0xd8] sm:$0xff] %v247_v4  ;;  %v251_v14 = vmax.f32 %v187_v5, 0.0  ;;  %v120_v17 = vmul.f32 %v380_v1, %v49_v63  ;;  %312 = vst [vmem:[%s899_s3 + $0xe0] sm:$0xff] %v248_v9  ;;  %v188_v18 = vadd.f32 %v385_v2, %v117_v12  ;;  %v121_v19 = vmul.f32 %v380_v1, %v50_v6  ;;  %v63_v63 = vld [vmem:[%s896_s0 + $0x188] sm:$0xff] }
  0x1e   :  { %313 = vst [vmem:[%s899_s3 + $0xe8] sm:$0xff] %v249_v10  ;;  %314 = vst [vmem:[%s899_s3 + $0xf0] sm:$0xff] %v250_v11  ;;  %v122_v20 = vmul.f32 %v380_v1, %v51_v7  ;;  %v123_v21 = vmul.f32 %v380_v1, %v52_v8  ;;  %v189_v22 = vadd.f32 %v385_v2, %v118_v15  ;;  %v66_v8 = vld [vmem:[%s896_s0 + $0x1a0] sm:$0xff]  ;;  %v67_v9 = vld [vmem:[%s896_s0 + $0x1a8] sm:$0xff] }
  0x1f   :  { %315 = vst [vmem:[%s899_s3 + $0xf8] sm:$0xff] %v251_v14  ;;  %v190_v23 = vadd.f32 %v385_v2, %v119_v16  ;;  %v191_v24 = vadd.f32 %v385_v2, %v120_v17  ;;  %v124_v25 = vmul.f32 %v380_v1, %v53_v13  ;;  %v252_v27 = vmax.f32 %v188_v18, 0.0  ;;  %v68_v10 = vld [vmem:[%s896_s0 + $0x1b0] sm:$0xff]  ;;  %v69_v15 = vld [vmem:[%s896_s0 + $0x1b8] sm:$0xff] }
  0x20   :  { %v192_v28 = vadd.f32 %v385_v2, %v121_v19  ;;  %v193_v29 = vadd.f32 %v385_v2, %v122_v20  ;;  %v194_v30 = vadd.f32 %v385_v2, %v123_v21  ;;  %v253_v34 = vmax.f32 %v189_v22, 0.0 }
  0x21   :  { %v254_v35 = vmax.f32 %v190_v23, 0.0  ;;  %v255_v36 = vmax.f32 %v191_v24, 0.0  ;;  %v195_v37 = vadd.f32 %v385_v2, %v124_v25  ;;  %316 = vst [vmem:[%s899_s3 + $0x100] sm:$0xff] %v252_v27  ;;  %v125_v44 = vmul.f32 %v380_v1, %v54_v26 }
  0x22   :  { %v256_v41 = vmax.f32 %v192_v28, 0.0  ;;  %v257_v42 = vmax.f32 %v193_v29, 0.0  ;;  %v258_v43 = vmax.f32 %v194_v30, 0.0  ;;  %317 = vst [vmem:[%s899_s3 + $0x108] sm:$0xff] %v253_v34  ;;  %v126_v47 = vmul.f32 %v380_v1, %v55_v31  ;;  %v70_v28 = vld [vmem:[%s896_s0 + $0x1c0] sm:$0xff]  ;;  %v72_v34 = vld [vmem:[%s896_s0 + $0x1d0] sm:$0xff] }
  0x23   :  { %318 = vst [vmem:[%s899_s3 + $0x110] sm:$0xff] %v254_v35  ;;  %319 = vst [vmem:[%s899_s3 + $0x118] sm:$0xff] %v255_v36  ;;  %v259_v46 = vmax.f32 %v195_v37, 0.0  ;;  %v127_v48 = vmul.f32 %v380_v1, %v56_v32  ;;  %v128_v49 = vmul.f32 %v380_v1, %v57_v33  ;;  %v196_v50 = vadd.f32 %v385_v2, %v125_v44  ;;  %v71_v33 = vld [vmem:[%s896_s0 + $0x1c8] sm:$0xff]  ;;  %v73_v35 = vld [vmem:[%s896_s0 + $0x1d8] sm:$0xff] }
  0x24   :  { %320 = vst [vmem:[%s899_s3 + $0x120] sm:$0xff] %v256_v41  ;;  %321 = vst [vmem:[%s899_s3 + $0x128] sm:$0xff] %v257_v42  ;;  %v129_v51 = vmul.f32 %v380_v1, %v58_v38  ;;  %v130_v52 = vmul.f32 %v380_v1, %v59_v39  ;;  %v131_v53 = vmul.f32 %v380_v1, %v60_v40  ;;  %v74_v40 = vld [vmem:[%s896_s0 + $0x1e0] sm:$0xff]  ;;  %v75_v41 = vld [vmem:[%s896_s0 + $0x1e8] sm:$0xff] }
  0x25   :  { %322 = vst [vmem:[%s899_s3 + $0x130] sm:$0xff] %v258_v43  ;;  %323 = vst [vmem:[%s899_s3 + $0x138] sm:$0xff] %v259_v46  ;;  %v197_v54 = vadd.f32 %v385_v2, %v126_v47  ;;  %v198_v55 = vadd.f32 %v385_v2, %v127_v48  ;;  %v199_v56 = vadd.f32 %v385_v2, %v128_v49  ;;  %v260_v59 = vmax.f32 %v196_v50, 0.0  ;;  %v76_v42 = vld [vmem:[%s896_s0 + $0x1f0] sm:$0xff]  ;;  %v77_v47 = vld [vmem:[%s896_s0 + $0x1f8] sm:$0xff] }
  0x26   :  { %v132_v57 = vmul.f32 %v380_v1, %v61_v45  ;;  %v200_v60 = vadd.f32 %v385_v2, %v129_v51  ;;  %v201_v61 = vadd.f32 %v385_v2, %v130_v52  ;;  %v202_v62 = vadd.f32 %v385_v2, %v131_v53 }
  0x27   :  { %v261_v4 = vmax.f32 %v197_v54, 0.0  ;;  %v262_v5 = vmax.f32 %v198_v55, 0.0  ;;  %v263_v6 = vmax.f32 %v199_v56, 0.0  ;;  %324 = vst [vmem:[%s899_s3 + $0x140] sm:$0xff] %v260_v59  ;;  %v133_v14 = vmul.f32 %v380_v1, %v62_v58 }
  0x28   :  { %v203_v7 = vadd.f32 %v385_v2, %v132_v57  ;;  %v264_v11 = vmax.f32 %v200_v60, 0.0  ;;  %v265_v12 = vmax.f32 %v201_v61, 0.0  ;;  %v266_v13 = vmax.f32 %v202_v62, 0.0 }
  0x29   :  { %325 = vst [vmem:[%s899_s3 + $0x148] sm:$0xff] %v261_v4  ;;  %326 = vst [vmem:[%s899_s3 + $0x150] sm:$0xff] %v262_v5  ;;  %v134_v17 = vmul.f32 %v380_v1, %v63_v63  ;;  %v135_v18 = vmul.f32 %v380_v1, %v64_v0  ;;  %v136_v19 = vmul.f32 %v380_v1, %v65_v3 }
  0x2a   :  { %327 = vst [vmem:[%s899_s3 + $0x158] sm:$0xff] %v263_v6  ;;  %v267_v16 = vmax.f32 %v203_v7, 0.0  ;;  %328 = vst [vmem:[%s899_s3 + $0x160] sm:$0xff] %v264_v11  ;;  %v204_v20 = vadd.f32 %v385_v2, %v133_v14  ;;  %v137_v21 = vmul.f32 %v380_v1, %v66_v8  ;;  %v138_v22 = vmul.f32 %v380_v1, %v67_v9 }
  0x2b   :  { %329 = vst [vmem:[%s899_s3 + $0x168] sm:$0xff] %v265_v12  ;;  %330 = vst [vmem:[%s899_s3 + $0x170] sm:$0xff] %v266_v13  ;;  %v139_v23 = vmul.f32 %v380_v1, %v68_v10  ;;  %v205_v24 = vadd.f32 %v385_v2, %v134_v17  ;;  %v206_v25 = vadd.f32 %v385_v2, %v135_v18 }
  0x2c   :  { %331 = vst [vmem:[%s899_s3 + $0x178] sm:$0xff] %v267_v16  ;;  %v207_v26 = vadd.f32 %v385_v2, %v136_v19  ;;  %v140_v27 = vmul.f32 %v380_v1, %v69_v15  ;;  %v268_v29 = vmax.f32 %v204_v20, 0.0  ;;  %v208_v30 = vadd.f32 %v385_v2, %v137_v21 }
  0x2d   :  { %v209_v31 = vadd.f32 %v385_v2, %v138_v22  ;;  %v210_v32 = vadd.f32 %v385_v2, %v139_v23  ;;  %v269_v36 = vmax.f32 %v205_v24, 0.0  ;;  %v270_v37 = vmax.f32 %v206_v25, 0.0 }
  0x2e   :  { %v271_v38 = vmax.f32 %v207_v26, 0.0  ;;  %v211_v39 = vadd.f32 %v385_v2, %v140_v27  ;;  %332 = vst [vmem:[%s899_s3 + $0x180] sm:$0xff] %v268_v29  ;;  %v272_v43 = vmax.f32 %v208_v30, 0.0  ;;  %v141_v46 = vmul.f32 %v380_v1, %v70_v28 }
  0x2f   :  { %v273_v44 = vmax.f32 %v209_v31, 0.0  ;;  %v274_v45 = vmax.f32 %v210_v32, 0.0  ;;  %333 = vst [vmem:[%s899_s3 + $0x188] sm:$0xff] %v269_v36  ;;  %334 = vst [vmem:[%s899_s3 + $0x190] sm:$0xff] %v270_v37  ;;  %v142_v49 = vmul.f32 %v380_v1, %v71_v33  ;;  %v143_v50 = vmul.f32 %v380_v1, %v72_v34 }
  0x30   :  { %335 = vst [vmem:[%s899_s3 + $0x198] sm:$0xff] %v271_v38  ;;  %v275_v48 = vmax.f32 %v211_v39, 0.0  ;;  %v144_v51 = vmul.f32 %v380_v1, %v73_v35  ;;  %336 = vst [vmem:[%s899_s3 + $0x1a0] sm:$0xff] %v272_v43  ;;  %v212_v52 = vadd.f32 %v385_v2, %v141_v46  ;;  %v145_v53 = vmul.f32 %v380_v1, %v74_v40 }
  0x31   :  { %337 = vst [vmem:[%s899_s3 + $0x1a8] sm:$0xff] %v273_v44  ;;  %338 = vst [vmem:[%s899_s3 + $0x1b0] sm:$0xff] %v274_v45  ;;  %v146_v54 = vmul.f32 %v380_v1, %v75_v41  ;;  %v147_v55 = vmul.f32 %v380_v1, %v76_v42  ;;  %v213_v56 = vadd.f32 %v385_v2, %v142_v49 }
  0x32   :  { %339 = vst [vmem:[%s899_s3 + $0x1b8] sm:$0xff] %v275_v48  ;;  %v214_v57 = vadd.f32 %v385_v2, %v143_v50  ;;  %v215_v58 = vadd.f32 %v385_v2, %v144_v51  ;;  %v148_v59 = vmul.f32 %v380_v1, %v77_v47  ;;  %v276_v60 = vmax.f32 %v212_v52, 0.0 }
  0x33   :  { %v216_v61 = vadd.f32 %v385_v2, %v145_v53  ;;  %v217_v62 = vadd.f32 %v385_v2, %v146_v54  ;;  %v218_v63 = vadd.f32 %v385_v2, %v147_v55  ;;  %v277_v0 = vmax.f32 %v213_v56, 0.0 }
  0x34   :  { %v278_v3 = vmax.f32 %v214_v57, 0.0  ;;  %v279_v4 = vmax.f32 %v215_v58, 0.0  ;;  %v219_v5 = vadd.f32 %v385_v2, %v148_v59  ;;  %340 = vst [vmem:[%s899_s3 + $0x1c0] sm:$0xff] %v276_v60 }
  0x35   :  { %v280_v6 = vmax.f32 %v216_v61, 0.0  ;;  %v281_v7 = vmax.f32 %v217_v62, 0.0  ;;  %v282_v8 = vmax.f32 %v218_v63, 0.0  ;;  %341 = vst [vmem:[%s899_s3 + $0x1c8] sm:$0xff] %v277_v0 }
  0x36   :  { %342 = vst [vmem:[%s899_s3 + $0x1d0] sm:$0xff] %v278_v3  ;;  %343 = vst [vmem:[%s899_s3 + $0x1d8] sm:$0xff] %v279_v4  ;;  %v283_v1 = vmax.f32 %v219_v5, 0.0 }
  0x37   :  { %344 = vst [vmem:[%s899_s3 + $0x1e0] sm:$0xff] %v280_v6  ;;  %345 = vst [vmem:[%s899_s3 + $0x1e8] sm:$0xff] %v281_v7 }
  0x38   :  { %346 = vst [vmem:[%s899_s3 + $0x1f0] sm:$0xff] %v282_v8  ;;  %347 = vst [vmem:[%s899_s3 + $0x1f8] sm:$0xff] %v283_v1 }

// kernel: _lambda_.14
= control target key start
LH: loop header
LB: loop body
LE: loop exit
PB: predicated region body
PF: predicated region fallthrough
CT: control target
= control target key end

     0   :  { %s2952_s12 = smov 0   ;;  %s2954_s13 = smov 0   ;;  %s3695_s0 = inlined_call_operand.vmem [shape: f32[2,16,16,128], index: 0, kind: input, shape index: {}]   ;;  %s3696_s1 = inlined_call_operand.vmem [shape: bf16[1152,128], index: 1, kind: input, shape index: {}]   ;;  %s3697_s2 = inlined_call_operand.vmem [shape: f32[512,128], index: 2, kind: output, shape index: {0}]   ;;  %s3698_s3 = inlined_call_operand.vmem [shape: f32[4,2,128], index: 3, kind: output, shape index: {1}]  }
   0x1   :  { %s2956_s14 = smov 0   ;;  %s2958_s15 = smov 0  }
   0x2   :  { %s2960_s16 = smov 0  }
   0x3 LB: > { %s23_s17 = sadd.s32 1, %s2920_s14  ;;  %s26_s18 = sadd.s32 1, %s2924_s15  ;;  %s2928_s16 = sphi %s2960_s16, %s14_s16   ;;  %s2924_s15 = sphi %s2958_s15, %s3706_s15   ;;  %s2920_s14 = sphi %s2956_s14, %s3705_s14   ;;  %s2916_s13 = sphi %s2954_s13, %s3704_s13   ;;  %s2912_s12 = sphi %s2952_s12, %s3703_s12  }
   0x4   : > { %p24_p0 = scmp.ge.s32.totalorder %s23_s17, 2  ;;  %p2309_p1 = scmp.ge.s32.totalorder %s2928_s16, 1 }
   0x5   : > { %p126_p2 = scmp.lt.s32.totalorder %s2928_s16, 5 }
   0x6   : > { %s3708_s17 = smov (%p24_p0, %s23_s17), 0  ;;  %s3710_s18 = smov (!%p24_p0, %s26_s18), %s2924_s15 }
   0x7   : > { %p127_p3 = pnand %p2309_p1, %p126_p2  ;;  %p28_p4 = scmp.ge.s32.totalorder %s3710_s18, 2 }
   0x8   : > { %s2310_s19 = sshll.u32 (!%p127_p3), %s2916_s13, 1  ;;  %p170_p5 = scmp.lt.s32.totalorder (!%p127_p3), %s2912_s12, 0 }
   0x9   : > { %s3712_s18 = smov (%p28_p4, %s3710_s18), 0  ;;  %130 = sbr.rel (%p127_p3) target bundleno = 554 (0x22a), region = 24 }
   0xa   : > { %s152_s20 = sadd.s32 (!%p127_p3), %s2912_s12, %s2310_s19  ;;  %s171_s21 = ssub.s32 (!%p127_p3), 0, %s2912_s12 }
   0xb   : > { %s2311_s22 = sshll.u32 (!%p127_p3), %s152_s20, 4  ;;  %p163_p6 = scmp.lt.s32.totalorder (!%p127_p3), %s152_s20, 3 }
   0xc   : > { %p154_p7 = scmp.lt.s32.totalorder (!%p127_p3), %s2311_s22, 63  ;;  %s2315_s23 = smin.u32 (!%p127_p3), %s2912_s12, %s171_s21 }
   0xd   : > { %s173_s25 = sand.u32 (!%p127_p3), 1, %s2315_s23   ;;  %p2316_p8 = scmp.ne.s32.totalorder (!%p127_p3), %s2912_s12, 0 }
   0xe   : > { %s174_s6 = ssub.s32 (!%p127_p3), 0, %s173_s25 }
  0x10   : > { %s3714_s20 = smov (!%p163_p6, %s152_s20), 3  ;;  %s3716_s22 = smov (!%p154_p7, %s2311_s22), 63 }
  0x11   : > { %s2314_s24 = sshll.u32 %s3714_s20, 1  ;;  %s2312_s26 = sshll.u32 %s3716_s22, 3 }
  0x12   : > { %s2994_s29 = scalar_lea.vmem %s3698_s3, %s2314_s24  ;;  %s2999_s5 = scalar_lea.vmem %s3697_s2, %s2312_s26 }
  0x13   : > { %s3718_s6 = smov (!%p170_p5, %s174_s6), %s173_s25  ;;  %179 = sbr.rel (%p2316_p8) target bundleno = 59 (0x3b), region = 28 }
  0x14   : > { %s2317_s7 = sshll.u32 (!%p2316_p8), %s2912_s12, 3  ;;  %s3010_s8 = sshll.u32 (!%p2316_p8), %s2916_s13, 8 }
  0x15   : > { %p181_p9 = scmp.lt.s32.totalorder (!%p2316_p8), %s2317_s7, 8  ;;  %s2318_s9 = sadd.s32 (!%p2316_p8), 4294967295, %s2317_s7 }
  0x16   : > { %p184_p10 = scmp.gt.s32.totalorder (!%p2316_p8), %s2318_s9, 0  ;;  %s186_s10 = sadd.s32 (!%p2316_p8), 8, %s2317_s7 }
  0x17   : > { %p187_p11 = scmp.lt.s32.totalorder (!%p2316_p8), %s186_s10, 15 }
  0x1a   : > { %s3720_s7 = smov (!%p181_p9, %s2317_s7), 8  ;;  %s3722_s9 = smov (!%p184_p10, %s2318_s9), 0 }
  0x1b   : > { %s2319_s11 = sshll.u32 %s3720_s7, 4  ;;  %s3724_s10 = smov (!%p187_p11, %s186_s10), 15 }
  0x1c   : > { %s191_s19 = sadd.s32 %s3010_s8, %s2319_s11 }
  0x1d   : > { %s3020_s22 = scalar_lea.vmem %s3695_s0, %s191_s19 }
  0x1e   : > { %v226_v0 = vld [vmem:[%s3020_s22] sm:$0xff]  ;;  %v228_v1 = vld [vmem:[%s3020_s22 + $0x8] sm:$0xff]  ;;  %v230_v2 = vld [vmem:[%s3020_s22 + $0x10] sm:$0xff] }
  0x1f   : > { %227 = vst [vmem:[#allocation2 + $0x10] sm:$0xff] %v226_v0  ;;  %229 = vst [vmem:[#allocation2 + $0x18] sm:$0xff] %v228_v1  ;;  %v232_v3 = vld [vmem:[%s3020_s22 + $0x18] sm:$0xff]  ;;  %v234_v4 = vld [vmem:[%s3020_s22 + $0x20] sm:$0xff] }
  0x20   : > { %231 = vst [vmem:[#allocation2 + $0x20] sm:$0xff] %v230_v2  ;;  %v236_v5 = vld [vmem:[%s3020_s22 + $0x28] sm:$0xff]  ;;  %233 = vst [vmem:[#allocation2 + $0x28] sm:$0xff] %v232_v3  ;;  %v238_v6 = vld [vmem:[%s3020_s22 + $0x30] sm:$0xff] }
  0x21   : > { %235 = vst [vmem:[#allocation2 + $0x30] sm:$0xff] %v234_v4  ;;  %237 = vst [vmem:[#allocation2 + $0x38] sm:$0xff] %v236_v5  ;;  %v240_v7 = vld [vmem:[%s3020_s22 + $0x38] sm:$0xff]  ;;  %v242_v8 = vld [vmem:[%s3020_s22 + $0x40] sm:$0xff] }
  0x22   : > { %239 = vst [vmem:[#allocation2 + $0x40] sm:$0xff] %v238_v6  ;;  %241 = vst [vmem:[#allocation2 + $0x48] sm:$0xff] %v240_v7  ;;  %v244_v9 = vld [vmem:[%s3020_s22 + $0x48] sm:$0xff]  ;;  %v246_v10 = vld [vmem:[%s3020_s22 + $0x50] sm:$0xff] }
  0x23   : > { %243 = vst [vmem:[#allocation2 + $0x50] sm:$0xff] %v242_v8  ;;  %v248_v11 = vld [vmem:[%s3020_s22 + $0x58] sm:$0xff]  ;;  %245 = vst [vmem:[#allocation2 + $0x58] sm:$0xff] %v244_v9  ;;  %v250_v12 = vld [vmem:[%s3020_s22 + $0x60] sm:$0xff] }
  0x24   : > { %247 = vst [vmem:[#allocation2 + $0x60] sm:$0xff] %v246_v10  ;;  %249 = vst [vmem:[#allocation2 + $0x68] sm:$0xff] %v248_v11  ;;  %v252_v13 = vld [vmem:[%s3020_s22 + $0x68] sm:$0xff]  ;;  %v254_v14 = vld [vmem:[%s3020_s22 + $0x70] sm:$0xff] }
  0x25   : > { %251 = vst [vmem:[#allocation2 + $0x70] sm:$0xff] %v250_v12  ;;  %253 = vst [vmem:[#allocation2 + $0x78] sm:$0xff] %v252_v13  ;;  %v256_v15 = vld [vmem:[%s3020_s22 + $0x78] sm:$0xff] }
  0x26   : > { %255 = vst [vmem:[#allocation2 + $0x80] sm:$0xff] %v254_v14  ;;  %257 = vst [vmem:[#allocation2 + $0x88] sm:$0xff] %v256_v15 }
  0x27   : > { %265 = vsyncadd [#allocation4], 2048  ;;  %p2321_p12 = scmp.le.s32.totalorder %s2912_s12, 0 }
  0x28   : > { %s2322_s23 = sshll.u32 (!%p2321_p12), %s3722_s9, 4 }
  0x29   : > { %269 = sbr.rel (%p2321_p12) target bundleno = 49 (0x31), region = 66  ;;  %s271_s24 = sadd.s32 (!%p2321_p12), %s2322_s23, %s3010_s8 }
  0x2a   : > { %s272_s27 = scalar_lea.vmem (!%p2321_p12), %s3695_s0, %s271_s24 }
  0x2b   : > { %v306_v16 = vld [vmem:[%s272_s27] sm:$0xff] (!%p2321_p12)  ;;  %v308_v17 = vld [vmem:[%s272_s27 + $0x8] sm:$0xff] (!%p2321_p12) }
  0x2c   : > { %307 = vst [vmem:[#allocation2] sm:$0xff] (!%p2321_p12), %v306_v16  ;;  %309 = vst [vmem:[#allocation2 + $0x8] sm:$0xff] (!%p2321_p12), %v308_v17 }
  0x30   : > { %317 = vsyncadd [#allocation4 + $0x1], 256 }
  0x31 PF: > { %p2323_p13 = scmp.ge.s32.totalorder %s2912_s12, 1 }
  0x32   : > { %s2324_s28 = sshll.u32 (!%p2323_p13), %s3724_s10, 4 }
  0x33   : > { %321 = sbr.rel (%p2323_p13) target bundleno = 59 (0x3b), region = 104  ;;  %s323_s30 = sadd.s32 (!%p2323_p13), %s2324_s28, %s3010_s8 }
  0x34   : > { %s324_s9 = scalar_lea.vmem (!%p2323_p13), %s3695_s0, %s323_s30 }
  0x35   : > { %v359_v18 = vld [vmem:[%s324_s9] sm:$0xff] (!%p2323_p13)  ;;  %v361_v19 = vld [vmem:[%s324_s9 + $0x8] sm:$0xff] (!%p2323_p13) }
  0x36   : > { %360 = vst [vmem:[#allocation2 + $0x90] sm:$0xff] (!%p2323_p13), %v359_v18  ;;  %362 = vst [vmem:[#allocation2 + $0x98] sm:$0xff] (!%p2323_p13), %v361_v19 }
  0x3a   : > { %370 = vsyncadd [#allocation4 + $0x2], 256 }
  0x3b PF: > { %s371_s11 = smul.u32 3, %s3718_s6 }
  0x3d   : > { %s372_s19 = scalar_lea.sflag [#allocation4], %s371_s11 }
  0x3e   : > { %2900 = dma.done.wait %s372_s19, 2048 }
  0x3f   : > { %2901 = vsyncadd %s372_s19, 4294965248  ;;  %p2764_p0 = scmp.gt.s32.totalorder %s2912_s12, 0  ;;  %s2177_s10 = scalar_lea.sflag %s372_s19, 1 [#allocation4] }
  0x41   : > { %2903 = dma.done.wait (%p2764_p0), %s2177_s10, 256 }
  0x42   : > { %2905 = vsyncadd (%p2764_p0), %s2177_s10, 4294967040  ;;  %p2765_p1 = scmp.lt.s32.totalorder %s2912_s12, 1  ;;  %s2180_s8 = scalar_lea.sflag %s372_s19, 2 [#allocation4] }
  0x44   : > { %2907 = dma.done.wait (%p2765_p1), %s2180_s8, 256 }
  0x45   : > { %2909 = vsyncadd (%p2765_p1), %s2180_s8, 4294967040  ;;  %s3054_s20 = sadd.s32 1, %s2912_s12 }
  0x46   : > { %p2327_p2 = scmp.ge.s32.totalorder %s3054_s20, 2 }
  0x47   : > { %s402_s21 = ssub.s32 (!%p2327_p2), 1, %s3718_s6  ;;  %s2438_s22 = sshll.u32 (!%p2327_p2), %s2912_s12, 3 }
  0x48   : > { %401 = sbr.rel (%p2327_p2) target bundleno = 112 (0x70), region = 150  ;;  %s2439_s23 = sadd.s32 (!%p2327_p2), 8, %s2438_s22 }
  0x49   : > { %s3060_s24 = sshll.u32 (!%p2327_p2), %s2916_s13, 8  ;;  %p404_p3 = scmp.lt.s32.totalorder (!%p2327_p2), %s2439_s23, 8 }
  0x4a   : > { %s2329_s25 = sadd.s32 (!%p2327_p2), 4294967295, %s2439_s23  ;;  %s409_s26 = sadd.s32 (!%p2327_p2), 8, %s2439_s23 }
  0x4b   : > { %p407_p4 = scmp.gt.s32.totalorder (!%p2327_p2), %s2329_s25, 0  ;;  %p410_p5 = scmp.lt.s32.totalorder (!%p2327_p2), %s409_s26, 15 }
  0x4c   : > { %s416_s30 = smul.u32 (!%p2327_p2), 160, %s402_s21 }
  0x4d   : > { %s3072_s13 = smul.u32 (!%p2327_p2), 3, %s402_s21 }
  0x4e   : > { %s3077_s11 = scalar_lea.vmem (!%p2327_p2), [#allocation2], %s416_s30 }
  0x4f   : > { %s3726_s23 = smov (!%p404_p3, %s2439_s23), 8  ;;  %s3728_s25 = smov (!%p407_p4, %s2329_s25), 0 }
  0x50   : > { %s2330_s27 = sshll.u32 %s3726_s23, 4  ;;  %s3730_s26 = smov (!%p410_p5, %s409_s26), 15 }
  0x51   : > { %s414_s28 = sadd.s32 %s3060_s24, %s2330_s27  ;;  %s420_s19 = scalar_lea.sflag [#allocation4], %s3072_s13 }
  0x52   : > { %s3070_s9 = scalar_lea.vmem %s3695_s0, %s414_s28 }
  0x53   : > { %v453_v20 = vld [vmem:[%s3070_s9] sm:$0xff]  ;;  %v455_v21 = vld [vmem:[%s3070_s9 + $0x8] sm:$0xff]  ;;  %v457_v22 = vld [vmem:[%s3070_s9 + $0x10] sm:$0xff] }
  0x54   : > { %2332 = vst [vmem:[%s3077_s11 + $0x10] sm:$0xff] %v453_v20  ;;  %2333 = vst [vmem:[%s3077_s11 + $0x18] sm:$0xff] %v455_v21  ;;  %v459_v23 = vld [vmem:[%s3070_s9 + $0x18] sm:$0xff]  ;;  %v461_v24 = vld [vmem:[%s3070_s9 + $0x20] sm:$0xff] }
  0x55   : > { %2334 = vst [vmem:[%s3077_s11 + $0x20] sm:$0xff] %v457_v22  ;;  %v463_v25 = vld [vmem:[%s3070_s9 + $0x28] sm:$0xff]  ;;  %2335 = vst [vmem:[%s3077_s11 + $0x28] sm:$0xff] %v459_v23  ;;  %v465_v26 = vld [vmem:[%s3070_s9 + $0x30] sm:$0xff] }
  0x56   : > { %2336 = vst [vmem:[%s3077_s11 + $0x30] sm:$0xff] %v461_v24  ;;  %2337 = vst [vmem:[%s3077_s11 + $0x38] sm:$0xff] %v463_v25  ;;  %v467_v27 = vld [vmem:[%s3070_s9 + $0x38] sm:$0xff]  ;;  %v469_v28 = vld [vmem:[%s3070_s9 + $0x40] sm:$0xff] }
  0x57   : > { %2338 = vst [vmem:[%s3077_s11 + $0x40] sm:$0xff] %v465_v26  ;;  %2339 = vst [vmem:[%s3077_s11 + $0x48] sm:$0xff] %v467_v27  ;;  %v471_v29 = vld [vmem:[%s3070_s9 + $0x48] sm:$0xff]  ;;  %v473_v30 = vld [vmem:[%s3070_s9 + $0x50] sm:$0xff] }
  0x58   : > { %2340 = vst [vmem:[%s3077_s11 + $0x50] sm:$0xff] %v469_v28  ;;  %v475_v31 = vld [vmem:[%s3070_s9 + $0x58] sm:$0xff]  ;;  %2341 = vst [vmem:[%s3077_s11 + $0x58] sm:$0xff] %v471_v29  ;;  %v477_v32 = vld [vmem:[%s3070_s9 + $0x60] sm:$0xff] }
  0x59   : > { %2342 = vst [vmem:[%s3077_s11 + $0x60] sm:$0xff] %v473_v30  ;;  %2343 = vst [vmem:[%s3077_s11 + $0x68] sm:$0xff] %v475_v31  ;;  %v479_v33 = vld [vmem:[%s3070_s9 + $0x68] sm:$0xff]  ;;  %v481_v34 = vld [vmem:[%s3070_s9 + $0x70] sm:$0xff] }
  0x5a   : > { %2344 = vst [vmem:[%s3077_s11 + $0x70] sm:$0xff] %v477_v32  ;;  %2345 = vst [vmem:[%s3077_s11 + $0x78] sm:$0xff] %v479_v33  ;;  %v483_v35 = vld [vmem:[%s3070_s9 + $0x78] sm:$0xff] }
  0x5b   : > { %2346 = vst [vmem:[%s3077_s11 + $0x80] sm:$0xff] %v481_v34  ;;  %2347 = vst [vmem:[%s3077_s11 + $0x88] sm:$0xff] %v483_v35 }
  0x5c   : > { %492 = vsyncadd %s420_s19, 2048  ;;  %p2349_p6 = scmp.le.s32.totalorder %s3054_s20, 0 }
  0x5d   : > { %s2350_s10 = sshll.u32 (!%p2349_p6), %s3728_s25, 4  ;;  %s2198_s8 = scalar_lea.sflag (!%p2349_p6), %s420_s19, 1 [#allocation4] }
  0x5e   : > { %496 = sbr.rel (%p2349_p6) target bundleno = 102 (0x66), region = 188  ;;  %s498_s21 = sadd.s32 (!%p2349_p6), %s2350_s10, %s3060_s24 }
  0x5f   : > { %s499_s27 = scalar_lea.vmem (!%p2349_p6), %s3695_s0, %s498_s21 }
  0x60   : > { %v535_v36 = vld [vmem:[%s499_s27] sm:$0xff] (!%p2349_p6)  ;;  %v537_v37 = vld [vmem:[%s499_s27 + $0x8] sm:$0xff] (!%p2349_p6) }
  0x61   : > { %536 = vst [vmem:[%s3077_s11] sm:$0xff] (!%p2349_p6), %v535_v36  ;;  %538 = vst [vmem:[%s3077_s11 + $0x8] sm:$0xff] (!%p2349_p6), %v537_v37 }
  0x65   : > { %546 = vsyncadd %s2198_s8, 256 }
  0x66 PF: > { %p2351_p7 = scmp.ge.s32.totalorder %s3054_s20, 1 }
  0x67   : > { %s2352_s25 = sshll.u32 (!%p2351_p7), %s3730_s26, 4  ;;  %s2208_s28 = scalar_lea.sflag (!%p2351_p7), %s420_s19, 2 [#allocation4] }
  0x68   : > { %550 = sbr.rel (%p2351_p7) target bundleno = 112 (0x70), region = 226  ;;  %s552_s30 = sadd.s32 (!%p2351_p7), %s2352_s25, %s3060_s24 }
  0x69   : > { %s553_s9 = scalar_lea.vmem (!%p2351_p7), %s3695_s0, %s552_s30 }
  0x6a   : > { %v590_v38 = vld [vmem:[%s553_s9] sm:$0xff] (!%p2351_p7)  ;;  %v592_v39 = vld [vmem:[%s553_s9 + $0x8] sm:$0xff] (!%p2351_p7) }
  0x6b   : > { %2353 = vst [vmem:[%s3077_s11 + $0x90] sm:$0xff] (!%p2351_p7), %v590_v38  ;;  %2354 = vst [vmem:[%s3077_s11 + $0x98] sm:$0xff] (!%p2351_p7), %v592_v39 }
  0x6f   : > { %601 = vsyncadd %s2208_s28, 256 }
  0x70 PF: > { %604 = sbr.rel (%p2316_p8) target bundleno = 119 (0x77), region = 264  ;;  %v2930_v40 = vmov (!%p2316_p8), 0.0  }
  0x71   : > { %605 = vst [vmem:[#allocation2] sm:$0xff] (!%p2316_p8), %v2930_v40  ;;  %606 = vst [vmem:[#allocation2 + $0x8] sm:$0xff] (!%p2316_p8), %v2930_v40 }
  0x77 PF: > { %p2357_p9 = scmp.ne.s32.totalorder %s2912_s12, 1 }
  0x78   : > { %v2931_v41 = vmov (!%p2357_p9), 0.0  }
  0x79   : > { %610 = sbr.rel (%p2357_p9) target bundleno = 128 (0x80), region = 268  ;;  %612 = vst [vmem:[#allocation2 + $0x130] sm:$0xff] (!%p2357_p9), %v2931_v41  ;;  %613 = vst [vmem:[#allocation2 + $0x138] sm:$0xff] (!%p2357_p9), %v2931_v41 }
  0x80 PF: > { %v2808_v42 = vld [vmem:[%s3696_s1 + $0x40] sm:$0xff]   ;;  %v2812_v46 = vld [vmem:[%s3696_s1 + $0x48] sm:$0xff]   ;;  %v2816_v50 = vld [vmem:[%s3696_s1 + $0x50] sm:$0xff]   ;;  %s614_s28 = smul.u32 160, %s3718_s6  ;;  %vm710_vm0 = vcmask 1040384   ;;  %vm745_vm2 = vcmask 1047552  }
  0x81   : > { %v2809_v43 = vld [vmem:[%s3696_s1 + $0xc0] sm:$0xff]   ;;  %2440 = vmatprep.subr.bf16.mxu0 %v2808_v42  ;;  %v2813_v47 = vld [vmem:[%s3696_s1 + $0xc8] sm:$0xff]   ;;  %v2817_v51 = vld [vmem:[%s3696_s1 + $0xd0] sm:$0xff]   ;;  %vm711_vm1 = vsmask.f32 256 }
  0x82   : > { %v2810_v44 = vld [vmem:[%s3696_s1] sm:$0xff]   ;;  %2504 = vmatprep.subr.bf16.mxu1 %v2809_v43  ;;  %v2814_v48 = vld [vmem:[%s3696_s1 + $0x8] sm:$0xff]   ;;  %v2818_v52 = vld [vmem:[%s3696_s1 + $0x10] sm:$0xff]   ;;  %s3225_s10 = scalar_lea.vmem [#allocation2], %s614_s28  ;;  %vm746_vm3 = vsmask.f32 7424 }
  0x83   : > { %v2811_v45 = vld [vmem:[%s3696_s1 + $0x80] sm:$0xff]   ;;  %2441 = vmatpush3.bf16.msra.mxu0 %v2810_v44  ;;  %v2815_v49 = vld [vmem:[%s3696_s1 + $0x88] sm:$0xff]   ;;  %v2819_v53 = vld [vmem:[%s3696_s1 + $0x90] sm:$0xff]  }
  0x84   : > { %2505 = vmatpush3.bf16.msra.mxu1 %v2811_v45  ;;  %2442 = vmatprep.subr.bf16.mxu0 %v2812_v46  ;;  %v2820_v54 = vld [vmem:[%s3696_s1 + $0x58] sm:$0xff]   ;;  %v2824_v58 = vld [vmem:[%s3696_s1 + $0x60] sm:$0xff]   ;;  %v2828_v62 = vld [vmem:[%s3696_s1 + $0x68] sm:$0xff]  }
  0x85   : > { %2506 = vmatprep.subr.bf16.mxu1 %v2813_v47  ;;  %v2821_v55 = vld [vmem:[%s3696_s1 + $0xd8] sm:$0xff]   ;;  %v2825_v59 = vld [vmem:[%s3696_s1 + $0xe0] sm:$0xff]   ;;  %v2829_v63 = vld [vmem:[%s3696_s1 + $0xe8] sm:$0xff]  }
  0x86   : > { %v2822_v56 = vld [vmem:[%s3696_s1 + $0x18] sm:$0xff]   ;;  %v2826_v60 = vld [vmem:[%s3696_s1 + $0x20] sm:$0xff]   ;;  %v2830_v0 = vld [vmem:[%s3696_s1 + $0x28] sm:$0xff]  }
  0x87   : > { %2443 = vmatpush3.bf16.msra.mxu0 %v2814_v48  ;;  %v2823_v57 = vld [vmem:[%s3696_s1 + $0x98] sm:$0xff]   ;;  %v2827_v61 = vld [vmem:[%s3696_s1 + $0xa0] sm:$0xff]   ;;  %v2831_v1 = vld [vmem:[%s3696_s1 + $0xa8] sm:$0xff]  }
  0x88   : > { %2507 = vmatpush3.bf16.msra.mxu1 %v2815_v49  ;;  %2444 = vmatprep.subr.bf16.mxu0 %v2816_v50  ;;  %v2832_v2 = vld [vmem:[%s3696_s1 + $0x70] sm:$0xff]   ;;  %v2836_v6 = vld [vmem:[%s3696_s1 + $0x78] sm:$0xff]   ;;  %v616_v10 = vld [vmem:[%s3225_s10] sm:$0xff] }
  0x89   : > { %2508 = vmatprep.subr.bf16.mxu1 %v2817_v51  ;;  %v2833_v3 = vld [vmem:[%s3696_s1 + $0xf0] sm:$0xff]   ;;  %v2837_v7 = vld [vmem:[%s3696_s1 + $0xf8] sm:$0xff]   ;;  %v617_v11 = vld [vmem:[%s3225_s10 + $0x8] sm:$0xff] }
  0x8a   : > { %v2834_v4 = vld [vmem:[%s3696_s1 + $0x30] sm:$0xff]   ;;  %v2838_v8 = vld [vmem:[%s3696_s1 + $0x38] sm:$0xff]   ;;  %v636_v13 = vpack.c.bf16 %v617_v11, %v616_v10  ;;  %v2840_v16 = vld [vmem:[%s3696_s1 + $0x140] sm:$0xff]  }
  0x8b   : > { %2445 = vmatpush3.bf16.msra.mxu0 %v2818_v52  ;;  %v2835_v5 = vld [vmem:[%s3696_s1 + $0xb0] sm:$0xff]   ;;  %v2839_v9 = vld [vmem:[%s3696_s1 + $0xb8] sm:$0xff]   ;;  %v620_v21 = vld [vmem:[%s3225_s10 + $0x20] sm:$0xff] }
  0x8c   : > { %2509 = vmatpush3.bf16.msra.mxu1 %v2819_v53  ;;  %2446 = vmatprep.subr.bf16.mxu0 %v2820_v54  ;;  %v618_v12 = vld [vmem:[%s3225_s10 + $0x10] sm:$0xff]  ;;  %v619_v14 = vld [vmem:[%s3225_s10 + $0x18] sm:$0xff]  ;;  %v647_v17 = vshrl.u32 %v636_v13, 16  ;;  %v650_v18 = vshll.u32 %v636_v13, 16  ;;  %v621_v22 = vld [vmem:[%s3225_s10 + $0x28] sm:$0xff] }
  0x8d   : > { %2510 = vmatprep.subr.bf16.mxu1 %v2821_v55  ;;  %v3231_v15 = vpack.c.bf16 %v619_v14, %v618_v12  ;;  %1534 = vmatprep.mubr.bf16.mxu0 %v636_v13  ;;  %vm3241_vm4 = vmand %vm710_vm0, %vm711_vm1  ;;  %v3245_v26 = vpack.c.bf16 %v621_v22, %v620_v21  ;;  %v2841_v29 = vld [vmem:[%s3696_s1 + $0x100] sm:$0xff]   ;;  %v622_v34 = vld [vmem:[%s3225_s10 + $0x30] sm:$0xff] }
  0x8e   : > { %v649_v24 = vrot.slane %v647_v17, 7  ;;  %v721_v25 = vrot.slane %v650_v18, 1  ;;  %vm3249_vm5 = vmand %vm745_vm2, %vm746_vm3  ;;  %v623_v35 = vld [vmem:[%s3225_s10 + $0x38] sm:$0xff]  ;;  %v2842_v42 = vld [vmem:[%s3696_s1 + $0x148] sm:$0xff]  }
  0x8f   : > { %2447 = vmatpush3.bf16.msra.mxu0 %v2822_v56  ;;  %v654_v19 = vshrl.u32 %v3231_v15, 16  ;;  %v657_v20 = vshll.u32 %v3231_v15, 16  ;;  %v661_v32 = vshrl.u32 %v3245_v26, 16  ;;  %v664_v33 = vshll.u32 %v3245_v26, 16  ;;  %v2843_v44 = vld [vmem:[%s3696_s1 + $0x108] sm:$0xff]   ;;  %v2845_v48 = vld [vmem:[%s3696_s1 + $0x1c0] sm:$0xff]  }
  0x90   : > { %2511 = vmatpush3.bf16.msra.mxu1 %v2823_v57  ;;  %2448 = vmatprep.subr.bf16.mxu0 %v2824_v58  ;;  %v652_v30 = vor.u32 %v650_v18, %v649_v24  ;;  %v722_v31 = vor.u32 %v721_v25, %v647_v17  ;;  %v3260_v38 = vpack.c.bf16 %v623_v35, %v622_v34  ;;  %v2844_v51 = vld [vmem:[%s3696_s1 + $0x150] sm:$0xff]   ;;  %v2847_v53 = vld [vmem:[%s3696_s1 + $0x180] sm:$0xff]   ;;  %v625_v55 = vld [vmem:[%s3225_s10 + $0x48] sm:$0xff] }
  0x91   : > { %2512 = vmatprep.subr.bf16.mxu1 %v2825_v59  ;;  %v656_v27 = vrot.slane %v654_v19, 7  ;;  %v723_v37 = vrot.slane %v657_v20, 1  ;;  %v663_v41 = vrot.slane %v661_v32, 7  ;;  %v624_v54 = vld [vmem:[%s3225_s10 + $0x40] sm:$0xff]  ;;  %v2846_v57 = vld [vmem:[%s3696_s1 + $0x110] sm:$0xff]   ;;  %v725_v59 = vrot.slane %v664_v33, 1 }
  0x92   : > { %v713_v39 = vsel %vm3241_vm4, 0, %v652_v30  ;;  %v748_v40 = vsel %vm3249_vm5, %v722_v31, 0  ;;  %v668_v45 = vshrl.u32 %v3260_v38, 16  ;;  %v671_v46 = vshll.u32 %v3260_v38, 16  ;;  %v2853_v10 = vld [vmem:[%s3696_s1 + $0x1d0] sm:$0xff]   ;;  %v2854_v13 = vld [vmem:[%s3696_s1 + $0x120] sm:$0xff]  }
  0x93   : > { %2449 = vmatpush3.bf16.msra.mxu0 %v2826_v60  ;;  %v659_v36 = vor.u32 %v657_v20, %v656_v27  ;;  %v666_v47 = vor.u32 %v664_v33, %v663_v41  ;;  %v724_v49 = vor.u32 %v723_v37, %v654_v19  ;;  %v3298_v58 = vpack.c.bf16 %v625_v55, %v624_v54  ;;  %v2849_v60 = vld [vmem:[%s3696_s1 + $0x1c8] sm:$0xff]   ;;  %v2855_v14 = vld [vmem:[%s3696_s1 + $0x190] sm:$0xff]   ;;  %v628_v18 = vld [vmem:[%s3225_s10 + $0x60] sm:$0xff] }
  0x94   : > { %2513 = vmatpush3.bf16.msra.mxu1 %v2827_v61  ;;  %2450 = vmatprep.subr.bf16.mxu0 %v2828_v62  ;;  %v670_v50 = vrot.slane %v668_v45, 7  ;;  %v727_v17 = vrot.slane %v671_v46, 1  ;;  %v629_v19 = vld [vmem:[%s3225_s10 + $0x68] sm:$0xff]  ;;  %v2857_v25 = vld [vmem:[%s3696_s1 + $0x1d8] sm:$0xff]   ;;  %v630_v34 = vld [vmem:[%s3225_s10 + $0x70] sm:$0xff] }
  0x95   : > { %2514 = vmatprep.subr.bf16.mxu1 %v2829_v63  ;;  %v714_v43 = vsel %vm3241_vm4, 0, %v659_v36  ;;  %v3287_v52 = vsel %vm3241_vm4, 0, %v666_v47  ;;  %v3305_v61 = vsel %vm3249_vm5, %v724_v49, 0  ;;  %v675_v62 = vshrl.u32 %v3298_v58, 16  ;;  %v2848_v63 = vld [vmem:[%s3696_s1 + $0x158] sm:$0xff]   ;;  %v2856_v22 = vld [vmem:[%s3696_s1 + $0x168] sm:$0xff]  }
  0x96   : > { %1631 = vmatprep.mubr.bf16.mxu1 %v714_v43  ;;  %v673_v56 = vor.u32 %v671_v46, %v670_v50  ;;  %v3349_v21 = vpack.c.bf16 %v629_v19, %v628_v18  ;;  %v2858_v31 = vld [vmem:[%s3696_s1 + $0x128] sm:$0xff]   ;;  %v728_v33 = vor.u32 %v727_v17, %v668_v45  ;;  %v631_v35 = vld [vmem:[%s3225_s10 + $0x78] sm:$0xff]  ;;  %v2861_v41 = vld [vmem:[%s3696_s1 + $0x1e0] sm:$0xff]  }
  0x97   : > { %2451 = vmatpush3.bf16.msra.mxu0 %v2830_v0  ;;  %v2863_v45 = vld [vmem:[%s3696_s1 + $0x1a0] sm:$0xff]   ;;  %v3401_v47 = vpack.c.bf16 %v631_v35, %v630_v34  ;;  %v633_v54 = vld [vmem:[%s3225_s10 + $0x88] sm:$0xff] }
  0x98   : > { %2515 = vmatpush3.bf16.msra.mxu1 %v2831_v1  ;;  %2452 = vmatprep.subr.bf16.mxu0 %v2832_v2  ;;  %v3313_v0 = vsel %vm3241_vm4, 0, %v673_v56  ;;  %v2850_v1 = vld [vmem:[%s3696_s1 + $0x118] sm:$0xff]   ;;  %v2851_v2 = vld [vmem:[%s3696_s1 + $0x188] sm:$0xff]   ;;  %v692_v37 = vshll.u32 %v3349_v21, 16 }
  0x99   : > { %2516 = vmatprep.subr.bf16.mxu1 %v2833_v3  ;;  %v677_v3 = vrot.slane %v675_v62, 7 }
  0x9a   : > { %v733_v19 = vrot.slane %v692_v37, 1 }
  0x9b   : > { %2453 = vmatpush3.bf16.msra.mxu0 %v2834_v4  ;;  %v678_v4 = vshll.u32 %v3298_v58, 16 }
  0x9c   : > { %2517 = vmatpush3.bf16.msra.mxu1 %v2835_v5  ;;  %2454 = vmatprep.subr.bf16.mxu0 %v2836_v6  ;;  %v626_v5 = vld [vmem:[%s3225_s10 + $0x50] sm:$0xff]  ;;  %v627_v6 = vld [vmem:[%s3225_s10 + $0x58] sm:$0xff] }
  0x9d   : > { %2518 = vmatprep.subr.bf16.mxu1 %v2837_v7  ;;  %v726_v7 = vor.u32 %v725_v59, %v661_v32  ;;  %v680_v12 = vor.u32 %v678_v4, %v677_v3  ;;  %v729_v30 = vrot.slane %v678_v4, 1  ;;  %v2859_v32 = vld [vmem:[%s3696_s1 + $0x198] sm:$0xff]   ;;  %v696_v59 = vshrl.u32 %v3401_v47, 16  ;;  %v2869_v4 = vld [vmem:[%s3696_s1 + $0x1b0] sm:$0xff]  }
  0x9f   : > { %2455 = vmatpush3.bf16.msra.mxu0 %v2838_v8  ;;  %v3325_v8 = vpack.c.bf16 %v627_v6, %v626_v5  ;;  %v3362_v27 = vsel %vm3241_vm4, 0, %v680_v12  ;;  %v2870_v5 = vld [vmem:[%s3696_s1 + $0x1f8] sm:$0xff]  }
  0xa0   : > { %2519 = vmatpush3.bf16.msra.mxu1 %v2839_v9  ;;  %2568 = vmatprep.subr.bf16.mxu0 %v2840_v16  ;;  %v2852_v9 = vld [vmem:[%s3696_s1 + $0x160] sm:$0xff]   ;;  %v3344_v16 = vsel %vm3249_vm5, %v726_v7, 0  ;;  %v698_v7 = vrot.slane %v696_v59, 7 }
  0xa1   : > { %2632 = vmatprep.subr.bf16.mxu1 %v2845_v48  ;;  %v682_v11 = vshrl.u32 %v3325_v8, 16  ;;  %v685_v20 = vshll.u32 %v3325_v8, 16  ;;  %v2864_v48 = vld [vmem:[%s3696_s1 + $0x1e8] sm:$0xff]  }
  0xa2   : > { %1535 = vmatmul.mubr.bf16.vlgmr.msra.gmra.mrb[0].mxu0 %v713_v39  ;;  %v2860_v39 = vld [vmem:[%s3696_s1 + $0x170] sm:$0xff]  }
  0xa3   : > { %2569 = vmatpush3.bf16.msra.mxu0 %v2841_v29  ;;  %1632 = vmatmul.mubr.bf16.vlgmr.msra.gmra.mrb[0].mxu1 %v748_v40  ;;  %v684_v24 = vrot.slane %v682_v11, 7  ;;  %v689_v29 = vshrl.u32 %v3349_v21, 16  ;;  %v731_v55 = vrot.slane %v685_v20, 1 }
  0xa4   : > { %1542 = vmatprep.mubr.bf16.mxu0 %v3231_v15  ;;  %2570 = vmatprep.subr.bf16.mxu0 %v2842_v42  ;;  %v730_v42 = vor.u32 %v729_v30, %v675_v62 }
  0xa5   : > { %1639 = vmatprep.mubr.bf16.mxu1 %v3287_v52  ;;  %2633 = vmatpush3.bf16.msra.mxu1 %v2847_v53  ;;  %v687_v36 = vor.u32 %v685_v20, %v684_v24  ;;  %v691_v40 = vrot.slane %v689_v29, 7  ;;  %v632_v53 = vld [vmem:[%s3225_s10 + $0x80] sm:$0xff]  ;;  %v634_v20 = vld [vmem:[%s3225_s10 + $0x90] sm:$0xff] }
  0xa6   : > { %2634 = vmatprep.subr.bf16.mxu1 %v2849_v60  ;;  %v3410_v50 = vsel %vm3249_vm5, %v730_v42, 0  ;;  %v3418_v56 = vpack.c.bf16 %v633_v54, %v632_v53  ;;  %v2867_v60 = vld [vmem:[%s3696_s1 + $0x1f0] sm:$0xff]  }
  0xa7   : > { %2571 = vmatpush3.bf16.msra.mxu0 %v2843_v44  ;;  %v2862_v44 = vld [vmem:[%s3696_s1 + $0x130] sm:$0xff]   ;;  %v3399_v46 = vsel %vm3241_vm4, 0, %v687_v36  ;;  %v694_v49 = vor.u32 %v692_v37, %v691_v40 }
  0xa8   : > { %2572 = vmatprep.subr.bf16.mxu0 %v2844_v51  ;;  %v2865_v51 = vld [vmem:[%s3696_s1 + $0x1a8] sm:$0xff]   ;;  %v781_v3 = vshrl.u32 %v3418_v56, 16 }
  0xa9   : > { %2635 = vmatpush3.bf16.msra.mxu1 %v2851_v2  ;;  %v3430_v62 = vsel %vm3241_vm4, 0, %v694_v49  ;;  %v2868_v2 = vld [vmem:[%s3696_s1 + $0x138] sm:$0xff]  }
  0xaa   : > { %1543 = vmatmul.mubr.bf16.gmra.mrb[4].mxu0 %v714_v43  ;;  %2636 = vmatprep.subr.bf16.mxu1 %v2853_v10  ;;  %v3389_v43 = vsel %vm3249_vm5, %v728_v33, 0  ;;  %v2872_v10 = vld [vmem:[%s3696_s1 + $0x200] sm:$0xff]   ;;  %v783_v24 = vrot.slane %v781_v3, 7 }
  0xab   : > { %1550 = vmatprep.mubr.bf16.mxu0 %v3245_v26  ;;  %2573 = vmatpush3.bf16.msra.mxu0 %v2846_v57  ;;  %v2866_v57 = vld [vmem:[%s3696_s1 + $0x178] sm:$0xff]  }
  0xac   : > { %1640 = vmatmul.mubr.bf16.gmra.mrb[4].mxu1 %v3305_v61  ;;  %2574 = vmatprep.subr.bf16.mxu0 %v2848_v63  ;;  %v699_v63 = vshll.u32 %v3401_v47, 16 }
  0xad   : > { %1647 = vmatprep.mubr.bf16.mxu1 %v3313_v0  ;;  %2637 = vmatpush3.bf16.msra.mxu1 %v2855_v14 }
  0xae   : > { %2638 = vmatprep.subr.bf16.mxu1 %v2857_v25  ;;  %v701_v17 = vor.u32 %v699_v63, %v698_v7  ;;  %v735_v40 = vrot.slane %v699_v63, 1 }
  0xaf   : > { %2575 = vmatpush3.bf16.msra.mxu0 %v2850_v1  ;;  %v784_v1 = vshll.u32 %v3418_v56, 16 }
  0xb0   : > { %2576 = vmatprep.subr.bf16.mxu0 %v2852_v9  ;;  %v2871_v9 = vld [vmem:[%s3696_s1 + $0x1b8] sm:$0xff]  }
  0xb1   : > { %2639 = vmatpush3.bf16.msra.mxu1 %v2859_v32  ;;  %v789_v6 = vrot.slane %v784_v1, 1  ;;  %v734_v32 = vor.u32 %v733_v19, %v689_v29  ;;  %v786_v33 = vor.u32 %v784_v1, %v783_v24 }
  0xb2   : > { %1551 = vmatmul.mubr.bf16.gmra.mrb[8].mxu0 %v3287_v52  ;;  %2640 = vmatprep.subr.bf16.mxu1 %v2861_v41 }
  0xb3   : > { %1558 = vmatprep.mubr.bf16.mxu0 %v3260_v38  ;;  %2577 = vmatpush3.bf16.msra.mxu0 %v2854_v13  ;;  %v790_v12 = vor.u32 %v789_v6, %v781_v3  ;;  %v732_v13 = vor.u32 %v731_v55, %v682_v11  ;;  %v3469_v11 = vsel %vm3241_vm4, 0, %v701_v17  ;;  %v3491_v41 = vsel %vm3241_vm4, 0, %v786_v33 }
  0xb4   : > { %1648 = vmatmul.mubr.bf16.gmra.mrb[8].mxu1 %v3344_v16  ;;  %2578 = vmatprep.subr.bf16.mxu0 %v2856_v22  ;;  %v635_v22 = vld [vmem:[%s3225_s10 + $0x98] sm:$0xff] }
  0xb5   : > { %1655 = vmatprep.mubr.bf16.mxu1 %v3362_v27  ;;  %2641 = vmatpush3.bf16.msra.mxu1 %v2863_v45  ;;  %v3458_v14 = vsel %vm3249_vm5, %v790_v12, 0  ;;  %v3462_v18 = vsel %vm3249_vm5, %v732_v13, 0  ;;  %v3471_v25 = vpack.c.bf16 %v635_v22, %v634_v20 }
  0xb6   : > { %2642 = vmatprep.subr.bf16.mxu1 %v2864_v48  ;;  %v2873_v48 = vld [vmem:[%s3696_s1 + $0x208] sm:$0xff]  }
  0xb7   : > { %2579 = vmatpush3.bf16.msra.mxu0 %v2858_v31  ;;  %v818_v30 = vshrl.u32 %v3471_v25, 16  ;;  %v821_v31 = vshll.u32 %v3471_v25, 16 }
  0xb8   : > { %2580 = vmatprep.subr.bf16.mxu0 %v2860_v39  ;;  %v3486_v39 = vsel %vm3249_vm5, %v734_v32, 0 }
  0xb9   : > { %2643 = vmatpush3.bf16.msra.mxu1 %v2865_v51  ;;  %v820_v34 = vrot.slane %v818_v30, 7  ;;  %v826_v35 = vrot.slane %v821_v31, 1 }
  0xba   : > { %1559 = vmatmul.mubr.bf16.gmra.mrb[12].mxu0 %v3313_v0  ;;  %2644 = vmatprep.subr.bf16.mxu1 %v2867_v60 }
  0xbb   : > { %1566 = vmatprep.mubr.bf16.mxu0 %v3298_v58  ;;  %2581 = vmatpush3.bf16.msra.mxu0 %v2862_v44  ;;  %v3480_v36 = vor.u32 %v821_v31, %v820_v34  ;;  %v3482_v37 = vor.u32 %v826_v35, %v818_v30  ;;  %v736_v44 = vor.u32 %v735_v40, %v696_v59 }
  0xbc   : > { %1656 = vmatmul.mubr.bf16.gmra.mrb[12].mxu1 %v3389_v43  ;;  %2582 = vmatprep.subr.bf16.mxu0 %v2866_v57 }
  0xbd   : > { %1663 = vmatprep.mubr.bf16.mxu1 %v3399_v46  ;;  %2645 = vmatpush3.bf16.msra.mxu1 %v2869_v4  ;;  %v825_v29 = vsel %vm3241_vm4, 0, %v3480_v36  ;;  %v829_v42 = vsel %vm3249_vm5, %v3482_v37, 0  ;;  %v3504_v45 = vsel %vm3249_vm5, %v736_v44, 0 }
  0xbe   : > { %2646 = vmatprep.subr.bf16.mxu1 %v2870_v5 }
  0xbf   : > { %2583 = vmatpush3.bf16.msra.mxu0 %v2868_v2 }
  0xc0   : > { %2712 = vmatprep.subr.bf16.mxu0 %v2872_v10 }
  0xc1   : > { %2647 = vmatpush3.bf16.msra.mxu1 %v2871_v9 }
  0xc2   : > { %1567 = vmatmul.mubr.bf16.gmra.mrb[16].mxu0 %v3362_v27  ;;  %2744 = vmatprep.subr.bf16.mxu1 %v2872_v10 }
  0xc3   : > { %1574 = vmatprep.mubr.bf16.mxu0 %v3325_v8 }
  0xc4   : > { %1664 = vmatmul.mubr.bf16.gmra.mrb[16].mxu1 %v3410_v50 }
  0xc5   : > { %1671 = vmatprep.mubr.bf16.mxu1 %v3430_v62 }
  0xca   : > { %1575 = vmatmul.mubr.bf16.gmra.mrb[20].mxu0 %v3399_v46 }
  0xcb   : > { %1582 = vmatprep.mubr.bf16.mxu0 %v3349_v21 }
  0xcc   : > { %1672 = vmatmul.mubr.bf16.gmra.mrb[20].mxu1 %v3462_v18 }
  0xcd   : > { %1679 = vmatprep.mubr.bf16.mxu1 %v3469_v11 }
  0xd2   : > { %1583 = vmatmul.mubr.bf16.gmra.mrb[24].mxu0 %v3430_v62 }
  0xd3   : > { %1590 = vmatprep.mubr.bf16.mxu0 %v3401_v47 }
  0xd4   : > { %1680 = vmatmul.mubr.bf16.gmra.mrb[24].mxu1 %v3486_v39 }
  0xd5   : > { %1687 = vmatprep.mubr.bf16.mxu1 %v3491_v41 }
  0xda   : > { %1591 = vmatmul.mubr.bf16.gmra.mrb[28].mxu0 %v3469_v11 }
  0xdb   : > { %1728 = vmatprep.mubr.bf16.mxu0 %v3305_v61  ;;  %v2874_v61 = vld [vmem:[%s3696_s1 + $0x210] sm:$0xff]  }
  0xdc   : > { %1688 = vmatmul.mubr.bf16.gmra.mrb[28].mxu1 %v3504_v45 }
  0xdd   : > { %1825 = vmatprep.mubr.bf16.mxu1 %v3245_v26 }
  0xe2   : > { %1729 = vmatmul.mubr.bf16.vlgmr.msra.gmra.mrb[32].mxu0 %v3231_v15  ;;  %v2875_v15 = vld [vmem:[%s3696_s1 + $0x218] sm:$0xff]  }
  0xe3   : > { %2713 = vmatpush3.bf16.msra.mxu0 %v2872_v10  ;;  %1736 = vmatprep.mubr.bf16.mxu0 %v3344_v16 }
  0xe4   : > { %1826 = vmatmul.mubr.bf16.vlgmr.msra.gmra.mrb[32].mxu1 %v3287_v52  ;;  %2714 = vmatprep.subr.bf16.mxu0 %v2873_v48  ;;  %v2876_v52 = vld [vmem:[%s3696_s1 + $0x220] sm:$0xff]  }
  0xe5   : > { %1833 = vmatprep.mubr.bf16.mxu1 %v3260_v38  ;;  %2752 = vmatpush3.bf16.msra.mxu1 %v2872_v10 }
  0xe6   : > { %2745 = vmatprep.subr.bf16.mxu1 %v2873_v48 }
  0xe7   : > { %2715 = vmatpush3.bf16.msra.mxu0 %v2873_v48 }
  0xe8   : > { %2716 = vmatprep.subr.bf16.mxu0 %v2874_v61 }
  0xe9   : > { %2753 = vmatpush3.bf16.msra.mxu1 %v2873_v48 }
  0xea   : > { %1737 = vmatmul.mubr.bf16.gmra.mrb[36].mxu0 %v3245_v26  ;;  %2746 = vmatprep.subr.bf16.mxu1 %v2874_v61  ;;  %v2877_v26 = vld [vmem:[%s3696_s1 + $0x228] sm:$0xff]  }
  0xeb   : > { %1744 = vmatprep.mubr.bf16.mxu0 %v3389_v43  ;;  %2717 = vmatpush3.bf16.msra.mxu0 %v2874_v61 }
  0xec   : > { %1834 = vmatmul.mubr.bf16.gmra.mrb[36].mxu1 %v3313_v0  ;;  %2718 = vmatprep.subr.bf16.mxu0 %v2875_v15  ;;  %v2878_v0 = vld [vmem:[%s3696_s1 + $0x230] sm:$0xff]  }
  0xed   : > { %1841 = vmatprep.mubr.bf16.mxu1 %v3298_v58  ;;  %2754 = vmatpush3.bf16.msra.mxu1 %v2874_v61 }
  0xee   : > { %2747 = vmatprep.subr.bf16.mxu1 %v2875_v15 }
  0xef   : > { %2719 = vmatpush3.bf16.msra.mxu0 %v2875_v15 }
  0xf0   : > { %2720 = vmatprep.subr.bf16.mxu0 %v2876_v52 }
  0xf1   : > { %2755 = vmatpush3.bf16.msra.mxu1 %v2875_v15 }
  0xf2   : > { %1745 = vmatmul.mubr.bf16.gmra.mrb[40].mxu0 %v3260_v38  ;;  %2748 = vmatprep.subr.bf16.mxu1 %v2876_v52  ;;  %v2879_v38 = vld [vmem:[%s3696_s1 + $0x238] sm:$0xff]  }
  0xf3   : > { %1752 = vmatprep.mubr.bf16.mxu0 %v3410_v50  ;;  %2721 = vmatpush3.bf16.msra.mxu0 %v2876_v52 }
  0xf4   : > { %1842 = vmatmul.mubr.bf16.gmra.mrb[40].mxu1 %v3362_v27  ;;  %2722 = vmatprep.subr.bf16.mxu0 %v2877_v26 }
  0xf5   : > { %1849 = vmatprep.mubr.bf16.mxu1 %v3325_v8  ;;  %2756 = vmatpush3.bf16.msra.mxu1 %v2876_v52 }
  0xf6   : > { %2749 = vmatprep.subr.bf16.mxu1 %v2877_v26 }
  0xf7   : > { %2723 = vmatpush3.bf16.msra.mxu0 %v2877_v26 }
  0xf8   : > { %2724 = vmatprep.subr.bf16.mxu0 %v2878_v0 }
  0xf9   : > { %2757 = vmatpush3.bf16.msra.mxu1 %v2877_v26 }
  0xfa   : > { %1753 = vmatmul.mubr.bf16.gmra.mrb[44].mxu0 %v3298_v58  ;;  %2750 = vmatprep.subr.bf16.mxu1 %v2878_v0 }
  0xfb   : > { %1760 = vmatprep.mubr.bf16.mxu0 %v3462_v18  ;;  %2725 = vmatpush3.bf16.msra.mxu0 %v2878_v0 }
  0xfc   : > { %1850 = vmatmul.mubr.bf16.gmra.mrb[44].mxu1 %v3399_v46  ;;  %2726 = vmatprep.subr.bf16.mxu0 %v2879_v38 }
  0xfd   : > { %1857 = vmatprep.mubr.bf16.mxu1 %v3349_v21  ;;  %2758 = vmatpush3.bf16.msra.mxu1 %v2878_v0 }
  0xfe   : > { %2751 = vmatprep.subr.bf16.mxu1 %v2879_v38 }
  0xff   : > { %2727 = vmatpush3.bf16.msra.mxu0 %v2879_v38 }
 0x101   : > { %2759 = vmatpush3.bf16.msra.mxu1 %v2879_v38 }
 0x102   : > { %1761 = vmatmul.mubr.bf16.gmra.mrb[48].mxu0 %v3325_v8 }
 0x103   : > { %1768 = vmatprep.mubr.bf16.mxu0 %v3486_v39 }
 0x104   : > { %1858 = vmatmul.mubr.bf16.gmra.mrb[48].mxu1 %v3430_v62 }
 0x105   : > { %1865 = vmatprep.mubr.bf16.mxu1 %v3401_v47 }
 0x10a   : > { %1769 = vmatmul.mubr.bf16.gmra.mrb[52].mxu0 %v3349_v21 }
 0x10b   : > { %1776 = vmatprep.mubr.bf16.mxu0 %v3504_v45 }
 0x10c   : > { %1866 = vmatmul.mubr.bf16.gmra.mrb[52].mxu1 %v3469_v11 }
 0x10d   : > { %1873 = vmatprep.mubr.bf16.mxu1 %v3418_v56 }
 0x112   : > { %1777 = vmatmul.mubr.bf16.gmra.mrb[56].mxu0 %v3401_v47 }
 0x113   : > { %1784 = vmatprep.mubr.bf16.mxu0 %v3458_v14 }
 0x114   : > { %1874 = vmatmul.mubr.bf16.gmra.mrb[56].mxu1 %v3491_v41 }
 0x115   : > { %1881 = vmatprep.mubr.bf16.mxu1 %v3471_v25 }
 0x11a   : > { %1785 = vmatmul.mubr.bf16.gmra.mrb[60].mxu0 %v3418_v56 }
 0x11b   : > { %2728 = vmatprep.mubr.bf16.mxu0 %v3344_v16 }
 0x11c   : > { %1882 = vmatmul.mubr.bf16.gmra.mrb[60].mxu1 %v825_v29 }
 0x11d   : > { %2736 = vmatprep.mubr.bf16.mxu1 %v3486_v39 }
 0x122   : > { %2729 = vmatmul.mubr.bf16.vlgmr.msra.gmra.mrb[64].mxu0 %v3389_v43 }
 0x123   : > { %2732 = vmatprep.mubr.bf16.mxu0 %v3410_v50 }
 0x124   : > { %2737 = vmatmul.mubr.bf16.vlgmr.msra.gmra.mrb[64].mxu1 %v3504_v45 }
 0x125   : > { %2740 = vmatprep.mubr.bf16.mxu1 %v3458_v14 }
 0x12a   : > { %2733 = vmatmul.mubr.bf16.gmra.mrb[68].mxu0 %v3462_v18 }
 0x12c   : > { %2741 = vmatmul.mubr.bf16.gmra.mrb[68].mxu1 %v829_v42 }
 0x175   : > { %v2456_v23 = vpop.f32.mrb[0].mxu0 }
 0x176   : > { %v2457_v58 = vpop.f32.mrb[1].mxu0  ;;  %v2520_v8 = vpop.f32.mrb[0].mxu1 }
 0x177   : > { %v2458_v16 = vadd.f32 %v2457_v58, %v2456_v23  ;;  %v2459_v21 = vpop.f32.mrb[2].mxu0  ;;  %v2521_v27 = vpop.f32.mrb[1].mxu1 }
 0x178   : > { %v2460_v43 = vpop.f32.mrb[3].mxu0  ;;  %v2522_v46 = vadd.f32 %v2521_v27, %v2520_v8  ;;  %v2523_v47 = vpop.f32.mrb[2].mxu1 }
 0x179   : > { %v2461_v49 = vadd.f32 %v2460_v43, %v2459_v21  ;;  %v2524_v50 = vpop.f32.mrb[3].mxu1 }
 0x17a   : > { %v3575_v51 = vadd.f32 %v2522_v46, %v2458_v16  ;;  %v2525_v53 = vadd.f32 %v2524_v50, %v2523_v47 }
 0x17c   : > { %v3577_v54 = vadd.f32 %v2525_v53, %v2461_v49 }
 0x17d   : > { %v2462_v28 = vpop.f32.mrb[4].mxu0 }
 0x17e   : > { %v2463_v55 = vpop.f32.mrb[5].mxu0 }
 0x17f   : > { %v2526_v56 = vpop.f32.mrb[4].mxu1  ;;  %v2464_v57 = vadd.f32 %v2463_v55, %v2462_v28  ;;  %v2465_v59 = vpop.f32.mrb[6].mxu0 }
 0x180   : > { %v2527_v60 = vpop.f32.mrb[5].mxu1  ;;  %v2466_v62 = vpop.f32.mrb[7].mxu0 }
 0x181   : > { %v2528_v63 = vadd.f32 %v2527_v60, %v2526_v56  ;;  %v2529_v1 = vpop.f32.mrb[6].mxu1  ;;  %v2467_v2 = vadd.f32 %v2466_v62, %v2465_v59 }
 0x182   : > { %v2530_v3 = vpop.f32.mrb[7].mxu1 }
 0x183   : > { %v3579_v4 = vadd.f32 %v2528_v63, %v2464_v57  ;;  %v2531_v5 = vadd.f32 %v2530_v3, %v2529_v1 }
 0x185   : > { %v3581_v6 = vadd.f32 %v2531_v5, %v2467_v2  ;;  %v2468_v7 = vpop.f32.mrb[8].mxu0 }
 0x186   : > { %v2469_v9 = vpop.f32.mrb[9].mxu0 }
 0x187   : > { %v2532_v10 = vpop.f32.mrb[8].mxu1  ;;  %v2470_v12 = vadd.f32 %v2469_v9, %v2468_v7  ;;  %v2471_v13 = vpop.f32.mrb[10].mxu0 }
 0x188   : > { %v2533_v14 = vpop.f32.mrb[9].mxu1  ;;  %v2472_v17 = vpop.f32.mrb[11].mxu0 }
 0x189   : > { %v2534_v18 = vadd.f32 %v2533_v14, %v2532_v10  ;;  %v2535_v19 = vpop.f32.mrb[10].mxu1  ;;  %v2473_v20 = vadd.f32 %v2472_v17, %v2471_v13 }
 0x18a   : > { %v2536_v22 = vpop.f32.mrb[11].mxu1 }
 0x18b   : > { %v3583_v11 = vadd.f32 %v2534_v18, %v2470_v12  ;;  %v2537_v24 = vadd.f32 %v2536_v22, %v2535_v19 }
 0x18d   : > { %v3585_v25 = vadd.f32 %v2537_v24, %v2473_v20  ;;  %v2474_v30 = vpop.f32.mrb[12].mxu0 }
 0x18e   : > { %v2475_v31 = vpop.f32.mrb[13].mxu0 }
 0x18f   : > { %v2538_v32 = vpop.f32.mrb[12].mxu1  ;;  %v2476_v33 = vadd.f32 %v2475_v31, %v2474_v30  ;;  %v2477_v34 = vpop.f32.mrb[14].mxu0 }
 0x190   : > { %v2539_v35 = vpop.f32.mrb[13].mxu1  ;;  %v2478_v36 = vpop.f32.mrb[15].mxu0 }
 0x191   : > { %v2540_v37 = vadd.f32 %v2539_v35, %v2538_v32  ;;  %v2541_v39 = vpop.f32.mrb[14].mxu1  ;;  %v2479_v40 = vadd.f32 %v2478_v36, %v2477_v34 }
 0x192   : > { %v2542_v41 = vpop.f32.mrb[15].mxu1 }
 0x193   : > { %v3587_v29 = vadd.f32 %v2540_v37, %v2476_v33  ;;  %v2543_v42 = vadd.f32 %v2542_v41, %v2541_v39 }
 0x195   : > { %v3589_v44 = vadd.f32 %v2543_v42, %v2479_v40  ;;  %v2480_v45 = vpop.f32.mrb[16].mxu0 }
 0x196   : > { %v2481_v48 = vpop.f32.mrb[17].mxu0 }
 0x197   : > { %v2544_v61 = vpop.f32.mrb[16].mxu1  ;;  %v2482_v15 = vadd.f32 %v2481_v48, %v2480_v45  ;;  %v2483_v52 = vpop.f32.mrb[18].mxu0 }
 0x198   : > { %v2545_v26 = vpop.f32.mrb[17].mxu1  ;;  %v2484_v0 = vpop.f32.mrb[19].mxu0 }
 0x199   : > { %v2546_v38 = vadd.f32 %v2545_v26, %v2544_v61  ;;  %v2547_v23 = vpop.f32.mrb[18].mxu1  ;;  %v2485_v58 = vadd.f32 %v2484_v0, %v2483_v52 }
 0x19a   : > { %v2548_v8 = vpop.f32.mrb[19].mxu1 }
 0x19b   : > { %v3591_v16 = vadd.f32 %v2546_v38, %v2482_v15  ;;  %v2549_v21 = vadd.f32 %v2548_v8, %v2547_v23 }
 0x19d   : > { %v3593_v27 = vadd.f32 %v2549_v21, %v2485_v58  ;;  %v2486_v43 = vpop.f32.mrb[20].mxu0 }
 0x19e   : > { %v2487_v46 = vpop.f32.mrb[21].mxu0 }
 0x19f   : > { %v2550_v47 = vpop.f32.mrb[20].mxu1  ;;  %v2488_v49 = vadd.f32 %v2487_v46, %v2486_v43  ;;  %v2489_v50 = vpop.f32.mrb[22].mxu0 }
 0x1a0   : > { %v2551_v53 = vpop.f32.mrb[21].mxu1  ;;  %v2490_v28 = vpop.f32.mrb[23].mxu0 }
 0x1a1   : > { %v2552_v55 = vadd.f32 %v2551_v53, %v2550_v47  ;;  %v2553_v56 = vpop.f32.mrb[22].mxu1  ;;  %v2491_v57 = vadd.f32 %v2490_v28, %v2489_v50 }
 0x1a2   : > { %v2554_v59 = vpop.f32.mrb[23].mxu1 }
 0x1a3   : > { %v3595_v60 = vadd.f32 %v2552_v55, %v2488_v49  ;;  %v2555_v62 = vadd.f32 %v2554_v59, %v2553_v56 }
 0x1a5   : > { %v3597_v63 = vadd.f32 %v2555_v62, %v2491_v57  ;;  %v2492_v1 = vpop.f32.mrb[24].mxu0 }
 0x1a6   : > { %v2493_v2 = vpop.f32.mrb[25].mxu0 }
 0x1a7   : > { %v2556_v3 = vpop.f32.mrb[24].mxu1  ;;  %v2494_v5 = vadd.f32 %v2493_v2, %v2492_v1  ;;  %v2495_v7 = vpop.f32.mrb[26].mxu0 }
 0x1a8   : > { %v2557_v9 = vpop.f32.mrb[25].mxu1  ;;  %v2496_v10 = vpop.f32.mrb[27].mxu0 }
 0x1a9   : > { %v2558_v12 = vadd.f32 %v2557_v9, %v2556_v3  ;;  %v2559_v13 = vpop.f32.mrb[26].mxu1  ;;  %v2497_v14 = vadd.f32 %v2496_v10, %v2495_v7 }
 0x1aa   : > { %v2560_v17 = vpop.f32.mrb[27].mxu1 }
 0x1ab   : > { %v3599_v18 = vadd.f32 %v2558_v12, %v2494_v5  ;;  %v2561_v19 = vadd.f32 %v2560_v17, %v2559_v13 }
 0x1ad   : > { %v3601_v20 = vadd.f32 %v2561_v19, %v2497_v14  ;;  %v2498_v22 = vpop.f32.mrb[28].mxu0 }
 0x1ae   : > { %v2499_v24 = vpop.f32.mrb[29].mxu0 }
 0x1af   : > { %v2562_v30 = vpop.f32.mrb[28].mxu1  ;;  %v2500_v31 = vadd.f32 %v2499_v24, %v2498_v22  ;;  %v2501_v32 = vpop.f32.mrb[30].mxu0 }
 0x1b0   : > { %v2563_v33 = vpop.f32.mrb[29].mxu1  ;;  %v2502_v34 = vpop.f32.mrb[31].mxu0 }
 0x1b1   : > { %v2564_v35 = vadd.f32 %v2563_v33, %v2562_v30  ;;  %v2565_v36 = vpop.f32.mrb[30].mxu1  ;;  %v2503_v37 = vadd.f32 %v2502_v34, %v2501_v32 }
 0x1b2   : > { %v2566_v39 = vpop.f32.mrb[31].mxu1 }
 0x1b3   : > { %v3603_v40 = vadd.f32 %v2564_v35, %v2500_v31  ;;  %v2567_v41 = vadd.f32 %v2566_v39, %v2565_v36 }
 0x1b5   : > { %v3605_v42 = vadd.f32 %v2567_v41, %v2503_v37  ;;  %v2584_v45 = vpop.f32.mrb[32].mxu0 }
 0x1b6   : > { %v2585_v48 = vpop.f32.mrb[33].mxu0 }
 0x1b7   : > { %v2586_v61 = vadd.f32 %v2585_v48, %v2584_v45  ;;  %v2587_v15 = vpop.f32.mrb[34].mxu0  ;;  %v2648_v52 = vpop.f32.mrb[32].mxu1 }
 0x1b8   : > { %v2588_v26 = vpop.f32.mrb[35].mxu0  ;;  %v2649_v0 = vpop.f32.mrb[33].mxu1 }
 0x1b9   : > { %v1731_v38 = vadd.f32 %v2586_v61, %v3575_v51  ;;  %v2589_v23 = vadd.f32 %v2588_v26, %v2587_v15  ;;  %v2650_v58 = vadd.f32 %v2649_v0, %v2648_v52  ;;  %v2651_v8 = vpop.f32.mrb[34].mxu1 }
 0x1ba   : > { %v2652_v21 = vpop.f32.mrb[35].mxu1 }
 0x1bb   : > { %v1734_v43 = vadd.f32 %v2589_v23, %v3577_v54  ;;  %v2653_v46 = vadd.f32 %v2652_v21, %v2651_v8  ;;  %v3609_v47 = vadd.f32 %v2650_v58, %v1731_v38 }
 0x1bd   : > { %v2590_v49 = vpop.f32.mrb[36].mxu0  ;;  %v3611_v50 = vadd.f32 %v2653_v46, %v1734_v43 }
 0x1be   : > { %v2591_v53 = vpop.f32.mrb[37].mxu0 }
 0x1bf   : > { %v2592_v28 = vadd.f32 %v2591_v53, %v2590_v49  ;;  %v2593_v55 = vpop.f32.mrb[38].mxu0  ;;  %v2654_v56 = vpop.f32.mrb[36].mxu1 }
 0x1c0   : > { %v2594_v57 = vpop.f32.mrb[39].mxu0  ;;  %v2655_v59 = vpop.f32.mrb[37].mxu1 }
 0x1c1   : > { %v1739_v51 = vadd.f32 %v2592_v28, %v3579_v4  ;;  %v2595_v62 = vadd.f32 %v2594_v57, %v2593_v55  ;;  %v2656_v1 = vadd.f32 %v2655_v59, %v2654_v56  ;;  %v2657_v2 = vpop.f32.mrb[38].mxu1 }
 0x1c2   : > { %v2658_v3 = vpop.f32.mrb[39].mxu1 }
 0x1c3   : > { %v1742_v54 = vadd.f32 %v2595_v62, %v3581_v6  ;;  %v2659_v5 = vadd.f32 %v2658_v3, %v2657_v2  ;;  %v3615_v7 = vadd.f32 %v2656_v1, %v1739_v51 }
 0x1c5   : > { %v2596_v9 = vpop.f32.mrb[40].mxu0  ;;  %v3617_v10 = vadd.f32 %v2659_v5, %v1742_v54 }
 0x1c6   : > { %v2597_v12 = vpop.f32.mrb[41].mxu0 }
 0x1c7   : > { %v2598_v13 = vadd.f32 %v2597_v12, %v2596_v9  ;;  %v2599_v14 = vpop.f32.mrb[42].mxu0  ;;  %v2660_v17 = vpop.f32.mrb[40].mxu1 }
 0x1c8   : > { %v2600_v19 = vpop.f32.mrb[43].mxu0  ;;  %v2661_v22 = vpop.f32.mrb[41].mxu1 }
 0x1c9   : > { %v1747_v4 = vadd.f32 %v2598_v13, %v3583_v11  ;;  %v2601_v24 = vadd.f32 %v2600_v19, %v2599_v14  ;;  %v2662_v30 = vadd.f32 %v2661_v22, %v2660_v17  ;;  %v2663_v31 = vpop.f32.mrb[42].mxu1 }
 0x1ca   : > { %v2664_v32 = vpop.f32.mrb[43].mxu1 }
 0x1cb   : > { %v1750_v6 = vadd.f32 %v2601_v24, %v3585_v25  ;;  %v2665_v33 = vadd.f32 %v2664_v32, %v2663_v31  ;;  %v3621_v34 = vadd.f32 %v2662_v30, %v1747_v4 }
 0x1cd   : > { %v2602_v35 = vpop.f32.mrb[44].mxu0  ;;  %v3623_v36 = vadd.f32 %v2665_v33, %v1750_v6 }
 0x1ce   : > { %v2603_v37 = vpop.f32.mrb[45].mxu0 }
 0x1cf   : > { %v2604_v39 = vadd.f32 %v2603_v37, %v2602_v35  ;;  %v2605_v41 = vpop.f32.mrb[46].mxu0  ;;  %v2666_v45 = vpop.f32.mrb[44].mxu1 }
 0x1d0   : > { %v2606_v48 = vpop.f32.mrb[47].mxu0  ;;  %v2667_v61 = vpop.f32.mrb[45].mxu1 }
 0x1d1   : > { %v1755_v11 = vadd.f32 %v2604_v39, %v3587_v29  ;;  %v2607_v15 = vadd.f32 %v2606_v48, %v2605_v41  ;;  %v2668_v52 = vadd.f32 %v2667_v61, %v2666_v45  ;;  %v2669_v26 = vpop.f32.mrb[46].mxu1 }
 0x1d2   : > { %v2670_v0 = vpop.f32.mrb[47].mxu1 }
 0x1d3   : > { %v1758_v25 = vadd.f32 %v2607_v15, %v3589_v44  ;;  %v2671_v38 = vadd.f32 %v2670_v0, %v2669_v26  ;;  %v3627_v23 = vadd.f32 %v2668_v52, %v1755_v11 }
 0x1d5   : > { %v2608_v58 = vpop.f32.mrb[48].mxu0  ;;  %v3629_v8 = vadd.f32 %v2671_v38, %v1758_v25 }
 0x1d6   : > { %v2609_v21 = vpop.f32.mrb[49].mxu0 }
 0x1d7   : > { %v2610_v43 = vadd.f32 %v2609_v21, %v2608_v58  ;;  %v2611_v46 = vpop.f32.mrb[50].mxu0  ;;  %v2672_v49 = vpop.f32.mrb[48].mxu1 }
 0x1d8   : > { %v2612_v53 = vpop.f32.mrb[51].mxu0  ;;  %v2673_v28 = vpop.f32.mrb[49].mxu1 }
 0x1d9   : > { %v1763_v29 = vadd.f32 %v2610_v43, %v3591_v16  ;;  %v2613_v55 = vadd.f32 %v2612_v53, %v2611_v46  ;;  %v2674_v56 = vadd.f32 %v2673_v28, %v2672_v49  ;;  %v2675_v57 = vpop.f32.mrb[50].mxu1 }
 0x1da   : > { %v2676_v59 = vpop.f32.mrb[51].mxu1 }
 0x1db   : > { %v1766_v44 = vadd.f32 %v2613_v55, %v3593_v27  ;;  %v2677_v51 = vadd.f32 %v2676_v59, %v2675_v57  ;;  %v1860_v62 = vadd.f32 %v2674_v56, %v1763_v29 }
 0x1dd   : > { %v2614_v1 = vpop.f32.mrb[52].mxu0  ;;  %v3633_v2 = vadd.f32 %v2677_v51, %v1766_v44 }
 0x1de   : > { %v2615_v3 = vpop.f32.mrb[53].mxu0 }
 0x1df   : > { %v2616_v54 = vadd.f32 %v2615_v3, %v2614_v1  ;;  %v2617_v5 = vpop.f32.mrb[54].mxu0  ;;  %v2678_v9 = vpop.f32.mrb[52].mxu1 }
 0x1e0   : > { %v2618_v12 = vpop.f32.mrb[55].mxu0  ;;  %v2679_v13 = vpop.f32.mrb[53].mxu1 }
 0x1e1   : > { %v1771_v14 = vadd.f32 %v2616_v54, %v3595_v60  ;;  %v2619_v16 = vadd.f32 %v2618_v12, %v2617_v5  ;;  %v2680_v17 = vadd.f32 %v2679_v13, %v2678_v9  ;;  %v2681_v19 = vpop.f32.mrb[54].mxu1 }
 0x1e2   : > { %v2682_v22 = vpop.f32.mrb[55].mxu1 }
 0x1e3   : > { %v1774_v4 = vadd.f32 %v2619_v16, %v3597_v63  ;;  %v2683_v27 = vadd.f32 %v2682_v22, %v2681_v19  ;;  %v1868_v24 = vadd.f32 %v2680_v17, %v1771_v14 }
 0x1e5   : > { %v2620_v30 = vpop.f32.mrb[56].mxu0  ;;  %v1871_v31 = vadd.f32 %v2683_v27, %v1774_v4 }
 0x1e6   : > { %v2621_v32 = vpop.f32.mrb[57].mxu0 }
 0x1e7   : > { %v2622_v6 = vadd.f32 %v2621_v32, %v2620_v30  ;;  %v2623_v33 = vpop.f32.mrb[58].mxu0  ;;  %v2684_v35 = vpop.f32.mrb[56].mxu1 }
 0x1e8   : > { %v2624_v37 = vpop.f32.mrb[59].mxu0  ;;  %v2685_v39 = vpop.f32.mrb[57].mxu1 }
 0x1e9   : > { %v1779_v41 = vadd.f32 %v2622_v6, %v3599_v18  ;;  %v2625_v45 = vadd.f32 %v2624_v37, %v2623_v33  ;;  %v2686_v60 = vadd.f32 %v2685_v39, %v2684_v35  ;;  %v2687_v48 = vpop.f32.mrb[58].mxu1 }
 0x1ea   : > { %v2688_v61 = vpop.f32.mrb[59].mxu1 }
 0x1eb   : > { %v1782_v11 = vadd.f32 %v2625_v45, %v3601_v20  ;;  %v2689_v15 = vadd.f32 %v2688_v61, %v2687_v48  ;;  %v3639_v63 = vadd.f32 %v2686_v60, %v1779_v41 }
 0x1ed   : > { %v2626_v52 = vpop.f32.mrb[60].mxu0  ;;  %v3641_v26 = vadd.f32 %v2689_v15, %v1782_v11 }
 0x1ee   : > { %v2627_v0 = vpop.f32.mrb[61].mxu0 }
 0x1ef   : > { %v2628_v25 = vadd.f32 %v2627_v0, %v2626_v52  ;;  %v2629_v38 = vpop.f32.mrb[62].mxu0  ;;  %v2690_v58 = vpop.f32.mrb[60].mxu1 }
 0x1f0   : > { %v2630_v21 = vpop.f32.mrb[63].mxu0  ;;  %v2691_v43 = vpop.f32.mrb[61].mxu1 }
 0x1f1   : > { %v1787_v18 = vadd.f32 %v2628_v25, %v3603_v40  ;;  %v2631_v46 = vadd.f32 %v2630_v21, %v2629_v38  ;;  %v2692_v49 = vadd.f32 %v2691_v43, %v2690_v58  ;;  %v2693_v53 = vpop.f32.mrb[62].mxu1 }
 0x1f2   : > { %v2694_v28 = vpop.f32.mrb[63].mxu1 }
 0x1f3   : > { %v1790_v20 = vadd.f32 %v2631_v46, %v3605_v42  ;;  %v2695_v29 = vadd.f32 %v2694_v28, %v2693_v53  ;;  %v1884_v55 = vadd.f32 %v2692_v49, %v1787_v18 }
 0x1f5   : > { %v2730_v56 = vpop.f32.mrb[64].mxu0  ;;  %v1887_v57 = vadd.f32 %v2695_v29, %v1790_v20 }
 0x1f6   : > { %v1933_v59 = vadd.f32 %v2730_v56, %v3615_v7  ;;  %v1924_v44 = vpop.f32.mrb[65].mxu0 }
 0x1f7   : > { %v2738_v51 = vpop.f32.mrb[64].mxu1  ;;  %v1925_v1 = vadd.f32 %v1924_v44, %v3609_v47  ;;  %v2731_v40 = vpop.f32.mrb[66].mxu0 }
 0x1f8   : > { %1989 = vst [vmem:[%s2999_s5 + $0x10] sm:$0xff] %v1933_v59  ;;  %v3648_v3 = vadd.f32 %v2738_v51, %v1868_v24  ;;  %v1956_v54 = vpop.f32.mrb[65].mxu1  ;;  %v1936_v42 = vadd.f32 %v2731_v40, %v3617_v10  ;;  %v1927_v5 = vpop.f32.mrb[67].mxu0  ;;  %v2026_v19 = vmul.f32 %v1933_v59, %v1933_v59 }
 0x1f9   : > { %1987 = vst [vmem:[%s2999_s5] sm:$0xff] %v1925_v1  ;;  %v1957_v9 = vadd.f32 %v1956_v54, %v1860_v62  ;;  %v2739_v12 = vpop.f32.mrb[66].mxu1  ;;  %v1928_v7 = vadd.f32 %v1927_v5, %v3611_v50  ;;  %v2024_v14 = vmul.f32 %v1925_v1, %v1925_v1 }
 0x1fa   : > { %1997 = vst [vmem:[%s2999_s5 + $0x50] sm:$0xff] %v3648_v3  ;;  %1990 = vst [vmem:[%s2999_s5 + $0x18] sm:$0xff] %v1936_v42  ;;  %v1968_v47 = vadd.f32 %v2739_v12, %v1871_v31  ;;  %v1959_v13 = vpop.f32.mrb[67].mxu1  ;;  %v2027_v24 = vmul.f32 %v1936_v42, %v1936_v42 }
 0x1fb   : > { %1995 = vst [vmem:[%s2999_s5 + $0x40] sm:$0xff] %v1957_v9  ;;  %1988 = vst [vmem:[%s2999_s5 + $0x8] sm:$0xff] %v1928_v7  ;;  %v2003_v16 = vadd.f32 %v1928_v7, %v1925_v1  ;;  %v2025_v17 = vmul.f32 %v1928_v7, %v1928_v7  ;;  %v1960_v10 = vadd.f32 %v1959_v13, %v3633_v2 }
 0x1fc   : > { %1998 = vst [vmem:[%s2999_s5 + $0x58] sm:$0xff] %v1968_v47  ;;  %v2032_v18 = vmul.f32 %v1957_v9, %v1957_v9 }
 0x1fd   : > { %v2004_v62 = vadd.f32 %v2003_v16, %v1933_v59  ;;  %v2040_v22 = vadd.f32 %v2025_v17, %v2024_v14  ;;  %1996 = vst [vmem:[%s2999_s5 + $0x48] sm:$0xff] %v1960_v10  ;;  %v2734_v50 = vpop.f32.mrb[68].mxu0 }
 0x1fe   : > { %v1949_v4 = vadd.f32 %v2734_v50, %v3627_v23  ;;  %v1940_v27 = vpop.f32.mrb[69].mxu0 }
 0x1ff   : > { %v2041_v30 = vadd.f32 %v2040_v22, %v2026_v19  ;;  %v2742_v31 = vpop.f32.mrb[68].mxu1  ;;  %v1941_v32 = vadd.f32 %v1940_v27, %v3621_v34  ;;  %v2005_v6 = vadd.f32 %v2004_v62, %v1936_v42  ;;  %v2735_v33 = vpop.f32.mrb[70].mxu0 }
 0x200   : > { %1993 = vst [vmem:[%s2999_s5 + $0x30] sm:$0xff] %v1949_v4  ;;  %v1981_v2 = vadd.f32 %v2742_v31, %v1884_v55  ;;  %v1972_v35 = vpop.f32.mrb[69].mxu1  ;;  %v1952_v37 = vadd.f32 %v2735_v33, %v3629_v8  ;;  %v1943_v39 = vpop.f32.mrb[71].mxu0  ;;  %v2030_v25 = vmul.f32 %v1949_v4, %v1949_v4  ;;  %v2035_v55 = vmul.f32 %v1968_v47, %v1968_v47 }
 0x201   : > { %1991 = vst [vmem:[%s2999_s5 + $0x20] sm:$0xff] %v1941_v32  ;;  %v2006_v23 = vadd.f32 %v2005_v6, %v1941_v32  ;;  %v2028_v41 = vmul.f32 %v1941_v32, %v1941_v32  ;;  %v2042_v45 = vadd.f32 %v2041_v30, %v2027_v24  ;;  %v1973_v60 = vadd.f32 %v1972_v35, %v3639_v63  ;;  %v2743_v48 = vpop.f32.mrb[70].mxu1 }
 0x202   : > { %2001 = vst [vmem:[%s2999_s5 + $0x70] sm:$0xff] %v1981_v2  ;;  %1994 = vst [vmem:[%s2999_s5 + $0x38] sm:$0xff] %v1952_v37  ;;  %v1984_v34 = vadd.f32 %v2743_v48, %v1887_v57  ;;  %v1944_v61 = vadd.f32 %v1943_v39, %v3623_v36  ;;  %v1975_v11 = vpop.f32.mrb[71].mxu1  ;;  %v2031_v63 = vmul.f32 %v1952_v37, %v1952_v37 }
 0x203   : > { %v2043_v15 = vadd.f32 %v2042_v45, %v2028_v41  ;;  %1999 = vst [vmem:[%s2999_s5 + $0x60] sm:$0xff] %v1973_v60  ;;  %v1976_v8 = vadd.f32 %v1975_v11, %v3641_v26  ;;  %v2033_v36 = vmul.f32 %v1960_v10, %v1960_v10  ;;  %v2034_v26 = vmul.f32 %v3648_v3, %v3648_v3 }
 0x204   : > { %2002 = vst [vmem:[%s2999_s5 + $0x78] sm:$0xff] %v1984_v34  ;;  %1992 = vst [vmem:[%s2999_s5 + $0x28] sm:$0xff] %v1944_v61  ;;  %v2007_v52 = vadd.f32 %v2006_v23, %v1944_v61  ;;  %v2029_v0 = vmul.f32 %v1944_v61, %v1944_v61  ;;  %v2036_v59 = vmul.f32 %v1973_v60, %v1973_v60 }
 0x205   : > { %2000 = vst [vmem:[%s2999_s5 + $0x68] sm:$0xff] %v1976_v8  ;;  %v2037_v40 = vmul.f32 %v1976_v8, %v1976_v8  ;;  %v2038_v42 = vmul.f32 %v1981_v2, %v1981_v2  ;;  %v2039_v12 = vmul.f32 %v1984_v34, %v1984_v34 }
 0x206   : > { %v2008_v38 = vadd.f32 %v2007_v52, %v1949_v4  ;;  %v2044_v58 = vadd.f32 %v2043_v15, %v2029_v0 }
 0x208   : > { %v2009_v21 = vadd.f32 %v2008_v38, %v1952_v37  ;;  %v2045_v43 = vadd.f32 %v2044_v58, %v2030_v25 }
 0x20a   : > { %v2010_v46 = vadd.f32 %v2009_v21, %v1957_v9  ;;  %v2046_v49 = vadd.f32 %v2045_v43, %v2031_v63 }
 0x20c   : > { %v2047_v53 = vadd.f32 %v2046_v49, %v2032_v18  ;;  %v2011_v28 = vadd.f32 %v2010_v46, %v1960_v10 }
 0x20e   : > { %v2012_v20 = vadd.f32 %v2011_v28, %v3648_v3  ;;  %v2048_v29 = vadd.f32 %v2047_v53, %v2033_v36 }
 0x210   : > { %v2013_v56 = vadd.f32 %v2012_v20, %v1968_v47  ;;  %v2049_v57 = vadd.f32 %v2048_v29, %v2034_v26 }
 0x212   : > { %v2014_v44 = vadd.f32 %v2013_v56, %v1973_v60  ;;  %v2050_v51 = vadd.f32 %v2049_v57, %v2035_v55 }
 0x214   : > { %v2015_v1 = vadd.f32 %v2014_v44, %v1976_v8  ;;  %v2051_v54 = vadd.f32 %v2050_v51, %v2036_v59 }
 0x216   : > { %v2016_v5 = vadd.f32 %v2015_v1, %v1981_v2  ;;  %v2052_v9 = vadd.f32 %v2051_v54, %v2037_v40 }
 0x218   : > { %v2017_v7 = vadd.f32 %v2016_v5, %v1984_v34  ;;  %v2053_v13 = vadd.f32 %v2052_v9, %v2038_v42 }
 0x21a   : > { %v2018_v14 = vrot.slane %v2017_v7, 4  ;;  %v2054_v16 = vadd.f32 %v2053_v13, %v2039_v12 }
 0x21c   : > { %v2019_v3 = vadd.f32 %v2018_v14, %v2017_v7  ;;  %v2055_v17 = vrot.slane %v2054_v16, 4 }
 0x21e   : > { %v2020_v10 = vrot.slane %v2019_v3, 2  ;;  %v2056_v47 = vadd.f32 %v2055_v17, %v2054_v16 }
 0x220   : > { %v2021_v19 = vadd.f32 %v2020_v10, %v2019_v3  ;;  %v2057_v62 = vrot.slane %v2056_v47, 2 }
 0x222   : > { %v2022_v22 = vrot.slane %v2021_v19, 1  ;;  %v2058_v50 = vadd.f32 %v2057_v62, %v2056_v47 }
 0x224   : > { %v2059_v4 = vrot.slane %v2058_v50, 1  ;;  %v2023_v27 = vadd.f32 %v2022_v22, %v2021_v19 }
 0x226   : > { %v2060_v24 = vadd.f32 %v2059_v4, %v2058_v50 }
 0x228   : > { %v2062_v30 = vsel %vm710_vm0, %v2023_v27, %v2060_v24 }
 0x229   : > { %2063 = vst [vmem:[%s2994_s29] sm:$0x3] %v2062_v30 }
 0x22a PF: > { %s14_s16 = sadd.s32 1, %s2928_s16   ;;  %s3703_s12 = smov %s2920_s14 }
 0x22b   : > { %p11_p8 = scmp.ge.s32.totalorder %s14_s16, 6   ;;  %s3704_s13 = smov %s2924_s15 }
 0x22c   : > { %s3705_s14 = smov %s3708_s17  ;;  %s3706_s15 = smov %s3712_s18 }
 0x22d   :  { %13 = sbr.rel (!%p11_p8) target bundleno = 3 (0x3), region = 381 }
 0x234   :  { %2112 = vsyncmov [#allocation4] }
 0x237   :  { %s2113_s29 = vpop.sfrf %2112 }
 0x238   :  { %p2432_p10 = scmp.ne.s32.totalorder %s2113_s29, 0 }
 0x23a   :  { %2117 = shalt.err (%p2432_p10)  }
 0x23b   :  { %2119 = vsyncmov [#allocation4 + $0x1] }
 0x23e   :  { %s2120_s5 = vpop.sfrf %2119 }
 0x23f   :  { %p2433_p11 = scmp.ne.s32.totalorder %s2120_s5, 0 }
 0x241   :  { %2124 = shalt.err (%p2433_p11)  }
 0x242   :  { %2126 = vsyncmov [#allocation4 + $0x2] }
 0x245   :  { %s2127_s23 = vpop.sfrf %2126 }
 0x246   :  { %p2434_p12 = scmp.ne.s32.totalorder %s2127_s23, 0 }
 0x248   :  { %2131 = shalt.err (%p2434_p12)  }
 0x249   :  { %2133 = vsyncmov [#allocation4 + $0x3] }
 0x24c   :  { %s2134_s27 = vpop.sfrf %2133 }
 0x24d   :  { %p2435_p13 = scmp.ne.s32.totalorder %s2134_s27, 0 }
 0x24f   :  { %2138 = shalt.err (%p2435_p13)  }
 0x250   :  { %2140 = vsyncmov [#allocation4 + $0x4] }
 0x253   :  { %s2141_s17 = vpop.sfrf %2140 }
 0x254   :  { %p2436_p0 = scmp.ne.s32.totalorder %s2141_s17, 0 }
 0x256   :  { %2145 = shalt.err (%p2436_p0)  }
 0x257   :  { %2147 = vsyncmov [#allocation4 + $0x5] }
 0x25a   :  { %s2148_s0 = vpop.sfrf %2147 }
 0x25b   :  { %p2437_p1 = scmp.ne.s32.totalorder %s2148_s0, 0 }
 0x25d   :  { %2152 = shalt.err (%p2437_p1)  }

// kernel: _lambda_.25
= control target key start
LH: loop header
LB: loop body
LE: loop exit
PB: predicated region body
PF: predicated region fallthrough
CT: control target
= control target key end

     0   :  { %s1224_s0 = inlined_call_operand.vmem [shape: f32[512,128], index: 0, kind: input, shape index: {}]   ;;  %s1225_s2 = inlined_call_operand.vmem [shape: f32[1,128], index: 2, kind: input, shape index: {}]   ;;  %s1226_s3 = inlined_call_operand.vmem [shape: f32[1,128], index: 3, kind: input, shape index: {}]   ;;  %s1227_s1 = inlined_call_operand.vmem [shape: f32[512,128], index: 1, kind: input, shape index: {}]   ;;  %s1228_s4 = inlined_call_operand.vmem [shape: f32[512,128], index: 4, kind: output, shape index: {}]  }
   0x1   :  { %v17_v0 = vld [vmem:[%s1224_s0] sm:$0xff]  ;;  %v18_v4 = vld [vmem:[%s1224_s0 + $0x8] sm:$0xff]  ;;  %v19_v6 = vld [vmem:[%s1224_s0 + $0x10] sm:$0xff] }
   0x2   :  { %v516_v1 = vld [vmem:[%s1225_s2] ss:$0 sm:$0xff]  ;;  %v20_v7 = vld [vmem:[%s1224_s0 + $0x18] sm:$0xff]  ;;  %v22_v15 = vld [vmem:[%s1224_s0 + $0x28] sm:$0xff] }
   0x3   :  { %v521_v2 = vld [vmem:[%s1226_s3] ss:$0 sm:$0xff]  ;;  %v88_v3 = vmul.f32 %v516_v1, %v17_v0  ;;  %v89_v5 = vmul.f32 %v516_v1, %v18_v4  ;;  %v90_v9 = vmul.f32 %v516_v1, %v19_v6  ;;  %v91_v10 = vmul.f32 %v516_v1, %v20_v7  ;;  %v23_v16 = vld [vmem:[%s1224_s0 + $0x30] sm:$0xff]  ;;  %v288_v18 = vld [vmem:[%s1227_s1 + $0x8] sm:$0xff] }
   0x4   :  { %v21_v11 = vld [vmem:[%s1224_s0 + $0x20] sm:$0xff]  ;;  %v93_v21 = vmul.f32 %v516_v1, %v22_v15  ;;  %v24_v22 = vld [vmem:[%s1224_s0 + $0x38] sm:$0xff]  ;;  %v289_v24 = vld [vmem:[%s1227_s1 + $0x10] sm:$0xff]  ;;  %v94_v27 = vmul.f32 %v516_v1, %v23_v16 }
   0x5   :  { %v159_v8 = vadd.f32 %v521_v2, %v88_v3  ;;  %v287_v12 = vld [vmem:[%s1227_s1] sm:$0xff]  ;;  %v160_v13 = vadd.f32 %v521_v2, %v89_v5  ;;  %v92_v14 = vmul.f32 %v516_v1, %v21_v11  ;;  %v161_v19 = vadd.f32 %v521_v2, %v90_v9  ;;  %v290_v25 = vld [vmem:[%s1227_s1 + $0x18] sm:$0xff]  ;;  %v26_v35 = vld [vmem:[%s1224_s0 + $0x48] sm:$0xff] }
   0x6   :  { %v162_v20 = vadd.f32 %v521_v2, %v91_v10  ;;  %v95_v28 = vmul.f32 %v516_v1, %v24_v22  ;;  %v25_v29 = vld [vmem:[%s1224_s0 + $0x40] sm:$0xff]  ;;  %v164_v34 = vadd.f32 %v521_v2, %v93_v21  ;;  %v292_v38 = vld [vmem:[%s1227_s1 + $0x28] sm:$0xff]  ;;  %v165_v39 = vadd.f32 %v521_v2, %v94_v27  ;;  %v27_v41 = vld [vmem:[%s1224_s0 + $0x50] sm:$0xff] }
   0x7   :  { %v223_v17 = vmax.f32 %v159_v8, 0.0  ;;  %v224_v23 = vmax.f32 %v160_v13, 0.0  ;;  %v163_v26 = vadd.f32 %v521_v2, %v92_v14  ;;  %v225_v31 = vmax.f32 %v161_v19, 0.0  ;;  %v291_v33 = vld [vmem:[%s1227_s1 + $0x20] sm:$0xff]  ;;  %v28_v42 = vld [vmem:[%s1224_s0 + $0x58] sm:$0xff]  ;;  %v293_v46 = vld [vmem:[%s1227_s1 + $0x30] sm:$0xff] }
   0x8   :  { %v226_v32 = vmax.f32 %v162_v20, 0.0  ;;  %v166_v40 = vadd.f32 %v521_v2, %v95_v28  ;;  %v228_v45 = vmax.f32 %v164_v34, 0.0  ;;  %v294_v47 = vld [vmem:[%s1227_s1 + $0x38] sm:$0xff]  ;;  %v96_v48 = vmul.f32 %v516_v1, %v25_v29  ;;  %v29_v49 = vld [vmem:[%s1224_s0 + $0x60] sm:$0xff]  ;;  %v30_v54 = vld [vmem:[%s1224_s0 + $0x68] sm:$0xff] }
   0x9   :  { %v351_v30 = vadd.f32 %v287_v12, %v223_v17  ;;  %v352_v36 = vadd.f32 %v288_v18, %v224_v23  ;;  %v227_v37 = vmax.f32 %v163_v26, 0.0  ;;  %v353_v43 = vadd.f32 %v289_v24, %v225_v31  ;;  %v31_v59 = vld [vmem:[%s1224_s0 + $0x70] sm:$0xff]  ;;  %v32_v60 = vld [vmem:[%s1224_s0 + $0x78] sm:$0xff]  ;;  %v295_v63 = vld [vmem:[%s1227_s1 + $0x40] sm:$0xff] }
   0xa   :  { %v354_v44 = vadd.f32 %v290_v25, %v226_v32  ;;  %v229_v51 = vmax.f32 %v165_v39, 0.0  ;;  %v230_v52 = vmax.f32 %v166_v40, 0.0  ;;  %v97_v53 = vmul.f32 %v516_v1, %v26_v35  ;;  %v296_v5 = vld [vmem:[%s1227_s1 + $0x48] sm:$0xff]  ;;  %v297_v10 = vld [vmem:[%s1227_s1 + $0x50] sm:$0xff]  ;;  %v298_v11 = vld [vmem:[%s1227_s1 + $0x58] sm:$0xff] }
   0xb   :  { %415 = vst [vmem:[%s1228_s4] sm:$0xff] %v351_v30  ;;  %416 = vst [vmem:[%s1228_s4 + $0x8] sm:$0xff] %v352_v36  ;;  %v355_v50 = vadd.f32 %v291_v33, %v227_v37  ;;  %v356_v55 = vadd.f32 %v292_v38, %v228_v45  ;;  %v167_v56 = vadd.f32 %v521_v2, %v96_v48  ;;  %v33_v15 = vld [vmem:[%s1224_s0 + $0x80] sm:$0xff]  ;;  %v34_v21 = vld [vmem:[%s1224_s0 + $0x88] sm:$0xff] }
   0xc   :  { %417 = vst [vmem:[%s1228_s4 + $0x10] sm:$0xff] %v353_v43  ;;  %418 = vst [vmem:[%s1228_s4 + $0x18] sm:$0xff] %v354_v44  ;;  %v98_v57 = vmul.f32 %v516_v1, %v27_v41  ;;  %v99_v58 = vmul.f32 %v516_v1, %v28_v42  ;;  %v357_v61 = vadd.f32 %v293_v46, %v229_v51  ;;  %v299_v19 = vld [vmem:[%s1227_s1 + $0x60] sm:$0xff]  ;;  %v300_v24 = vld [vmem:[%s1227_s1 + $0x68] sm:$0xff] }
   0xd   :  { %419 = vst [vmem:[%s1228_s4 + $0x20] sm:$0xff] %v355_v50  ;;  %v358_v62 = vadd.f32 %v294_v47, %v230_v52  ;;  %v168_v0 = vadd.f32 %v521_v2, %v97_v53  ;;  %v100_v3 = vmul.f32 %v516_v1, %v29_v49  ;;  %420 = vst [vmem:[%s1228_s4 + $0x28] sm:$0xff] %v356_v55  ;;  %v231_v4 = vmax.f32 %v167_v56, 0.0  ;;  %v35_v27 = vld [vmem:[%s1224_s0 + $0x90] sm:$0xff]  ;;  %v36_v28 = vld [vmem:[%s1224_s0 + $0x98] sm:$0xff] }
   0xe   :  { %v169_v6 = vadd.f32 %v521_v2, %v98_v57  ;;  %v170_v7 = vadd.f32 %v521_v2, %v99_v58  ;;  %v101_v8 = vmul.f32 %v516_v1, %v30_v54  ;;  %421 = vst [vmem:[%s1228_s4 + $0x30] sm:$0xff] %v357_v61  ;;  %v102_v13 = vmul.f32 %v516_v1, %v31_v59  ;;  %v301_v32 = vld [vmem:[%s1227_s1 + $0x70] sm:$0xff]  ;;  %v302_v33 = vld [vmem:[%s1227_s1 + $0x78] sm:$0xff]  ;;  %v37_v35 = vld [vmem:[%s1224_s0 + $0xa0] sm:$0xff] }
   0xf   :  { %422 = vst [vmem:[%s1228_s4 + $0x38] sm:$0xff] %v358_v62  ;;  %v232_v9 = vmax.f32 %v168_v0, 0.0  ;;  %v171_v12 = vadd.f32 %v521_v2, %v100_v3  ;;  %v103_v14 = vmul.f32 %v516_v1, %v32_v60  ;;  %v359_v16 = vadd.f32 %v295_v63, %v231_v4  ;;  %v38_v40 = vld [vmem:[%s1224_s0 + $0xa8] sm:$0xff]  ;;  %v39_v45 = vld [vmem:[%s1224_s0 + $0xb0] sm:$0xff]  ;;  %v40_v46 = vld [vmem:[%s1224_s0 + $0xb8] sm:$0xff] }
  0x10   :  { %v233_v17 = vmax.f32 %v169_v6, 0.0  ;;  %v234_v18 = vmax.f32 %v170_v7, 0.0  ;;  %v172_v20 = vadd.f32 %v521_v2, %v101_v8  ;;  %v173_v25 = vadd.f32 %v521_v2, %v102_v13  ;;  %v303_v49 = vld [vmem:[%s1227_s1 + $0x80] sm:$0xff]  ;;  %v304_v53 = vld [vmem:[%s1227_s1 + $0x88] sm:$0xff]  ;;  %v305_v58 = vld [vmem:[%s1227_s1 + $0x90] sm:$0xff] }
  0x11   :  { %v360_v22 = vadd.f32 %v296_v5, %v232_v9  ;;  %v235_v23 = vmax.f32 %v171_v12, 0.0  ;;  %v174_v26 = vadd.f32 %v521_v2, %v103_v14  ;;  %423 = vst [vmem:[%s1228_s4 + $0x40] sm:$0xff] %v359_v16  ;;  %v104_v34 = vmul.f32 %v516_v1, %v33_v15  ;;  %v306_v59 = vld [vmem:[%s1227_s1 + $0x98] sm:$0xff]  ;;  %v41_v63 = vld [vmem:[%s1224_s0 + $0xc0] sm:$0xff]  ;;  %v42_v7 = vld [vmem:[%s1224_s0 + $0xc8] sm:$0xff] }
  0x12   :  { %v361_v29 = vadd.f32 %v297_v10, %v233_v17  ;;  %v362_v30 = vadd.f32 %v298_v11, %v234_v18  ;;  %v236_v31 = vmax.f32 %v172_v20, 0.0  ;;  %v237_v37 = vmax.f32 %v173_v25, 0.0  ;;  %v307_v5 = vld [vmem:[%s1227_s1 + $0xa0] sm:$0xff]  ;;  %v308_v10 = vld [vmem:[%s1227_s1 + $0xa8] sm:$0xff]  ;;  %v43_v13 = vld [vmem:[%s1224_s0 + $0xd0] sm:$0xff] }
  0x13   :  { %424 = vst [vmem:[%s1228_s4 + $0x48] sm:$0xff] %v360_v22  ;;  %v363_v36 = vadd.f32 %v299_v19, %v235_v23  ;;  %v238_v38 = vmax.f32 %v174_v26, 0.0  ;;  %v105_v39 = vmul.f32 %v516_v1, %v34_v21  ;;  %v175_v42 = vadd.f32 %v521_v2, %v104_v34  ;;  %v44_v14 = vld [vmem:[%s1224_s0 + $0xd8] sm:$0xff]  ;;  %v309_v18 = vld [vmem:[%s1227_s1 + $0xb0] sm:$0xff]  ;;  %v45_v21 = vld [vmem:[%s1224_s0 + $0xe0] sm:$0xff] }
  0x14   :  { %425 = vst [vmem:[%s1228_s4 + $0x50] sm:$0xff] %v361_v29  ;;  %426 = vst [vmem:[%s1228_s4 + $0x58] sm:$0xff] %v362_v30  ;;  %v364_v41 = vadd.f32 %v300_v24, %v236_v31  ;;  %v106_v43 = vmul.f32 %v516_v1, %v35_v27  ;;  %v107_v44 = vmul.f32 %v516_v1, %v36_v28  ;;  %v310_v19 = vld [vmem:[%s1227_s1 + $0xb8] sm:$0xff]  ;;  %v46_v26 = vld [vmem:[%s1224_s0 + $0xe8] sm:$0xff] }
  0x15   :  { %427 = vst [vmem:[%s1228_s4 + $0x60] sm:$0xff] %v363_v36  ;;  %v365_v47 = vadd.f32 %v301_v32, %v237_v37  ;;  %v366_v48 = vadd.f32 %v302_v33, %v238_v38  ;;  %v176_v50 = vadd.f32 %v521_v2, %v105_v39  ;;  %v108_v51 = vmul.f32 %v516_v1, %v37_v35  ;;  %v47_v31 = vld [vmem:[%s1224_s0 + $0xf0] sm:$0xff]  ;;  %v48_v32 = vld [vmem:[%s1224_s0 + $0xf8] sm:$0xff]  ;;  %v311_v35 = vld [vmem:[%s1227_s1 + $0xc0] sm:$0xff] }
  0x16   :  { %428 = vst [vmem:[%s1228_s4 + $0x68] sm:$0xff] %v364_v41  ;;  %v239_v52 = vmax.f32 %v175_v42, 0.0  ;;  %v177_v54 = vadd.f32 %v521_v2, %v106_v43  ;;  %v178_v55 = vadd.f32 %v521_v2, %v107_v44  ;;  %v109_v56 = vmul.f32 %v516_v1, %v38_v40  ;;  %v312_v39 = vld [vmem:[%s1227_s1 + $0xc8] sm:$0xff]  ;;  %v313_v44 = vld [vmem:[%s1227_s1 + $0xd0] sm:$0xff] }
  0x17   :  { %429 = vst [vmem:[%s1228_s4 + $0x70] sm:$0xff] %v365_v47  ;;  %430 = vst [vmem:[%s1228_s4 + $0x78] sm:$0xff] %v366_v48  ;;  %v240_v57 = vmax.f32 %v176_v50, 0.0  ;;  %v179_v60 = vadd.f32 %v521_v2, %v108_v51  ;;  %v110_v61 = vmul.f32 %v516_v1, %v39_v45  ;;  %v111_v62 = vmul.f32 %v516_v1, %v40_v46  ;;  %v314_v45 = vld [vmem:[%s1227_s1 + $0xd8] sm:$0xff] }
  0x18   :  { %v367_v0 = vadd.f32 %v303_v49, %v239_v52  ;;  %v241_v3 = vmax.f32 %v177_v54, 0.0  ;;  %v242_v4 = vmax.f32 %v178_v55, 0.0  ;;  %v180_v6 = vadd.f32 %v521_v2, %v109_v56  ;;  %v49_v49 = vld [vmem:[%s1224_s0 + $0x100] sm:$0xff]  ;;  %v50_v55 = vld [vmem:[%s1224_s0 + $0x108] sm:$0xff] }
  0x19   :  { %v368_v8 = vadd.f32 %v304_v53, %v240_v57  ;;  %v243_v9 = vmax.f32 %v179_v60, 0.0  ;;  %v181_v11 = vadd.f32 %v521_v2, %v110_v61  ;;  %v182_v12 = vadd.f32 %v521_v2, %v111_v62  ;;  %v315_v53 = vld [vmem:[%s1227_s1 + $0xe0] sm:$0xff]  ;;  %v51_v61 = vld [vmem:[%s1224_s0 + $0x110] sm:$0xff]  ;;  %v52_v62 = vld [vmem:[%s1224_s0 + $0x118] sm:$0xff] }
  0x1a   :  { %431 = vst [vmem:[%s1228_s4 + $0x80] sm:$0xff] %v367_v0  ;;  %v369_v15 = vadd.f32 %v305_v58, %v241_v3  ;;  %v370_v16 = vadd.f32 %v306_v59, %v242_v4  ;;  %v244_v17 = vmax.f32 %v180_v6, 0.0  ;;  %v112_v20 = vmul.f32 %v516_v1, %v41_v63  ;;  %v316_v58 = vld [vmem:[%s1227_s1 + $0xe8] sm:$0xff]  ;;  %v317_v4 = vld [vmem:[%s1227_s1 + $0xf0] sm:$0xff] }
  0x1b   :  { %432 = vst [vmem:[%s1228_s4 + $0x88] sm:$0xff] %v368_v8  ;;  %v371_v22 = vadd.f32 %v307_v5, %v243_v9  ;;  %v245_v23 = vmax.f32 %v181_v11, 0.0  ;;  %v246_v24 = vmax.f32 %v182_v12, 0.0  ;;  %v113_v25 = vmul.f32 %v516_v1, %v42_v7  ;;  %v318_v5 = vld [vmem:[%s1227_s1 + $0xf8] sm:$0xff]  ;;  %v53_v7 = vld [vmem:[%s1224_s0 + $0x120] sm:$0xff]  ;;  %v54_v12 = vld [vmem:[%s1224_s0 + $0x128] sm:$0xff] }
  0x1c   :  { %433 = vst [vmem:[%s1228_s4 + $0x90] sm:$0xff] %v369_v15  ;;  %434 = vst [vmem:[%s1228_s4 + $0x98] sm:$0xff] %v370_v16  ;;  %v372_v27 = vadd.f32 %v308_v10, %v244_v17  ;;  %v183_v28 = vadd.f32 %v521_v2, %v112_v20  ;;  %v114_v29 = vmul.f32 %v516_v1, %v43_v13  ;;  %v55_v17 = vld [vmem:[%s1224_s0 + $0x130] sm:$0xff] }
  0x1d   :  { %v115_v30 = vmul.f32 %v516_v1, %v44_v14  ;;  %435 = vst [vmem:[%s1228_s4 + $0xa0] sm:$0xff] %v371_v22  ;;  %v373_v33 = vadd.f32 %v309_v18, %v245_v23  ;;  %v374_v34 = vadd.f32 %v310_v19, %v246_v24  ;;  %v184_v36 = vadd.f32 %v521_v2, %v113_v25  ;;  %v56_v18 = vld [vmem:[%s1224_s0 + $0x138] sm:$0xff]  ;;  %v320_v25 = vld [vmem:[%s1227_s1 + $0x108] sm:$0xff] }
  0x1e   :  { %v116_v37 = vmul.f32 %v516_v1, %v45_v21  ;;  %436 = vst [vmem:[%s1228_s4 + $0xa8] sm:$0xff] %v372_v27  ;;  %v247_v38 = vmax.f32 %v183_v28, 0.0  ;;  %v185_v40 = vadd.f32 %v521_v2, %v114_v29  ;;  %v117_v42 = vmul.f32 %v516_v1, %v46_v26  ;;  %v319_v21 = vld [vmem:[%s1227_s1 + $0x100] sm:$0xff] }
  0x1f   :  { %v186_v41 = vadd.f32 %v521_v2, %v115_v30  ;;  %437 = vst [vmem:[%s1228_s4 + $0xb0] sm:$0xff] %v373_v33  ;;  %438 = vst [vmem:[%s1228_s4 + $0xb8] sm:$0xff] %v374_v34  ;;  %v248_v43 = vmax.f32 %v184_v36, 0.0  ;;  %v118_v47 = vmul.f32 %v516_v1, %v47_v31  ;;  %v119_v48 = vmul.f32 %v516_v1, %v48_v32  ;;  %v321_v30 = vld [vmem:[%s1227_s1 + $0x110] sm:$0xff]  ;;  %v322_v31 = vld [vmem:[%s1227_s1 + $0x118] sm:$0xff] }
  0x20   :  { %v187_v46 = vadd.f32 %v521_v2, %v116_v37  ;;  %v375_v50 = vadd.f32 %v311_v35, %v247_v38  ;;  %v249_v51 = vmax.f32 %v185_v40, 0.0  ;;  %v188_v54 = vadd.f32 %v521_v2, %v117_v42  ;;  %v57_v35 = vld [vmem:[%s1224_s0 + $0x140] sm:$0xff] }
  0x21   :  { %v250_v52 = vmax.f32 %v186_v41, 0.0  ;;  %v376_v56 = vadd.f32 %v312_v39, %v248_v43  ;;  %v189_v59 = vadd.f32 %v521_v2, %v118_v47  ;;  %v190_v60 = vadd.f32 %v521_v2, %v119_v48  ;;  %v323_v39 = vld [vmem:[%s1227_s1 + $0x120] sm:$0xff]  ;;  %v58_v41 = vld [vmem:[%s1224_s0 + $0x148] sm:$0xff]  ;;  %v59_v47 = vld [vmem:[%s1224_s0 + $0x150] sm:$0xff] }
  0x22   :  { %v251_v57 = vmax.f32 %v187_v46, 0.0  ;;  %439 = vst [vmem:[%s1228_s4 + $0xc0] sm:$0xff] %v375_v50  ;;  %v377_v63 = vadd.f32 %v313_v44, %v249_v51  ;;  %v252_v3 = vmax.f32 %v188_v54, 0.0  ;;  %v120_v6 = vmul.f32 %v516_v1, %v49_v49  ;;  %v324_v44 = vld [vmem:[%s1227_s1 + $0x128] sm:$0xff]  ;;  %v60_v48 = vld [vmem:[%s1224_s0 + $0x158] sm:$0xff] }
  0x23   :  { %v378_v0 = vadd.f32 %v314_v45, %v250_v52  ;;  %440 = vst [vmem:[%s1228_s4 + $0xc8] sm:$0xff] %v376_v56  ;;  %v253_v9 = vmax.f32 %v189_v59, 0.0  ;;  %v254_v10 = vmax.f32 %v190_v60, 0.0  ;;  %v121_v11 = vmul.f32 %v516_v1, %v50_v55  ;;  %v325_v52 = vld [vmem:[%s1227_s1 + $0x130] sm:$0xff]  ;;  %v61_v55 = vld [vmem:[%s1224_s0 + $0x160] sm:$0xff]  ;;  %v62_v60 = vld [vmem:[%s1224_s0 + $0x168] sm:$0xff] }
  0x24   :  { %v379_v8 = vadd.f32 %v315_v53, %v251_v57  ;;  %441 = vst [vmem:[%s1228_s4 + $0xd0] sm:$0xff] %v377_v63  ;;  %v380_v13 = vadd.f32 %v316_v58, %v252_v3  ;;  %v191_v14 = vadd.f32 %v521_v2, %v120_v6  ;;  %v122_v15 = vmul.f32 %v516_v1, %v51_v61  ;;  %v326_v53 = vld [vmem:[%s1227_s1 + $0x138] sm:$0xff]  ;;  %v63_v3 = vld [vmem:[%s1224_s0 + $0x170] sm:$0xff] }
  0x25   :  { %442 = vst [vmem:[%s1228_s4 + $0xd8] sm:$0xff] %v378_v0  ;;  %v123_v16 = vmul.f32 %v516_v1, %v52_v62  ;;  %v381_v19 = vadd.f32 %v317_v4, %v253_v9  ;;  %v382_v20 = vadd.f32 %v318_v5, %v254_v10  ;;  %v192_v22 = vadd.f32 %v521_v2, %v121_v11  ;;  %v64_v4 = vld [vmem:[%s1224_s0 + $0x178] sm:$0xff]  ;;  %v328_v11 = vld [vmem:[%s1227_s1 + $0x148] sm:$0xff] }
  0x26   :  { %443 = vst [vmem:[%s1228_s4 + $0xe0] sm:$0xff] %v379_v8  ;;  %v124_v23 = vmul.f32 %v516_v1, %v53_v7  ;;  %444 = vst [vmem:[%s1228_s4 + $0xe8] sm:$0xff] %v380_v13  ;;  %v255_v24 = vmax.f32 %v191_v14, 0.0  ;;  %v193_v26 = vadd.f32 %v521_v2, %v122_v15  ;;  %v125_v28 = vmul.f32 %v516_v1, %v54_v12  ;;  %v327_v7 = vld [vmem:[%s1227_s1 + $0x140] sm:$0xff] }
  0x27   :  { %v194_v27 = vadd.f32 %v521_v2, %v123_v16  ;;  %445 = vst [vmem:[%s1228_s4 + $0xf0] sm:$0xff] %v381_v19  ;;  %446 = vst [vmem:[%s1228_s4 + $0xf8] sm:$0xff] %v382_v20  ;;  %v256_v29 = vmax.f32 %v192_v22, 0.0  ;;  %v126_v33 = vmul.f32 %v516_v1, %v55_v17  ;;  %v127_v34 = vmul.f32 %v516_v1, %v56_v18  ;;  %v329_v16 = vld [vmem:[%s1227_s1 + $0x150] sm:$0xff]  ;;  %v330_v17 = vld [vmem:[%s1227_s1 + $0x158] sm:$0xff] }
  0x28   :  { %v195_v32 = vadd.f32 %v521_v2, %v124_v23  ;;  %v383_v36 = vadd.f32 %v319_v21, %v255_v24  ;;  %v257_v37 = vmax.f32 %v193_v26, 0.0  ;;  %v196_v40 = vadd.f32 %v521_v2, %v125_v28  ;;  %v65_v21 = vld [vmem:[%s1224_s0 + $0x180] sm:$0xff] }
  0x29   :  { %v258_v38 = vmax.f32 %v194_v27, 0.0  ;;  %v384_v42 = vadd.f32 %v320_v25, %v256_v29  ;;  %v197_v45 = vadd.f32 %v521_v2, %v126_v33  ;;  %v198_v46 = vadd.f32 %v521_v2, %v127_v34  ;;  %v331_v25 = vld [vmem:[%s1227_s1 + $0x160] sm:$0xff]  ;;  %v66_v27 = vld [vmem:[%s1224_s0 + $0x188] sm:$0xff]  ;;  %v67_v33 = vld [vmem:[%s1224_s0 + $0x190] sm:$0xff] }
  0x2a   :  { %v259_v43 = vmax.f32 %v195_v32, 0.0  ;;  %447 = vst [vmem:[%s1228_s4 + $0x100] sm:$0xff] %v383_v36  ;;  %v385_v49 = vadd.f32 %v321_v30, %v257_v37  ;;  %v260_v51 = vmax.f32 %v196_v40, 0.0  ;;  %v128_v54 = vmul.f32 %v516_v1, %v57_v35  ;;  %v332_v30 = vld [vmem:[%s1227_s1 + $0x168] sm:$0xff]  ;;  %v68_v34 = vld [vmem:[%s1224_s0 + $0x198] sm:$0xff] }
  0x2b   :  { %v386_v50 = vadd.f32 %v322_v31, %v258_v38  ;;  %448 = vst [vmem:[%s1228_s4 + $0x108] sm:$0xff] %v384_v42  ;;  %v261_v57 = vmax.f32 %v197_v45, 0.0  ;;  %v262_v58 = vmax.f32 %v198_v46, 0.0  ;;  %v129_v59 = vmul.f32 %v516_v1, %v58_v41  ;;  %v333_v38 = vld [vmem:[%s1227_s1 + $0x170] sm:$0xff]  ;;  %v69_v41 = vld [vmem:[%s1224_s0 + $0x1a0] sm:$0xff]  ;;  %v70_v46 = vld [vmem:[%s1224_s0 + $0x1a8] sm:$0xff] }
  0x2c   :  { %v387_v56 = vadd.f32 %v323_v39, %v259_v43  ;;  %449 = vst [vmem:[%s1228_s4 + $0x110] sm:$0xff] %v385_v49  ;;  %v388_v61 = vadd.f32 %v324_v44, %v260_v51  ;;  %v199_v62 = vadd.f32 %v521_v2, %v128_v54  ;;  %v130_v63 = vmul.f32 %v516_v1, %v59_v47  ;;  %v334_v39 = vld [vmem:[%s1227_s1 + $0x178] sm:$0xff]  ;;  %v71_v51 = vld [vmem:[%s1224_s0 + $0x1b0] sm:$0xff] }
  0x2d   :  { %450 = vst [vmem:[%s1228_s4 + $0x118] sm:$0xff] %v386_v50  ;;  %v131_v0 = vmul.f32 %v516_v1, %v60_v48  ;;  %v389_v5 = vadd.f32 %v325_v52, %v261_v57  ;;  %v390_v6 = vadd.f32 %v326_v53, %v262_v58  ;;  %v200_v8 = vadd.f32 %v521_v2, %v129_v59  ;;  %v72_v52 = vld [vmem:[%s1224_s0 + $0x1b8] sm:$0xff]  ;;  %v336_v59 = vld [vmem:[%s1227_s1 + $0x188] sm:$0xff] }
  0x2e   :  { %451 = vst [vmem:[%s1228_s4 + $0x120] sm:$0xff] %v387_v56  ;;  %v132_v9 = vmul.f32 %v516_v1, %v61_v55  ;;  %452 = vst [vmem:[%s1228_s4 + $0x128] sm:$0xff] %v388_v61  ;;  %v263_v10 = vmax.f32 %v199_v62, 0.0  ;;  %v201_v12 = vadd.f32 %v521_v2, %v130_v63  ;;  %v133_v14 = vmul.f32 %v516_v1, %v62_v60  ;;  %v335_v55 = vld [vmem:[%s1227_s1 + $0x180] sm:$0xff] }
  0x2f   :  { %v202_v13 = vadd.f32 %v521_v2, %v131_v0  ;;  %453 = vst [vmem:[%s1228_s4 + $0x130] sm:$0xff] %v389_v5  ;;  %454 = vst [vmem:[%s1228_s4 + $0x138] sm:$0xff] %v390_v6  ;;  %v264_v15 = vmax.f32 %v200_v8, 0.0  ;;  %v134_v19 = vmul.f32 %v516_v1, %v63_v3  ;;  %v135_v20 = vmul.f32 %v516_v1, %v64_v4  ;;  %v337_v0 = vld [vmem:[%s1227_s1 + $0x190] sm:$0xff]  ;;  %v338_v3 = vld [vmem:[%s1227_s1 + $0x198] sm:$0xff] }
  0x30   :  { %v203_v18 = vadd.f32 %v521_v2, %v132_v9  ;;  %v391_v22 = vadd.f32 %v327_v7, %v263_v10  ;;  %v265_v23 = vmax.f32 %v201_v12, 0.0  ;;  %v204_v26 = vadd.f32 %v521_v2, %v133_v14  ;;  %v73_v7 = vld [vmem:[%s1224_s0 + $0x1c0] sm:$0xff] }
  0x31   :  { %v266_v24 = vmax.f32 %v202_v13, 0.0  ;;  %v392_v28 = vadd.f32 %v328_v11, %v264_v15  ;;  %v205_v31 = vadd.f32 %v521_v2, %v134_v19  ;;  %v206_v32 = vadd.f32 %v521_v2, %v135_v20  ;;  %v339_v11 = vld [vmem:[%s1227_s1 + $0x1a0] sm:$0xff]  ;;  %v74_v13 = vld [vmem:[%s1224_s0 + $0x1c8] sm:$0xff]  ;;  %v75_v19 = vld [vmem:[%s1224_s0 + $0x1d0] sm:$0xff] }
  0x32   :  { %v267_v29 = vmax.f32 %v203_v18, 0.0  ;;  %455 = vst [vmem:[%s1228_s4 + $0x140] sm:$0xff] %v391_v22  ;;  %v393_v35 = vadd.f32 %v329_v16, %v265_v23  ;;  %v268_v37 = vmax.f32 %v204_v26, 0.0  ;;  %v136_v40 = vmul.f32 %v516_v1, %v65_v21  ;;  %v340_v16 = vld [vmem:[%s1227_s1 + $0x1a8] sm:$0xff]  ;;  %v76_v20 = vld [vmem:[%s1224_s0 + $0x1d8] sm:$0xff] }
  0x33   :  { %v394_v36 = vadd.f32 %v330_v17, %v266_v24  ;;  %456 = vst [vmem:[%s1228_s4 + $0x148] sm:$0xff] %v392_v28  ;;  %v269_v43 = vmax.f32 %v205_v31, 0.0  ;;  %v270_v44 = vmax.f32 %v206_v32, 0.0  ;;  %v137_v45 = vmul.f32 %v516_v1, %v66_v27  ;;  %v341_v24 = vld [vmem:[%s1227_s1 + $0x1b0] sm:$0xff]  ;;  %v77_v27 = vld [vmem:[%s1224_s0 + $0x1e0] sm:$0xff]  ;;  %v78_v32 = vld [vmem:[%s1224_s0 + $0x1e8] sm:$0xff] }
  0x34   :  { %v395_v42 = vadd.f32 %v331_v25, %v267_v29  ;;  %457 = vst [vmem:[%s1228_s4 + $0x150] sm:$0xff] %v393_v35  ;;  %v396_v47 = vadd.f32 %v332_v30, %v268_v37  ;;  %v207_v48 = vadd.f32 %v521_v2, %v136_v40  ;;  %v138_v49 = vmul.f32 %v516_v1, %v67_v33  ;;  %v342_v25 = vld [vmem:[%s1227_s1 + $0x1b8] sm:$0xff]  ;;  %v79_v37 = vld [vmem:[%s1224_s0 + $0x1f0] sm:$0xff] }
  0x35   :  { %458 = vst [vmem:[%s1228_s4 + $0x158] sm:$0xff] %v394_v36  ;;  %v139_v50 = vmul.f32 %v516_v1, %v68_v34  ;;  %v397_v53 = vadd.f32 %v333_v38, %v269_v43  ;;  %v398_v54 = vadd.f32 %v334_v39, %v270_v44  ;;  %v208_v56 = vadd.f32 %v521_v2, %v137_v45  ;;  %v80_v38 = vld [vmem:[%s1224_s0 + $0x1f8] sm:$0xff]  ;;  %v344_v45 = vld [vmem:[%s1227_s1 + $0x1c8] sm:$0xff] }
  0x36   :  { %459 = vst [vmem:[%s1228_s4 + $0x160] sm:$0xff] %v395_v42  ;;  %v140_v57 = vmul.f32 %v516_v1, %v69_v41  ;;  %460 = vst [vmem:[%s1228_s4 + $0x168] sm:$0xff] %v396_v47  ;;  %v271_v58 = vmax.f32 %v207_v48, 0.0  ;;  %v209_v60 = vadd.f32 %v521_v2, %v138_v49  ;;  %v141_v62 = vmul.f32 %v516_v1, %v70_v46  ;;  %v343_v41 = vld [vmem:[%s1227_s1 + $0x1c0] sm:$0xff] }
  0x37   :  { %v210_v61 = vadd.f32 %v521_v2, %v139_v50  ;;  %461 = vst [vmem:[%s1228_s4 + $0x170] sm:$0xff] %v397_v53  ;;  %462 = vst [vmem:[%s1228_s4 + $0x178] sm:$0xff] %v398_v54  ;;  %v272_v63 = vmax.f32 %v208_v56, 0.0  ;;  %v142_v5 = vmul.f32 %v516_v1, %v71_v51  ;;  %v143_v6 = vmul.f32 %v516_v1, %v72_v52  ;;  %v345_v50 = vld [vmem:[%s1227_s1 + $0x1d0] sm:$0xff]  ;;  %v346_v51 = vld [vmem:[%s1227_s1 + $0x1d8] sm:$0xff] }
  0x38   :  { %v211_v4 = vadd.f32 %v521_v2, %v140_v57  ;;  %v399_v8 = vadd.f32 %v335_v55, %v271_v58  ;;  %v273_v9 = vmax.f32 %v209_v60, 0.0  ;;  %v212_v12 = vadd.f32 %v521_v2, %v141_v62  ;;  %v347_v58 = vld [vmem:[%s1227_s1 + $0x1e0] sm:$0xff]  ;;  %v348_v62 = vld [vmem:[%s1227_s1 + $0x1e8] sm:$0xff] }
  0x39   :  { %v274_v10 = vmax.f32 %v210_v61, 0.0  ;;  %v400_v14 = vadd.f32 %v336_v59, %v272_v63  ;;  %v213_v17 = vadd.f32 %v521_v2, %v142_v5  ;;  %v214_v18 = vadd.f32 %v521_v2, %v143_v6  ;;  %v349_v5 = vld [vmem:[%s1227_s1 + $0x1f0] sm:$0xff]  ;;  %v350_v6 = vld [vmem:[%s1227_s1 + $0x1f8] sm:$0xff] }
  0x3a   :  { %v275_v15 = vmax.f32 %v211_v4, 0.0  ;;  %463 = vst [vmem:[%s1228_s4 + $0x180] sm:$0xff] %v399_v8  ;;  %v401_v21 = vadd.f32 %v337_v0, %v273_v9  ;;  %v276_v23 = vmax.f32 %v212_v12, 0.0  ;;  %v144_v26 = vmul.f32 %v516_v1, %v73_v7 }
  0x3b   :  { %v402_v22 = vadd.f32 %v338_v3, %v274_v10  ;;  %464 = vst [vmem:[%s1228_s4 + $0x188] sm:$0xff] %v400_v14  ;;  %v277_v29 = vmax.f32 %v213_v17, 0.0  ;;  %v278_v30 = vmax.f32 %v214_v18, 0.0  ;;  %v145_v31 = vmul.f32 %v516_v1, %v74_v13 }
  0x3c   :  { %v403_v28 = vadd.f32 %v339_v11, %v275_v15  ;;  %465 = vst [vmem:[%s1228_s4 + $0x190] sm:$0xff] %v401_v21  ;;  %v404_v33 = vadd.f32 %v340_v16, %v276_v23  ;;  %v215_v34 = vadd.f32 %v521_v2, %v144_v26  ;;  %v146_v35 = vmul.f32 %v516_v1, %v75_v19 }
  0x3d   :  { %466 = vst [vmem:[%s1228_s4 + $0x198] sm:$0xff] %v402_v22  ;;  %v147_v36 = vmul.f32 %v516_v1, %v76_v20  ;;  %v405_v39 = vadd.f32 %v341_v24, %v277_v29  ;;  %v406_v40 = vadd.f32 %v342_v25, %v278_v30  ;;  %v216_v42 = vadd.f32 %v521_v2, %v145_v31 }
  0x3e   :  { %467 = vst [vmem:[%s1228_s4 + $0x1a0] sm:$0xff] %v403_v28  ;;  %v148_v43 = vmul.f32 %v516_v1, %v77_v27  ;;  %468 = vst [vmem:[%s1228_s4 + $0x1a8] sm:$0xff] %v404_v33  ;;  %v279_v44 = vmax.f32 %v215_v34, 0.0  ;;  %v217_v46 = vadd.f32 %v521_v2, %v146_v35  ;;  %v149_v48 = vmul.f32 %v516_v1, %v78_v32 }
  0x3f   :  { %v218_v47 = vadd.f32 %v521_v2, %v147_v36  ;;  %469 = vst [vmem:[%s1228_s4 + $0x1b0] sm:$0xff] %v405_v39  ;;  %470 = vst [vmem:[%s1228_s4 + $0x1b8] sm:$0xff] %v406_v40  ;;  %v280_v49 = vmax.f32 %v216_v42, 0.0  ;;  %v150_v53 = vmul.f32 %v516_v1, %v79_v37  ;;  %v151_v54 = vmul.f32 %v516_v1, %v80_v38 }
  0x40   :  { %v219_v52 = vadd.f32 %v521_v2, %v148_v43  ;;  %v407_v55 = vadd.f32 %v343_v41, %v279_v44  ;;  %v281_v56 = vmax.f32 %v217_v46, 0.0  ;;  %v220_v59 = vadd.f32 %v521_v2, %v149_v48 }
  0x41   :  { %v282_v57 = vmax.f32 %v218_v47, 0.0  ;;  %v408_v60 = vadd.f32 %v344_v45, %v280_v49  ;;  %v221_v63 = vadd.f32 %v521_v2, %v150_v53  ;;  %v222_v0 = vadd.f32 %v521_v2, %v151_v54 }
  0x42   :  { %v283_v61 = vmax.f32 %v219_v52, 0.0  ;;  %471 = vst [vmem:[%s1228_s4 + $0x1c0] sm:$0xff] %v407_v55  ;;  %v409_v1 = vadd.f32 %v345_v50, %v281_v56  ;;  %v284_v4 = vmax.f32 %v220_v59, 0.0 }
  0x43   :  { %v410_v3 = vadd.f32 %v346_v51, %v282_v57  ;;  %472 = vst [vmem:[%s1228_s4 + $0x1c8] sm:$0xff] %v408_v60  ;;  %v285_v7 = vmax.f32 %v221_v63, 0.0  ;;  %v286_v8 = vmax.f32 %v222_v0, 0.0 }
  0x44   :  { %v411_v2 = vadd.f32 %v347_v58, %v283_v61  ;;  %473 = vst [vmem:[%s1228_s4 + $0x1d0] sm:$0xff] %v409_v1  ;;  %v412_v9 = vadd.f32 %v348_v62, %v284_v4 }
  0x45   :  { %474 = vst [vmem:[%s1228_s4 + $0x1d8] sm:$0xff] %v410_v3  ;;  %v413_v10 = vadd.f32 %v349_v5, %v285_v7  ;;  %v414_v11 = vadd.f32 %v350_v6, %v286_v8 }
  0x46   :  { %475 = vst [vmem:[%s1228_s4 + $0x1e0] sm:$0xff] %v411_v2  ;;  %476 = vst [vmem:[%s1228_s4 + $0x1e8] sm:$0xff] %v412_v9 }
  0x47   :  { %477 = vst [vmem:[%s1228_s4 + $0x1f0] sm:$0xff] %v413_v10  ;;  %478 = vst [vmem:[%s1228_s4 + $0x1f8] sm:$0xff] %v414_v11 }

// kernel: _lambda_.16
= control target key start
LH: loop header
LB: loop body
LE: loop exit
PB: predicated region body
PF: predicated region fallthrough
CT: control target
= control target key end

     0   :  { %s2914_s12 = smov 0   ;;  %s2916_s13 = smov 0   ;;  %s3593_s0 = inlined_call_operand.vmem [shape: bf16[2,16,16,128], index: 0, kind: input, shape index: {}]   ;;  %s3594_s1 = inlined_call_operand.vmem [shape: bf16[1152,128], index: 1, kind: input, shape index: {}]   ;;  %s3595_s2 = inlined_call_operand.vmem [shape: f32[512,128], index: 2, kind: output, shape index: {0}]   ;;  %s3596_s3 = inlined_call_operand.vmem [shape: f32[4,2,128], index: 3, kind: output, shape index: {1}]  }
   0x1   :  { %s2918_s14 = smov 0   ;;  %s2920_s15 = smov 0  }
   0x2   :  { %s2922_s16 = smov 0  }
   0x3 LB: > { %s23_s17 = sadd.s32 1, %s2882_s14  ;;  %s26_s18 = sadd.s32 1, %s2886_s15  ;;  %s2890_s16 = sphi %s2922_s16, %s14_s16   ;;  %s2886_s15 = sphi %s2920_s15, %s3604_s15   ;;  %s2882_s14 = sphi %s2918_s14, %s3603_s14   ;;  %s2878_s13 = sphi %s2916_s13, %s3602_s13   ;;  %s2874_s12 = sphi %s2914_s12, %s3601_s12  }
   0x4   : > { %p24_p0 = scmp.ge.s32.totalorder %s23_s17, 2  ;;  %p2268_p1 = scmp.ge.s32.totalorder %s2890_s16, 1 }
   0x5   : > { %p126_p2 = scmp.lt.s32.totalorder %s2890_s16, 5 }
   0x6   : > { %s3606_s17 = smov (%p24_p0, %s23_s17), 0  ;;  %s3608_s18 = smov (!%p24_p0, %s26_s18), %s2886_s15 }
   0x7   : > { %p127_p3 = pnand %p2268_p1, %p126_p2  ;;  %p28_p4 = scmp.ge.s32.totalorder %s3608_s18, 2 }
   0x8   : > { %s2269_s19 = sshll.u32 (!%p127_p3), %s2878_s13, 1  ;;  %p170_p5 = scmp.lt.s32.totalorder (!%p127_p3), %s2874_s12, 0 }
   0x9   : > { %s3610_s18 = smov (%p28_p4, %s3608_s18), 0  ;;  %130 = sbr.rel (%p127_p3) target bundleno = 548 (0x224), region = 24 }
   0xa   : > { %s152_s20 = sadd.s32 (!%p127_p3), %s2874_s12, %s2269_s19  ;;  %s171_s21 = ssub.s32 (!%p127_p3), 0, %s2874_s12 }
   0xb   : > { %s2270_s22 = sshll.u32 (!%p127_p3), %s152_s20, 4  ;;  %p163_p6 = scmp.lt.s32.totalorder (!%p127_p3), %s152_s20, 3 }
   0xc   : > { %p154_p7 = scmp.lt.s32.totalorder (!%p127_p3), %s2270_s22, 63  ;;  %s2274_s23 = smin.u32 (!%p127_p3), %s2874_s12, %s171_s21 }
   0xd   : > { %s173_s25 = sand.u32 (!%p127_p3), 1, %s2274_s23   ;;  %p2275_p8 = scmp.ne.s32.totalorder (!%p127_p3), %s2874_s12, 0 }
   0xe   : > { %s174_s6 = ssub.s32 (!%p127_p3), 0, %s173_s25 }
  0x10   : > { %s3612_s20 = smov (!%p163_p6, %s152_s20), 3  ;;  %s3614_s22 = smov (!%p154_p7, %s2270_s22), 63 }
  0x11   : > { %s2273_s24 = sshll.u32 %s3612_s20, 1  ;;  %s2271_s26 = sshll.u32 %s3614_s22, 3 }
  0x12   : > { %s2956_s29 = scalar_lea.vmem %s3596_s3, %s2273_s24  ;;  %s2961_s5 = scalar_lea.vmem %s3595_s2, %s2271_s26 }
  0x13   : > { %s3616_s6 = smov (!%p170_p5, %s174_s6), %s173_s25  ;;  %179 = sbr.rel (%p2275_p8) target bundleno = 56 (0x38), region = 28 }
  0x14   : > { %s2276_s7 = sshll.u32 (!%p2275_p8), %s2874_s12, 3  ;;  %s2972_s8 = sshll.u32 (!%p2275_p8), %s2878_s13, 5 }
  0x15   : > { %p181_p9 = scmp.lt.s32.totalorder (!%p2275_p8), %s2276_s7, 8  ;;  %s2277_s9 = sadd.s32 (!%p2275_p8), 4294967295, %s2276_s7 }
  0x16   : > { %p184_p10 = scmp.gt.s32.totalorder (!%p2275_p8), %s2277_s9, 0  ;;  %s186_s10 = sadd.s32 (!%p2275_p8), 8, %s2276_s7 }
  0x17   : > { %p187_p11 = scmp.lt.s32.totalorder (!%p2275_p8), %s186_s10, 15 }
  0x1a   : > { %s3618_s7 = smov (!%p181_p9, %s2276_s7), 8  ;;  %s3620_s9 = smov (!%p184_p10, %s2277_s9), 0 }
  0x1b   : > { %s2278_s11 = sshll.u32 %s3618_s7, 1  ;;  %s3622_s10 = smov (!%p187_p11, %s186_s10), 15 }
  0x1c   : > { %s191_s19 = sadd.s32 %s2972_s8, %s2278_s11 }
  0x1d   : > { %s2280_s20 = sshll.u32 %s191_s19, 2 }
  0x1e   : > { %s193_s23 = scalar_lea.vmem %s3593_s0, %s2280_s20 }
  0x1f   : > { %v227_v0 = vld [vmem:[%s193_s23] sm:$0xff]  ;;  %v229_v1 = vld [vmem:[%s193_s23 + $0x8] sm:$0xff]  ;;  %v231_v2 = vld [vmem:[%s193_s23 + $0x10] sm:$0xff] }
  0x20   : > { %228 = vst [vmem:[#allocation2 + $0x8] sm:$0xff] %v227_v0  ;;  %230 = vst [vmem:[#allocation2 + $0x10] sm:$0xff] %v229_v1  ;;  %v233_v3 = vld [vmem:[%s193_s23 + $0x18] sm:$0xff]  ;;  %v235_v4 = vld [vmem:[%s193_s23 + $0x20] sm:$0xff] }
  0x21   : > { %232 = vst [vmem:[#allocation2 + $0x18] sm:$0xff] %v231_v2  ;;  %v237_v5 = vld [vmem:[%s193_s23 + $0x28] sm:$0xff]  ;;  %234 = vst [vmem:[#allocation2 + $0x20] sm:$0xff] %v233_v3  ;;  %v239_v6 = vld [vmem:[%s193_s23 + $0x30] sm:$0xff] }
  0x22   : > { %236 = vst [vmem:[#allocation2 + $0x28] sm:$0xff] %v235_v4  ;;  %238 = vst [vmem:[#allocation2 + $0x30] sm:$0xff] %v237_v5  ;;  %v241_v7 = vld [vmem:[%s193_s23 + $0x38] sm:$0xff] }
  0x23   : > { %240 = vst [vmem:[#allocation2 + $0x38] sm:$0xff] %v239_v6  ;;  %242 = vst [vmem:[#allocation2 + $0x40] sm:$0xff] %v241_v7 }
  0x24   : > { %250 = vsyncadd [#allocation4], 1024  ;;  %p2281_p12 = scmp.le.s32.totalorder %s2874_s12, 0 }
  0x25   : > { %s2282_s24 = sshll.u32 (!%p2281_p12), %s3620_s9, 1 }
  0x26   : > { %254 = sbr.rel (%p2281_p12) target bundleno = 46 (0x2e), region = 66  ;;  %s256_s25 = sadd.s32 (!%p2281_p12), %s2282_s24, %s2972_s8 }
  0x27   : > { %s2283_s26 = sshll.u32 (!%p2281_p12), %s256_s25, 2 }
  0x28   : > { %s258_s30 = scalar_lea.vmem (!%p2281_p12), %s3593_s0, %s2283_s26 }
  0x29   : > { %v292_v8 = vld [vmem:[%s258_s30] sm:$0xff] (!%p2281_p12) }
  0x2a   : > { %293 = vst [vmem:[#allocation2] sm:$0xff] (!%p2281_p12), %v292_v8 }
  0x2d   : > { %301 = vsyncadd [#allocation4 + $0x1], 128 }
  0x2e PF: > { %p2284_p13 = scmp.ge.s32.totalorder %s2874_s12, 1 }
  0x2f   : > { %s2285_s4 = sshll.u32 (!%p2284_p13), %s3622_s10, 1 }
  0x30   : > { %305 = sbr.rel (%p2284_p13) target bundleno = 56 (0x38), region = 104  ;;  %s307_s7 = sadd.s32 (!%p2284_p13), %s2285_s4, %s2972_s8 }
  0x31   : > { %s2286_s11 = sshll.u32 (!%p2284_p13), %s307_s7, 2 }
  0x32   : > { %s309_s20 = scalar_lea.vmem (!%p2284_p13), %s3593_s0, %s2286_s11 }
  0x33   : > { %v344_v9 = vld [vmem:[%s309_s20] sm:$0xff] (!%p2284_p13) }
  0x34   : > { %345 = vst [vmem:[#allocation2 + $0x48] sm:$0xff] (!%p2284_p13), %v344_v9 }
  0x37   : > { %353 = vsyncadd [#allocation4 + $0x2], 128 }
  0x38 PF: > { %s354_s21 = smul.u32 3, %s3616_s6 }
  0x3a   : > { %s355_s22 = scalar_lea.sflag [#allocation4], %s354_s21 }
  0x3b   : > { %2862 = dma.done.wait %s355_s22, 1024 }
  0x3c   : > { %2863 = vsyncadd %s355_s22, 4294966272  ;;  %p2726_p0 = scmp.gt.s32.totalorder %s2874_s12, 0  ;;  %s2131_s23 = scalar_lea.sflag %s355_s22, 1 [#allocation4] }
  0x3e   : > { %2865 = dma.done.wait (%p2726_p0), %s2131_s23, 128 }
  0x3f   : > { %2867 = vsyncadd (%p2726_p0), %s2131_s23, 4294967168  ;;  %p2727_p1 = scmp.lt.s32.totalorder %s2874_s12, 1  ;;  %s2134_s8 = scalar_lea.sflag %s355_s22, 2 [#allocation4] }
  0x41   : > { %2869 = dma.done.wait (%p2727_p1), %s2134_s8, 128 }
  0x42   : > { %2871 = vsyncadd (%p2727_p1), %s2134_s8, 4294967168  ;;  %s2995_s10 = sadd.s32 1, %s2874_s12 }
  0x43   : > { %p2289_p2 = scmp.ge.s32.totalorder %s2995_s10, 2 }
  0x44   : > { %s388_s24 = ssub.s32 (!%p2289_p2), 1, %s3616_s6  ;;  %s2398_s25 = sshll.u32 (!%p2289_p2), %s2874_s12, 3 }
  0x45   : > { %387 = sbr.rel (%p2289_p2) target bundleno = 106 (0x6a), region = 150  ;;  %s2399_s26 = sadd.s32 (!%p2289_p2), 8, %s2398_s25 }
  0x46   : > { %s3001_s27 = sshll.u32 (!%p2289_p2), %s2878_s13, 5  ;;  %p390_p3 = scmp.lt.s32.totalorder (!%p2289_p2), %s2399_s26, 8 }
  0x47   : > { %s2291_s28 = sadd.s32 (!%p2289_p2), 4294967295, %s2399_s26  ;;  %s395_s30 = sadd.s32 (!%p2289_p2), 8, %s2399_s26 }
  0x48   : > { %p393_p4 = scmp.gt.s32.totalorder (!%p2289_p2), %s2291_s28, 0  ;;  %p396_p5 = scmp.lt.s32.totalorder (!%p2289_p2), %s395_s30, 15 }
  0x49   : > { %s2295_s11 = smul.u32 (!%p2289_p2), 80, %s388_s24 }
  0x4a   : > { %s407_s21 = smul.u32 (!%p2289_p2), 3, %s388_s24 }
  0x4b   : > { %s3011_s22 = scalar_lea.vmem (!%p2289_p2), [#allocation2], %s2295_s11 }
  0x4c   : > { %s3624_s26 = smov (!%p390_p3, %s2399_s26), 8  ;;  %s3626_s28 = smov (!%p393_p4, %s2291_s28), 0 }
  0x4d   : > { %s2292_s4 = sshll.u32 %s3624_s26, 1  ;;  %s3628_s30 = smov (!%p396_p5, %s395_s30), 15 }
  0x4e   : > { %s400_s7 = sadd.s32 %s3001_s27, %s2292_s4  ;;  %s408_s23 = scalar_lea.sflag [#allocation4], %s407_s21 }
  0x4f   : > { %s2294_s9 = sshll.u32 %s400_s7, 2 }
  0x50   : > { %s402_s13 = scalar_lea.vmem %s3593_s0, %s2294_s9 }
  0x51   : > { %v441_v10 = vld [vmem:[%s402_s13] sm:$0xff]  ;;  %v443_v11 = vld [vmem:[%s402_s13 + $0x8] sm:$0xff]  ;;  %v445_v12 = vld [vmem:[%s402_s13 + $0x10] sm:$0xff] }
  0x52   : > { %2296 = vst [vmem:[%s3011_s22 + $0x8] sm:$0xff] %v441_v10  ;;  %2297 = vst [vmem:[%s3011_s22 + $0x10] sm:$0xff] %v443_v11  ;;  %v447_v13 = vld [vmem:[%s402_s13 + $0x18] sm:$0xff]  ;;  %v449_v14 = vld [vmem:[%s402_s13 + $0x20] sm:$0xff] }
  0x53   : > { %2298 = vst [vmem:[%s3011_s22 + $0x18] sm:$0xff] %v445_v12  ;;  %v451_v15 = vld [vmem:[%s402_s13 + $0x28] sm:$0xff]  ;;  %2299 = vst [vmem:[%s3011_s22 + $0x20] sm:$0xff] %v447_v13  ;;  %v453_v16 = vld [vmem:[%s402_s13 + $0x30] sm:$0xff] }
  0x54   : > { %2300 = vst [vmem:[%s3011_s22 + $0x28] sm:$0xff] %v449_v14  ;;  %2301 = vst [vmem:[%s3011_s22 + $0x30] sm:$0xff] %v451_v15  ;;  %v455_v17 = vld [vmem:[%s402_s13 + $0x38] sm:$0xff] }
  0x55   : > { %2302 = vst [vmem:[%s3011_s22 + $0x38] sm:$0xff] %v453_v16  ;;  %2303 = vst [vmem:[%s3011_s22 + $0x40] sm:$0xff] %v455_v17 }
  0x56   : > { %464 = vsyncadd %s408_s23, 1024  ;;  %p2305_p6 = scmp.le.s32.totalorder %s2995_s10, 0 }
  0x57   : > { %s2306_s8 = sshll.u32 (!%p2305_p6), %s3626_s28, 1  ;;  %s2155_s24 = scalar_lea.sflag (!%p2305_p6), %s408_s23, 1 [#allocation4] }
  0x58   : > { %468 = sbr.rel (%p2305_p6) target bundleno = 96 (0x60), region = 188  ;;  %s470_s25 = sadd.s32 (!%p2305_p6), %s2306_s8, %s3001_s27 }
  0x59   : > { %s2307_s26 = sshll.u32 (!%p2305_p6), %s470_s25, 2 }
  0x5a   : > { %s472_s11 = scalar_lea.vmem (!%p2305_p6), %s3593_s0, %s2307_s26 }
  0x5b   : > { %v509_v18 = vld [vmem:[%s472_s11] sm:$0xff] (!%p2305_p6) }
  0x5c   : > { %510 = vst [vmem:[%s3011_s22] sm:$0xff] (!%p2305_p6), %v509_v18 }
  0x5f   : > { %518 = vsyncadd %s2155_s24, 128 }
  0x60 PF: > { %p2309_p7 = scmp.ge.s32.totalorder %s2995_s10, 1 }
  0x61   : > { %s2310_s9 = sshll.u32 (!%p2309_p7), %s3628_s30, 1  ;;  %s2167_s19 = scalar_lea.sflag (!%p2309_p7), %s408_s23, 2 [#allocation4] }
  0x62   : > { %522 = sbr.rel (%p2309_p7) target bundleno = 106 (0x6a), region = 226  ;;  %s524_s28 = sadd.s32 (!%p2309_p7), %s2310_s9, %s3001_s27 }
  0x63   : > { %s2311_s20 = sshll.u32 (!%p2309_p7), %s524_s28, 2 }
  0x64   : > { %s526_s8 = scalar_lea.vmem (!%p2309_p7), %s3593_s0, %s2311_s20 }
  0x65   : > { %v564_v19 = vld [vmem:[%s526_s8] sm:$0xff] (!%p2309_p7) }
  0x66   : > { %2313 = vst [vmem:[%s3011_s22 + $0x48] sm:$0xff] (!%p2309_p7), %v564_v19 }
  0x69   : > { %573 = vsyncadd %s2167_s19, 128 }
  0x6a PF: > { %576 = sbr.rel (%p2275_p8) target bundleno = 113 (0x71), region = 264  ;;  %v2892_v20 = vmov (!%p2275_p8), 0  }
  0x6b   : > { %577 = vst [vmem:[#allocation2] sm:$0xff] (!%p2275_p8), %v2892_v20 }
  0x71 PF: > { %p2316_p9 = scmp.ne.s32.totalorder %s2874_s12, 1 }
  0x72   : > { %v2893_v21 = vmov (!%p2316_p9), 0  }
  0x73   : > { %581 = sbr.rel (%p2316_p9) target bundleno = 122 (0x7a), region = 268  ;;  %583 = vst [vmem:[#allocation2 + $0x98] sm:$0xff] (!%p2316_p9), %v2893_v21 }
  0x7a PF: > { %v2770_v22 = vld [vmem:[%s3594_s1 + $0x40] sm:$0xff]   ;;  %v2774_v26 = vld [vmem:[%s3594_s1 + $0x48] sm:$0xff]   ;;  %v2778_v30 = vld [vmem:[%s3594_s1 + $0x50] sm:$0xff]   ;;  %s2401_s28 = smul.u32 80, %s3616_s6  ;;  %vm661_vm0 = vcmask 1040384   ;;  %vm696_vm1 = vcmask 1047552  }
  0x7b   : > { %v2771_v23 = vld [vmem:[%s3594_s1 + $0xc0] sm:$0xff]   ;;  %2402 = vmatprep.subr.bf16.mxu0 %v2770_v22  ;;  %v2775_v27 = vld [vmem:[%s3594_s1 + $0xc8] sm:$0xff]   ;;  %v2779_v31 = vld [vmem:[%s3594_s1 + $0xd0] sm:$0xff]   ;;  %vm662_vm2 = vsmask.f32 256 }
  0x7c   : > { %v2772_v24 = vld [vmem:[%s3594_s1] sm:$0xff]   ;;  %2466 = vmatprep.subr.bf16.mxu1 %v2771_v23  ;;  %v2776_v28 = vld [vmem:[%s3594_s1 + $0x8] sm:$0xff]   ;;  %v2780_v32 = vld [vmem:[%s3594_s1 + $0x10] sm:$0xff]   ;;  %s3135_s12 = scalar_lea.vmem [#allocation2], %s2401_s28  ;;  %vm697_vm3 = vsmask.f32 7424 }
  0x7d   : > { %v2773_v25 = vld [vmem:[%s3594_s1 + $0x80] sm:$0xff]   ;;  %2403 = vmatpush3.bf16.msra.mxu0 %v2772_v24  ;;  %v2777_v29 = vld [vmem:[%s3594_s1 + $0x88] sm:$0xff]   ;;  %v2781_v33 = vld [vmem:[%s3594_s1 + $0x90] sm:$0xff]  }
  0x7e   : > { %2467 = vmatpush3.bf16.msra.mxu1 %v2773_v25  ;;  %2404 = vmatprep.subr.bf16.mxu0 %v2774_v26  ;;  %v2782_v34 = vld [vmem:[%s3594_s1 + $0x58] sm:$0xff]   ;;  %v2786_v38 = vld [vmem:[%s3594_s1 + $0x60] sm:$0xff]   ;;  %v2790_v42 = vld [vmem:[%s3594_s1 + $0x68] sm:$0xff]  }
  0x7f   : > { %2468 = vmatprep.subr.bf16.mxu1 %v2775_v27  ;;  %v2783_v35 = vld [vmem:[%s3594_s1 + $0xd8] sm:$0xff]   ;;  %v2787_v39 = vld [vmem:[%s3594_s1 + $0xe0] sm:$0xff]   ;;  %v2791_v43 = vld [vmem:[%s3594_s1 + $0xe8] sm:$0xff]  }
  0x80   : > { %v2784_v36 = vld [vmem:[%s3594_s1 + $0x18] sm:$0xff]   ;;  %v2788_v40 = vld [vmem:[%s3594_s1 + $0x20] sm:$0xff]   ;;  %v2792_v44 = vld [vmem:[%s3594_s1 + $0x28] sm:$0xff]  }
  0x81   : > { %2405 = vmatpush3.bf16.msra.mxu0 %v2776_v28  ;;  %v2785_v37 = vld [vmem:[%s3594_s1 + $0x98] sm:$0xff]   ;;  %v2789_v41 = vld [vmem:[%s3594_s1 + $0xa0] sm:$0xff]   ;;  %v2793_v45 = vld [vmem:[%s3594_s1 + $0xa8] sm:$0xff]  }
  0x82   : > { %2469 = vmatpush3.bf16.msra.mxu1 %v2777_v29  ;;  %2406 = vmatprep.subr.bf16.mxu0 %v2778_v30  ;;  %v2794_v46 = vld [vmem:[%s3594_s1 + $0x70] sm:$0xff]   ;;  %v2798_v50 = vld [vmem:[%s3594_s1 + $0x78] sm:$0xff]   ;;  %vm3144_vm4 = vmand %vm661_vm0, %vm662_vm2 }
  0x83   : > { %2470 = vmatprep.subr.bf16.mxu1 %v2779_v31  ;;  %v2795_v47 = vld [vmem:[%s3594_s1 + $0xf0] sm:$0xff]   ;;  %v2799_v51 = vld [vmem:[%s3594_s1 + $0xf8] sm:$0xff]   ;;  %v2802_v61 = vld [vmem:[%s3594_s1 + $0x140] sm:$0xff]  }
  0x84   : > { %v2796_v48 = vld [vmem:[%s3594_s1 + $0x30] sm:$0xff]   ;;  %v2800_v52 = vld [vmem:[%s3594_s1 + $0x38] sm:$0xff]   ;;  %vm3152_vm5 = vmand %vm696_vm1, %vm697_vm3 }
  0x85   : > { %2407 = vmatpush3.bf16.msra.mxu0 %v2780_v32  ;;  %v2797_v49 = vld [vmem:[%s3594_s1 + $0xb0] sm:$0xff]   ;;  %v2801_v53 = vld [vmem:[%s3594_s1 + $0xb8] sm:$0xff]   ;;  %v2803_v7 = vld [vmem:[%s3594_s1 + $0x100] sm:$0xff]  }
  0x86   : > { %2471 = vmatpush3.bf16.msra.mxu1 %v2781_v33  ;;  %2408 = vmatprep.subr.bf16.mxu0 %v2782_v34  ;;  %v587_v54 = vld [vmem:[%s3135_s12] sm:$0xff]  ;;  %v3139_v55 = vld [vmem:[%s3135_s12 + $0x8] sm:$0xff]  ;;  %v3157_v2 = vld [vmem:[%s3135_s12 + $0x10] sm:$0xff] }
  0x87   : > { %2472 = vmatprep.subr.bf16.mxu1 %v2783_v35  ;;  %v598_v56 = vshrl.u32 %v587_v54, 16  ;;  %v601_v57 = vshll.u32 %v587_v54, 16  ;;  %1485 = vmatprep.mubr.bf16.mxu0 %v587_v54  ;;  %v605_v58 = vshrl.u32 %v3139_v55, 16  ;;  %v608_v59 = vshll.u32 %v3139_v55, 16  ;;  %v2804_v10 = vld [vmem:[%s3594_s1 + $0x148] sm:$0xff]   ;;  %v2806_v21 = vld [vmem:[%s3594_s1 + $0x150] sm:$0xff]  }
  0x88   : > { %v612_v8 = vshrl.u32 %v3157_v2, 16  ;;  %v615_v9 = vshll.u32 %v3157_v2, 16  ;;  %v3168_v11 = vld [vmem:[%s3135_s12 + $0x18] sm:$0xff]  ;;  %v2807_v23 = vld [vmem:[%s3594_s1 + $0x1c0] sm:$0xff]   ;;  %v2808_v30 = vld [vmem:[%s3594_s1 + $0x110] sm:$0xff]  }
  0x89   : > { %2409 = vmatpush3.bf16.msra.mxu0 %v2784_v36  ;;  %v607_v62 = vrot.slane %v605_v58, 7  ;;  %v600_v63 = vrot.slane %v598_v56, 7  ;;  %v672_v0 = vrot.slane %v601_v57, 1  ;;  %v674_v3 = vrot.slane %v608_v59, 1  ;;  %v2805_v17 = vld [vmem:[%s3594_s1 + $0x108] sm:$0xff]   ;;  %v2809_v28 = vld [vmem:[%s3594_s1 + $0x180] sm:$0xff]  }
  0x8a   : > { %2473 = vmatpush3.bf16.msra.mxu1 %v2785_v37  ;;  %2410 = vmatprep.subr.bf16.mxu0 %v2786_v38  ;;  %v614_v15 = vrot.slane %v612_v8, 7  ;;  %v619_v18 = vshrl.u32 %v3168_v11, 16  ;;  %v622_v19 = vshll.u32 %v3168_v11, 16  ;;  %v676_v27 = vrot.slane %v615_v9, 1  ;;  %v3201_v29 = vld [vmem:[%s3135_s12 + $0x20] sm:$0xff]  ;;  %v2811_v33 = vld [vmem:[%s3594_s1 + $0x1c8] sm:$0xff]  }
  0x8b   : > { %2474 = vmatprep.subr.bf16.mxu1 %v2787_v39  ;;  %v610_v4 = vor.u32 %v608_v59, %v607_v62  ;;  %v603_v5 = vor.u32 %v601_v57, %v600_v63  ;;  %v673_v6 = vor.u32 %v672_v0, %v598_v56  ;;  %v675_v16 = vor.u32 %v674_v3, %v605_v58  ;;  %v2810_v35 = vld [vmem:[%s3594_s1 + $0x158] sm:$0xff]   ;;  %v2813_v37 = vld [vmem:[%s3594_s1 + $0x188] sm:$0xff]   ;;  %v2822_v62 = vld [vmem:[%s3594_s1 + $0x170] sm:$0xff]  }
  0x8c   : > { %v617_v20 = vor.u32 %v615_v9, %v614_v15  ;;  %v621_v22 = vrot.slane %v619_v18, 7  ;;  %v626_v31 = vshrl.u32 %v3201_v29, 16  ;;  %v629_v32 = vshll.u32 %v3201_v29, 16  ;;  %v3222_v38 = vld [vmem:[%s3135_s12 + $0x28] sm:$0xff]  ;;  %v2825_v9 = vld [vmem:[%s3594_s1 + $0x1a0] sm:$0xff]  }
  0x8d   : > { %2411 = vmatpush3.bf16.msra.mxu0 %v2788_v40  ;;  %v665_v12 = vsel %vm3144_vm4, 0, %v610_v4  ;;  %v664_v13 = vsel %vm3144_vm4, 0, %v603_v5  ;;  %v699_v14 = vsel %vm3152_vm5, %v673_v6, 0  ;;  %v3195_v25 = vsel %vm3152_vm5, %v675_v16, 0  ;;  %v2812_v40 = vld [vmem:[%s3594_s1 + $0x118] sm:$0xff]   ;;  %v2818_v54 = vld [vmem:[%s3594_s1 + $0x168] sm:$0xff]  }
  0x8e   : > { %2475 = vmatpush3.bf16.msra.mxu1 %v2789_v41  ;;  %2412 = vmatprep.subr.bf16.mxu0 %v2790_v42  ;;  %v3190_v24 = vsel %vm3144_vm4, 0, %v617_v20  ;;  %v624_v26 = vor.u32 %v622_v19, %v621_v22  ;;  %v628_v36 = vrot.slane %v626_v31, 7  ;;  %v677_v39 = vor.u32 %v676_v27, %v612_v8  ;;  %v2821_v58 = vld [vmem:[%s3594_s1 + $0x198] sm:$0xff]   ;;  %v2823_v6 = vld [vmem:[%s3594_s1 + $0x1e0] sm:$0xff]  }
  0x8f   : > { %2476 = vmatprep.subr.bf16.mxu1 %v2791_v43  ;;  %1582 = vmatprep.mubr.bf16.mxu1 %v665_v12  ;;  %v678_v42 = vrot.slane %v622_v19, 1  ;;  %v633_v43 = vshrl.u32 %v3222_v38, 16  ;;  %v680_v57 = vrot.slane %v629_v32, 1  ;;  %v3283_v5 = vld [vmem:[%s3135_s12 + $0x38] sm:$0xff]  ;;  %v3312_v15 = vld [vmem:[%s3135_s12 + $0x40] sm:$0xff] }
  0x90   : > { %v3213_v34 = vsel %vm3144_vm4, 0, %v624_v26  ;;  %v631_v41 = vor.u32 %v629_v32, %v628_v36  ;;  %v2829_v19 = vld [vmem:[%s3594_s1 + $0x1f0] sm:$0xff]   ;;  %v735_v22 = vshll.u32 %v3312_v15, 16  ;;  %v732_v27 = vshrl.u32 %v3312_v15, 16  ;;  %v2833_v36 = vld [vmem:[%s3594_s1 + $0x1b8] sm:$0xff]  }
  0x91   : > { %2413 = vmatpush3.bf16.msra.mxu0 %v2792_v44  ;;  %v2814_v44 = vld [vmem:[%s3594_s1 + $0x160] sm:$0xff]   ;;  %v679_v56 = vor.u32 %v678_v42, %v619_v18  ;;  %v681_v3 = vor.u32 %v680_v57, %v626_v31  ;;  %v2828_v18 = vld [vmem:[%s3594_s1 + $0x178] sm:$0xff]   ;;  %v2831_v26 = vld [vmem:[%s3594_s1 + $0x1b0] sm:$0xff]  }
  0x92   : > { %2477 = vmatpush3.bf16.msra.mxu1 %v2793_v45  ;;  %2414 = vmatprep.subr.bf16.mxu0 %v2794_v46  ;;  %v2815_v45 = vld [vmem:[%s3594_s1 + $0x1d0] sm:$0xff]   ;;  %v3239_v46 = vsel %vm3152_vm5, %v677_v39, 0  ;;  %v2832_v31 = vld [vmem:[%s3594_s1 + $0x1f8] sm:$0xff]  }
  0x93   : > { %2478 = vmatprep.subr.bf16.mxu1 %v2795_v47  ;;  %v2816_v47 = vld [vmem:[%s3594_s1 + $0x120] sm:$0xff]   ;;  %v3279_v0 = vsel %vm3152_vm5, %v679_v56, 0 }
  0x95   : > { %2415 = vmatpush3.bf16.msra.mxu0 %v2796_v48  ;;  %v2817_v48 = vld [vmem:[%s3594_s1 + $0x190] sm:$0xff]  }
  0x96   : > { %2479 = vmatpush3.bf16.msra.mxu1 %v2797_v49  ;;  %2416 = vmatprep.subr.bf16.mxu0 %v2798_v50  ;;  %v3249_v49 = vsel %vm3144_vm4, 0, %v631_v41  ;;  %v636_v50 = vshll.u32 %v3222_v38, 16 }
  0x97   : > { %2480 = vmatprep.subr.bf16.mxu1 %v2799_v51  ;;  %v3253_v51 = vld [vmem:[%s3135_s12 + $0x30] sm:$0xff] }
  0x98   : > { %v640_v59 = vshrl.u32 %v3253_v51, 16  ;;  %v643_v4 = vshll.u32 %v3253_v51, 16  ;;  %v682_v16 = vrot.slane %v636_v50, 1 }
  0x99   : > { %2417 = vmatpush3.bf16.msra.mxu0 %v2800_v52  ;;  %v2819_v52 = vld [vmem:[%s3594_s1 + $0x1d8] sm:$0xff]  }
  0x9a   : > { %2481 = vmatpush3.bf16.msra.mxu1 %v2801_v53  ;;  %2530 = vmatprep.subr.bf16.mxu0 %v2802_v61  ;;  %v635_v53 = vrot.slane %v633_v43, 7  ;;  %v2820_v61 = vld [vmem:[%s3594_s1 + $0x128] sm:$0xff]   ;;  %v642_v8 = vrot.slane %v640_v59, 7  ;;  %v684_v42 = vrot.slane %v643_v4, 1 }
  0x9b   : > { %2594 = vmatprep.subr.bf16.mxu1 %v2807_v23  ;;  %v2830_v23 = vld [vmem:[%s3594_s1 + $0x138] sm:$0xff]  }
  0x9c   : > { %1486 = vmatmul.mubr.bf16.vlgmr.msra.gmra.mrb[0].mxu0 %v664_v13  ;;  %v638_v63 = vor.u32 %v636_v50, %v635_v53  ;;  %v3306_v13 = vsel %vm3152_vm5, %v681_v3, 0  ;;  %v645_v20 = vor.u32 %v643_v4, %v642_v8  ;;  %v685_v53 = vor.u32 %v684_v42, %v640_v59 }
  0x9d   : > { %1583 = vmatmul.mubr.bf16.vlgmr.msra.gmra.mrb[0].mxu1 %v699_v14  ;;  %2531 = vmatpush3.bf16.msra.mxu0 %v2803_v7  ;;  %v2824_v7 = vld [vmem:[%s3594_s1 + $0x130] sm:$0xff]   ;;  %v2827_v14 = vld [vmem:[%s3594_s1 + $0x1a8] sm:$0xff]  }
  0x9e   : > { %1493 = vmatprep.mubr.bf16.mxu0 %v3139_v55  ;;  %2532 = vmatprep.subr.bf16.mxu0 %v2804_v10  ;;  %v3298_v10 = vsel %vm3144_vm4, 0, %v638_v63 }
  0x9f   : > { %1590 = vmatprep.mubr.bf16.mxu1 %v3190_v24  ;;  %2595 = vmatpush3.bf16.msra.mxu1 %v2809_v28  ;;  %v740_v28 = vrot.slane %v735_v22, 1 }
  0xa0   : > { %2596 = vmatprep.subr.bf16.mxu1 %v2811_v33  ;;  %v2834_v33 = vld [vmem:[%s3594_s1 + $0x200] sm:$0xff]  }
  0xa1   : > { %2533 = vmatpush3.bf16.msra.mxu0 %v2805_v17  ;;  %v647_v17 = vshrl.u32 %v3283_v5, 16 }
  0xa2   : > { %2534 = vmatprep.subr.bf16.mxu0 %v2806_v21  ;;  %v650_v21 = vshll.u32 %v3283_v5, 16 }
  0xa3   : > { %2597 = vmatpush3.bf16.msra.mxu1 %v2813_v37  ;;  %v649_v32 = vrot.slane %v647_v17, 7  ;;  %v683_v37 = vor.u32 %v682_v16, %v633_v43 }
  0xa4   : > { %1494 = vmatmul.mubr.bf16.gmra.mrb[4].mxu0 %v665_v12  ;;  %2598 = vmatprep.subr.bf16.mxu1 %v2815_v45  ;;  %v2826_v12 = vld [vmem:[%s3594_s1 + $0x1e8] sm:$0xff]   ;;  %v686_v63 = vrot.slane %v650_v21, 1 }
  0xa5   : > { %1591 = vmatmul.mubr.bf16.gmra.mrb[4].mxu1 %v3195_v25  ;;  %1501 = vmatprep.mubr.bf16.mxu0 %v3157_v2  ;;  %v3358_v41 = vsel %vm3152_vm5, %v683_v37, 0 }
  0xa6   : > { %1598 = vmatprep.mubr.bf16.mxu1 %v3213_v34  ;;  %2535 = vmatpush3.bf16.msra.mxu0 %v2808_v30  ;;  %v3335_v30 = vsel %vm3144_vm4, 0, %v645_v20  ;;  %v687_v3 = vor.u32 %v686_v63, %v647_v17 }
  0xa7   : > { %2536 = vmatprep.subr.bf16.mxu0 %v2810_v35  ;;  %2599 = vmatpush3.bf16.msra.mxu1 %v2817_v48  ;;  %v741_v35 = vor.u32 %v740_v28, %v732_v27  ;;  %v734_v48 = vrot.slane %v732_v27, 7 }
  0xa8   : > { %2600 = vmatprep.subr.bf16.mxu1 %v2819_v52  ;;  %v3399_v4 = vsel %vm3152_vm5, %v687_v3, 0 }
  0xa9   : > { %v3353_v39 = vsel %vm3152_vm5, %v741_v35, 0  ;;  %v737_v57 = vor.u32 %v735_v22, %v734_v48 }
  0xaa   : > { %2537 = vmatpush3.bf16.msra.mxu0 %v2812_v40  ;;  %v652_v40 = vor.u32 %v650_v21, %v649_v32 }
  0xab   : > { %2538 = vmatprep.subr.bf16.mxu0 %v2814_v44  ;;  %2601 = vmatpush3.bf16.msra.mxu1 %v2821_v58  ;;  %v3361_v44 = vld [vmem:[%s3135_s12 + $0x48] sm:$0xff]  ;;  %v3391_v59 = vsel %vm3144_vm4, 0, %v737_v57 }
  0xac   : > { %1502 = vmatmul.mubr.bf16.gmra.mrb[8].mxu0 %v3190_v24  ;;  %2602 = vmatprep.subr.bf16.mxu1 %v2823_v6  ;;  %v769_v43 = vshrl.u32 %v3361_v44, 16  ;;  %v772_v45 = vshll.u32 %v3361_v44, 16  ;;  %v2835_v6 = vld [vmem:[%s3594_s1 + $0x208] sm:$0xff]  }
  0xad   : > { %1599 = vmatmul.mubr.bf16.gmra.mrb[8].mxu1 %v3239_v46  ;;  %1509 = vmatprep.mubr.bf16.mxu0 %v3168_v11 }
  0xae   : > { %1606 = vmatprep.mubr.bf16.mxu1 %v3249_v49  ;;  %2539 = vmatpush3.bf16.msra.mxu0 %v2816_v47  ;;  %v3367_v47 = vsel %vm3144_vm4, 0, %v652_v40  ;;  %v771_v50 = vrot.slane %v769_v43, 7  ;;  %v777_v52 = vrot.slane %v772_v45, 1 }
  0xaf   : > { %2540 = vmatprep.subr.bf16.mxu0 %v2818_v54  ;;  %2603 = vmatpush3.bf16.msra.mxu1 %v2825_v9 }
  0xb0   : > { %2604 = vmatprep.subr.bf16.mxu1 %v2826_v12  ;;  %v3375_v54 = vor.u32 %v772_v45, %v771_v50  ;;  %v3377_v56 = vor.u32 %v777_v52, %v769_v43 }
  0xb2   : > { %2541 = vmatpush3.bf16.msra.mxu0 %v2820_v61  ;;  %v776_v58 = vsel %vm3144_vm4, 0, %v3375_v54  ;;  %v780_v61 = vsel %vm3152_vm5, %v3377_v56, 0 }
  0xb3   : > { %2542 = vmatprep.subr.bf16.mxu0 %v2822_v62  ;;  %2605 = vmatpush3.bf16.msra.mxu1 %v2827_v14  ;;  %v3387_v62 = vsel %vm3152_vm5, %v685_v53, 0 }
  0xb4   : > { %1510 = vmatmul.mubr.bf16.gmra.mrb[12].mxu0 %v3213_v34  ;;  %2606 = vmatprep.subr.bf16.mxu1 %v2829_v19 }
  0xb5   : > { %1607 = vmatmul.mubr.bf16.gmra.mrb[12].mxu1 %v3279_v0  ;;  %1517 = vmatprep.mubr.bf16.mxu0 %v3201_v29 }
  0xb6   : > { %1614 = vmatprep.mubr.bf16.mxu1 %v3298_v10  ;;  %2543 = vmatpush3.bf16.msra.mxu0 %v2824_v7  ;;  %v2836_v7 = vld [vmem:[%s3594_s1 + $0x210] sm:$0xff]  }
  0xb7   : > { %2544 = vmatprep.subr.bf16.mxu0 %v2828_v18  ;;  %2607 = vmatpush3.bf16.msra.mxu1 %v2831_v26 }
  0xb8   : > { %2608 = vmatprep.subr.bf16.mxu1 %v2832_v31 }
  0xba   : > { %2545 = vmatpush3.bf16.msra.mxu0 %v2830_v23 }
  0xbb   : > { %2674 = vmatprep.subr.bf16.mxu0 %v2834_v33  ;;  %2609 = vmatpush3.bf16.msra.mxu1 %v2833_v36 }
  0xbc   : > { %1518 = vmatmul.mubr.bf16.gmra.mrb[16].mxu0 %v3249_v49  ;;  %2706 = vmatprep.subr.bf16.mxu1 %v2834_v33 }
  0xbd   : > { %1615 = vmatmul.mubr.bf16.gmra.mrb[16].mxu1 %v3306_v13  ;;  %1525 = vmatprep.mubr.bf16.mxu0 %v3222_v38 }
  0xbe   : > { %1622 = vmatprep.mubr.bf16.mxu1 %v3335_v30 }
  0xc4   : > { %1526 = vmatmul.mubr.bf16.gmra.mrb[20].mxu0 %v3298_v10 }
  0xc5   : > { %1623 = vmatmul.mubr.bf16.gmra.mrb[20].mxu1 %v3358_v41  ;;  %1533 = vmatprep.mubr.bf16.mxu0 %v3253_v51 }
  0xc6   : > { %1630 = vmatprep.mubr.bf16.mxu1 %v3367_v47 }
  0xcc   : > { %1534 = vmatmul.mubr.bf16.gmra.mrb[24].mxu0 %v3335_v30 }
  0xcd   : > { %1631 = vmatmul.mubr.bf16.gmra.mrb[24].mxu1 %v3387_v62  ;;  %1541 = vmatprep.mubr.bf16.mxu0 %v3283_v5 }
  0xce   : > { %1638 = vmatprep.mubr.bf16.mxu1 %v3391_v59 }
  0xd4   : > { %1542 = vmatmul.mubr.bf16.gmra.mrb[28].mxu0 %v3367_v47 }
  0xd5   : > { %1639 = vmatmul.mubr.bf16.gmra.mrb[28].mxu1 %v3399_v4  ;;  %1679 = vmatprep.mubr.bf16.mxu0 %v3195_v25  ;;  %v2840_v25 = vld [vmem:[%s3594_s1 + $0x230] sm:$0xff]  }
  0xd6   : > { %1776 = vmatprep.mubr.bf16.mxu1 %v3157_v2 }
  0xdc   : > { %1680 = vmatmul.mubr.bf16.vlgmr.msra.gmra.mrb[32].mxu0 %v3139_v55  ;;  %v2837_v55 = vld [vmem:[%s3594_s1 + $0x218] sm:$0xff]  }
  0xdd   : > { %1777 = vmatmul.mubr.bf16.vlgmr.msra.gmra.mrb[32].mxu1 %v3190_v24  ;;  %2675 = vmatpush3.bf16.msra.mxu0 %v2834_v33  ;;  %v2838_v24 = vld [vmem:[%s3594_s1 + $0x220] sm:$0xff]  }
  0xde   : > { %1687 = vmatprep.mubr.bf16.mxu0 %v3239_v46  ;;  %1784 = vmatprep.mubr.bf16.mxu1 %v3168_v11 }
  0xdf   : > { %2676 = vmatprep.subr.bf16.mxu0 %v2835_v6  ;;  %2714 = vmatpush3.bf16.msra.mxu1 %v2834_v33 }
  0xe0   : > { %2707 = vmatprep.subr.bf16.mxu1 %v2835_v6 }
  0xe1   : > { %2677 = vmatpush3.bf16.msra.mxu0 %v2835_v6 }
  0xe2   : > { %2678 = vmatprep.subr.bf16.mxu0 %v2836_v7 }
  0xe3   : > { %2715 = vmatpush3.bf16.msra.mxu1 %v2835_v6 }
  0xe4   : > { %1688 = vmatmul.mubr.bf16.gmra.mrb[36].mxu0 %v3157_v2  ;;  %2708 = vmatprep.subr.bf16.mxu1 %v2836_v7  ;;  %v2839_v2 = vld [vmem:[%s3594_s1 + $0x228] sm:$0xff]  }
  0xe5   : > { %1785 = vmatmul.mubr.bf16.gmra.mrb[36].mxu1 %v3213_v34  ;;  %1695 = vmatprep.mubr.bf16.mxu0 %v3279_v0 }
  0xe6   : > { %1792 = vmatprep.mubr.bf16.mxu1 %v3201_v29  ;;  %2679 = vmatpush3.bf16.msra.mxu0 %v2836_v7 }
  0xe7   : > { %2680 = vmatprep.subr.bf16.mxu0 %v2837_v55  ;;  %2716 = vmatpush3.bf16.msra.mxu1 %v2836_v7 }
  0xe8   : > { %2709 = vmatprep.subr.bf16.mxu1 %v2837_v55 }
  0xea   : > { %2681 = vmatpush3.bf16.msra.mxu0 %v2837_v55 }
  0xeb   : > { %2682 = vmatprep.subr.bf16.mxu0 %v2838_v24  ;;  %2717 = vmatpush3.bf16.msra.mxu1 %v2837_v55 }
  0xec   : > { %1696 = vmatmul.mubr.bf16.gmra.mrb[40].mxu0 %v3168_v11  ;;  %2710 = vmatprep.subr.bf16.mxu1 %v2838_v24  ;;  %v2841_v11 = vld [vmem:[%s3594_s1 + $0x238] sm:$0xff]  }
  0xed   : > { %1793 = vmatmul.mubr.bf16.gmra.mrb[40].mxu1 %v3249_v49  ;;  %1703 = vmatprep.mubr.bf16.mxu0 %v3306_v13 }
  0xee   : > { %1800 = vmatprep.mubr.bf16.mxu1 %v3222_v38  ;;  %2683 = vmatpush3.bf16.msra.mxu0 %v2838_v24 }
  0xef   : > { %2684 = vmatprep.subr.bf16.mxu0 %v2839_v2  ;;  %2718 = vmatpush3.bf16.msra.mxu1 %v2838_v24 }
  0xf0   : > { %2711 = vmatprep.subr.bf16.mxu1 %v2839_v2 }
  0xf2   : > { %2685 = vmatpush3.bf16.msra.mxu0 %v2839_v2 }
  0xf3   : > { %2686 = vmatprep.subr.bf16.mxu0 %v2840_v25  ;;  %2719 = vmatpush3.bf16.msra.mxu1 %v2839_v2 }
  0xf4   : > { %1704 = vmatmul.mubr.bf16.gmra.mrb[44].mxu0 %v3201_v29  ;;  %2712 = vmatprep.subr.bf16.mxu1 %v2840_v25 }
  0xf5   : > { %1801 = vmatmul.mubr.bf16.gmra.mrb[44].mxu1 %v3298_v10  ;;  %1711 = vmatprep.mubr.bf16.mxu0 %v3358_v41 }
  0xf6   : > { %1808 = vmatprep.mubr.bf16.mxu1 %v3253_v51  ;;  %2687 = vmatpush3.bf16.msra.mxu0 %v2840_v25 }
  0xf7   : > { %2688 = vmatprep.subr.bf16.mxu0 %v2841_v11  ;;  %2720 = vmatpush3.bf16.msra.mxu1 %v2840_v25 }
  0xf8   : > { %2713 = vmatprep.subr.bf16.mxu1 %v2841_v11 }
  0xfa   : > { %2689 = vmatpush3.bf16.msra.mxu0 %v2841_v11 }
  0xfb   : > { %2721 = vmatpush3.bf16.msra.mxu1 %v2841_v11 }
  0xfc   : > { %1712 = vmatmul.mubr.bf16.gmra.mrb[48].mxu0 %v3222_v38 }
  0xfd   : > { %1809 = vmatmul.mubr.bf16.gmra.mrb[48].mxu1 %v3335_v30  ;;  %1719 = vmatprep.mubr.bf16.mxu0 %v3387_v62 }
  0xfe   : > { %1816 = vmatprep.mubr.bf16.mxu1 %v3283_v5 }
 0x104   : > { %1720 = vmatmul.mubr.bf16.gmra.mrb[52].mxu0 %v3253_v51 }
 0x105   : > { %1817 = vmatmul.mubr.bf16.gmra.mrb[52].mxu1 %v3367_v47  ;;  %1727 = vmatprep.mubr.bf16.mxu0 %v3399_v4 }
 0x106   : > { %1824 = vmatprep.mubr.bf16.mxu1 %v3312_v15 }
 0x10c   : > { %1728 = vmatmul.mubr.bf16.gmra.mrb[56].mxu0 %v3283_v5 }
 0x10d   : > { %1825 = vmatmul.mubr.bf16.gmra.mrb[56].mxu1 %v3391_v59  ;;  %1735 = vmatprep.mubr.bf16.mxu0 %v3353_v39 }
 0x10e   : > { %1832 = vmatprep.mubr.bf16.mxu1 %v3361_v44 }
 0x114   : > { %1736 = vmatmul.mubr.bf16.gmra.mrb[60].mxu0 %v3312_v15 }
 0x115   : > { %1833 = vmatmul.mubr.bf16.gmra.mrb[60].mxu1 %v776_v58  ;;  %2690 = vmatprep.mubr.bf16.mxu0 %v3239_v46 }
 0x116   : > { %2698 = vmatprep.mubr.bf16.mxu1 %v3387_v62 }
 0x11c   : > { %2691 = vmatmul.mubr.bf16.vlgmr.msra.gmra.mrb[64].mxu0 %v3279_v0 }
 0x11d   : > { %2699 = vmatmul.mubr.bf16.vlgmr.msra.gmra.mrb[64].mxu1 %v3399_v4  ;;  %2694 = vmatprep.mubr.bf16.mxu0 %v3306_v13 }
 0x11e   : > { %2702 = vmatprep.mubr.bf16.mxu1 %v3353_v39 }
 0x124   : > { %2695 = vmatmul.mubr.bf16.gmra.mrb[68].mxu0 %v3358_v41 }
 0x125   : > { %2703 = vmatmul.mubr.bf16.gmra.mrb[68].mxu1 %v780_v61 }
 0x16f   : > { %v2418_v60 = vpop.f32.mrb[0].mxu0 }
 0x170   : > { %v2482_v29 = vpop.f32.mrb[0].mxu1  ;;  %v2419_v34 = vpop.f32.mrb[1].mxu0 }
 0x171   : > { %v2420_v38 = vadd.f32 %v2419_v34, %v2418_v60  ;;  %v2483_v46 = vpop.f32.mrb[1].mxu1  ;;  %v2421_v49 = vpop.f32.mrb[2].mxu0 }
 0x172   : > { %v2484_v51 = vadd.f32 %v2483_v46, %v2482_v29  ;;  %v2485_v0 = vpop.f32.mrb[2].mxu1  ;;  %v2422_v5 = vpop.f32.mrb[3].mxu0 }
 0x173   : > { %v2423_v8 = vadd.f32 %v2422_v5, %v2421_v49  ;;  %v2486_v9 = vpop.f32.mrb[3].mxu1 }
 0x174   : > { %v3470_v10 = vadd.f32 %v2484_v51, %v2420_v38  ;;  %v2487_v12 = vadd.f32 %v2486_v9, %v2485_v0 }
 0x176   : > { %v3472_v13 = vadd.f32 %v2487_v12, %v2423_v8 }
 0x177   : > { %v2424_v1 = vpop.f32.mrb[4].mxu0 }
 0x178   : > { %v2488_v14 = vpop.f32.mrb[4].mxu1  ;;  %v2425_v15 = vpop.f32.mrb[5].mxu0 }
 0x179   : > { %v2426_v16 = vadd.f32 %v2425_v15, %v2424_v1  ;;  %v2489_v17 = vpop.f32.mrb[5].mxu1  ;;  %v2427_v18 = vpop.f32.mrb[6].mxu0 }
 0x17a   : > { %v2490_v19 = vadd.f32 %v2489_v17, %v2488_v14  ;;  %v2491_v20 = vpop.f32.mrb[6].mxu1  ;;  %v2428_v21 = vpop.f32.mrb[7].mxu0 }
 0x17b   : > { %v2429_v22 = vadd.f32 %v2428_v21, %v2427_v18  ;;  %v2492_v23 = vpop.f32.mrb[7].mxu1 }
 0x17c   : > { %v3474_v26 = vadd.f32 %v2490_v19, %v2426_v16  ;;  %v2493_v27 = vadd.f32 %v2492_v23, %v2491_v20 }
 0x17e   : > { %v3476_v28 = vadd.f32 %v2493_v27, %v2429_v22 }
 0x17f   : > { %v2430_v30 = vpop.f32.mrb[8].mxu0 }
 0x180   : > { %v2494_v31 = vpop.f32.mrb[8].mxu1  ;;  %v2431_v32 = vpop.f32.mrb[9].mxu0 }
 0x181   : > { %v2432_v33 = vadd.f32 %v2431_v32, %v2430_v30  ;;  %v2495_v35 = vpop.f32.mrb[9].mxu1  ;;  %v2433_v36 = vpop.f32.mrb[10].mxu0 }
 0x182   : > { %v2496_v37 = vadd.f32 %v2495_v35, %v2494_v31  ;;  %v2497_v39 = vpop.f32.mrb[10].mxu1  ;;  %v2434_v40 = vpop.f32.mrb[11].mxu0 }
 0x183   : > { %v2435_v41 = vadd.f32 %v2434_v40, %v2433_v36  ;;  %v2498_v42 = vpop.f32.mrb[11].mxu1 }
 0x184   : > { %v3478_v44 = vadd.f32 %v2496_v37, %v2432_v33  ;;  %v2499_v43 = vadd.f32 %v2498_v42, %v2497_v39 }
 0x186   : > { %v3480_v45 = vadd.f32 %v2499_v43, %v2435_v41 }
 0x187   : > { %v2436_v47 = vpop.f32.mrb[12].mxu0 }
 0x188   : > { %v2500_v48 = vpop.f32.mrb[12].mxu1  ;;  %v2437_v50 = vpop.f32.mrb[13].mxu0 }
 0x189   : > { %v2438_v52 = vadd.f32 %v2437_v50, %v2436_v47  ;;  %v2501_v53 = vpop.f32.mrb[13].mxu1  ;;  %v2439_v54 = vpop.f32.mrb[14].mxu0 }
 0x18a   : > { %v2502_v56 = vadd.f32 %v2501_v53, %v2500_v48  ;;  %v2503_v57 = vpop.f32.mrb[14].mxu1  ;;  %v2440_v58 = vpop.f32.mrb[15].mxu0 }
 0x18b   : > { %v2441_v61 = vadd.f32 %v2440_v58, %v2439_v54  ;;  %v2504_v62 = vpop.f32.mrb[15].mxu1 }
 0x18c   : > { %v3482_v63 = vadd.f32 %v2502_v56, %v2438_v52  ;;  %v2505_v59 = vadd.f32 %v2504_v62, %v2503_v57 }
 0x18e   : > { %v3484_v3 = vadd.f32 %v2505_v59, %v2441_v61 }
 0x18f   : > { %v2442_v4 = vpop.f32.mrb[16].mxu0 }
 0x190   : > { %v2506_v6 = vpop.f32.mrb[16].mxu1  ;;  %v2443_v7 = vpop.f32.mrb[17].mxu0 }
 0x191   : > { %v2444_v55 = vadd.f32 %v2443_v7, %v2442_v4  ;;  %v2507_v24 = vpop.f32.mrb[17].mxu1  ;;  %v2445_v2 = vpop.f32.mrb[18].mxu0 }
 0x192   : > { %v2508_v25 = vadd.f32 %v2507_v24, %v2506_v6  ;;  %v2509_v11 = vpop.f32.mrb[18].mxu1  ;;  %v2446_v60 = vpop.f32.mrb[19].mxu0 }
 0x193   : > { %v2447_v29 = vadd.f32 %v2446_v60, %v2445_v2  ;;  %v2510_v34 = vpop.f32.mrb[19].mxu1 }
 0x194   : > { %v3486_v38 = vadd.f32 %v2508_v25, %v2444_v55  ;;  %v2511_v46 = vadd.f32 %v2510_v34, %v2509_v11 }
 0x196   : > { %v3488_v49 = vadd.f32 %v2511_v46, %v2447_v29 }
 0x197   : > { %v2448_v51 = vpop.f32.mrb[20].mxu0 }
 0x198   : > { %v2512_v0 = vpop.f32.mrb[20].mxu1  ;;  %v2449_v5 = vpop.f32.mrb[21].mxu0 }
 0x199   : > { %v2450_v8 = vadd.f32 %v2449_v5, %v2448_v51  ;;  %v2513_v9 = vpop.f32.mrb[21].mxu1  ;;  %v2451_v12 = vpop.f32.mrb[22].mxu0 }
 0x19a   : > { %v2514_v1 = vadd.f32 %v2513_v9, %v2512_v0  ;;  %v2515_v14 = vpop.f32.mrb[22].mxu1  ;;  %v2452_v15 = vpop.f32.mrb[23].mxu0 }
 0x19b   : > { %v2453_v16 = vadd.f32 %v2452_v15, %v2451_v12  ;;  %v2516_v17 = vpop.f32.mrb[23].mxu1 }
 0x19c   : > { %v3490_v18 = vadd.f32 %v2514_v1, %v2450_v8  ;;  %v2517_v19 = vadd.f32 %v2516_v17, %v2515_v14 }
 0x19e   : > { %v3492_v20 = vadd.f32 %v2517_v19, %v2453_v16 }
 0x19f   : > { %v2454_v21 = vpop.f32.mrb[24].mxu0 }
 0x1a0   : > { %v2518_v22 = vpop.f32.mrb[24].mxu1  ;;  %v2455_v23 = vpop.f32.mrb[25].mxu0 }
 0x1a1   : > { %v2456_v27 = vadd.f32 %v2455_v23, %v2454_v21  ;;  %v2519_v30 = vpop.f32.mrb[25].mxu1  ;;  %v2457_v31 = vpop.f32.mrb[26].mxu0 }
 0x1a2   : > { %v2520_v32 = vadd.f32 %v2519_v30, %v2518_v22  ;;  %v2521_v33 = vpop.f32.mrb[26].mxu1  ;;  %v2458_v35 = vpop.f32.mrb[27].mxu0 }
 0x1a3   : > { %v2459_v36 = vadd.f32 %v2458_v35, %v2457_v31  ;;  %v2522_v37 = vpop.f32.mrb[27].mxu1 }
 0x1a4   : > { %v3494_v39 = vadd.f32 %v2520_v32, %v2456_v27  ;;  %v2523_v40 = vadd.f32 %v2522_v37, %v2521_v33 }
 0x1a6   : > { %v3496_v41 = vadd.f32 %v2523_v40, %v2459_v36 }
 0x1a7   : > { %v2460_v42 = vpop.f32.mrb[28].mxu0 }
 0x1a8   : > { %v2524_v43 = vpop.f32.mrb[28].mxu1  ;;  %v2461_v47 = vpop.f32.mrb[29].mxu0 }
 0x1a9   : > { %v2462_v48 = vadd.f32 %v2461_v47, %v2460_v42  ;;  %v2525_v50 = vpop.f32.mrb[29].mxu1  ;;  %v2463_v52 = vpop.f32.mrb[30].mxu0 }
 0x1aa   : > { %v2526_v53 = vadd.f32 %v2525_v50, %v2524_v43  ;;  %v2527_v54 = vpop.f32.mrb[30].mxu1  ;;  %v2464_v56 = vpop.f32.mrb[31].mxu0 }
 0x1ab   : > { %v2465_v57 = vadd.f32 %v2464_v56, %v2463_v52  ;;  %v2528_v58 = vpop.f32.mrb[31].mxu1 }
 0x1ac   : > { %v3498_v61 = vadd.f32 %v2526_v53, %v2462_v48  ;;  %v2529_v62 = vadd.f32 %v2528_v58, %v2527_v54 }
 0x1ae   : > { %v3500_v59 = vadd.f32 %v2529_v62, %v2465_v57 }
 0x1af   : > { %v2546_v4 = vpop.f32.mrb[32].mxu0 }
 0x1b0   : > { %v2547_v6 = vpop.f32.mrb[33].mxu0  ;;  %v2610_v7 = vpop.f32.mrb[32].mxu1 }
 0x1b1   : > { %v2548_v55 = vadd.f32 %v2547_v6, %v2546_v4  ;;  %v2549_v24 = vpop.f32.mrb[34].mxu0  ;;  %v2611_v2 = vpop.f32.mrb[33].mxu1 }
 0x1b2   : > { %v2550_v25 = vpop.f32.mrb[35].mxu0  ;;  %v2612_v11 = vadd.f32 %v2611_v2, %v2610_v7  ;;  %v2613_v60 = vpop.f32.mrb[34].mxu1 }
 0x1b3   : > { %v1682_v29 = vadd.f32 %v2548_v55, %v3470_v10  ;;  %v2551_v34 = vadd.f32 %v2550_v25, %v2549_v24  ;;  %v2614_v46 = vpop.f32.mrb[35].mxu1 }
 0x1b4   : > { %v2615_v51 = vadd.f32 %v2614_v46, %v2613_v60 }
 0x1b5   : > { %v1685_v0 = vadd.f32 %v2551_v34, %v3472_v13  ;;  %v3504_v5 = vadd.f32 %v2612_v11, %v1682_v29 }
 0x1b7   : > { %v2552_v8 = vpop.f32.mrb[36].mxu0  ;;  %v3506_v9 = vadd.f32 %v2615_v51, %v1685_v0 }
 0x1b8   : > { %v2553_v12 = vpop.f32.mrb[37].mxu0  ;;  %v2616_v1 = vpop.f32.mrb[36].mxu1 }
 0x1b9   : > { %v2554_v14 = vadd.f32 %v2553_v12, %v2552_v8  ;;  %v2555_v15 = vpop.f32.mrb[38].mxu0  ;;  %v2617_v16 = vpop.f32.mrb[37].mxu1 }
 0x1ba   : > { %v2556_v17 = vpop.f32.mrb[39].mxu0  ;;  %v2618_v19 = vadd.f32 %v2617_v16, %v2616_v1  ;;  %v2619_v21 = vpop.f32.mrb[38].mxu1 }
 0x1bb   : > { %v1690_v10 = vadd.f32 %v2554_v14, %v3474_v26  ;;  %v2557_v22 = vadd.f32 %v2556_v17, %v2555_v15  ;;  %v2620_v23 = vpop.f32.mrb[39].mxu1 }
 0x1bc   : > { %v2621_v27 = vadd.f32 %v2620_v23, %v2619_v21 }
 0x1bd   : > { %v1693_v13 = vadd.f32 %v2557_v22, %v3476_v28  ;;  %v3510_v30 = vadd.f32 %v2618_v19, %v1690_v10 }
 0x1bf   : > { %v2558_v31 = vpop.f32.mrb[40].mxu0  ;;  %v3512_v32 = vadd.f32 %v2621_v27, %v1693_v13 }
 0x1c0   : > { %v2559_v33 = vpop.f32.mrb[41].mxu0  ;;  %v2622_v35 = vpop.f32.mrb[40].mxu1 }
 0x1c1   : > { %v2560_v36 = vadd.f32 %v2559_v33, %v2558_v31  ;;  %v2561_v37 = vpop.f32.mrb[42].mxu0  ;;  %v2623_v40 = vpop.f32.mrb[41].mxu1 }
 0x1c2   : > { %v2562_v42 = vpop.f32.mrb[43].mxu0  ;;  %v2624_v43 = vadd.f32 %v2623_v40, %v2622_v35  ;;  %v2625_v47 = vpop.f32.mrb[42].mxu1 }
 0x1c3   : > { %v1698_v26 = vadd.f32 %v2560_v36, %v3478_v44  ;;  %v2563_v48 = vadd.f32 %v2562_v42, %v2561_v37  ;;  %v2626_v50 = vpop.f32.mrb[43].mxu1 }
 0x1c4   : > { %v2627_v52 = vadd.f32 %v2626_v50, %v2625_v47 }
 0x1c5   : > { %v1701_v28 = vadd.f32 %v2563_v48, %v3480_v45  ;;  %v3516_v53 = vadd.f32 %v2624_v43, %v1698_v26 }
 0x1c7   : > { %v2564_v54 = vpop.f32.mrb[44].mxu0  ;;  %v3518_v56 = vadd.f32 %v2627_v52, %v1701_v28 }
 0x1c8   : > { %v2565_v57 = vpop.f32.mrb[45].mxu0  ;;  %v2628_v58 = vpop.f32.mrb[44].mxu1 }
 0x1c9   : > { %v2566_v62 = vadd.f32 %v2565_v57, %v2564_v54  ;;  %v2567_v4 = vpop.f32.mrb[46].mxu0  ;;  %v2629_v6 = vpop.f32.mrb[45].mxu1 }
 0x1ca   : > { %v2568_v7 = vpop.f32.mrb[47].mxu0  ;;  %v2630_v55 = vadd.f32 %v2629_v6, %v2628_v58  ;;  %v2631_v24 = vpop.f32.mrb[46].mxu1 }
 0x1cb   : > { %v1706_v44 = vadd.f32 %v2566_v62, %v3482_v63  ;;  %v2569_v2 = vadd.f32 %v2568_v7, %v2567_v4  ;;  %v2632_v25 = vpop.f32.mrb[47].mxu1 }
 0x1cc   : > { %v2633_v11 = vadd.f32 %v2632_v25, %v2631_v24 }
 0x1cd   : > { %v1709_v45 = vadd.f32 %v2569_v2, %v3484_v3  ;;  %v3522_v60 = vadd.f32 %v2630_v55, %v1706_v44 }
 0x1cf   : > { %v2570_v29 = vpop.f32.mrb[48].mxu0  ;;  %v3524_v34 = vadd.f32 %v2633_v11, %v1709_v45 }
 0x1d0   : > { %v2571_v46 = vpop.f32.mrb[49].mxu0  ;;  %v2634_v51 = vpop.f32.mrb[48].mxu1 }
 0x1d1   : > { %v2572_v0 = vadd.f32 %v2571_v46, %v2570_v29  ;;  %v2573_v8 = vpop.f32.mrb[50].mxu0  ;;  %v2635_v12 = vpop.f32.mrb[49].mxu1 }
 0x1d2   : > { %v2574_v1 = vpop.f32.mrb[51].mxu0  ;;  %v2636_v14 = vadd.f32 %v2635_v12, %v2634_v51  ;;  %v2637_v15 = vpop.f32.mrb[50].mxu1 }
 0x1d3   : > { %v1714_v63 = vadd.f32 %v2572_v0, %v3486_v38  ;;  %v2575_v16 = vadd.f32 %v2574_v1, %v2573_v8  ;;  %v2638_v17 = vpop.f32.mrb[51].mxu1 }
 0x1d4   : > { %v2639_v19 = vadd.f32 %v2638_v17, %v2637_v15 }
 0x1d5   : > { %v1717_v3 = vadd.f32 %v2575_v16, %v3488_v49  ;;  %v1811_v21 = vadd.f32 %v2636_v14, %v1714_v63 }
 0x1d7   : > { %v2576_v10 = vpop.f32.mrb[52].mxu0  ;;  %v3528_v22 = vadd.f32 %v2639_v19, %v1717_v3 }
 0x1d8   : > { %v2577_v23 = vpop.f32.mrb[53].mxu0  ;;  %v2640_v27 = vpop.f32.mrb[52].mxu1 }
 0x1d9   : > { %v2578_v13 = vadd.f32 %v2577_v23, %v2576_v10  ;;  %v2579_v31 = vpop.f32.mrb[54].mxu0  ;;  %v2641_v33 = vpop.f32.mrb[53].mxu1 }
 0x1da   : > { %v2580_v35 = vpop.f32.mrb[55].mxu0  ;;  %v2642_v36 = vadd.f32 %v2641_v33, %v2640_v27  ;;  %v2643_v37 = vpop.f32.mrb[54].mxu1 }
 0x1db   : > { %v1722_v40 = vadd.f32 %v2578_v13, %v3490_v18  ;;  %v2581_v38 = vadd.f32 %v2580_v35, %v2579_v31  ;;  %v2644_v42 = vpop.f32.mrb[55].mxu1 }
 0x1dc   : > { %v2645_v43 = vadd.f32 %v2644_v42, %v2643_v37 }
 0x1dd   : > { %v1725_v47 = vadd.f32 %v2581_v38, %v3492_v20  ;;  %v1819_v49 = vadd.f32 %v2642_v36, %v1722_v40 }
 0x1df   : > { %v2582_v26 = vpop.f32.mrb[56].mxu0  ;;  %v1822_v48 = vadd.f32 %v2645_v43, %v1725_v47 }
 0x1e0   : > { %v2583_v50 = vpop.f32.mrb[57].mxu0  ;;  %v2646_v52 = vpop.f32.mrb[56].mxu1 }
 0x1e1   : > { %v2584_v28 = vadd.f32 %v2583_v50, %v2582_v26  ;;  %v2585_v54 = vpop.f32.mrb[58].mxu0  ;;  %v2647_v57 = vpop.f32.mrb[57].mxu1 }
 0x1e2   : > { %v2586_v58 = vpop.f32.mrb[59].mxu0  ;;  %v2648_v62 = vadd.f32 %v2647_v57, %v2646_v52  ;;  %v2649_v4 = vpop.f32.mrb[58].mxu1 }
 0x1e3   : > { %v1730_v6 = vadd.f32 %v2584_v28, %v3494_v39  ;;  %v2587_v7 = vadd.f32 %v2586_v58, %v2585_v54  ;;  %v2650_v18 = vpop.f32.mrb[59].mxu1 }
 0x1e4   : > { %v2651_v55 = vadd.f32 %v2650_v18, %v2649_v4 }
 0x1e5   : > { %v1733_v24 = vadd.f32 %v2587_v7, %v3496_v41  ;;  %v1827_v44 = vadd.f32 %v2648_v62, %v1730_v6 }
 0x1e7   : > { %v2588_v20 = vpop.f32.mrb[60].mxu0  ;;  %v3534_v2 = vadd.f32 %v2651_v55, %v1733_v24 }
 0x1e8   : > { %v2589_v25 = vpop.f32.mrb[61].mxu0  ;;  %v2652_v11 = vpop.f32.mrb[60].mxu1 }
 0x1e9   : > { %v2590_v45 = vadd.f32 %v2589_v25, %v2588_v20  ;;  %v2591_v29 = vpop.f32.mrb[62].mxu0  ;;  %v2653_v46 = vpop.f32.mrb[61].mxu1 }
 0x1ea   : > { %v2592_v51 = vpop.f32.mrb[63].mxu0  ;;  %v2654_v0 = vadd.f32 %v2653_v46, %v2652_v11  ;;  %v2655_v8 = vpop.f32.mrb[62].mxu1 }
 0x1eb   : > { %v1738_v39 = vadd.f32 %v2590_v45, %v3498_v61  ;;  %v2593_v12 = vadd.f32 %v2592_v51, %v2591_v29  ;;  %v2656_v1 = vpop.f32.mrb[63].mxu1 }
 0x1ec   : > { %v2657_v14 = vadd.f32 %v2656_v1, %v2655_v8 }
 0x1ed   : > { %v1741_v41 = vadd.f32 %v2593_v12, %v3500_v59  ;;  %v1835_v15 = vadd.f32 %v2654_v0, %v1738_v39 }
 0x1ef   : > { %v2692_v63 = vpop.f32.mrb[64].mxu0  ;;  %v1838_v16 = vadd.f32 %v2657_v14, %v1741_v41 }
 0x1f0   : > { %v1884_v17 = vadd.f32 %v2692_v63, %v3510_v30  ;;  %v2700_v19 = vpop.f32.mrb[64].mxu1  ;;  %v1875_v3 = vpop.f32.mrb[65].mxu0 }
 0x1f1   : > { %v3539_v10 = vadd.f32 %v2700_v19, %v1819_v49  ;;  %v1876_v61 = vadd.f32 %v1875_v3, %v3504_v5  ;;  %v1907_v23 = vpop.f32.mrb[65].mxu1  ;;  %v2693_v27 = vpop.f32.mrb[66].mxu0 }
 0x1f2   : > { %1940 = vst [vmem:[%s2961_s5 + $0x10] sm:$0xff] %v1884_v17  ;;  %v1908_v59 = vadd.f32 %v1907_v23, %v1811_v21  ;;  %v1887_v13 = vadd.f32 %v2693_v27, %v3512_v32  ;;  %v2701_v31 = vpop.f32.mrb[66].mxu1  ;;  %v1878_v33 = vpop.f32.mrb[67].mxu0  ;;  %v1977_v40 = vmul.f32 %v1884_v17, %v1884_v17 }
 0x1f3   : > { %1948 = vst [vmem:[%s2961_s5 + $0x50] sm:$0xff] %v3539_v10  ;;  %1938 = vst [vmem:[%s2961_s5] sm:$0xff] %v1876_v61  ;;  %v3547_v30 = vadd.f32 %v2701_v31, %v1822_v48  ;;  %v1879_v35 = vadd.f32 %v1878_v33, %v3506_v9  ;;  %v1910_v36 = vpop.f32.mrb[67].mxu1  ;;  %v1975_v37 = vmul.f32 %v1876_v61, %v1876_v61 }
 0x1f4   : > { %1946 = vst [vmem:[%s2961_s5 + $0x40] sm:$0xff] %v1908_v59  ;;  %1941 = vst [vmem:[%s2961_s5 + $0x18] sm:$0xff] %v1887_v13  ;;  %v1911_v5 = vadd.f32 %v1910_v36, %v3528_v22  ;;  %v1978_v47 = vmul.f32 %v1887_v13, %v1887_v13  ;;  %v1983_v0 = vmul.f32 %v1908_v59, %v1908_v59 }
 0x1f5   : > { %1949 = vst [vmem:[%s2961_s5 + $0x58] sm:$0xff] %v3547_v30  ;;  %1939 = vst [vmem:[%s2961_s5 + $0x8] sm:$0xff] %v1879_v35  ;;  %v1954_v32 = vadd.f32 %v1879_v35, %v1876_v61  ;;  %v1976_v21 = vmul.f32 %v1879_v35, %v1879_v35 }
 0x1f6   : > { %1947 = vst [vmem:[%s2961_s5 + $0x48] sm:$0xff] %v1911_v5  ;;  %v1984_v12 = vmul.f32 %v1911_v5, %v1911_v5 }
 0x1f7   : > { %v1955_v38 = vadd.f32 %v1954_v32, %v1884_v17  ;;  %v1991_v42 = vadd.f32 %v1976_v21, %v1975_v37  ;;  %v2696_v43 = vpop.f32.mrb[68].mxu0 }
 0x1f8   : > { %v1900_v9 = vadd.f32 %v2696_v43, %v3522_v60  ;;  %v2704_v49 = vpop.f32.mrb[68].mxu1  ;;  %v1891_v26 = vpop.f32.mrb[69].mxu0 }
 0x1f9   : > { %v1992_v22 = vadd.f32 %v1991_v42, %v1977_v40  ;;  %v1932_v48 = vadd.f32 %v2704_v49, %v1835_v15  ;;  %v1892_v50 = vadd.f32 %v1891_v26, %v3516_v53  ;;  %v1956_v52 = vadd.f32 %v1955_v38, %v1887_v13  ;;  %v1923_v28 = vpop.f32.mrb[69].mxu1  ;;  %v2697_v54 = vpop.f32.mrb[70].mxu0 }
 0x1fa   : > { %1944 = vst [vmem:[%s2961_s5 + $0x30] sm:$0xff] %v1900_v9  ;;  %v1924_v57 = vadd.f32 %v1923_v28, %v1827_v44  ;;  %v1903_v58 = vadd.f32 %v2697_v54, %v3524_v34  ;;  %v2705_v62 = vpop.f32.mrb[70].mxu1  ;;  %v1894_v4 = vpop.f32.mrb[71].mxu0  ;;  %v1981_v25 = vmul.f32 %v1900_v9, %v1900_v9  ;;  %v1986_v15 = vmul.f32 %v3547_v30, %v3547_v30 }
 0x1fb   : > { %1952 = vst [vmem:[%s2961_s5 + $0x70] sm:$0xff] %v1932_v48  ;;  %1942 = vst [vmem:[%s2961_s5 + $0x20] sm:$0xff] %v1892_v50  ;;  %v1957_v60 = vadd.f32 %v1956_v52, %v1892_v50  ;;  %v1979_v6 = vmul.f32 %v1892_v50, %v1892_v50  ;;  %v1993_v7 = vadd.f32 %v1992_v22, %v1978_v47  ;;  %v1926_v18 = vpop.f32.mrb[71].mxu1 }
 0x1fc   : > { %1950 = vst [vmem:[%s2961_s5 + $0x60] sm:$0xff] %v1924_v57  ;;  %1945 = vst [vmem:[%s2961_s5 + $0x38] sm:$0xff] %v1903_v58  ;;  %v1935_v53 = vadd.f32 %v2705_v62, %v1838_v16  ;;  %v1895_v55 = vadd.f32 %v1894_v4, %v3518_v56  ;;  %v1927_v44 = vadd.f32 %v1926_v18, %v3534_v2 }
 0x1fd   : > { %v1994_v24 = vadd.f32 %v1993_v7, %v1979_v6  ;;  %v1982_v29 = vmul.f32 %v1903_v58, %v1903_v58  ;;  %v1985_v2 = vmul.f32 %v3539_v10, %v3539_v10  ;;  %v1987_v17 = vmul.f32 %v1924_v57, %v1924_v57 }
 0x1fe   : > { %1953 = vst [vmem:[%s2961_s5 + $0x78] sm:$0xff] %v1935_v53  ;;  %1943 = vst [vmem:[%s2961_s5 + $0x28] sm:$0xff] %v1895_v55  ;;  %v1958_v34 = vadd.f32 %v1957_v60, %v1895_v55  ;;  %v1980_v20 = vmul.f32 %v1895_v55, %v1895_v55  ;;  %v1988_v23 = vmul.f32 %v1927_v44, %v1927_v44 }
 0x1ff   : > { %1951 = vst [vmem:[%s2961_s5 + $0x68] sm:$0xff] %v1927_v44  ;;  %v1990_v33 = vmul.f32 %v1935_v53, %v1935_v53 }
 0x200   : > { %v1959_v11 = vadd.f32 %v1958_v34, %v1900_v9  ;;  %v1995_v45 = vadd.f32 %v1994_v24, %v1980_v20 }
 0x202   : > { %v1960_v46 = vadd.f32 %v1959_v11, %v1903_v58  ;;  %v1996_v51 = vadd.f32 %v1995_v45, %v1981_v25 }
 0x204   : > { %v1961_v8 = vadd.f32 %v1960_v46, %v1908_v59  ;;  %v1997_v39 = vadd.f32 %v1996_v51, %v1982_v29  ;;  %v1989_v59 = vmul.f32 %v1932_v48, %v1932_v48 }
 0x206   : > { %v1998_v1 = vadd.f32 %v1997_v39, %v1983_v0  ;;  %v1962_v56 = vadd.f32 %v1961_v8, %v1911_v5 }
 0x208   : > { %v1963_v14 = vadd.f32 %v1962_v56, %v3539_v10  ;;  %v1999_v41 = vadd.f32 %v1998_v1, %v1984_v12 }
 0x20a   : > { %v1964_v63 = vadd.f32 %v1963_v14, %v3547_v30  ;;  %v2000_v16 = vadd.f32 %v1999_v41, %v1985_v2 }
 0x20c   : > { %v1965_v19 = vadd.f32 %v1964_v63, %v1924_v57  ;;  %v2001_v3 = vadd.f32 %v2000_v16, %v1986_v15 }
 0x20e   : > { %v1966_v61 = vadd.f32 %v1965_v19, %v1927_v44  ;;  %v2002_v27 = vadd.f32 %v2001_v3, %v1987_v17 }
 0x210   : > { %v1967_v13 = vadd.f32 %v1966_v61, %v1932_v48  ;;  %v2003_v31 = vadd.f32 %v2002_v27, %v1988_v23 }
 0x212   : > { %v1968_v35 = vadd.f32 %v1967_v13, %v1935_v53  ;;  %v2004_v10 = vadd.f32 %v2003_v31, %v1989_v59 }
 0x214   : > { %v1969_v36 = vrot.slane %v1968_v35, 4  ;;  %v2005_v5 = vadd.f32 %v2004_v10, %v1990_v33 }
 0x216   : > { %v1970_v37 = vadd.f32 %v1969_v36, %v1968_v35  ;;  %v2006_v32 = vrot.slane %v2005_v5, 4 }
 0x218   : > { %v1971_v21 = vrot.slane %v1970_v37, 2  ;;  %v2007_v30 = vadd.f32 %v2006_v32, %v2005_v5 }
 0x21a   : > { %v1972_v40 = vadd.f32 %v1971_v21, %v1970_v37  ;;  %v2008_v38 = vrot.slane %v2007_v30, 2 }
 0x21c   : > { %v1973_v42 = vrot.slane %v1972_v40, 1  ;;  %v2009_v43 = vadd.f32 %v2008_v38, %v2007_v30 }
 0x21e   : > { %v2010_v47 = vrot.slane %v2009_v43, 1  ;;  %v1974_v9 = vadd.f32 %v1973_v42, %v1972_v40 }
 0x220   : > { %v2011_v49 = vadd.f32 %v2010_v47, %v2009_v43 }
 0x222   : > { %v2013_v26 = vsel %vm661_vm0, %v1974_v9, %v2011_v49 }
 0x223   : > { %2014 = vst [vmem:[%s2956_s29] sm:$0x3] %v2013_v26 }
 0x224 PF: > { %s14_s16 = sadd.s32 1, %s2890_s16   ;;  %s3601_s12 = smov %s2882_s14 }
 0x225   : > { %p11_p8 = scmp.ge.s32.totalorder %s14_s16, 6   ;;  %s3602_s13 = smov %s2886_s15 }
 0x226   : > { %s3603_s14 = smov %s3606_s17  ;;  %s3604_s15 = smov %s3610_s18 }
 0x227   :  { %13 = sbr.rel (!%p11_p8) target bundleno = 3 (0x3), region = 381 }
 0x22e   :  { %2063 = vsyncmov [#allocation4] }
 0x231   :  { %s2064_s29 = vpop.sfrf %2063 }
 0x232   :  { %p2392_p10 = scmp.ne.s32.totalorder %s2064_s29, 0 }
 0x234   :  { %2068 = shalt.err (%p2392_p10)  }
 0x235   :  { %2070 = vsyncmov [#allocation4 + $0x1] }
 0x238   :  { %s2071_s5 = vpop.sfrf %2070 }
 0x239   :  { %p2393_p11 = scmp.ne.s32.totalorder %s2071_s5, 0 }
 0x23b   :  { %2075 = shalt.err (%p2393_p11)  }
 0x23c   :  { %2077 = vsyncmov [#allocation4 + $0x2] }
 0x23f   :  { %s2078_s11 = vpop.sfrf %2077 }
 0x240   :  { %p2394_p12 = scmp.ne.s32.totalorder %s2078_s11, 0 }
 0x242   :  { %2082 = shalt.err (%p2394_p12)  }
 0x243   :  { %2084 = vsyncmov [#allocation4 + $0x3] }
 0x246   :  { %s2085_s9 = vpop.sfrf %2084 }
 0x247   :  { %p2395_p13 = scmp.ne.s32.totalorder %s2085_s9, 0 }
 0x249   :  { %2089 = shalt.err (%p2395_p13)  }
 0x24a   :  { %2091 = vsyncmov [#allocation4 + $0x4] }
 0x24d   :  { %s2092_s17 = vpop.sfrf %2091 }
 0x24e   :  { %p2396_p0 = scmp.ne.s32.totalorder %s2092_s17, 0 }
 0x250   :  { %2096 = shalt.err (%p2396_p0)  }
 0x251   :  { %2098 = vsyncmov [#allocation4 + $0x5] }
 0x254   :  { %s2099_s0 = vpop.sfrf %2098 }
 0x255   :  { %p2397_p1 = scmp.ne.s32.totalorder %s2099_s0, 0 }
 0x257   :  { %2103 = shalt.err (%p2397_p1)  }

</bundles_post_ra>
